<compile_context>
chip_gen: v7x
topology: tpu7x:2x2x1
jax: 0.10.0
libtpu: 0.0.40
codegen_flags: <defaults>
</compile_context>

<pallas_src>
import functools

import jax
import jax.numpy as jnp
from jax.experimental import pallas as pl
from jax.experimental.pallas import tpu as pltpu


_VMEM = functools.partial(pl.BlockSpec, memory_space=pltpu.MemorySpace.VMEM)
_PARALLEL_1D = pltpu.CompilerParams(dimension_semantics=("parallel",))


def _gelu(x):
    # TODO(synk): PyTorch nn.GELU() default is exact-erf; tanh approximation used
    # here (rides the EUP slot, ~1e-3 max abs difference from the exact form).
    c = 0.7978845608028654  # sqrt(2/pi)
    return 0.5 * x * (1.0 + jnp.tanh(c * (x + 0.044715 * x * x * x)))


# ----------------------------------------------------------------------------
# Pallas kernels
# ----------------------------------------------------------------------------
def _stem_kernel(x_ref, w_ref, scale_ref, shift_ref, o_ref, *, Ho, Wo, Cin):
    """3x3 / stride-1 / pad-0 conv + folded BN; im2col taps formed in-kernel."""
    x = x_ref[0]                                   # (H, W, Cin) f32
    w = w_ref[...]                                 # (9, Cin, Cout) bf16, hoisted
    acc = None
    for i in range(3):
        for j in range(3):
            tap = x[i:i + Ho, j:j + Wo, :].reshape(Ho * Wo, Cin)
            y = jnp.dot(tap.astype(jnp.bfloat16), w[i * 3 + j],
                        preferred_element_type=jnp.float32)
            acc = y if acc is None else acc + y
    o_ref[0] = (acc * scale_ref[...] + shift_ref[...]).astype(o_ref.dtype)


def _down2_kernel(x_ref, w_ref, scale_ref, shift_ref, o_ref, *, Ho, Wo, Cin):
    """2x2 / stride-2 conv + folded BN; input arrives as a free (Ho,2,Wo,2*Cin) view."""
    x = x_ref[0]                                   # (Ho, 2, Wo, 2*Cin) f32
    w = w_ref[...]                                 # (4, Cin, Cout) bf16, hoisted
    acc = None
    for i in range(2):
        for j in range(2):
            tap = x[:, i, :, j * Cin:(j + 1) * Cin].reshape(Ho * Wo, Cin)
            y = jnp.dot(tap.astype(jnp.bfloat16), w[i * 2 + j],
                        preferred_element_type=jnp.float32)
            acc = y if acc is None else acc + y
    o_ref[0] = (acc * scale_ref[...] + shift_ref[...]).astype(o_ref.dtype)


def _block_kernel(x_ref, w1_ref, s1_ref, b1_ref, wd_ref, sd_ref, bd_ref,
                  w2_ref, s2_ref, b2_ref, o_ref, hpad_ref, *, H, W, C, CE):
    """Fused inverted-residual block, all intermediates VMEM-resident."""
    xf = x_ref[0]                                            # (H*W, C) f32
    # 1x1 expand (MXU bf16 in / f32 acc) + folded BN + GELU
    h = jnp.dot(xf.astype(jnp.bfloat16), w1_ref[...],
                preferred_element_type=jnp.float32)
    h = _gelu(h * s1_ref[...] + b1_ref[...])                 # (H*W, CE) f32
    # Depthwise 3x3: halo padding done in a VMEM scratch (no jnp.pad / HBM copy).
    hpad_ref[...] = jnp.zeros_like(hpad_ref)
    hpad_ref[1:H + 1, 1:W + 1, :] = h.reshape(H, W, CE)
    wd = wd_ref[...]                                         # (9, CE) f32, hoisted
    acc = None
    for kh in range(3):
        for kw in range(3):
            k = kh * 3 + kw
            tap = hpad_ref[kh:kh + H, kw:kw + W, :] * wd[k:k + 1, :]
            acc = tap if acc is None else acc + tap
    hd = _gelu(acc * sd_ref[...] + bd_ref[...])              # (H, W, CE) f32
    # 1x1 project + folded BN + residual add (fused)
    y = jnp.dot(hd.reshape(H * W, CE).astype(jnp.bfloat16), w2_ref[...],
                preferred_element_type=jnp.float32)
    o_ref[0] = (y * s2_ref[...] + b2_ref[...] + xf).astype(o_ref.dtype)


def _head_kernel(x_ref, g_ref, b_ref, w_ref, bias_ref, o_ref, *, hw, eps):
    """Global average pool over H*W, LayerNorm over channels, Linear head."""
    x = x_ref[...]                                   # (N, H*W, C)
    pooled = jnp.sum(x, axis=1) * (1.0 / hw)         # == x.mean([-1,-2]) in NCHW
    mu = jnp.mean(pooled, axis=-1, keepdims=True)
    var = jnp.mean(jnp.square(pooled - mu), axis=-1, keepdims=True)
    xn = (pooled - mu) * jax.lax.rsqrt(var + eps)
    xn = xn * g_ref[...] + b_ref[...]
    y = jnp.dot(xn.astype(jnp.bfloat16), w_ref[...],
                preferred_element_type=jnp.float32) + bias_ref[...]
    o_ref[...] = y.astype(o_ref.dtype)


# ----------------------------------------------------------------------------
# Wrappers (all inter-kernel reshapes are free row-major bitcasts)
# ----------------------------------------------------------------------------
def _apply_stem(x, p):
    N, H, W, Cin = x.shape
    Ho, Wo = H - 2, W - 2
    Cout = p["w"].shape[-1]
    kernel = functools.partial(_stem_kernel, Ho=Ho, Wo=Wo, Cin=Cin)
    y = pl.pallas_call(
        kernel,
        out_shape=jax.ShapeDtypeStruct((N, Ho * Wo, Cout), jnp.float32),
        grid=(N,),
        in_specs=[
            pl.BlockSpec((1, H, W, Cin), lambda n: (n, 0, 0, 0)),
            pl.BlockSpec((9, Cin, Cout), lambda n: (0, 0, 0)),
            pl.BlockSpec((1, Cout), lambda n: (0, 0)),
            pl.BlockSpec((1, Cout), lambda n: (0, 0)),
        ],
        out_specs=pl.BlockSpec((1, Ho * Wo, Cout), lambda n: (n, 0, 0)),
        compiler_params=_PARALLEL_1D,
    )(x, p["w"], p["scale"], p["shift"])
    return y.reshape(N, Ho, Wo, Cout)


def _apply_down2(x, p):
    N, H, W, Cin = x.shape
    Ho, Wo = H // 2, W // 2
    Cout = p["w"].shape[-1]
    xr = x.reshape(N, Ho, 2, Wo, 2 * Cin)     # layout-preserving view, no HBM copy
    kernel = functools.partial(_down2_kernel, Ho=Ho, Wo=Wo, Cin=Cin)
    y = pl.pallas_call(
        kernel,
        out_shape=jax.ShapeDtypeStruct((N, Ho * Wo, Cout), jnp.float32),
        grid=(N,),
        in_specs=[
            pl.BlockSpec((1, Ho, 2, Wo, 2 * Cin), lambda n: (n, 0, 0, 0, 0)),
            pl.BlockSpec((4, Cin, Cout), lambda n: (0, 0, 0)),
            pl.BlockSpec((1, Cout), lambda n: (0, 0)),
            pl.BlockSpec((1, Cout), lambda n: (0, 0)),
        ],
        out_specs=pl.BlockSpec((1, Ho * Wo, Cout), lambda n: (n, 0, 0)),
        compiler_params=_PARALLEL_1D,
    )(xr, p["w"], p["scale"], p["shift"])
    return y.reshape(N, Ho, Wo, Cout)


def _apply_block(x, p):
    # DropPath(0.0) / eval mode -> identity; residual add fused in-kernel.
    N, H, W, C = x.shape
    CE = p["w1"].shape[1]
    xf = x.reshape(N, H * W, C)
    kernel = functools.partial(_block_kernel, H=H, W=W, C=C, CE=CE)
    y = pl.pallas_call(
        kernel,
        out_shape=jax.ShapeDtypeStruct((N, H * W, C), jnp.float32),
        grid=(N,),
        in_specs=[
            pl.BlockSpec((1, H * W, C), lambda n: (n, 0, 0)),
            pl.BlockSpec((C, CE), lambda n: (0, 0)),
            pl.BlockSpec((1, CE), lambda n: (0, 0)),
            pl.BlockSpec((1, CE), lambda n: (0, 0)),
            pl.BlockSpec((9, CE), lambda n: (0, 0)),
            pl.BlockSpec((1, CE), lambda n: (0, 0)),
            pl.BlockSpec((1, CE), lambda n: (0, 0)),
            pl.BlockSpec((CE, C), lambda n: (0, 0)),
            pl.BlockSpec((1, C), lambda n: (0, 0)),
            pl.BlockSpec((1, C), lambda n: (0, 0)),
        ],
        out_specs=pl.BlockSpec((1, H * W, C), lambda n: (n, 0, 0)),
        scratch_shapes=[pltpu.VMEM((H + 2, W + 2, CE), jnp.float32)],
        compiler_params=_PARALLEL_1D,
    )(xf, p["w1"], p["s1"], p["b1"], p["wd"], p["sd"], p["bd"],
      p["w2"], p["s2"], p["b2"])
    # TODO(synk): for non-toy spatial sizes, additionally tile H*W (with dw-conv
    # halo exchange) so per-batch blocks stay under v7x's 64 MiB VMEM.
    return y.reshape(N, H, W, C)


def pallas_head(x, gamma, beta, w, b):
    N, H, W, C = x.shape
    nc = w.shape[1]
    xf = x.reshape(N, H * W, C)
    kernel = functools.partial(_head_kernel, hw=float(H * W), eps=1e-5)
    return pl.pallas_call(
        kernel,
        out_shape=jax.ShapeDtypeStruct((N, nc), jnp.float32),
        in_specs=[_VMEM() for _ in range(5)],
        out_specs=_VMEM(),
    )(xf, gamma, beta, w, b)


# ----------------------------------------------------------------------------
# BN folding, parameter init, forward pass
# ----------------------------------------------------------------------------
def _bn_affine(gamma, beta, mean, var, conv_bias=None, eps=1e-5):
    scale = gamma / jnp.sqrt(var + eps)
    shift = beta - scale * mean
    if conv_bias is not None:
        shift = shift + scale * conv_bias
    return scale, shift


def init_params(key, dims, blocks, num_classes):
    it = iter(jax.random.split(key, 512))

    def nk():
        return next(it)

    def rnorm(shape, scale=0.1):
        return scale * jax.random.normal(nk(), shape, jnp.float32)

    def bn_stats(c):
        gamma = 1.0 + 0.1 * jax.random.normal(nk(), (c,), jnp.float32)
        beta = 0.1 * jax.random.normal(nk(), (c,), jnp.float32)
        mean = 0.1 * jax.random.normal(nk(), (c,), jnp.float32)
        var = 1.0 + jax.random.uniform(nk(), (c,), jnp.float32)
        return gamma, beta, mean, var

    params = {"downsamples": [], "stages": []}
    in_dims = [3] + list(dims[:-1])
    for i in range(4):
        cin, cout = in_dims[i], dims[i]
        kh = kw = 3 if i == 0 else 2
        w_pt = rnorm((cout, cin, kh, kw))                     # PyTorch OIHW
        bias = rnorm((cout,))                                 # Downsample conv bias=True
        # tap-major (kh*kw, cin, cout) layout for in-kernel per-tap MXU matmuls
        w_taps = jnp.transpose(w_pt, (2, 3, 1, 0)).reshape(kh * kw, cin, cout)
        scale, shift = _bn_affine(*bn_stats(cout), conv_bias=bias)
        params["downsamples"].append(dict(
            w=w_taps.astype(jnp.bfloat16),
            scale=scale.reshape(1, cout), shift=shift.reshape(1, cout)))

        stage = []
        c = dims[i]
        ce = c * 2                                            # expand_ratio = 2
        for _ in range(blocks[i]):
            w1 = rnorm((ce, c, 1, 1))[:, :, 0, 0].T           # (c, ce), bias=False
            s1, b1 = _bn_affine(*bn_stats(ce))
            wd = rnorm((ce, 1, 3, 3))                         # depthwise, groups=ce
            wd = jnp.transpose(wd[:, 0], (1, 2, 0)).reshape(9, ce)
            sd, bd = _bn_affine(*bn_stats(ce))
            w2 = rnorm((c, ce, 1, 1))[:, :, 0, 0].T           # (ce, c), bias=False
            s2, b2 = _bn_affine(*bn_stats(c))
            stage.append(dict(
                w1=w1.astype(jnp.bfloat16), s1=s1.reshape(1, ce), b1=b1.reshape(1, ce),
                wd=wd, sd=sd.reshape(1, ce), bd=bd.reshape(1, ce),
                w2=w2.astype(jnp.bfloat16), s2=s2.reshape(1, c), b2=b2.reshape(1, c)))
        params["stages"].append(stage)

    c_last = dims[-1]
    params["ln_gamma"] = (1.0 + 0.1 * jax.random.normal(nk(), (c_last,), jnp.float32)
                          ).reshape(1, c_last)
    params["ln_beta"] = (0.1 * jax.random.normal(nk(), (c_last,), jnp.float32)
                         ).reshape(1, c_last)
    params["head_w"] = rnorm((num_classes, c_last)).T.astype(jnp.bfloat16)  # (C, nc)
    params["head_b"] = rnorm((num_classes,)).reshape(1, num_classes)
    return params


def convnet_forward(x_nchw, params):
    # Input NCHW (PyTorch convention) -> NHWC internally (channels on lanes).
    x = jnp.transpose(x_nchw, (0, 2, 3, 1)).astype(jnp.float32)
    for i in range(4):
        p = params["downsamples"][i]
        x = _apply_stem(x, p) if i == 0 else _apply_down2(x, p)
        for blk in params["stages"][i]:
            x = _apply_block(x, blk)
    # nn.Dropout / DropPath are identity in eval mode.
    # TODO(synk): training-mode Dropout / DropPath (stochastic) not implemented.
    return pallas_head(x, params["ln_gamma"], params["ln_beta"],
                       params["head_w"], params["head_b"])


if __name__ == "__main__":
    key = jax.random.PRNGKey(0)
    kx, kp = jax.random.split(key)

    dims = [8, 16, 32, 64]
    blocks = [1, 1, 2, 1]
    num_classes = 10
    # droppath = 0.0, dropout = 0.0  (both identity at inference)

    # NCHW input, 3 channels (stem is Conv2d(3, dims[0], 3, stride=1, padding=0)):
    # spatial 18 -> 16 -> 8 -> 4 -> 2 through the four downsample stages.
    x = jax.random.normal(kx, (2, 3, 18, 18), jnp.float32)
    params = init_params(kp, dims, blocks, num_classes)

    logits = jax.jit(convnet_forward)(x, params)
    jax.block_until_ready(logits)
    assert logits.shape == (2, num_classes), logits.shape
    print("KERNEL_OK")
</pallas_src>

<mosaic_0001>
module attributes {stable_mosaic.version = 11 : i64} {
  func.func @_stem_kernel(%arg0: i32, %arg1: memref<1x18x18x3xf32, #tpu.memory_space<vmem>>, %arg2: memref<9x3x8xbf16, #tpu.memory_space<vmem>>, %arg3: memref<1x8xf32, #tpu.memory_space<vmem>>, %arg4: memref<1x8xf32, #tpu.memory_space<vmem>>, %arg5: memref<1x256x8xf32, #tpu.memory_space<vmem>>) attributes {dimension_semantics = [#tpu.dimension_semantics<parallel>], iteration_bounds = array<i64: 2>, scalar_prefetch = 0 : i64, scratch_operands = 0 : i64, tpu.core_type = #tpu.core_type<tc>, window_params = [{transform_indices = @transform_0, window_bounds = array<i64: 1, 18, 18, 3>}, {pipeline_mode = #tpu.pipeline_mode<synchronous>, transform_indices = @transform_1, window_bounds = array<i64: 9, 3, 8>}, {pipeline_mode = #tpu.pipeline_mode<synchronous>, transform_indices = @transform_2, window_bounds = array<i64: 1, 8>}, {pipeline_mode = #tpu.pipeline_mode<synchronous>, transform_indices = @transform_3, window_bounds = array<i64: 1, 8>}, {transform_indices = @transform_4, window_bounds = array<i64: 1, 256, 8>}]} {
    %c0 = arith.constant 0 : index
    %c0_0 = arith.constant 0 : index
    %c0_1 = arith.constant 0 : index
    %c0_2 = arith.constant 0 : index
    %0 = vector.load %arg1[%c0, %c0_0, %c0_1, %c0_2] : memref<1x18x18x3xf32, #tpu.memory_space<vmem>>, vector<1x18x18x3xf32>
    %1 = vector.shape_cast %0 : vector<1x18x18x3xf32> to vector<18x18x3xf32>
    %c0_3 = arith.constant 0 : index
    %c0_4 = arith.constant 0 : index
    %c0_5 = arith.constant 0 : index
    %2 = vector.load %arg2[%c0_3, %c0_4, %c0_5] : memref<9x3x8xbf16, #tpu.memory_space<vmem>>, vector<9x3x8xbf16>
    %3 = vector.extract_strided_slice %1 {offsets = [0, 0, 0], sizes = [16, 16, 3], strides = [1, 1, 1]} : vector<18x18x3xf32> to vector<16x16x3xf32>
    %4 = vector.shape_cast %3 : vector<16x16x3xf32> to vector<256x3xf32>
    %5 = arith.truncf %4 : vector<256x3xf32> to vector<256x3xbf16>
    %6 = vector.extract_strided_slice %2 {offsets = [0, 0, 0], sizes = [1, 3, 8], strides = [1, 1, 1]} : vector<9x3x8xbf16> to vector<1x3x8xbf16>
    %7 = vector.shape_cast %6 : vector<1x3x8xbf16> to vector<3x8xbf16>
    %cst = arith.constant dense<0.000000e+00> : vector<256x8xf32>
    %8 = tpu.matmul %5, %7, %cst {dimension_numbers = #tpu.dot_dimension_numbers<[1], [0], [0], [1], [0, 0, 1, 1], [], []>} : vector<256x3xbf16>, vector<3x8xbf16>, vector<256x8xf32> -> vector<256x8xf32>
    %9 = vector.extract_strided_slice %1 {offsets = [0, 1, 0], sizes = [16, 16, 3], strides = [1, 1, 1]} : vector<18x18x3xf32> to vector<16x16x3xf32>
    %10 = vector.shape_cast %9 : vector<16x16x3xf32> to vector<256x3xf32>
    %11 = arith.truncf %10 : vector<256x3xf32> to vector<256x3xbf16>
    %12 = vector.extract_strided_slice %2 {offsets = [1, 0, 0], sizes = [1, 3, 8], strides = [1, 1, 1]} : vector<9x3x8xbf16> to vector<1x3x8xbf16>
    %13 = vector.shape_cast %12 : vector<1x3x8xbf16> to vector<3x8xbf16>
    %cst_6 = arith.constant dense<0.000000e+00> : vector<256x8xf32>
    %14 = tpu.matmul %11, %13, %cst_6 {dimension_numbers = #tpu.dot_dimension_numbers<[1], [0], [0], [1], [0, 0, 1, 1], [], []>} : vector<256x3xbf16>, vector<3x8xbf16>, vector<256x8xf32> -> vector<256x8xf32>
    %15 = arith.addf %8, %14 : vector<256x8xf32>
    %16 = vector.extract_strided_slice %1 {offsets = [0, 2, 0], sizes = [16, 16, 3], strides = [1, 1, 1]} : vector<18x18x3xf32> to vector<16x16x3xf32>
    %17 = vector.shape_cast %16 : vector<16x16x3xf32> to vector<256x3xf32>
    %18 = arith.truncf %17 : vector<256x3xf32> to vector<256x3xbf16>
    %19 = vector.extract_strided_slice %2 {offsets = [2, 0, 0], sizes = [1, 3, 8], strides = [1, 1, 1]} : vector<9x3x8xbf16> to vector<1x3x8xbf16>
    %20 = vector.shape_cast %19 : vector<1x3x8xbf16> to vector<3x8xbf16>
    %cst_7 = arith.constant dense<0.000000e+00> : vector<256x8xf32>
    %21 = tpu.matmul %18, %20, %cst_7 {dimension_numbers = #tpu.dot_dimension_numbers<[1], [0], [0], [1], [0, 0, 1, 1], [], []>} : vector<256x3xbf16>, vector<3x8xbf16>, vector<256x8xf32> -> vector<256x8xf32>
    %22 = arith.addf %15, %21 : vector<256x8xf32>
    %23 = vector.extract_strided_slice %1 {offsets = [1, 0, 0], sizes = [16, 16, 3], strides = [1, 1, 1]} : vector<18x18x3xf32> to vector<16x16x3xf32>
    %24 = vector.shape_cast %23 : vector<16x16x3xf32> to vector<256x3xf32>
    %25 = arith.truncf %24 : vector<256x3xf32> to vector<256x3xbf16>
    %26 = vector.extract_strided_slice %2 {offsets = [3, 0, 0], sizes = [1, 3, 8], strides = [1, 1, 1]} : vector<9x3x8xbf16> to vector<1x3x8xbf16>
    %27 = vector.shape_cast %26 : vector<1x3x8xbf16> to vector<3x8xbf16>
    %cst_8 = arith.constant dense<0.000000e+00> : vector<256x8xf32>
    %28 = tpu.matmul %25, %27, %cst_8 {dimension_numbers = #tpu.dot_dimension_numbers<[1], [0], [0], [1], [0, 0, 1, 1], [], []>} : vector<256x3xbf16>, vector<3x8xbf16>, vector<256x8xf32> -> vector<256x8xf32>
    %29 = arith.addf %22, %28 : vector<256x8xf32>
    %30 = vector.extract_strided_slice %1 {offsets = [1, 1, 0], sizes = [16, 16, 3], strides = [1, 1, 1]} : vector<18x18x3xf32> to vector<16x16x3xf32>
    %31 = vector.shape_cast %30 : vector<16x16x3xf32> to vector<256x3xf32>
    %32 = arith.truncf %31 : vector<256x3xf32> to vector<256x3xbf16>
    %33 = vector.extract_strided_slice %2 {offsets = [4, 0, 0], sizes = [1, 3, 8], strides = [1, 1, 1]} : vector<9x3x8xbf16> to vector<1x3x8xbf16>
    %34 = vector.shape_cast %33 : vector<1x3x8xbf16> to vector<3x8xbf16>
    %cst_9 = arith.constant dense<0.000000e+00> : vector<256x8xf32>
    %35 = tpu.matmul %32, %34, %cst_9 {dimension_numbers = #tpu.dot_dimension_numbers<[1], [0], [0], [1], [0, 0, 1, 1], [], []>} : vector<256x3xbf16>, vector<3x8xbf16>, vector<256x8xf32> -> vector<256x8xf32>
    %36 = arith.addf %29, %35 : vector<256x8xf32>
    %37 = vector.extract_strided_slice %1 {offsets = [1, 2, 0], sizes = [16, 16, 3], strides = [1, 1, 1]} : vector<18x18x3xf32> to vector<16x16x3xf32>
    %38 = vector.shape_cast %37 : vector<16x16x3xf32> to vector<256x3xf32>
    %39 = arith.truncf %38 : vector<256x3xf32> to vector<256x3xbf16>
    %40 = vector.extract_strided_slice %2 {offsets = [5, 0, 0], sizes = [1, 3, 8], strides = [1, 1, 1]} : vector<9x3x8xbf16> to vector<1x3x8xbf16>
    %41 = vector.shape_cast %40 : vector<1x3x8xbf16> to vector<3x8xbf16>
    %cst_10 = arith.constant dense<0.000000e+00> : vector<256x8xf32>
    %42 = tpu.matmul %39, %41, %cst_10 {dimension_numbers = #tpu.dot_dimension_numbers<[1], [0], [0], [1], [0, 0, 1, 1], [], []>} : vector<256x3xbf16>, vector<3x8xbf16>, vector<256x8xf32> -> vector<256x8xf32>
    %43 = arith.addf %36, %42 : vector<256x8xf32>
    %44 = vector.extract_strided_slice %1 {offsets = [2, 0, 0], sizes = [16, 16, 3], strides = [1, 1, 1]} : vector<18x18x3xf32> to vector<16x16x3xf32>
    %45 = vector.shape_cast %44 : vector<16x16x3xf32> to vector<256x3xf32>
    %46 = arith.truncf %45 : vector<256x3xf32> to vector<256x3xbf16>
    %47 = vector.extract_strided_slice %2 {offsets = [6, 0, 0], sizes = [1, 3, 8], strides = [1, 1, 1]} : vector<9x3x8xbf16> to vector<1x3x8xbf16>
    %48 = vector.shape_cast %47 : vector<1x3x8xbf16> to vector<3x8xbf16>
    %cst_11 = arith.constant dense<0.000000e+00> : vector<256x8xf32>
    %49 = tpu.matmul %46, %48, %cst_11 {dimension_numbers = #tpu.dot_dimension_numbers<[1], [0], [0], [1], [0, 0, 1, 1], [], []>} : vector<256x3xbf16>, vector<3x8xbf16>, vector<256x8xf32> -> vector<256x8xf32>
    %50 = arith.addf %43, %49 : vector<256x8xf32>
    %51 = vector.extract_strided_slice %1 {offsets = [2, 1, 0], sizes = [16, 16, 3], strides = [1, 1, 1]} : vector<18x18x3xf32> to vector<16x16x3xf32>
    %52 = vector.shape_cast %51 : vector<16x16x3xf32> to vector<256x3xf32>
    %53 = arith.truncf %52 : vector<256x3xf32> to vector<256x3xbf16>
    %54 = vector.extract_strided_slice %2 {offsets = [7, 0, 0], sizes = [1, 3, 8], strides = [1, 1, 1]} : vector<9x3x8xbf16> to vector<1x3x8xbf16>
    %55 = vector.shape_cast %54 : vector<1x3x8xbf16> to vector<3x8xbf16>
    %cst_12 = arith.constant dense<0.000000e+00> : vector<256x8xf32>
    %56 = tpu.matmul %53, %55, %cst_12 {dimension_numbers = #tpu.dot_dimension_numbers<[1], [0], [0], [1], [0, 0, 1, 1], [], []>} : vector<256x3xbf16>, vector<3x8xbf16>, vector<256x8xf32> -> vector<256x8xf32>
    %57 = arith.addf %50, %56 : vector<256x8xf32>
    %58 = vector.extract_strided_slice %1 {offsets = [2, 2, 0], sizes = [16, 16, 3], strides = [1, 1, 1]} : vector<18x18x3xf32> to vector<16x16x3xf32>
    %59 = vector.shape_cast %58 : vector<16x16x3xf32> to vector<256x3xf32>
    %60 = arith.truncf %59 : vector<256x3xf32> to vector<256x3xbf16>
    %61 = vector.extract_strided_slice %2 {offsets = [8, 0, 0], sizes = [1, 3, 8], strides = [1, 1, 1]} : vector<9x3x8xbf16> to vector<1x3x8xbf16>
    %62 = vector.shape_cast %61 : vector<1x3x8xbf16> to vector<3x8xbf16>
    %cst_13 = arith.constant dense<0.000000e+00> : vector<256x8xf32>
    %63 = tpu.matmul %60, %62, %cst_13 {dimension_numbers = #tpu.dot_dimension_numbers<[1], [0], [0], [1], [0, 0, 1, 1], [], []>} : vector<256x3xbf16>, vector<3x8xbf16>, vector<256x8xf32> -> vector<256x8xf32>
    %64 = arith.addf %57, %63 : vector<256x8xf32>
    %c0_14 = arith.constant 0 : index
    %c0_15 = arith.constant 0 : index
    %65 = vector.load %arg3[%c0_14, %c0_15] : memref<1x8xf32, #tpu.memory_space<vmem>>, vector<1x8xf32>
    %66 = vector.broadcast %65 : vector<1x8xf32> to vector<256x8xf32>
    %67 = arith.mulf %64, %66 : vector<256x8xf32>
    %c0_16 = arith.constant 0 : index
    %c0_17 = arith.constant 0 : index
    %68 = vector.load %arg4[%c0_16, %c0_17] : memref<1x8xf32, #tpu.memory_space<vmem>>, vector<1x8xf32>
    %69 = vector.broadcast %68 : vector<1x8xf32> to vector<256x8xf32>
    %70 = arith.addf %67, %69 : vector<256x8xf32>
    %c0_18 = arith.constant 0 : index
    %c0_19 = arith.constant 0 : index
    %c0_20 = arith.constant 0 : index
    %71 = vector.load %arg5[%c0_18, %c0_19, %c0_20] : memref<1x256x8xf32, #tpu.memory_space<vmem>>, vector<1x256x8xf32>
    %72 = vector.shape_cast %71 : vector<1x256x8xf32> to vector<256x8xf32>
    %73 = vector.shape_cast %70 : vector<256x8xf32> to vector<1x256x8xf32>
    tpu.vector_store %arg5[%c0_18, %c0_19, %c0_20], %73 {strides = array<i32>} : memref<1x256x8xf32, #tpu.memory_space<vmem>>, vector<1x256x8xf32>,
    return
  }
  func.func @transform_0(%arg0: i32) -> (i32, i32, i32, i32) {
    %c0_i32 = arith.constant 0 : i32
    %c0_i32_0 = arith.constant 0 : i32
    %c0_i32_1 = arith.constant 0 : i32
    %c0_i32_2 = arith.constant 0 : i32
    return %arg0, %c0_i32, %c0_i32_0, %c0_i32_1 : i32, i32, i32, i32
  }
  func.func @transform_1(%arg0: i32) -> (i32, i32, i32) {
    %c0_i32 = arith.constant 0 : i32
    %c0_i32_0 = arith.constant 0 : i32
    %c0_i32_1 = arith.constant 0 : i32
    %c0_i32_2 = arith.constant 0 : i32
    return %c0_i32, %c0_i32_0, %c0_i32_1 : i32, i32, i32
  }
  func.func @transform_2(%arg0: i32) -> (i32, i32) {
    %c0_i32 = arith.constant 0 : i32
    %c0_i32_0 = arith.constant 0 : i32
    %c0_i32_1 = arith.constant 0 : i32
    return %c0_i32, %c0_i32_0 : i32, i32
  }
  func.func @transform_3(%arg0: i32) -> (i32, i32) {
    %c0_i32 = arith.constant 0 : i32
    %c0_i32_0 = arith.constant 0 : i32
    %c0_i32_1 = arith.constant 0 : i32
    return %c0_i32, %c0_i32_0 : i32, i32
  }
  func.func @transform_4(%arg0: i32) -> (i32, i32, i32) {
    %c0_i32 = arith.constant 0 : i32
    %c0_i32_0 = arith.constant 0 : i32
    %c0_i32_1 = arith.constant 0 : i32
    return %arg0, %c0_i32, %c0_i32_0 : i32, i32, i32
  }
}

module attributes {stable_mosaic.version = 11 : i64} {
  func.func @_block_kernel(%arg0: i32, %arg1: memref<1x256x8xf32, #tpu.memory_space<vmem>>, %arg2: memref<8x16xbf16, #tpu.memory_space<vmem>>, %arg3: memref<1x16xf32, #tpu.memory_space<vmem>>, %arg4: memref<1x16xf32, #tpu.memory_space<vmem>>, %arg5: memref<9x16xf32, #tpu.memory_space<vmem>>, %arg6: memref<1x16xf32, #tpu.memory_space<vmem>>, %arg7: memref<1x16xf32, #tpu.memory_space<vmem>>, %arg8: memref<16x8xbf16, #tpu.memory_space<vmem>>, %arg9: memref<1x8xf32, #tpu.memory_space<vmem>>, %arg10: memref<1x8xf32, #tpu.memory_space<vmem>>, %arg11: memref<1x256x8xf32, #tpu.memory_space<vmem>>, %arg12: memref<18x18x16xf32, #tpu.memory_space<vmem>>) attributes {dimension_semantics = [#tpu.dimension_semantics<parallel>], iteration_bounds = array<i64: 2>, scalar_prefetch = 0 : i64, scratch_operands = 1 : i64, tpu.core_type = #tpu.core_type<tc>, window_params = [{transform_indices = @transform_0, window_bounds = array<i64: 1, 256, 8>}, {pipeline_mode = #tpu.pipeline_mode<synchronous>, transform_indices = @transform_1, window_bounds = array<i64: 8, 16>}, {pipeline_mode = #tpu.pipeline_mode<synchronous>, transform_indices = @transform_2, window_bounds = array<i64: 1, 16>}, {pipeline_mode = #tpu.pipeline_mode<synchronous>, transform_indices = @transform_3, window_bounds = array<i64: 1, 16>}, {pipeline_mode = #tpu.pipeline_mode<synchronous>, transform_indices = @transform_4, window_bounds = array<i64: 9, 16>}, {pipeline_mode = #tpu.pipeline_mode<synchronous>, transform_indices = @transform_5, window_bounds = array<i64: 1, 16>}, {pipeline_mode = #tpu.pipeline_mode<synchronous>, transform_indices = @transform_6, window_bounds = array<i64: 1, 16>}, {pipeline_mode = #tpu.pipeline_mode<synchronous>, transform_indices = @transform_7, window_bounds = array<i64: 16, 8>}, {pipeline_mode = #tpu.pipeline_mode<synchronous>, transform_indices = @transform_8, window_bounds = array<i64: 1, 8>}, {pipeline_mode = #tpu.pipeline_mode<synchronous>, transform_indices = @transform_9, window_bounds = array<i64: 1, 8>}, {transform_indices = @transform_10, window_bounds = array<i64: 1, 256, 8>}]} {
    %c0 = arith.constant 0 : index
    %c0_0 = arith.constant 0 : index
    %c0_1 = arith.constant 0 : index
    %0 = vector.load %arg1[%c0, %c0_0, %c0_1] : memref<1x256x8xf32, #tpu.memory_space<vmem>>, vector<1x256x8xf32>
    %1 = vector.shape_cast %0 : vector<1x256x8xf32> to vector<256x8xf32>
    %2 = arith.truncf %1 : vector<256x8xf32> to vector<256x8xbf16>
    %c0_2 = arith.constant 0 : index
    %c0_3 = arith.constant 0 : index
    %3 = vector.load %arg2[%c0_2, %c0_3] : memref<8x16xbf16, #tpu.memory_space<vmem>>, vector<8x16xbf16>
    %cst = arith.constant dense<0.000000e+00> : vector<256x16xf32>
    %4 = tpu.matmul %2, %3, %cst {dimension_numbers = #tpu.dot_dimension_numbers<[1], [0], [0], [1], [0, 0, 1, 1], [], []>} : vector<256x8xbf16>, vector<8x16xbf16>, vector<256x16xf32> -> vector<256x16xf32>
    %c0_4 = arith.constant 0 : index
    %c0_5 = arith.constant 0 : index
    %5 = vector.load %arg3[%c0_4, %c0_5] : memref<1x16xf32, #tpu.memory_space<vmem>>, vector<1x16xf32>
    %6 = vector.broadcast %5 : vector<1x16xf32> to vector<256x16xf32>
    %7 = arith.mulf %4, %6 : vector<256x16xf32>
    %c0_6 = arith.constant 0 : index
    %c0_7 = arith.constant 0 : index
    %8 = vector.load %arg4[%c0_6, %c0_7] : memref<1x16xf32, #tpu.memory_space<vmem>>, vector<1x16xf32>
    %9 = vector.broadcast %8 : vector<1x16xf32> to vector<256x16xf32>
    %10 = arith.addf %7, %9 : vector<256x16xf32>
    %cst_8 = arith.constant 5.000000e-01 : f32
    %11 = vector.broadcast %cst_8 : f32 to vector<256x16xf32>
    %12 = arith.mulf %11, %10 : vector<256x16xf32>
    %cst_9 = arith.constant 4.471500e-02 : f32
    %13 = vector.broadcast %cst_9 : f32 to vector<256x16xf32>
    %14 = arith.mulf %13, %10 : vector<256x16xf32>
    %15 = arith.mulf %14, %10 : vector<256x16xf32>
    %16 = arith.mulf %15, %10 : vector<256x16xf32>
    %17 = arith.addf %10, %16 : vector<256x16xf32>
    %cst_10 = arith.constant 0.797884583 : f32
    %18 = vector.broadcast %cst_10 : f32 to vector<256x16xf32>
    %19 = arith.mulf %18, %17 : vector<256x16xf32>
    %20 = math.tanh %19 : vector<256x16xf32>
    %cst_11 = arith.constant 1.000000e+00 : f32
    %21 = vector.broadcast %cst_11 : f32 to vector<256x16xf32>
    %22 = arith.addf %21, %20 : vector<256x16xf32>
    %23 = arith.mulf %12, %22 : vector<256x16xf32>
    %cst_12 = arith.constant 0.000000e+00 : f32
    %24 = vector.broadcast %cst_12 : f32 to vector<18x18x16xf32>
    %c0_13 = arith.constant 0 : index
    %c0_14 = arith.constant 0 : index
    %c0_15 = arith.constant 0 : index
    %25 = vector.load %arg12[%c0_13, %c0_14, %c0_15] : memref<18x18x16xf32, #tpu.memory_space<vmem>>, vector<18x18x16xf32>
    tpu.vector_store %arg12[%c0_13, %c0_14, %c0_15], %24 {strides = array<i32>} : memref<18x18x16xf32, #tpu.memory_space<vmem>>, vector<18x18x16xf32>,
    %26 = vector.shape_cast %23 : vector<256x16xf32> to vector<16x16x16xf32>
    %c1 = arith.constant 1 : index
    %c1_16 = arith.constant 1 : index
    %c0_17 = arith.constant 0 : index
    %27 = vector.load %arg12[%c1, %c1_16, %c0_17] : memref<18x18x16xf32, #tpu.memory_space<vmem>>, vector<16x16x16xf32>
    tpu.vector_store %arg12[%c1, %c1_16, %c0_17], %26 {strides = array<i32>} : memref<18x18x16xf32, #tpu.memory_space<vmem>>, vector<16x16x16xf32>,
    %c0_18 = arith.constant 0 : index
    %c0_19 = arith.constant 0 : index
    %28 = vector.load %arg5[%c0_18, %c0_19] : memref<9x16xf32, #tpu.memory_space<vmem>>, vector<9x16xf32>
    %c0_20 = arith.constant 0 : index
    %c0_21 = arith.constant 0 : index
    %c0_22 = arith.constant 0 : index
    %29 = vector.load %arg12[%c0_20, %c0_21, %c0_22] : memref<18x18x16xf32, #tpu.memory_space<vmem>>, vector<16x16x16xf32>
    %30 = vector.extract_strided_slice %28 {offsets = [0, 0], sizes = [1, 16], strides = [1, 1]} : vector<9x16xf32> to vector<1x16xf32>
    %31 = vector.shape_cast %30 : vector<1x16xf32> to vector<1x1x16xf32>
    %32 = vector.broadcast %31 : vector<1x1x16xf32> to vector<16x16x16xf32>
    %33 = arith.mulf %29, %32 : vector<16x16x16xf32>
    %c0_23 = arith.constant 0 : index
    %c1_24 = arith.constant 1 : index
    %c0_25 = arith.constant 0 : index
    %34 = vector.load %arg12[%c0_23, %c1_24, %c0_25] : memref<18x18x16xf32, #tpu.memory_space<vmem>>, vector<16x16x16xf32>
    %35 = vector.extract_strided_slice %28 {offsets = [1, 0], sizes = [1, 16], strides = [1, 1]} : vector<9x16xf32> to vector<1x16xf32>
    %36 = vector.shape_cast %35 : vector<1x16xf32> to vector<1x1x16xf32>
    %37 = vector.broadcast %36 : vector<1x1x16xf32> to vector<16x16x16xf32>
    %38 = arith.mulf %34, %37 : vector<16x16x16xf32>
    %39 = arith.addf %33, %38 : vector<16x16x16xf32>
    %c0_26 = arith.constant 0 : index
    %c2 = arith.constant 2 : index
    %c0_27 = arith.constant 0 : index
    %40 = vector.load %arg12[%c0_26, %c2, %c0_27] : memref<18x18x16xf32, #tpu.memory_space<vmem>>, vector<16x16x16xf32>
    %41 = vector.extract_strided_slice %28 {offsets = [2, 0], sizes = [1, 16], strides = [1, 1]} : vector<9x16xf32> to vector<1x16xf32>
    %42 = vector.shape_cast %41 : vector<1x16xf32> to vector<1x1x16xf32>
    %43 = vector.broadcast %42 : vector<1x1x16xf32> to vector<16x16x16xf32>
    %44 = arith.mulf %40, %43 : vector<16x16x16xf32>
    %45 = arith.addf %39, %44 : vector<16x16x16xf32>
    %c1_28 = arith.constant 1 : index
    %c0_29 = arith.constant 0 : index
    %c0_30 = arith.constant 0 : index
    %46 = vector.load %arg12[%c1_28, %c0_29, %c0_30] : memref<18x18x16xf32, #tpu.memory_space<vmem>>, vector<16x16x16xf32>
    %47 = vector.extract_strided_slice %28 {offsets = [3, 0], sizes = [1, 16], strides = [1, 1]} : vector<9x16xf32> to vector<1x16xf32>
    %48 = vector.shape_cast %47 : vector<1x16xf32> to vector<1x1x16xf32>
    %49 = vector.broadcast %48 : vector<1x1x16xf32> to vector<16x16x16xf32>
    %50 = arith.mulf %46, %49 : vector<16x16x16xf32>
    %51 = arith.addf %45, %50 : vector<16x16x16xf32>
    %c1_31 = arith.constant 1 : index
    %c1_32 = arith.constant 1 : index
    %c0_33 = arith.constant 0 : index
    %52 = vector.load %arg12[%c1_31, %c1_32, %c0_33] : memref<18x18x16xf32, #tpu.memory_space<vmem>>, vector<16x16x16xf32>
    %53 = vector.extract_strided_slice %28 {offsets = [4, 0], sizes = [1, 16], strides = [1, 1]} : vector<9x16xf32> to vector<1x16xf32>
    %54 = vector.shape_cast %53 : vector<1x16xf32> to vector<1x1x16xf32>
    %55 = vector.broadcast %54 : vector<1x1x16xf32> to vector<16x16x16xf32>
    %56 = arith.mulf %52, %55 : vector<16x16x16xf32>
    %57 = arith.addf %51, %56 : vector<16x16x16xf32>
    %c1_34 = arith.constant 1 : index
    %c2_35 = arith.constant 2 : index
    %c0_36 = arith.constant 0 : index
    %58 = vector.load %arg12[%c1_34, %c2_35, %c0_36] : memref<18x18x16xf32, #tpu.memory_space<vmem>>, vector<16x16x16xf32>
    %59 = vector.extract_strided_slice %28 {offsets = [5, 0], sizes = [1, 16], strides = [1, 1]} : vector<9x16xf32> to vector<1x16xf32>
    %60 = vector.shape_cast %59 : vector<1x16xf32> to vector<1x1x16xf32>
    %61 = vector.broadcast %60 : vector<1x1x16xf32> to vector<16x16x16xf32>
    %62 = arith.mulf %58, %61 : vector<16x16x16xf32>
    %63 = arith.addf %57, %62 : vector<16x16x16xf32>
    %c2_37 = arith.constant 2 : index
    %c0_38 = arith.constant 0 : index
    %c0_39 = arith.constant 0 : index
    %64 = vector.load %arg12[%c2_37, %c0_38, %c0_39] : memref<18x18x16xf32, #tpu.memory_space<vmem>>, vector<16x16x16xf32>
    %65 = vector.extract_strided_slice %28 {offsets = [6, 0], sizes = [1, 16], strides = [1, 1]} : vector<9x16xf32> to vector<1x16xf32>
    %66 = vector.shape_cast %65 : vector<1x16xf32> to vector<1x1x16xf32>
    %67 = vector.broadcast %66 : vector<1x1x16xf32> to vector<16x16x16xf32>
    %68 = arith.mulf %64, %67 : vector<16x16x16xf32>
    %69 = arith.addf %63, %68 : vector<16x16x16xf32>
    %c2_40 = arith.constant 2 : index
    %c1_41 = arith.constant 1 : index
    %c0_42 = arith.constant 0 : index
    %70 = vector.load %arg12[%c2_40, %c1_41, %c0_42] : memref<18x18x16xf32, #tpu.memory_space<vmem>>, vector<16x16x16xf32>
    %71 = vector.extract_strided_slice %28 {offsets = [7, 0], sizes = [1, 16], strides = [1, 1]} : vector<9x16xf32> to vector<1x16xf32>
    %72 = vector.shape_cast %71 : vector<1x16xf32> to vector<1x1x16xf32>
    %73 = vector.broadcast %72 : vector<1x1x16xf32> to vector<16x16x16xf32>
    %74 = arith.mulf %70, %73 : vector<16x16x16xf32>
    %75 = arith.addf %69, %74 : vector<16x16x16xf32>
    %c2_43 = arith.constant 2 : index
    %c2_44 = arith.constant 2 : index
    %c0_45 = arith.constant 0 : index
    %76 = vector.load %arg12[%c2_43, %c2_44, %c0_45] : memref<18x18x16xf32, #tpu.memory_space<vmem>>, vector<16x16x16xf32>
    %77 = vector.extract_strided_slice %28 {offsets = [8, 0], sizes = [1, 16], strides = [1, 1]} : vector<9x16xf32> to vector<1x16xf32>
    %78 = vector.shape_cast %77 : vector<1x16xf32> to vector<1x1x16xf32>
    %79 = vector.broadcast %78 : vector<1x1x16xf32> to vector<16x16x16xf32>
    %80 = arith.mulf %76, %79 : vector<16x16x16xf32>
    %81 = arith.addf %75, %80 : vector<16x16x16xf32>
    %c0_46 = arith.constant 0 : index
    %c0_47 = arith.constant 0 : index
    %82 = vector.load %arg6[%c0_46, %c0_47] : memref<1x16xf32, #tpu.memory_space<vmem>>, vector<1x16xf32>
    %83 = vector.shape_cast %82 : vector<1x16xf32> to vector<1x1x16xf32>
    %84 = vector.broadcast %83 : vector<1x1x16xf32> to vector<16x16x16xf32>
    %85 = arith.mulf %81, %84 : vector<16x16x16xf32>
    %c0_48 = arith.constant 0 : index
    %c0_49 = arith.constant 0 : index
    %86 = vector.load %arg7[%c0_48, %c0_49] : memref<1x16xf32, #tpu.memory_space<vmem>>, vector<1x16xf32>
    %87 = vector.shape_cast %86 : vector<1x16xf32> to vector<1x1x16xf32>
    %88 = vector.broadcast %87 : vector<1x1x16xf32> to vector<16x16x16xf32>
    %89 = arith.addf %85, %88 : vector<16x16x16xf32>
    %cst_50 = arith.constant 5.000000e-01 : f32
    %90 = vector.broadcast %cst_50 : f32 to vector<16x16x16xf32>
    %91 = arith.mulf %90, %89 : vector<16x16x16xf32>
    %cst_51 = arith.constant 4.471500e-02 : f32
    %92 = vector.broadcast %cst_51 : f32 to vector<16x16x16xf32>
    %93 = arith.mulf %92, %89 : vector<16x16x16xf32>
    %94 = arith.mulf %93, %89 : vector<16x16x16xf32>
    %95 = arith.mulf %94, %89 : vector<16x16x16xf32>
    %96 = arith.addf %89, %95 : vector<16x16x16xf32>
    %cst_52 = arith.constant 0.797884583 : f32
    %97 = vector.broadcast %cst_52 : f32 to vector<16x16x16xf32>
    %98 = arith.mulf %97, %96 : vector<16x16x16xf32>
    %99 = math.tanh %98 : vector<16x16x16xf32>
    %cst_53 = arith.constant 1.000000e+00 : f32
    %100 = vector.broadcast %cst_53 : f32 to vector<16x16x16xf32>
    %101 = arith.addf %100, %99 : vector<16x16x16xf32>
    %102 = arith.mulf %91, %101 : vector<16x16x16xf32>
    %103 = vector.shape_cast %102 : vector<16x16x16xf32> to vector<256x16xf32>
    %104 = arith.truncf %103 : vector<256x16xf32> to vector<256x16xbf16>
    %c0_54 = arith.constant 0 : index
    %c0_55 = arith.constant 0 : index
    %105 = vector.load %arg8[%c0_54, %c0_55] : memref<16x8xbf16, #tpu.memory_space<vmem>>, vector<16x8xbf16>
    %cst_56 = arith.constant dense<0.000000e+00> : vector<256x8xf32>
    %106 = tpu.matmul %104, %105, %cst_56 {dimension_numbers = #tpu.dot_dimension_numbers<[1], [0], [0], [1], [0, 0, 1, 1], [], []>} : vector<256x16xbf16>, vector<16x8xbf16>, vector<256x8xf32> -> vector<256x8xf32>
    %c0_57 = arith.constant 0 : index
    %c0_58 = arith.constant 0 : index
    %107 = vector.load %arg9[%c0_57, %c0_58] : memref<1x8xf32, #tpu.memory_space<vmem>>, vector<1x8xf32>
    %108 = vector.broadcast %107 : vector<1x8xf32> to vector<256x8xf32>
    %109 = arith.mulf %106, %108 : vector<256x8xf32>
    %c0_59 = arith.constant 0 : index
    %c0_60 = arith.constant 0 : index
    %110 = vector.load %arg10[%c0_59, %c0_60] : memref<1x8xf32, #tpu.memory_space<vmem>>, vector<1x8xf32>
    %111 = vector.broadcast %110 : vector<1x8xf32> to vector<256x8xf32>
    %112 = arith.addf %109, %111 : vector<256x8xf32>
    %113 = arith.addf %112, %1 : vector<256x8xf32>
    %c0_61 = arith.constant 0 : index
    %c0_62 = arith.constant 0 : index
    %c0_63 = arith.constant 0 : index
    %114 = vector.load %arg11[%c0_61, %c0_62, %c0_63] : memref<1x256x8xf32, #tpu.memory_space<vmem>>, vector<1x256x8xf32>
    %115 = vector.shape_cast %114 : vector<1x256x8xf32> to vector<256x8xf32>
    %116 = vector.shape_cast %113 : vector<256x8xf32> to vector<1x256x8xf32>
    tpu.vector_store %arg11[%c0_61, %c0_62, %c0_63], %116 {strides = array<i32>} : memref<1x256x8xf32, #tpu.memory_space<vmem>>, vector<1x256x8xf32>,
    return
  }
  func.func @transform_0(%arg0: i32) -> (i32, i32, i32) {
    %c0_i32 = arith.constant 0 : i32
    %c0_i32_0 = arith.constant 0 : i32
    %c0_i32_1 = arith.constant 0 : i32
    return %arg0, %c0_i32, %c0_i32_0 : i32, i32, i32
  }
  func.func @transform_1(%arg0: i32) -> (i32, i32) {
    %c0_i32 = arith.constant 0 : i32
    %c0_i32_0 = arith.constant 0 : i32
    %c0_i32_1 = arith.constant 0 : i32
    return %c0_i32, %c0_i32_0 : i32, i32
  }
  func.func @transform_2(%arg0: i32) -> (i32, i32) {
    %c0_i32 = arith.constant 0 : i32
    %c0_i32_0 = arith.constant 0 : i32
    %c0_i32_1 = arith.constant 0 : i32
    return %c0_i32, %c0_i32_0 : i32, i32
  }
  func.func @transform_3(%arg0: i32) -> (i32, i32) {
    %c0_i32 = arith.constant 0 : i32
    %c0_i32_0 = arith.constant 0 : i32
    %c0_i32_1 = arith.constant 0 : i32
    return %c0_i32, %c0_i32_0 : i32, i32
  }
  func.func @transform_4(%arg0: i32) -> (i32, i32) {
    %c0_i32 = arith.constant 0 : i32
    %c0_i32_0 = arith.constant 0 : i32
    %c0_i32_1 = arith.constant 0 : i32
    return %c0_i32, %c0_i32_0 : i32, i32
  }
  func.func @transform_5(%arg0: i32) -> (i32, i32) {
    %c0_i32 = arith.constant 0 : i32
    %c0_i32_0 = arith.constant 0 : i32
    %c0_i32_1 = arith.constant 0 : i32
    return %c0_i32, %c0_i32_0 : i32, i32
  }
  func.func @transform_6(%arg0: i32) -> (i32, i32) {
    %c0_i32 = arith.constant 0 : i32
    %c0_i32_0 = arith.constant 0 : i32
    %c0_i32_1 = arith.constant 0 : i32
    return %c0_i32, %c0_i32_0 : i32, i32
  }
  func.func @transform_7(%arg0: i32) -> (i32, i32) {
    %c0_i32 = arith.constant 0 : i32
    %c0_i32_0 = arith.constant 0 : i32
    %c0_i32_1 = arith.constant 0 : i32
    return %c0_i32, %c0_i32_0 : i32, i32
  }
  func.func @transform_8(%arg0: i32) -> (i32, i32) {
    %c0_i32 = arith.constant 0 : i32
    %c0_i32_0 = arith.constant 0 : i32
    %c0_i32_1 = arith.constant 0 : i32
    return %c0_i32, %c0_i32_0 : i32, i32
  }
  func.func @transform_9(%arg0: i32) -> (i32, i32) {
    %c0_i32 = arith.constant 0 : i32
    %c0_i32_0 = arith.constant 0 : i32
    %c0_i32_1 = arith.constant 0 : i32
    return %c0_i32, %c0_i32_0 : i32, i32
  }
  func.func @transform_10(%arg0: i32) -> (i32, i32, i32) {
    %c0_i32 = arith.constant 0 : i32
    %c0_i32_0 = arith.constant 0 : i32
    %c0_i32_1 = arith.constant 0 : i32
    return %arg0, %c0_i32, %c0_i32_0 : i32, i32, i32
  }
}

module attributes {stable_mosaic.version = 11 : i64} {
  func.func @_down2_kernel(%arg0: i32, %arg1: memref<1x8x2x8x16xf32, #tpu.memory_space<vmem>>, %arg2: memref<4x8x16xbf16, #tpu.memory_space<vmem>>, %arg3: memref<1x16xf32, #tpu.memory_space<vmem>>, %arg4: memref<1x16xf32, #tpu.memory_space<vmem>>, %arg5: memref<1x64x16xf32, #tpu.memory_space<vmem>>) attributes {dimension_semantics = [#tpu.dimension_semantics<parallel>], iteration_bounds = array<i64: 2>, scalar_prefetch = 0 : i64, scratch_operands = 0 : i64, tpu.core_type = #tpu.core_type<tc>, window_params = [{transform_indices = @transform_0, window_bounds = array<i64: 1, 8, 2, 8, 16>}, {pipeline_mode = #tpu.pipeline_mode<synchronous>, transform_indices = @transform_1, window_bounds = array<i64: 4, 8, 16>}, {pipeline_mode = #tpu.pipeline_mode<synchronous>, transform_indices = @transform_2, window_bounds = array<i64: 1, 16>}, {pipeline_mode = #tpu.pipeline_mode<synchronous>, transform_indices = @transform_3, window_bounds = array<i64: 1, 16>}, {transform_indices = @transform_4, window_bounds = array<i64: 1, 64, 16>}]} {
    %c0 = arith.constant 0 : index
    %c0_0 = arith.constant 0 : index
    %c0_1 = arith.constant 0 : index
    %c0_2 = arith.constant 0 : index
    %c0_3 = arith.constant 0 : index
    %0 = vector.load %arg1[%c0, %c0_0, %c0_1, %c0_2, %c0_3] : memref<1x8x2x8x16xf32, #tpu.memory_space<vmem>>, vector<1x8x2x8x16xf32>
    %1 = vector.shape_cast %0 : vector<1x8x2x8x16xf32> to vector<8x2x8x16xf32>
    %c0_4 = arith.constant 0 : index
    %c0_5 = arith.constant 0 : index
    %c0_6 = arith.constant 0 : index
    %2 = vector.load %arg2[%c0_4, %c0_5, %c0_6] : memref<4x8x16xbf16, #tpu.memory_space<vmem>>, vector<4x8x16xbf16>
    %3 = vector.extract_strided_slice %1 {offsets = [0, 0, 0, 0], sizes = [8, 1, 8, 8], strides = [1, 1, 1, 1]} : vector<8x2x8x16xf32> to vector<8x1x8x8xf32>
    %4 = vector.shape_cast %3 : vector<8x1x8x8xf32> to vector<8x8x8xf32>
    %5 = vector.shape_cast %4 : vector<8x8x8xf32> to vector<64x8xf32>
    %6 = arith.truncf %5 : vector<64x8xf32> to vector<64x8xbf16>
    %7 = vector.extract_strided_slice %2 {offsets = [0, 0, 0], sizes = [1, 8, 16], strides = [1, 1, 1]} : vector<4x8x16xbf16> to vector<1x8x16xbf16>
    %8 = vector.shape_cast %7 : vector<1x8x16xbf16> to vector<8x16xbf16>
    %cst = arith.constant dense<0.000000e+00> : vector<64x16xf32>
    %9 = tpu.matmul %6, %8, %cst {dimension_numbers = #tpu.dot_dimension_numbers<[1], [0], [0], [1], [0, 0, 1, 1], [], []>} : vector<64x8xbf16>, vector<8x16xbf16>, vector<64x16xf32> -> vector<64x16xf32>
    %10 = vector.extract_strided_slice %1 {offsets = [0, 0, 0, 8], sizes = [8, 1, 8, 8], strides = [1, 1, 1, 1]} : vector<8x2x8x16xf32> to vector<8x1x8x8xf32>
    %11 = vector.shape_cast %10 : vector<8x1x8x8xf32> to vector<8x8x8xf32>
    %12 = vector.shape_cast %11 : vector<8x8x8xf32> to vector<64x8xf32>
    %13 = arith.truncf %12 : vector<64x8xf32> to vector<64x8xbf16>
    %14 = vector.extract_strided_slice %2 {offsets = [1, 0, 0], sizes = [1, 8, 16], strides = [1, 1, 1]} : vector<4x8x16xbf16> to vector<1x8x16xbf16>
    %15 = vector.shape_cast %14 : vector<1x8x16xbf16> to vector<8x16xbf16>
    %cst_7 = arith.constant dense<0.000000e+00> : vector<64x16xf32>
    %16 = tpu.matmul %13, %15, %cst_7 {dimension_numbers = #tpu.dot_dimension_numbers<[1], [0], [0], [1], [0, 0, 1, 1], [], []>} : vector<64x8xbf16>, vector<8x16xbf16>, vector<64x16xf32> -> vector<64x16xf32>
    %17 = arith.addf %9, %16 : vector<64x16xf32>
    %18 = vector.extract_strided_slice %1 {offsets = [0, 1, 0, 0], sizes = [8, 1, 8, 8], strides = [1, 1, 1, 1]} : vector<8x2x8x16xf32> to vector<8x1x8x8xf32>
    %19 = vector.shape_cast %18 : vector<8x1x8x8xf32> to vector<8x8x8xf32>
    %20 = vector.shape_cast %19 : vector<8x8x8xf32> to vector<64x8xf32>
    %21 = arith.truncf %20 : vector<64x8xf32> to vector<64x8xbf16>
    %22 = vector.extract_strided_slice %2 {offsets = [2, 0, 0], sizes = [1, 8, 16], strides = [1, 1, 1]} : vector<4x8x16xbf16> to vector<1x8x16xbf16>
    %23 = vector.shape_cast %22 : vector<1x8x16xbf16> to vector<8x16xbf16>
    %cst_8 = arith.constant dense<0.000000e+00> : vector<64x16xf32>
    %24 = tpu.matmul %21, %23, %cst_8 {dimension_numbers = #tpu.dot_dimension_numbers<[1], [0], [0], [1], [0, 0, 1, 1], [], []>} : vector<64x8xbf16>, vector<8x16xbf16>, vector<64x16xf32> -> vector<64x16xf32>
    %25 = arith.addf %17, %24 : vector<64x16xf32>
    %26 = vector.extract_strided_slice %1 {offsets = [0, 1, 0, 8], sizes = [8, 1, 8, 8], strides = [1, 1, 1, 1]} : vector<8x2x8x16xf32> to vector<8x1x8x8xf32>
    %27 = vector.shape_cast %26 : vector<8x1x8x8xf32> to vector<8x8x8xf32>
    %28 = vector.shape_cast %27 : vector<8x8x8xf32> to vector<64x8xf32>
    %29 = arith.truncf %28 : vector<64x8xf32> to vector<64x8xbf16>
    %30 = vector.extract_strided_slice %2 {offsets = [3, 0, 0], sizes = [1, 8, 16], strides = [1, 1, 1]} : vector<4x8x16xbf16> to vector<1x8x16xbf16>
    %31 = vector.shape_cast %30 : vector<1x8x16xbf16> to vector<8x16xbf16>
    %cst_9 = arith.constant dense<0.000000e+00> : vector<64x16xf32>
    %32 = tpu.matmul %29, %31, %cst_9 {dimension_numbers = #tpu.dot_dimension_numbers<[1], [0], [0], [1], [0, 0, 1, 1], [], []>} : vector<64x8xbf16>, vector<8x16xbf16>, vector<64x16xf32> -> vector<64x16xf32>
    %33 = arith.addf %25, %32 : vector<64x16xf32>
    %c0_10 = arith.constant 0 : index
    %c0_11 = arith.constant 0 : index
    %34 = vector.load %arg3[%c0_10, %c0_11] : memref<1x16xf32, #tpu.memory_space<vmem>>, vector<1x16xf32>
    %35 = vector.broadcast %34 : vector<1x16xf32> to vector<64x16xf32>
    %36 = arith.mulf %33, %35 : vector<64x16xf32>
    %c0_12 = arith.constant 0 : index
    %c0_13 = arith.constant 0 : index
    %37 = vector.load %arg4[%c0_12, %c0_13] : memref<1x16xf32, #tpu.memory_space<vmem>>, vector<1x16xf32>
    %38 = vector.broadcast %37 : vector<1x16xf32> to vector<64x16xf32>
    %39 = arith.addf %36, %38 : vector<64x16xf32>
    %c0_14 = arith.constant 0 : index
    %c0_15 = arith.constant 0 : index
    %c0_16 = arith.constant 0 : index
    %40 = vector.load %arg5[%c0_14, %c0_15, %c0_16] : memref<1x64x16xf32, #tpu.memory_space<vmem>>, vector<1x64x16xf32>
    %41 = vector.shape_cast %40 : vector<1x64x16xf32> to vector<64x16xf32>
    %42 = vector.shape_cast %39 : vector<64x16xf32> to vector<1x64x16xf32>
    tpu.vector_store %arg5[%c0_14, %c0_15, %c0_16], %42 {strides = array<i32>} : memref<1x64x16xf32, #tpu.memory_space<vmem>>, vector<1x64x16xf32>,
    return
  }
  func.func @transform_0(%arg0: i32) -> (i32, i32, i32, i32, i32) {
    %c0_i32 = arith.constant 0 : i32
    %c0_i32_0 = arith.constant 0 : i32
    %c0_i32_1 = arith.constant 0 : i32
    %c0_i32_2 = arith.constant 0 : i32
    %c0_i32_3 = arith.constant 0 : i32
    return %arg0, %c0_i32, %c0_i32_0, %c0_i32_1, %c0_i32_2 : i32, i32, i32, i32, i32
  }
  func.func @transform_1(%arg0: i32) -> (i32, i32, i32) {
    %c0_i32 = arith.constant 0 : i32
    %c0_i32_0 = arith.constant 0 : i32
    %c0_i32_1 = arith.constant 0 : i32
    %c0_i32_2 = arith.constant 0 : i32
    return %c0_i32, %c0_i32_0, %c0_i32_1 : i32, i32, i32
  }
  func.func @transform_2(%arg0: i32) -> (i32, i32) {
    %c0_i32 = arith.constant 0 : i32
    %c0_i32_0 = arith.constant 0 : i32
    %c0_i32_1 = arith.constant 0 : i32
    return %c0_i32, %c0_i32_0 : i32, i32
  }
  func.func @transform_3(%arg0: i32) -> (i32, i32) {
    %c0_i32 = arith.constant 0 : i32
    %c0_i32_0 = arith.constant 0 : i32
    %c0_i32_1 = arith.constant 0 : i32
    return %c0_i32, %c0_i32_0 : i32, i32
  }
  func.func @transform_4(%arg0: i32) -> (i32, i32, i32) {
    %c0_i32 = arith.constant 0 : i32
    %c0_i32_0 = arith.constant 0 : i32
    %c0_i32_1 = arith.constant 0 : i32
    return %arg0, %c0_i32, %c0_i32_0 : i32, i32, i32
  }
}

module attributes {stable_mosaic.version = 11 : i64} {
  func.func @_block_kernel(%arg0: i32, %arg1: memref<1x64x16xf32, #tpu.memory_space<vmem>>, %arg2: memref<16x32xbf16, #tpu.memory_space<vmem>>, %arg3: memref<1x32xf32, #tpu.memory_space<vmem>>, %arg4: memref<1x32xf32, #tpu.memory_space<vmem>>, %arg5: memref<9x32xf32, #tpu.memory_space<vmem>>, %arg6: memref<1x32xf32, #tpu.memory_space<vmem>>, %arg7: memref<1x32xf32, #tpu.memory_space<vmem>>, %arg8: memref<32x16xbf16, #tpu.memory_space<vmem>>, %arg9: memref<1x16xf32, #tpu.memory_space<vmem>>, %arg10: memref<1x16xf32, #tpu.memory_space<vmem>>, %arg11: memref<1x64x16xf32, #tpu.memory_space<vmem>>, %arg12: memref<10x10x32xf32, #tpu.memory_space<vmem>>) attributes {dimension_semantics = [#tpu.dimension_semantics<parallel>], iteration_bounds = array<i64: 2>, scalar_prefetch = 0 : i64, scratch_operands = 1 : i64, tpu.core_type = #tpu.core_type<tc>, window_params = [{transform_indices = @transform_0, window_bounds = array<i64: 1, 64, 16>}, {pipeline_mode = #tpu.pipeline_mode<synchronous>, transform_indices = @transform_1, window_bounds = array<i64: 16, 32>}, {pipeline_mode = #tpu.pipeline_mode<synchronous>, transform_indices = @transform_2, window_bounds = array<i64: 1, 32>}, {pipeline_mode = #tpu.pipeline_mode<synchronous>, transform_indices = @transform_3, window_bounds = array<i64: 1, 32>}, {pipeline_mode = #tpu.pipeline_mode<synchronous>, transform_indices = @transform_4, window_bounds = array<i64: 9, 32>}, {pipeline_mode = #tpu.pipeline_mode<synchronous>, transform_indices = @transform_5, window_bounds = array<i64: 1, 32>}, {pipeline_mode = #tpu.pipeline_mode<synchronous>, transform_indices = @transform_6, window_bounds = array<i64: 1, 32>}, {pipeline_mode = #tpu.pipeline_mode<synchronous>, transform_indices = @transform_7, window_bounds = array<i64: 32, 16>}, {pipeline_mode = #tpu.pipeline_mode<synchronous>, transform_indices = @transform_8, window_bounds = array<i64: 1, 16>}, {pipeline_mode = #tpu.pipeline_mode<synchronous>, transform_indices = @transform_9, window_bounds = array<i64: 1, 16>}, {transform_indices = @transform_10, window_bounds = array<i64: 1, 64, 16>}]} {
    %c0 = arith.constant 0 : index
    %c0_0 = arith.constant 0 : index
    %c0_1 = arith.constant 0 : index
    %0 = vector.load %arg1[%c0, %c0_0, %c0_1] : memref<1x64x16xf32, #tpu.memory_space<vmem>>, vector<1x64x16xf32>
    %1 = vector.shape_cast %0 : vector<1x64x16xf32> to vector<64x16xf32>
    %2 = arith.truncf %1 : vector<64x16xf32> to vector<64x16xbf16>
    %c0_2 = arith.constant 0 : index
    %c0_3 = arith.constant 0 : index
    %3 = vector.load %arg2[%c0_2, %c0_3] : memref<16x32xbf16, #tpu.memory_space<vmem>>, vector<16x32xbf16>
    %cst = arith.constant dense<0.000000e+00> : vector<64x32xf32>
    %4 = tpu.matmul %2, %3, %cst {dimension_numbers = #tpu.dot_dimension_numbers<[1], [0], [0], [1], [0, 0, 1, 1], [], []>} : vector<64x16xbf16>, vector<16x32xbf16>, vector<64x32xf32> -> vector<64x32xf32>
    %c0_4 = arith.constant 0 : index
    %c0_5 = arith.constant 0 : index
    %5 = vector.load %arg3[%c0_4, %c0_5] : memref<1x32xf32, #tpu.memory_space<vmem>>, vector<1x32xf32>
    %6 = vector.broadcast %5 : vector<1x32xf32> to vector<64x32xf32>
    %7 = arith.mulf %4, %6 : vector<64x32xf32>
    %c0_6 = arith.constant 0 : index
    %c0_7 = arith.constant 0 : index
    %8 = vector.load %arg4[%c0_6, %c0_7] : memref<1x32xf32, #tpu.memory_space<vmem>>, vector<1x32xf32>
    %9 = vector.broadcast %8 : vector<1x32xf32> to vector<64x32xf32>
    %10 = arith.addf %7, %9 : vector<64x32xf32>
    %cst_8 = arith.constant 5.000000e-01 : f32
    %11 = vector.broadcast %cst_8 : f32 to vector<64x32xf32>
    %12 = arith.mulf %11, %10 : vector<64x32xf32>
    %cst_9 = arith.constant 4.471500e-02 : f32
    %13 = vector.broadcast %cst_9 : f32 to vector<64x32xf32>
    %14 = arith.mulf %13, %10 : vector<64x32xf32>
    %15 = arith.mulf %14, %10 : vector<64x32xf32>
    %16 = arith.mulf %15, %10 : vector<64x32xf32>
    %17 = arith.addf %10, %16 : vector<64x32xf32>
    %cst_10 = arith.constant 0.797884583 : f32
    %18 = vector.broadcast %cst_10 : f32 to vector<64x32xf32>
    %19 = arith.mulf %18, %17 : vector<64x32xf32>
    %20 = math.tanh %19 : vector<64x32xf32>
    %cst_11 = arith.constant 1.000000e+00 : f32
    %21 = vector.broadcast %cst_11 : f32 to vector<64x32xf32>
    %22 = arith.addf %21, %20 : vector<64x32xf32>
    %23 = arith.mulf %12, %22 : vector<64x32xf32>
    %cst_12 = arith.constant 0.000000e+00 : f32
    %24 = vector.broadcast %cst_12 : f32 to vector<10x10x32xf32>
    %c0_13 = arith.constant 0 : index
    %c0_14 = arith.constant 0 : index
    %c0_15 = arith.constant 0 : index
    %25 = vector.load %arg12[%c0_13, %c0_14, %c0_15] : memref<10x10x32xf32, #tpu.memory_space<vmem>>, vector<10x10x32xf32>
    tpu.vector_store %arg12[%c0_13, %c0_14, %c0_15], %24 {strides = array<i32>} : memref<10x10x32xf32, #tpu.memory_space<vmem>>, vector<10x10x32xf32>,
    %26 = vector.shape_cast %23 : vector<64x32xf32> to vector<8x8x32xf32>
    %c1 = arith.constant 1 : index
    %c1_16 = arith.constant 1 : index
    %c0_17 = arith.constant 0 : index
    %27 = vector.load %arg12[%c1, %c1_16, %c0_17] : memref<10x10x32xf32, #tpu.memory_space<vmem>>, vector<8x8x32xf32>
    tpu.vector_store %arg12[%c1, %c1_16, %c0_17], %26 {strides = array<i32>} : memref<10x10x32xf32, #tpu.memory_space<vmem>>, vector<8x8x32xf32>,
    %c0_18 = arith.constant 0 : index
    %c0_19 = arith.constant 0 : index
    %28 = vector.load %arg5[%c0_18, %c0_19] : memref<9x32xf32, #tpu.memory_space<vmem>>, vector<9x32xf32>
    %c0_20 = arith.constant 0 : index
    %c0_21 = arith.constant 0 : index
    %c0_22 = arith.constant 0 : index
    %29 = vector.load %arg12[%c0_20, %c0_21, %c0_22] : memref<10x10x32xf32, #tpu.memory_space<vmem>>, vector<8x8x32xf32>
    %30 = vector.extract_strided_slice %28 {offsets = [0, 0], sizes = [1, 32], strides = [1, 1]} : vector<9x32xf32> to vector<1x32xf32>
    %31 = vector.shape_cast %30 : vector<1x32xf32> to vector<1x1x32xf32>
    %32 = vector.broadcast %31 : vector<1x1x32xf32> to vector<8x8x32xf32>
    %33 = arith.mulf %29, %32 : vector<8x8x32xf32>
    %c0_23 = arith.constant 0 : index
    %c1_24 = arith.constant 1 : index
    %c0_25 = arith.constant 0 : index
    %34 = vector.load %arg12[%c0_23, %c1_24, %c0_25] : memref<10x10x32xf32, #tpu.memory_space<vmem>>, vector<8x8x32xf32>
    %35 = vector.extract_strided_slice %28 {offsets = [1, 0], sizes = [1, 32], strides = [1, 1]} : vector<9x32xf32> to vector<1x32xf32>
    %36 = vector.shape_cast %35 : vector<1x32xf32> to vector<1x1x32xf32>
    %37 = vector.broadcast %36 : vector<1x1x32xf32> to vector<8x8x32xf32>
    %38 = arith.mulf %34, %37 : vector<8x8x32xf32>
    %39 = arith.addf %33, %38 : vector<8x8x32xf32>
    %c0_26 = arith.constant 0 : index
    %c2 = arith.constant 2 : index
    %c0_27 = arith.constant 0 : index
    %40 = vector.load %arg12[%c0_26, %c2, %c0_27] : memref<10x10x32xf32, #tpu.memory_space<vmem>>, vector<8x8x32xf32>
    %41 = vector.extract_strided_slice %28 {offsets = [2, 0], sizes = [1, 32], strides = [1, 1]} : vector<9x32xf32> to vector<1x32xf32>
    %42 = vector.shape_cast %41 : vector<1x32xf32> to vector<1x1x32xf32>
    %43 = vector.broadcast %42 : vector<1x1x32xf32> to vector<8x8x32xf32>
    %44 = arith.mulf %40, %43 : vector<8x8x32xf32>
    %45 = arith.addf %39, %44 : vector<8x8x32xf32>
    %c1_28 = arith.constant 1 : index
    %c0_29 = arith.constant 0 : index
    %c0_30 = arith.constant 0 : index
    %46 = vector.load %arg12[%c1_28, %c0_29, %c0_30] : memref<10x10x32xf32, #tpu.memory_space<vmem>>, vector<8x8x32xf32>
    %47 = vector.extract_strided_slice %28 {offsets = [3, 0], sizes = [1, 32], strides = [1, 1]} : vector<9x32xf32> to vector<1x32xf32>
    %48 = vector.shape_cast %47 : vector<1x32xf32> to vector<1x1x32xf32>
    %49 = vector.broadcast %48 : vector<1x1x32xf32> to vector<8x8x32xf32>
    %50 = arith.mulf %46, %49 : vector<8x8x32xf32>
    %51 = arith.addf %45, %50 : vector<8x8x32xf32>
    %c1_31 = arith.constant 1 : index
    %c1_32 = arith.constant 1 : index
    %c0_33 = arith.constant 0 : index
    %52 = vector.load %arg12[%c1_31, %c1_32, %c0_33] : memref<10x10x32xf32, #tpu.memory_space<vmem>>, vector<8x8x32xf32>
    %53 = vector.extract_strided_slice %28 {offsets = [4, 0], sizes = [1, 32], strides = [1, 1]} : vector<9x32xf32> to vector<1x32xf32>
    %54 = vector.shape_cast %53 : vector<1x32xf32> to vector<1x1x32xf32>
    %55 = vector.broadcast %54 : vector<1x1x32xf32> to vector<8x8x32xf32>
    %56 = arith.mulf %52, %55 : vector<8x8x32xf32>
    %57 = arith.addf %51, %56 : vector<8x8x32xf32>
    %c1_34 = arith.constant 1 : index
    %c2_35 = arith.constant 2 : index
    %c0_36 = arith.constant 0 : index
    %58 = vector.load %arg12[%c1_34, %c2_35, %c0_36] : memref<10x10x32xf32, #tpu.memory_space<vmem>>, vector<8x8x32xf32>
    %59 = vector.extract_strided_slice %28 {offsets = [5, 0], sizes = [1, 32], strides = [1, 1]} : vector<9x32xf32> to vector<1x32xf32>
    %60 = vector.shape_cast %59 : vector<1x32xf32> to vector<1x1x32xf32>
    %61 = vector.broadcast %60 : vector<1x1x32xf32> to vector<8x8x32xf32>
    %62 = arith.mulf %58, %61 : vector<8x8x32xf32>
    %63 = arith.addf %57, %62 : vector<8x8x32xf32>
    %c2_37 = arith.constant 2 : index
    %c0_38 = arith.constant 0 : index
    %c0_39 = arith.constant 0 : index
    %64 = vector.load %arg12[%c2_37, %c0_38, %c0_39] : memref<10x10x32xf32, #tpu.memory_space<vmem>>, vector<8x8x32xf32>
    %65 = vector.extract_strided_slice %28 {offsets = [6, 0], sizes = [1, 32], strides = [1, 1]} : vector<9x32xf32> to vector<1x32xf32>
    %66 = vector.shape_cast %65 : vector<1x32xf32> to vector<1x1x32xf32>
    %67 = vector.broadcast %66 : vector<1x1x32xf32> to vector<8x8x32xf32>
    %68 = arith.mulf %64, %67 : vector<8x8x32xf32>
    %69 = arith.addf %63, %68 : vector<8x8x32xf32>
    %c2_40 = arith.constant 2 : index
    %c1_41 = arith.constant 1 : index
    %c0_42 = arith.constant 0 : index
    %70 = vector.load %arg12[%c2_40, %c1_41, %c0_42] : memref<10x10x32xf32, #tpu.memory_space<vmem>>, vector<8x8x32xf32>
    %71 = vector.extract_strided_slice %28 {offsets = [7, 0], sizes = [1, 32], strides = [1, 1]} : vector<9x32xf32> to vector<1x32xf32>
    %72 = vector.shape_cast %71 : vector<1x32xf32> to vector<1x1x32xf32>
    %73 = vector.broadcast %72 : vector<1x1x32xf32> to vector<8x8x32xf32>
    %74 = arith.mulf %70, %73 : vector<8x8x32xf32>
    %75 = arith.addf %69, %74 : vector<8x8x32xf32>
    %c2_43 = arith.constant 2 : index
    %c2_44 = arith.constant 2 : index
    %c0_45 = arith.constant 0 : index
    %76 = vector.load %arg12[%c2_43, %c2_44, %c0_45] : memref<10x10x32xf32, #tpu.memory_space<vmem>>, vector<8x8x32xf32>
    %77 = vector.extract_strided_slice %28 {offsets = [8, 0], sizes = [1, 32], strides = [1, 1]} : vector<9x32xf32> to vector<1x32xf32>
    %78 = vector.shape_cast %77 : vector<1x32xf32> to vector<1x1x32xf32>
    %79 = vector.broadcast %78 : vector<1x1x32xf32> to vector<8x8x32xf32>
    %80 = arith.mulf %76, %79 : vector<8x8x32xf32>
    %81 = arith.addf %75, %80 : vector<8x8x32xf32>
    %c0_46 = arith.constant 0 : index
    %c0_47 = arith.constant 0 : index
    %82 = vector.load %arg6[%c0_46, %c0_47] : memref<1x32xf32, #tpu.memory_space<vmem>>, vector<1x32xf32>
    %83 = vector.shape_cast %82 : vector<1x32xf32> to vector<1x1x32xf32>
    %84 = vector.broadcast %83 : vector<1x1x32xf32> to vector<8x8x32xf32>
    %85 = arith.mulf %81, %84 : vector<8x8x32xf32>
    %c0_48 = arith.constant 0 : index
    %c0_49 = arith.constant 0 : index
    %86 = vector.load %arg7[%c0_48, %c0_49] : memref<1x32xf32, #tpu.memory_space<vmem>>, vector<1x32xf32>
    %87 = vector.shape_cast %86 : vector<1x32xf32> to vector<1x1x32xf32>
    %88 = vector.broadcast %87 : vector<1x1x32xf32> to vector<8x8x32xf32>
    %89 = arith.addf %85, %88 : vector<8x8x32xf32>
    %cst_50 = arith.constant 5.000000e-01 : f32
    %90 = vector.broadcast %cst_50 : f32 to vector<8x8x32xf32>
    %91 = arith.mulf %90, %89 : vector<8x8x32xf32>
    %cst_51 = arith.constant 4.471500e-02 : f32
    %92 = vector.broadcast %cst_51 : f32 to vector<8x8x32xf32>
    %93 = arith.mulf %92, %89 : vector<8x8x32xf32>
    %94 = arith.mulf %93, %89 : vector<8x8x32xf32>
    %95 = arith.mulf %94, %89 : vector<8x8x32xf32>
    %96 = arith.addf %89, %95 : vector<8x8x32xf32>
    %cst_52 = arith.constant 0.797884583 : f32
    %97 = vector.broadcast %cst_52 : f32 to vector<8x8x32xf32>
    %98 = arith.mulf %97, %96 : vector<8x8x32xf32>
    %99 = math.tanh %98 : vector<8x8x32xf32>
    %cst_53 = arith.constant 1.000000e+00 : f32
    %100 = vector.broadcast %cst_53 : f32 to vector<8x8x32xf32>
    %101 = arith.addf %100, %99 : vector<8x8x32xf32>
    %102 = arith.mulf %91, %101 : vector<8x8x32xf32>
    %103 = vector.shape_cast %102 : vector<8x8x32xf32> to vector<64x32xf32>
    %104 = arith.truncf %103 : vector<64x32xf32> to vector<64x32xbf16>
    %c0_54 = arith.constant 0 : index
    %c0_55 = arith.constant 0 : index
    %105 = vector.load %arg8[%c0_54, %c0_55] : memref<32x16xbf16, #tpu.memory_space<vmem>>, vector<32x16xbf16>
    %cst_56 = arith.constant dense<0.000000e+00> : vector<64x16xf32>
    %106 = tpu.matmul %104, %105, %cst_56 {dimension_numbers = #tpu.dot_dimension_numbers<[1], [0], [0], [1], [0, 0, 1, 1], [], []>} : vector<64x32xbf16>, vector<32x16xbf16>, vector<64x16xf32> -> vector<64x16xf32>
    %c0_57 = arith.constant 0 : index
    %c0_58 = arith.constant 0 : index
    %107 = vector.load %arg9[%c0_57, %c0_58] : memref<1x16xf32, #tpu.memory_space<vmem>>, vector<1x16xf32>
    %108 = vector.broadcast %107 : vector<1x16xf32> to vector<64x16xf32>
    %109 = arith.mulf %106, %108 : vector<64x16xf32>
    %c0_59 = arith.constant 0 : index
    %c0_60 = arith.constant 0 : index
    %110 = vector.load %arg10[%c0_59, %c0_60] : memref<1x16xf32, #tpu.memory_space<vmem>>, vector<1x16xf32>
    %111 = vector.broadcast %110 : vector<1x16xf32> to vector<64x16xf32>
    %112 = arith.addf %109, %111 : vector<64x16xf32>
    %113 = arith.addf %112, %1 : vector<64x16xf32>
    %c0_61 = arith.constant 0 : index
    %c0_62 = arith.constant 0 : index
    %c0_63 = arith.constant 0 : index
    %114 = vector.load %arg11[%c0_61, %c0_62, %c0_63] : memref<1x64x16xf32, #tpu.memory_space<vmem>>, vector<1x64x16xf32>
    %115 = vector.shape_cast %114 : vector<1x64x16xf32> to vector<64x16xf32>
    %116 = vector.shape_cast %113 : vector<64x16xf32> to vector<1x64x16xf32>
    tpu.vector_store %arg11[%c0_61, %c0_62, %c0_63], %116 {strides = array<i32>} : memref<1x64x16xf32, #tpu.memory_space<vmem>>, vector<1x64x16xf32>,
    return
  }
  func.func @transform_0(%arg0: i32) -> (i32, i32, i32) {
    %c0_i32 = arith.constant 0 : i32
    %c0_i32_0 = arith.constant 0 : i32
    %c0_i32_1 = arith.constant 0 : i32
    return %arg0, %c0_i32, %c0_i32_0 : i32, i32, i32
  }
  func.func @transform_1(%arg0: i32) -> (i32, i32) {
    %c0_i32 = arith.constant 0 : i32
    %c0_i32_0 = arith.constant 0 : i32
    %c0_i32_1 = arith.constant 0 : i32
    return %c0_i32, %c0_i32_0 : i32, i32
  }
  func.func @transform_2(%arg0: i32) -> (i32, i32) {
    %c0_i32 = arith.constant 0 : i32
    %c0_i32_0 = arith.constant 0 : i32
    %c0_i32_1 = arith.constant 0 : i32
    return %c0_i32, %c0_i32_0 : i32, i32
  }
  func.func @transform_3(%arg0: i32) -> (i32, i32) {
    %c0_i32 = arith.constant 0 : i32
    %c0_i32_0 = arith.constant 0 : i32
    %c0_i32_1 = arith.constant 0 : i32
    return %c0_i32, %c0_i32_0 : i32, i32
  }
  func.func @transform_4(%arg0: i32) -> (i32, i32) {
    %c0_i32 = arith.constant 0 : i32
    %c0_i32_0 = arith.constant 0 : i32
    %c0_i32_1 = arith.constant 0 : i32
    return %c0_i32, %c0_i32_0 : i32, i32
  }
  func.func @transform_5(%arg0: i32) -> (i32, i32) {
    %c0_i32 = arith.constant 0 : i32
    %c0_i32_0 = arith.constant 0 : i32
    %c0_i32_1 = arith.constant 0 : i32
    return %c0_i32, %c0_i32_0 : i32, i32
  }
  func.func @transform_6(%arg0: i32) -> (i32, i32) {
    %c0_i32 = arith.constant 0 : i32
    %c0_i32_0 = arith.constant 0 : i32
    %c0_i32_1 = arith.constant 0 : i32
    return %c0_i32, %c0_i32_0 : i32, i32
  }
  func.func @transform_7(%arg0: i32) -> (i32, i32) {
    %c0_i32 = arith.constant 0 : i32
    %c0_i32_0 = arith.constant 0 : i32
    %c0_i32_1 = arith.constant 0 : i32
    return %c0_i32, %c0_i32_0 : i32, i32
  }
  func.func @transform_8(%arg0: i32) -> (i32, i32) {
    %c0_i32 = arith.constant 0 : i32
    %c0_i32_0 = arith.constant 0 : i32
    %c0_i32_1 = arith.constant 0 : i32
    return %c0_i32, %c0_i32_0 : i32, i32
  }
  func.func @transform_9(%arg0: i32) -> (i32, i32) {
    %c0_i32 = arith.constant 0 : i32
    %c0_i32_0 = arith.constant 0 : i32
    %c0_i32_1 = arith.constant 0 : i32
    return %c0_i32, %c0_i32_0 : i32, i32
  }
  func.func @transform_10(%arg0: i32) -> (i32, i32, i32) {
    %c0_i32 = arith.constant 0 : i32
    %c0_i32_0 = arith.constant 0 : i32
    %c0_i32_1 = arith.constant 0 : i32
    return %arg0, %c0_i32, %c0_i32_0 : i32, i32, i32
  }
}

module attributes {stable_mosaic.version = 11 : i64} {
  func.func @_down2_kernel(%arg0: i32, %arg1: memref<1x4x2x4x32xf32, #tpu.memory_space<vmem>>, %arg2: memref<4x16x32xbf16, #tpu.memory_space<vmem>>, %arg3: memref<1x32xf32, #tpu.memory_space<vmem>>, %arg4: memref<1x32xf32, #tpu.memory_space<vmem>>, %arg5: memref<1x16x32xf32, #tpu.memory_space<vmem>>) attributes {dimension_semantics = [#tpu.dimension_semantics<parallel>], iteration_bounds = array<i64: 2>, scalar_prefetch = 0 : i64, scratch_operands = 0 : i64, tpu.core_type = #tpu.core_type<tc>, window_params = [{transform_indices = @transform_0, window_bounds = array<i64: 1, 4, 2, 4, 32>}, {pipeline_mode = #tpu.pipeline_mode<synchronous>, transform_indices = @transform_1, window_bounds = array<i64: 4, 16, 32>}, {pipeline_mode = #tpu.pipeline_mode<synchronous>, transform_indices = @transform_2, window_bounds = array<i64: 1, 32>}, {pipeline_mode = #tpu.pipeline_mode<synchronous>, transform_indices = @transform_3, window_bounds = array<i64: 1, 32>}, {transform_indices = @transform_4, window_bounds = array<i64: 1, 16, 32>}]} {
    %c0 = arith.constant 0 : index
    %c0_0 = arith.constant 0 : index
    %c0_1 = arith.constant 0 : index
    %c0_2 = arith.constant 0 : index
    %c0_3 = arith.constant 0 : index
    %0 = vector.load %arg1[%c0, %c0_0, %c0_1, %c0_2, %c0_3] : memref<1x4x2x4x32xf32, #tpu.memory_space<vmem>>, vector<1x4x2x4x32xf32>
    %1 = vector.shape_cast %0 : vector<1x4x2x4x32xf32> to vector<4x2x4x32xf32>
    %c0_4 = arith.constant 0 : index
    %c0_5 = arith.constant 0 : index
    %c0_6 = arith.constant 0 : index
    %2 = vector.load %arg2[%c0_4, %c0_5, %c0_6] : memref<4x16x32xbf16, #tpu.memory_space<vmem>>, vector<4x16x32xbf16>
    %3 = vector.extract_strided_slice %1 {offsets = [0, 0, 0, 0], sizes = [4, 1, 4, 16], strides = [1, 1, 1, 1]} : vector<4x2x4x32xf32> to vector<4x1x4x16xf32>
    %4 = vector.shape_cast %3 : vector<4x1x4x16xf32> to vector<4x4x16xf32>
    %5 = vector.shape_cast %4 : vector<4x4x16xf32> to vector<16x16xf32>
    %6 = arith.truncf %5 : vector<16x16xf32> to vector<16x16xbf16>
    %7 = vector.extract_strided_slice %2 {offsets = [0, 0, 0], sizes = [1, 16, 32], strides = [1, 1, 1]} : vector<4x16x32xbf16> to vector<1x16x32xbf16>
    %8 = vector.shape_cast %7 : vector<1x16x32xbf16> to vector<16x32xbf16>
    %cst = arith.constant dense<0.000000e+00> : vector<16x32xf32>
    %9 = tpu.matmul %6, %8, %cst {dimension_numbers = #tpu.dot_dimension_numbers<[1], [0], [0], [1], [0, 0, 1, 1], [], []>} : vector<16x16xbf16>, vector<16x32xbf16>, vector<16x32xf32> -> vector<16x32xf32>
    %10 = vector.extract_strided_slice %1 {offsets = [0, 0, 0, 16], sizes = [4, 1, 4, 16], strides = [1, 1, 1, 1]} : vector<4x2x4x32xf32> to vector<4x1x4x16xf32>
    %11 = vector.shape_cast %10 : vector<4x1x4x16xf32> to vector<4x4x16xf32>
    %12 = vector.shape_cast %11 : vector<4x4x16xf32> to vector<16x16xf32>
    %13 = arith.truncf %12 : vector<16x16xf32> to vector<16x16xbf16>
    %14 = vector.extract_strided_slice %2 {offsets = [1, 0, 0], sizes = [1, 16, 32], strides = [1, 1, 1]} : vector<4x16x32xbf16> to vector<1x16x32xbf16>
    %15 = vector.shape_cast %14 : vector<1x16x32xbf16> to vector<16x32xbf16>
    %cst_7 = arith.constant dense<0.000000e+00> : vector<16x32xf32>
    %16 = tpu.matmul %13, %15, %cst_7 {dimension_numbers = #tpu.dot_dimension_numbers<[1], [0], [0], [1], [0, 0, 1, 1], [], []>} : vector<16x16xbf16>, vector<16x32xbf16>, vector<16x32xf32> -> vector<16x32xf32>
    %17 = arith.addf %9, %16 : vector<16x32xf32>
    %18 = vector.extract_strided_slice %1 {offsets = [0, 1, 0, 0], sizes = [4, 1, 4, 16], strides = [1, 1, 1, 1]} : vector<4x2x4x32xf32> to vector<4x1x4x16xf32>
    %19 = vector.shape_cast %18 : vector<4x1x4x16xf32> to vector<4x4x16xf32>
    %20 = vector.shape_cast %19 : vector<4x4x16xf32> to vector<16x16xf32>
    %21 = arith.truncf %20 : vector<16x16xf32> to vector<16x16xbf16>
    %22 = vector.extract_strided_slice %2 {offsets = [2, 0, 0], sizes = [1, 16, 32], strides = [1, 1, 1]} : vector<4x16x32xbf16> to vector<1x16x32xbf16>
    %23 = vector.shape_cast %22 : vector<1x16x32xbf16> to vector<16x32xbf16>
    %cst_8 = arith.constant dense<0.000000e+00> : vector<16x32xf32>
    %24 = tpu.matmul %21, %23, %cst_8 {dimension_numbers = #tpu.dot_dimension_numbers<[1], [0], [0], [1], [0, 0, 1, 1], [], []>} : vector<16x16xbf16>, vector<16x32xbf16>, vector<16x32xf32> -> vector<16x32xf32>
    %25 = arith.addf %17, %24 : vector<16x32xf32>
    %26 = vector.extract_strided_slice %1 {offsets = [0, 1, 0, 16], sizes = [4, 1, 4, 16], strides = [1, 1, 1, 1]} : vector<4x2x4x32xf32> to vector<4x1x4x16xf32>
    %27 = vector.shape_cast %26 : vector<4x1x4x16xf32> to vector<4x4x16xf32>
    %28 = vector.shape_cast %27 : vector<4x4x16xf32> to vector<16x16xf32>
    %29 = arith.truncf %28 : vector<16x16xf32> to vector<16x16xbf16>
    %30 = vector.extract_strided_slice %2 {offsets = [3, 0, 0], sizes = [1, 16, 32], strides = [1, 1, 1]} : vector<4x16x32xbf16> to vector<1x16x32xbf16>
    %31 = vector.shape_cast %30 : vector<1x16x32xbf16> to vector<16x32xbf16>
    %cst_9 = arith.constant dense<0.000000e+00> : vector<16x32xf32>
    %32 = tpu.matmul %29, %31, %cst_9 {dimension_numbers = #tpu.dot_dimension_numbers<[1], [0], [0], [1], [0, 0, 1, 1], [], []>} : vector<16x16xbf16>, vector<16x32xbf16>, vector<16x32xf32> -> vector<16x32xf32>
    %33 = arith.addf %25, %32 : vector<16x32xf32>
    %c0_10 = arith.constant 0 : index
    %c0_11 = arith.constant 0 : index
    %34 = vector.load %arg3[%c0_10, %c0_11] : memref<1x32xf32, #tpu.memory_space<vmem>>, vector<1x32xf32>
    %35 = vector.broadcast %34 : vector<1x32xf32> to vector<16x32xf32>
    %36 = arith.mulf %33, %35 : vector<16x32xf32>
    %c0_12 = arith.constant 0 : index
    %c0_13 = arith.constant 0 : index
    %37 = vector.load %arg4[%c0_12, %c0_13] : memref<1x32xf32, #tpu.memory_space<vmem>>, vector<1x32xf32>
    %38 = vector.broadcast %37 : vector<1x32xf32> to vector<16x32xf32>
    %39 = arith.addf %36, %38 : vector<16x32xf32>
    %c0_14 = arith.constant 0 : index
    %c0_15 = arith.constant 0 : index
    %c0_16 = arith.constant 0 : index
    %40 = vector.load %arg5[%c0_14, %c0_15, %c0_16] : memref<1x16x32xf32, #tpu.memory_space<vmem>>, vector<1x16x32xf32>
    %41 = vector.shape_cast %40 : vector<1x16x32xf32> to vector<16x32xf32>
    %42 = vector.shape_cast %39 : vector<16x32xf32> to vector<1x16x32xf32>
    tpu.vector_store %arg5[%c0_14, %c0_15, %c0_16], %42 {strides = array<i32>} : memref<1x16x32xf32, #tpu.memory_space<vmem>>, vector<1x16x32xf32>,
    return
  }
  func.func @transform_0(%arg0: i32) -> (i32, i32, i32, i32, i32) {
    %c0_i32 = arith.constant 0 : i32
    %c0_i32_0 = arith.constant 0 : i32
    %c0_i32_1 = arith.constant 0 : i32
    %c0_i32_2 = arith.constant 0 : i32
    %c0_i32_3 = arith.constant 0 : i32
    return %arg0, %c0_i32, %c0_i32_0, %c0_i32_1, %c0_i32_2 : i32, i32, i32, i32, i32
  }
  func.func @transform_1(%arg0: i32) -> (i32, i32, i32) {
    %c0_i32 = arith.constant 0 : i32
    %c0_i32_0 = arith.constant 0 : i32
    %c0_i32_1 = arith.constant 0 : i32
    %c0_i32_2 = arith.constant 0 : i32
    return %c0_i32, %c0_i32_0, %c0_i32_1 : i32, i32, i32
  }
  func.func @transform_2(%arg0: i32) -> (i32, i32) {
    %c0_i32 = arith.constant 0 : i32
    %c0_i32_0 = arith.constant 0 : i32
    %c0_i32_1 = arith.constant 0 : i32
    return %c0_i32, %c0_i32_0 : i32, i32
  }
  func.func @transform_3(%arg0: i32) -> (i32, i32) {
    %c0_i32 = arith.constant 0 : i32
    %c0_i32_0 = arith.constant 0 : i32
    %c0_i32_1 = arith.constant 0 : i32
    return %c0_i32, %c0_i32_0 : i32, i32
  }
  func.func @transform_4(%arg0: i32) -> (i32, i32, i32) {
    %c0_i32 = arith.constant 0 : i32
    %c0_i32_0 = arith.constant 0 : i32
    %c0_i32_1 = arith.constant 0 : i32
    return %arg0, %c0_i32, %c0_i32_0 : i32, i32, i32
  }
}

module attributes {stable_mosaic.version = 11 : i64} {
  func.func @_down2_kernel(%arg0: i32, %arg1: memref<1x2x2x2x64xf32, #tpu.memory_space<vmem>>, %arg2: memref<4x32x64xbf16, #tpu.memory_space<vmem>>, %arg3: memref<1x64xf32, #tpu.memory_space<vmem>>, %arg4: memref<1x64xf32, #tpu.memory_space<vmem>>, %arg5: memref<1x4x64xf32, #tpu.memory_space<vmem>>) attributes {dimension_semantics = [#tpu.dimension_semantics<parallel>], iteration_bounds = array<i64: 2>, scalar_prefetch = 0 : i64, scratch_operands = 0 : i64, tpu.core_type = #tpu.core_type<tc>, window_params = [{transform_indices = @transform_0, window_bounds = array<i64: 1, 2, 2, 2, 64>}, {pipeline_mode = #tpu.pipeline_mode<synchronous>, transform_indices = @transform_1, window_bounds = array<i64: 4, 32, 64>}, {pipeline_mode = #tpu.pipeline_mode<synchronous>, transform_indices = @transform_2, window_bounds = array<i64: 1, 64>}, {pipeline_mode = #tpu.pipeline_mode<synchronous>, transform_indices = @transform_3, window_bounds = array<i64: 1, 64>}, {transform_indices = @transform_4, window_bounds = array<i64: 1, 4, 64>}]} {
    %c0 = arith.constant 0 : index
    %c0_0 = arith.constant 0 : index
    %c0_1 = arith.constant 0 : index
    %c0_2 = arith.constant 0 : index
    %c0_3 = arith.constant 0 : index
    %0 = vector.load %arg1[%c0, %c0_0, %c0_1, %c0_2, %c0_3] : memref<1x2x2x2x64xf32, #tpu.memory_space<vmem>>, vector<1x2x2x2x64xf32>
    %1 = vector.shape_cast %0 : vector<1x2x2x2x64xf32> to vector<2x2x2x64xf32>
    %c0_4 = arith.constant 0 : index
    %c0_5 = arith.constant 0 : index
    %c0_6 = arith.constant 0 : index
    %2 = vector.load %arg2[%c0_4, %c0_5, %c0_6] : memref<4x32x64xbf16, #tpu.memory_space<vmem>>, vector<4x32x64xbf16>
    %3 = vector.extract_strided_slice %1 {offsets = [0, 0, 0, 0], sizes = [2, 1, 2, 32], strides = [1, 1, 1, 1]} : vector<2x2x2x64xf32> to vector<2x1x2x32xf32>
    %4 = vector.shape_cast %3 : vector<2x1x2x32xf32> to vector<2x2x32xf32>
    %5 = vector.shape_cast %4 : vector<2x2x32xf32> to vector<4x32xf32>
    %6 = arith.truncf %5 : vector<4x32xf32> to vector<4x32xbf16>
    %7 = vector.extract_strided_slice %2 {offsets = [0, 0, 0], sizes = [1, 32, 64], strides = [1, 1, 1]} : vector<4x32x64xbf16> to vector<1x32x64xbf16>
    %8 = vector.shape_cast %7 : vector<1x32x64xbf16> to vector<32x64xbf16>
    %cst = arith.constant dense<0.000000e+00> : vector<4x64xf32>
    %9 = tpu.matmul %6, %8, %cst {dimension_numbers = #tpu.dot_dimension_numbers<[1], [0], [0], [1], [0, 0, 1, 1], [], []>} : vector<4x32xbf16>, vector<32x64xbf16>, vector<4x64xf32> -> vector<4x64xf32>
    %10 = vector.extract_strided_slice %1 {offsets = [0, 0, 0, 32], sizes = [2, 1, 2, 32], strides = [1, 1, 1, 1]} : vector<2x2x2x64xf32> to vector<2x1x2x32xf32>
    %11 = vector.shape_cast %10 : vector<2x1x2x32xf32> to vector<2x2x32xf32>
    %12 = vector.shape_cast %11 : vector<2x2x32xf32> to vector<4x32xf32>
    %13 = arith.truncf %12 : vector<4x32xf32> to vector<4x32xbf16>
    %14 = vector.extract_strided_slice %2 {offsets = [1, 0, 0], sizes = [1, 32, 64], strides = [1, 1, 1]} : vector<4x32x64xbf16> to vector<1x32x64xbf16>
    %15 = vector.shape_cast %14 : vector<1x32x64xbf16> to vector<32x64xbf16>
    %cst_7 = arith.constant dense<0.000000e+00> : vector<4x64xf32>
    %16 = tpu.matmul %13, %15, %cst_7 {dimension_numbers = #tpu.dot_dimension_numbers<[1], [0], [0], [1], [0, 0, 1, 1], [], []>} : vector<4x32xbf16>, vector<32x64xbf16>, vector<4x64xf32> -> vector<4x64xf32>
    %17 = arith.addf %9, %16 : vector<4x64xf32>
    %18 = vector.extract_strided_slice %1 {offsets = [0, 1, 0, 0], sizes = [2, 1, 2, 32], strides = [1, 1, 1, 1]} : vector<2x2x2x64xf32> to vector<2x1x2x32xf32>
    %19 = vector.shape_cast %18 : vector<2x1x2x32xf32> to vector<2x2x32xf32>
    %20 = vector.shape_cast %19 : vector<2x2x32xf32> to vector<4x32xf32>
    %21 = arith.truncf %20 : vector<4x32xf32> to vector<4x32xbf16>
    %22 = vector.extract_strided_slice %2 {offsets = [2, 0, 0], sizes = [1, 32, 64], strides = [1, 1, 1]} : vector<4x32x64xbf16> to vector<1x32x64xbf16>
    %23 = vector.shape_cast %22 : vector<1x32x64xbf16> to vector<32x64xbf16>
    %cst_8 = arith.constant dense<0.000000e+00> : vector<4x64xf32>
    %24 = tpu.matmul %21, %23, %cst_8 {dimension_numbers = #tpu.dot_dimension_numbers<[1], [0], [0], [1], [0, 0, 1, 1], [], []>} : vector<4x32xbf16>, vector<32x64xbf16>, vector<4x64xf32> -> vector<4x64xf32>
    %25 = arith.addf %17, %24 : vector<4x64xf32>
    %26 = vector.extract_strided_slice %1 {offsets = [0, 1, 0, 32], sizes = [2, 1, 2, 32], strides = [1, 1, 1, 1]} : vector<2x2x2x64xf32> to vector<2x1x2x32xf32>
    %27 = vector.shape_cast %26 : vector<2x1x2x32xf32> to vector<2x2x32xf32>
    %28 = vector.shape_cast %27 : vector<2x2x32xf32> to vector<4x32xf32>
    %29 = arith.truncf %28 : vector<4x32xf32> to vector<4x32xbf16>
    %30 = vector.extract_strided_slice %2 {offsets = [3, 0, 0], sizes = [1, 32, 64], strides = [1, 1, 1]} : vector<4x32x64xbf16> to vector<1x32x64xbf16>
    %31 = vector.shape_cast %30 : vector<1x32x64xbf16> to vector<32x64xbf16>
    %cst_9 = arith.constant dense<0.000000e+00> : vector<4x64xf32>
    %32 = tpu.matmul %29, %31, %cst_9 {dimension_numbers = #tpu.dot_dimension_numbers<[1], [0], [0], [1], [0, 0, 1, 1], [], []>} : vector<4x32xbf16>, vector<32x64xbf16>, vector<4x64xf32> -> vector<4x64xf32>
    %33 = arith.addf %25, %32 : vector<4x64xf32>
    %c0_10 = arith.constant 0 : index
    %c0_11 = arith.constant 0 : index
    %34 = vector.load %arg3[%c0_10, %c0_11] : memref<1x64xf32, #tpu.memory_space<vmem>>, vector<1x64xf32>
    %35 = vector.broadcast %34 : vector<1x64xf32> to vector<4x64xf32>
    %36 = arith.mulf %33, %35 : vector<4x64xf32>
    %c0_12 = arith.constant 0 : index
    %c0_13 = arith.constant 0 : index
    %37 = vector.load %arg4[%c0_12, %c0_13] : memref<1x64xf32, #tpu.memory_space<vmem>>, vector<1x64xf32>
    %38 = vector.broadcast %37 : vector<1x64xf32> to vector<4x64xf32>
    %39 = arith.addf %36, %38 : vector<4x64xf32>
    %c0_14 = arith.constant 0 : index
    %c0_15 = arith.constant 0 : index
    %c0_16 = arith.constant 0 : index
    %40 = vector.load %arg5[%c0_14, %c0_15, %c0_16] : memref<1x4x64xf32, #tpu.memory_space<vmem>>, vector<1x4x64xf32>
    %41 = vector.shape_cast %40 : vector<1x4x64xf32> to vector<4x64xf32>
    %42 = vector.shape_cast %39 : vector<4x64xf32> to vector<1x4x64xf32>
    tpu.vector_store %arg5[%c0_14, %c0_15, %c0_16], %42 {strides = array<i32>} : memref<1x4x64xf32, #tpu.memory_space<vmem>>, vector<1x4x64xf32>,
    return
  }
  func.func @transform_0(%arg0: i32) -> (i32, i32, i32, i32, i32) {
    %c0_i32 = arith.constant 0 : i32
    %c0_i32_0 = arith.constant 0 : i32
    %c0_i32_1 = arith.constant 0 : i32
    %c0_i32_2 = arith.constant 0 : i32
    %c0_i32_3 = arith.constant 0 : i32
    return %arg0, %c0_i32, %c0_i32_0, %c0_i32_1, %c0_i32_2 : i32, i32, i32, i32, i32
  }
  func.func @transform_1(%arg0: i32) -> (i32, i32, i32) {
    %c0_i32 = arith.constant 0 : i32
    %c0_i32_0 = arith.constant 0 : i32
    %c0_i32_1 = arith.constant 0 : i32
    %c0_i32_2 = arith.constant 0 : i32
    return %c0_i32, %c0_i32_0, %c0_i32_1 : i32, i32, i32
  }
  func.func @transform_2(%arg0: i32) -> (i32, i32) {
    %c0_i32 = arith.constant 0 : i32
    %c0_i32_0 = arith.constant 0 : i32
    %c0_i32_1 = arith.constant 0 : i32
    return %c0_i32, %c0_i32_0 : i32, i32
  }
  func.func @transform_3(%arg0: i32) -> (i32, i32) {
    %c0_i32 = arith.constant 0 : i32
    %c0_i32_0 = arith.constant 0 : i32
    %c0_i32_1 = arith.constant 0 : i32
    return %c0_i32, %c0_i32_0 : i32, i32
  }
  func.func @transform_4(%arg0: i32) -> (i32, i32, i32) {
    %c0_i32 = arith.constant 0 : i32
    %c0_i32_0 = arith.constant 0 : i32
    %c0_i32_1 = arith.constant 0 : i32
    return %arg0, %c0_i32, %c0_i32_0 : i32, i32, i32
  }
}

module attributes {stable_mosaic.version = 11 : i64} {
  func.func @_block_kernel(%arg0: i32, %arg1: memref<1x4x64xf32, #tpu.memory_space<vmem>>, %arg2: memref<64x128xbf16, #tpu.memory_space<vmem>>, %arg3: memref<1x128xf32, #tpu.memory_space<vmem>>, %arg4: memref<1x128xf32, #tpu.memory_space<vmem>>, %arg5: memref<9x128xf32, #tpu.memory_space<vmem>>, %arg6: memref<1x128xf32, #tpu.memory_space<vmem>>, %arg7: memref<1x128xf32, #tpu.memory_space<vmem>>, %arg8: memref<128x64xbf16, #tpu.memory_space<vmem>>, %arg9: memref<1x64xf32, #tpu.memory_space<vmem>>, %arg10: memref<1x64xf32, #tpu.memory_space<vmem>>, %arg11: memref<1x4x64xf32, #tpu.memory_space<vmem>>, %arg12: memref<4x4x128xf32, #tpu.memory_space<vmem>>) attributes {dimension_semantics = [#tpu.dimension_semantics<parallel>], iteration_bounds = array<i64: 2>, scalar_prefetch = 0 : i64, scratch_operands = 1 : i64, tpu.core_type = #tpu.core_type<tc>, window_params = [{transform_indices = @transform_0, window_bounds = array<i64: 1, 4, 64>}, {pipeline_mode = #tpu.pipeline_mode<synchronous>, transform_indices = @transform_1, window_bounds = array<i64: 64, 128>}, {pipeline_mode = #tpu.pipeline_mode<synchronous>, transform_indices = @transform_2, window_bounds = array<i64: 1, 128>}, {pipeline_mode = #tpu.pipeline_mode<synchronous>, transform_indices = @transform_3, window_bounds = array<i64: 1, 128>}, {pipeline_mode = #tpu.pipeline_mode<synchronous>, transform_indices = @transform_4, window_bounds = array<i64: 9, 128>}, {pipeline_mode = #tpu.pipeline_mode<synchronous>, transform_indices = @transform_5, window_bounds = array<i64: 1, 128>}, {pipeline_mode = #tpu.pipeline_mode<synchronous>, transform_indices = @transform_6, window_bounds = array<i64: 1, 128>}, {pipeline_mode = #tpu.pipeline_mode<synchronous>, transform_indices = @transform_7, window_bounds = array<i64: 128, 64>}, {pipeline_mode = #tpu.pipeline_mode<synchronous>, transform_indices = @transform_8, window_bounds = array<i64: 1, 64>}, {pipeline_mode = #tpu.pipeline_mode<synchronous>, transform_indices = @transform_9, window_bounds = array<i64: 1, 64>}, {transform_indices = @transform_10, window_bounds = array<i64: 1, 4, 64>}]} {
    %c0 = arith.constant 0 : index
    %c0_0 = arith.constant 0 : index
    %c0_1 = arith.constant 0 : index
    %0 = vector.load %arg1[%c0, %c0_0, %c0_1] : memref<1x4x64xf32, #tpu.memory_space<vmem>>, vector<1x4x64xf32>
    %1 = vector.shape_cast %0 : vector<1x4x64xf32> to vector<4x64xf32>
    %2 = arith.truncf %1 : vector<4x64xf32> to vector<4x64xbf16>
    %c0_2 = arith.constant 0 : index
    %c0_3 = arith.constant 0 : index
    %3 = vector.load %arg2[%c0_2, %c0_3] : memref<64x128xbf16, #tpu.memory_space<vmem>>, vector<64x128xbf16>
    %cst = arith.constant dense<0.000000e+00> : vector<4x128xf32>
    %4 = tpu.matmul %2, %3, %cst {dimension_numbers = #tpu.dot_dimension_numbers<[1], [0], [0], [1], [0, 0, 1, 1], [], []>} : vector<4x64xbf16>, vector<64x128xbf16>, vector<4x128xf32> -> vector<4x128xf32>
    %c0_4 = arith.constant 0 : index
    %c0_5 = arith.constant 0 : index
    %5 = vector.load %arg3[%c0_4, %c0_5] : memref<1x128xf32, #tpu.memory_space<vmem>>, vector<1x128xf32>
    %6 = vector.broadcast %5 : vector<1x128xf32> to vector<4x128xf32>
    %7 = arith.mulf %4, %6 : vector<4x128xf32>
    %c0_6 = arith.constant 0 : index
    %c0_7 = arith.constant 0 : index
    %8 = vector.load %arg4[%c0_6, %c0_7] : memref<1x128xf32, #tpu.memory_space<vmem>>, vector<1x128xf32>
    %9 = vector.broadcast %8 : vector<1x128xf32> to vector<4x128xf32>
    %10 = arith.addf %7, %9 : vector<4x128xf32>
    %cst_8 = arith.constant 5.000000e-01 : f32
    %11 = vector.broadcast %cst_8 : f32 to vector<4x128xf32>
    %12 = arith.mulf %11, %10 : vector<4x128xf32>
    %cst_9 = arith.constant 4.471500e-02 : f32
    %13 = vector.broadcast %cst_9 : f32 to vector<4x128xf32>
    %14 = arith.mulf %13, %10 : vector<4x128xf32>
    %15 = arith.mulf %14, %10 : vector<4x128xf32>
    %16 = arith.mulf %15, %10 : vector<4x128xf32>
    %17 = arith.addf %10, %16 : vector<4x128xf32>
    %cst_10 = arith.constant 0.797884583 : f32
    %18 = vector.broadcast %cst_10 : f32 to vector<4x128xf32>
    %19 = arith.mulf %18, %17 : vector<4x128xf32>
    %20 = math.tanh %19 : vector<4x128xf32>
    %cst_11 = arith.constant 1.000000e+00 : f32
    %21 = vector.broadcast %cst_11 : f32 to vector<4x128xf32>
    %22 = arith.addf %21, %20 : vector<4x128xf32>
    %23 = arith.mulf %12, %22 : vector<4x128xf32>
    %cst_12 = arith.constant 0.000000e+00 : f32
    %24 = vector.broadcast %cst_12 : f32 to vector<4x4x128xf32>
    %c0_13 = arith.constant 0 : index
    %c0_14 = arith.constant 0 : index
    %c0_15 = arith.constant 0 : index
    %25 = vector.load %arg12[%c0_13, %c0_14, %c0_15] : memref<4x4x128xf32, #tpu.memory_space<vmem>>, vector<4x4x128xf32>
    tpu.vector_store %arg12[%c0_13, %c0_14, %c0_15], %24 {strides = array<i32>} : memref<4x4x128xf32, #tpu.memory_space<vmem>>, vector<4x4x128xf32>,
    %26 = vector.shape_cast %23 : vector<4x128xf32> to vector<2x2x128xf32>
    %c1 = arith.constant 1 : index
    %c1_16 = arith.constant 1 : index
    %c0_17 = arith.constant 0 : index
    %27 = vector.load %arg12[%c1, %c1_16, %c0_17] : memref<4x4x128xf32, #tpu.memory_space<vmem>>, vector<2x2x128xf32>
    tpu.vector_store %arg12[%c1, %c1_16, %c0_17], %26 {strides = array<i32>} : memref<4x4x128xf32, #tpu.memory_space<vmem>>, vector<2x2x128xf32>,
    %c0_18 = arith.constant 0 : index
    %c0_19 = arith.constant 0 : index
    %28 = vector.load %arg5[%c0_18, %c0_19] : memref<9x128xf32, #tpu.memory_space<vmem>>, vector<9x128xf32>
    %c0_20 = arith.constant 0 : index
    %c0_21 = arith.constant 0 : index
    %c0_22 = arith.constant 0 : index
    %29 = vector.load %arg12[%c0_20, %c0_21, %c0_22] : memref<4x4x128xf32, #tpu.memory_space<vmem>>, vector<2x2x128xf32>
    %30 = vector.extract_strided_slice %28 {offsets = [0, 0], sizes = [1, 128], strides = [1, 1]} : vector<9x128xf32> to vector<1x128xf32>
    %31 = vector.shape_cast %30 : vector<1x128xf32> to vector<1x1x128xf32>
    %32 = vector.broadcast %31 : vector<1x1x128xf32> to vector<2x2x128xf32>
    %33 = arith.mulf %29, %32 : vector<2x2x128xf32>
    %c0_23 = arith.constant 0 : index
    %c1_24 = arith.constant 1 : index
    %c0_25 = arith.constant 0 : index
    %34 = vector.load %arg12[%c0_23, %c1_24, %c0_25] : memref<4x4x128xf32, #tpu.memory_space<vmem>>, vector<2x2x128xf32>
    %35 = vector.extract_strided_slice %28 {offsets = [1, 0], sizes = [1, 128], strides = [1, 1]} : vector<9x128xf32> to vector<1x128xf32>
    %36 = vector.shape_cast %35 : vector<1x128xf32> to vector<1x1x128xf32>
    %37 = vector.broadcast %36 : vector<1x1x128xf32> to vector<2x2x128xf32>
    %38 = arith.mulf %34, %37 : vector<2x2x128xf32>
    %39 = arith.addf %33, %38 : vector<2x2x128xf32>
    %c0_26 = arith.constant 0 : index
    %c2 = arith.constant 2 : index
    %c0_27 = arith.constant 0 : index
    %40 = vector.load %arg12[%c0_26, %c2, %c0_27] : memref<4x4x128xf32, #tpu.memory_space<vmem>>, vector<2x2x128xf32>
    %41 = vector.extract_strided_slice %28 {offsets = [2, 0], sizes = [1, 128], strides = [1, 1]} : vector<9x128xf32> to vector<1x128xf32>
    %42 = vector.shape_cast %41 : vector<1x128xf32> to vector<1x1x128xf32>
    %43 = vector.broadcast %42 : vector<1x1x128xf32> to vector<2x2x128xf32>
    %44 = arith.mulf %40, %43 : vector<2x2x128xf32>
    %45 = arith.addf %39, %44 : vector<2x2x128xf32>
    %c1_28 = arith.constant 1 : index
    %c0_29 = arith.constant 0 : index
    %c0_30 = arith.constant 0 : index
    %46 = vector.load %arg12[%c1_28, %c0_29, %c0_30] : memref<4x4x128xf32, #tpu.memory_space<vmem>>, vector<2x2x128xf32>
    %47 = vector.extract_strided_slice %28 {offsets = [3, 0], sizes = [1, 128], strides = [1, 1]} : vector<9x128xf32> to vector<1x128xf32>
    %48 = vector.shape_cast %47 : vector<1x128xf32> to vector<1x1x128xf32>
    %49 = vector.broadcast %48 : vector<1x1x128xf32> to vector<2x2x128xf32>
    %50 = arith.mulf %46, %49 : vector<2x2x128xf32>
    %51 = arith.addf %45, %50 : vector<2x2x128xf32>
    %c1_31 = arith.constant 1 : index
    %c1_32 = arith.constant 1 : index
    %c0_33 = arith.constant 0 : index
    %52 = vector.load %arg12[%c1_31, %c1_32, %c0_33] : memref<4x4x128xf32, #tpu.memory_space<vmem>>, vector<2x2x128xf32>
    %53 = vector.extract_strided_slice %28 {offsets = [4, 0], sizes = [1, 128], strides = [1, 1]} : vector<9x128xf32> to vector<1x128xf32>
    %54 = vector.shape_cast %53 : vector<1x128xf32> to vector<1x1x128xf32>
    %55 = vector.broadcast %54 : vector<1x1x128xf32> to vector<2x2x128xf32>
    %56 = arith.mulf %52, %55 : vector<2x2x128xf32>
    %57 = arith.addf %51, %56 : vector<2x2x128xf32>
    %c1_34 = arith.constant 1 : index
    %c2_35 = arith.constant 2 : index
    %c0_36 = arith.constant 0 : index
    %58 = vector.load %arg12[%c1_34, %c2_35, %c0_36] : memref<4x4x128xf32, #tpu.memory_space<vmem>>, vector<2x2x128xf32>
    %59 = vector.extract_strided_slice %28 {offsets = [5, 0], sizes = [1, 128], strides = [1, 1]} : vector<9x128xf32> to vector<1x128xf32>
    %60 = vector.shape_cast %59 : vector<1x128xf32> to vector<1x1x128xf32>
    %61 = vector.broadcast %60 : vector<1x1x128xf32> to vector<2x2x128xf32>
    %62 = arith.mulf %58, %61 : vector<2x2x128xf32>
    %63 = arith.addf %57, %62 : vector<2x2x128xf32>
    %c2_37 = arith.constant 2 : index
    %c0_38 = arith.constant 0 : index
    %c0_39 = arith.constant 0 : index
    %64 = vector.load %arg12[%c2_37, %c0_38, %c0_39] : memref<4x4x128xf32, #tpu.memory_space<vmem>>, vector<2x2x128xf32>
    %65 = vector.extract_strided_slice %28 {offsets = [6, 0], sizes = [1, 128], strides = [1, 1]} : vector<9x128xf32> to vector<1x128xf32>
    %66 = vector.shape_cast %65 : vector<1x128xf32> to vector<1x1x128xf32>
    %67 = vector.broadcast %66 : vector<1x1x128xf32> to vector<2x2x128xf32>
    %68 = arith.mulf %64, %67 : vector<2x2x128xf32>
    %69 = arith.addf %63, %68 : vector<2x2x128xf32>
    %c2_40 = arith.constant 2 : index
    %c1_41 = arith.constant 1 : index
    %c0_42 = arith.constant 0 : index
    %70 = vector.load %arg12[%c2_40, %c1_41, %c0_42] : memref<4x4x128xf32, #tpu.memory_space<vmem>>, vector<2x2x128xf32>
    %71 = vector.extract_strided_slice %28 {offsets = [7, 0], sizes = [1, 128], strides = [1, 1]} : vector<9x128xf32> to vector<1x128xf32>
    %72 = vector.shape_cast %71 : vector<1x128xf32> to vector<1x1x128xf32>
    %73 = vector.broadcast %72 : vector<1x1x128xf32> to vector<2x2x128xf32>
    %74 = arith.mulf %70, %73 : vector<2x2x128xf32>
    %75 = arith.addf %69, %74 : vector<2x2x128xf32>
    %c2_43 = arith.constant 2 : index
    %c2_44 = arith.constant 2 : index
    %c0_45 = arith.constant 0 : index
    %76 = vector.load %arg12[%c2_43, %c2_44, %c0_45] : memref<4x4x128xf32, #tpu.memory_space<vmem>>, vector<2x2x128xf32>
    %77 = vector.extract_strided_slice %28 {offsets = [8, 0], sizes = [1, 128], strides = [1, 1]} : vector<9x128xf32> to vector<1x128xf32>
    %78 = vector.shape_cast %77 : vector<1x128xf32> to vector<1x1x128xf32>
    %79 = vector.broadcast %78 : vector<1x1x128xf32> to vector<2x2x128xf32>
    %80 = arith.mulf %76, %79 : vector<2x2x128xf32>
    %81 = arith.addf %75, %80 : vector<2x2x128xf32>
    %c0_46 = arith.constant 0 : index
    %c0_47 = arith.constant 0 : index
    %82 = vector.load %arg6[%c0_46, %c0_47] : memref<1x128xf32, #tpu.memory_space<vmem>>, vector<1x128xf32>
    %83 = vector.shape_cast %82 : vector<1x128xf32> to vector<1x1x128xf32>
    %84 = vector.broadcast %83 : vector<1x1x128xf32> to vector<2x2x128xf32>
    %85 = arith.mulf %81, %84 : vector<2x2x128xf32>
    %c0_48 = arith.constant 0 : index
    %c0_49 = arith.constant 0 : index
    %86 = vector.load %arg7[%c0_48, %c0_49] : memref<1x128xf32, #tpu.memory_space<vmem>>, vector<1x128xf32>
    %87 = vector.shape_cast %86 : vector<1x128xf32> to vector<1x1x128xf32>
    %88 = vector.broadcast %87 : vector<1x1x128xf32> to vector<2x2x128xf32>
    %89 = arith.addf %85, %88 : vector<2x2x128xf32>
    %cst_50 = arith.constant 5.000000e-01 : f32
    %90 = vector.broadcast %cst_50 : f32 to vector<2x2x128xf32>
    %91 = arith.mulf %90, %89 : vector<2x2x128xf32>
    %cst_51 = arith.constant 4.471500e-02 : f32
    %92 = vector.broadcast %cst_51 : f32 to vector<2x2x128xf32>
    %93 = arith.mulf %92, %89 : vector<2x2x128xf32>
    %94 = arith.mulf %93, %89 : vector<2x2x128xf32>
    %95 = arith.mulf %94, %89 : vector<2x2x128xf32>
    %96 = arith.addf %89, %95 : vector<2x2x128xf32>
    %cst_52 = arith.constant 0.797884583 : f32
    %97 = vector.broadcast %cst_52 : f32 to vector<2x2x128xf32>
    %98 = arith.mulf %97, %96 : vector<2x2x128xf32>
    %99 = math.tanh %98 : vector<2x2x128xf32>
    %cst_53 = arith.constant 1.000000e+00 : f32
    %100 = vector.broadcast %cst_53 : f32 to vector<2x2x128xf32>
    %101 = arith.addf %100, %99 : vector<2x2x128xf32>
    %102 = arith.mulf %91, %101 : vector<2x2x128xf32>
    %103 = vector.shape_cast %102 : vector<2x2x128xf32> to vector<4x128xf32>
    %104 = arith.truncf %103 : vector<4x128xf32> to vector<4x128xbf16>
    %c0_54 = arith.constant 0 : index
    %c0_55 = arith.constant 0 : index
    %105 = vector.load %arg8[%c0_54, %c0_55] : memref<128x64xbf16, #tpu.memory_space<vmem>>, vector<128x64xbf16>
    %cst_56 = arith.constant dense<0.000000e+00> : vector<4x64xf32>
    %106 = tpu.matmul %104, %105, %cst_56 {dimension_numbers = #tpu.dot_dimension_numbers<[1], [0], [0], [1], [0, 0, 1, 1], [], []>} : vector<4x128xbf16>, vector<128x64xbf16>, vector<4x64xf32> -> vector<4x64xf32>
    %c0_57 = arith.constant 0 : index
    %c0_58 = arith.constant 0 : index
    %107 = vector.load %arg9[%c0_57, %c0_58] : memref<1x64xf32, #tpu.memory_space<vmem>>, vector<1x64xf32>
    %108 = vector.broadcast %107 : vector<1x64xf32> to vector<4x64xf32>
    %109 = arith.mulf %106, %108 : vector<4x64xf32>
    %c0_59 = arith.constant 0 : index
    %c0_60 = arith.constant 0 : index
    %110 = vector.load %arg10[%c0_59, %c0_60] : memref<1x64xf32, #tpu.memory_space<vmem>>, vector<1x64xf32>
    %111 = vector.broadcast %110 : vector<1x64xf32> to vector<4x64xf32>
    %112 = arith.addf %109, %111 : vector<4x64xf32>
    %113 = arith.addf %112, %1 : vector<4x64xf32>
    %c0_61 = arith.constant 0 : index
    %c0_62 = arith.constant 0 : index
    %c0_63 = arith.constant 0 : index
    %114 = vector.load %arg11[%c0_61, %c0_62, %c0_63] : memref<1x4x64xf32, #tpu.memory_space<vmem>>, vector<1x4x64xf32>
    %115 = vector.shape_cast %114 : vector<1x4x64xf32> to vector<4x64xf32>
    %116 = vector.shape_cast %113 : vector<4x64xf32> to vector<1x4x64xf32>
    tpu.vector_store %arg11[%c0_61, %c0_62, %c0_63], %116 {strides = array<i32>} : memref<1x4x64xf32, #tpu.memory_space<vmem>>, vector<1x4x64xf32>,
    return
  }
  func.func @transform_0(%arg0: i32) -> (i32, i32, i32) {
    %c0_i32 = arith.constant 0 : i32
    %c0_i32_0 = arith.constant 0 : i32
    %c0_i32_1 = arith.constant 0 : i32
    return %arg0, %c0_i32, %c0_i32_0 : i32, i32, i32
  }
  func.func @transform_1(%arg0: i32) -> (i32, i32) {
    %c0_i32 = arith.constant 0 : i32
    %c0_i32_0 = arith.constant 0 : i32
    %c0_i32_1 = arith.constant 0 : i32
    return %c0_i32, %c0_i32_0 : i32, i32
  }
  func.func @transform_2(%arg0: i32) -> (i32, i32) {
    %c0_i32 = arith.constant 0 : i32
    %c0_i32_0 = arith.constant 0 : i32
    %c0_i32_1 = arith.constant 0 : i32
    return %c0_i32, %c0_i32_0 : i32, i32
  }
  func.func @transform_3(%arg0: i32) -> (i32, i32) {
    %c0_i32 = arith.constant 0 : i32
    %c0_i32_0 = arith.constant 0 : i32
    %c0_i32_1 = arith.constant 0 : i32
    return %c0_i32, %c0_i32_0 : i32, i32
  }
  func.func @transform_4(%arg0: i32) -> (i32, i32) {
    %c0_i32 = arith.constant 0 : i32
    %c0_i32_0 = arith.constant 0 : i32
    %c0_i32_1 = arith.constant 0 : i32
    return %c0_i32, %c0_i32_0 : i32, i32
  }
  func.func @transform_5(%arg0: i32) -> (i32, i32) {
    %c0_i32 = arith.constant 0 : i32
    %c0_i32_0 = arith.constant 0 : i32
    %c0_i32_1 = arith.constant 0 : i32
    return %c0_i32, %c0_i32_0 : i32, i32
  }
  func.func @transform_6(%arg0: i32) -> (i32, i32) {
    %c0_i32 = arith.constant 0 : i32
    %c0_i32_0 = arith.constant 0 : i32
    %c0_i32_1 = arith.constant 0 : i32
    return %c0_i32, %c0_i32_0 : i32, i32
  }
  func.func @transform_7(%arg0: i32) -> (i32, i32) {
    %c0_i32 = arith.constant 0 : i32
    %c0_i32_0 = arith.constant 0 : i32
    %c0_i32_1 = arith.constant 0 : i32
    return %c0_i32, %c0_i32_0 : i32, i32
  }
  func.func @transform_8(%arg0: i32) -> (i32, i32) {
    %c0_i32 = arith.constant 0 : i32
    %c0_i32_0 = arith.constant 0 : i32
    %c0_i32_1 = arith.constant 0 : i32
    return %c0_i32, %c0_i32_0 : i32, i32
  }
  func.func @transform_9(%arg0: i32) -> (i32, i32) {
    %c0_i32 = arith.constant 0 : i32
    %c0_i32_0 = arith.constant 0 : i32
    %c0_i32_1 = arith.constant 0 : i32
    return %c0_i32, %c0_i32_0 : i32, i32
  }
  func.func @transform_10(%arg0: i32) -> (i32, i32, i32) {
    %c0_i32 = arith.constant 0 : i32
    %c0_i32_0 = arith.constant 0 : i32
    %c0_i32_1 = arith.constant 0 : i32
    return %arg0, %c0_i32, %c0_i32_0 : i32, i32, i32
  }
}

module attributes {stable_mosaic.version = 11 : i64} {
  func.func @_block_kernel(%arg0: i32, %arg1: memref<1x16x32xf32, #tpu.memory_space<vmem>>, %arg2: memref<32x64xbf16, #tpu.memory_space<vmem>>, %arg3: memref<1x64xf32, #tpu.memory_space<vmem>>, %arg4: memref<1x64xf32, #tpu.memory_space<vmem>>, %arg5: memref<9x64xf32, #tpu.memory_space<vmem>>, %arg6: memref<1x64xf32, #tpu.memory_space<vmem>>, %arg7: memref<1x64xf32, #tpu.memory_space<vmem>>, %arg8: memref<64x32xbf16, #tpu.memory_space<vmem>>, %arg9: memref<1x32xf32, #tpu.memory_space<vmem>>, %arg10: memref<1x32xf32, #tpu.memory_space<vmem>>, %arg11: memref<1x16x32xf32, #tpu.memory_space<vmem>>, %arg12: memref<6x6x64xf32, #tpu.memory_space<vmem>>) attributes {dimension_semantics = [#tpu.dimension_semantics<parallel>], iteration_bounds = array<i64: 2>, scalar_prefetch = 0 : i64, scratch_operands = 1 : i64, tpu.core_type = #tpu.core_type<tc>, window_params = [{transform_indices = @transform_0, window_bounds = array<i64: 1, 16, 32>}, {pipeline_mode = #tpu.pipeline_mode<synchronous>, transform_indices = @transform_1, window_bounds = array<i64: 32, 64>}, {pipeline_mode = #tpu.pipeline_mode<synchronous>, transform_indices = @transform_2, window_bounds = array<i64: 1, 64>}, {pipeline_mode = #tpu.pipeline_mode<synchronous>, transform_indices = @transform_3, window_bounds = array<i64: 1, 64>}, {pipeline_mode = #tpu.pipeline_mode<synchronous>, transform_indices = @transform_4, window_bounds = array<i64: 9, 64>}, {pipeline_mode = #tpu.pipeline_mode<synchronous>, transform_indices = @transform_5, window_bounds = array<i64: 1, 64>}, {pipeline_mode = #tpu.pipeline_mode<synchronous>, transform_indices = @transform_6, window_bounds = array<i64: 1, 64>}, {pipeline_mode = #tpu.pipeline_mode<synchronous>, transform_indices = @transform_7, window_bounds = array<i64: 64, 32>}, {pipeline_mode = #tpu.pipeline_mode<synchronous>, transform_indices = @transform_8, window_bounds = array<i64: 1, 32>}, {pipeline_mode = #tpu.pipeline_mode<synchronous>, transform_indices = @transform_9, window_bounds = array<i64: 1, 32>}, {transform_indices = @transform_10, window_bounds = array<i64: 1, 16, 32>}]} {
    %c0 = arith.constant 0 : index
    %c0_0 = arith.constant 0 : index
    %c0_1 = arith.constant 0 : index
    %0 = vector.load %arg1[%c0, %c0_0, %c0_1] : memref<1x16x32xf32, #tpu.memory_space<vmem>>, vector<1x16x32xf32>
    %1 = vector.shape_cast %0 : vector<1x16x32xf32> to vector<16x32xf32>
    %2 = arith.truncf %1 : vector<16x32xf32> to vector<16x32xbf16>
    %c0_2 = arith.constant 0 : index
    %c0_3 = arith.constant 0 : index
    %3 = vector.load %arg2[%c0_2, %c0_3] : memref<32x64xbf16, #tpu.memory_space<vmem>>, vector<32x64xbf16>
    %cst = arith.constant dense<0.000000e+00> : vector<16x64xf32>
    %4 = tpu.matmul %2, %3, %cst {dimension_numbers = #tpu.dot_dimension_numbers<[1], [0], [0], [1], [0, 0, 1, 1], [], []>} : vector<16x32xbf16>, vector<32x64xbf16>, vector<16x64xf32> -> vector<16x64xf32>
    %c0_4 = arith.constant 0 : index
    %c0_5 = arith.constant 0 : index
    %5 = vector.load %arg3[%c0_4, %c0_5] : memref<1x64xf32, #tpu.memory_space<vmem>>, vector<1x64xf32>
    %6 = vector.broadcast %5 : vector<1x64xf32> to vector<16x64xf32>
    %7 = arith.mulf %4, %6 : vector<16x64xf32>
    %c0_6 = arith.constant 0 : index
    %c0_7 = arith.constant 0 : index
    %8 = vector.load %arg4[%c0_6, %c0_7] : memref<1x64xf32, #tpu.memory_space<vmem>>, vector<1x64xf32>
    %9 = vector.broadcast %8 : vector<1x64xf32> to vector<16x64xf32>
    %10 = arith.addf %7, %9 : vector<16x64xf32>
    %cst_8 = arith.constant 5.000000e-01 : f32
    %11 = vector.broadcast %cst_8 : f32 to vector<16x64xf32>
    %12 = arith.mulf %11, %10 : vector<16x64xf32>
    %cst_9 = arith.constant 4.471500e-02 : f32
    %13 = vector.broadcast %cst_9 : f32 to vector<16x64xf32>
    %14 = arith.mulf %13, %10 : vector<16x64xf32>
    %15 = arith.mulf %14, %10 : vector<16x64xf32>
    %16 = arith.mulf %15, %10 : vector<16x64xf32>
    %17 = arith.addf %10, %16 : vector<16x64xf32>
    %cst_10 = arith.constant 0.797884583 : f32
    %18 = vector.broadcast %cst_10 : f32 to vector<16x64xf32>
    %19 = arith.mulf %18, %17 : vector<16x64xf32>
    %20 = math.tanh %19 : vector<16x64xf32>
    %cst_11 = arith.constant 1.000000e+00 : f32
    %21 = vector.broadcast %cst_11 : f32 to vector<16x64xf32>
    %22 = arith.addf %21, %20 : vector<16x64xf32>
    %23 = arith.mulf %12, %22 : vector<16x64xf32>
    %cst_12 = arith.constant 0.000000e+00 : f32
    %24 = vector.broadcast %cst_12 : f32 to vector<6x6x64xf32>
    %c0_13 = arith.constant 0 : index
    %c0_14 = arith.constant 0 : index
    %c0_15 = arith.constant 0 : index
    %25 = vector.load %arg12[%c0_13, %c0_14, %c0_15] : memref<6x6x64xf32, #tpu.memory_space<vmem>>, vector<6x6x64xf32>
    tpu.vector_store %arg12[%c0_13, %c0_14, %c0_15], %24 {strides = array<i32>} : memref<6x6x64xf32, #tpu.memory_space<vmem>>, vector<6x6x64xf32>,
    %26 = vector.shape_cast %23 : vector<16x64xf32> to vector<4x4x64xf32>
    %c1 = arith.constant 1 : index
    %c1_16 = arith.constant 1 : index
    %c0_17 = arith.constant 0 : index
    %27 = vector.load %arg12[%c1, %c1_16, %c0_17] : memref<6x6x64xf32, #tpu.memory_space<vmem>>, vector<4x4x64xf32>
    tpu.vector_store %arg12[%c1, %c1_16, %c0_17], %26 {strides = array<i32>} : memref<6x6x64xf32, #tpu.memory_space<vmem>>, vector<4x4x64xf32>,
    %c0_18 = arith.constant 0 : index
    %c0_19 = arith.constant 0 : index
    %28 = vector.load %arg5[%c0_18, %c0_19] : memref<9x64xf32, #tpu.memory_space<vmem>>, vector<9x64xf32>
    %c0_20 = arith.constant 0 : index
    %c0_21 = arith.constant 0 : index
    %c0_22 = arith.constant 0 : index
    %29 = vector.load %arg12[%c0_20, %c0_21, %c0_22] : memref<6x6x64xf32, #tpu.memory_space<vmem>>, vector<4x4x64xf32>
    %30 = vector.extract_strided_slice %28 {offsets = [0, 0], sizes = [1, 64], strides = [1, 1]} : vector<9x64xf32> to vector<1x64xf32>
    %31 = vector.shape_cast %30 : vector<1x64xf32> to vector<1x1x64xf32>
    %32 = vector.broadcast %31 : vector<1x1x64xf32> to vector<4x4x64xf32>
    %33 = arith.mulf %29, %32 : vector<4x4x64xf32>
    %c0_23 = arith.constant 0 : index
    %c1_24 = arith.constant 1 : index
    %c0_25 = arith.constant 0 : index
    %34 = vector.load %arg12[%c0_23, %c1_24, %c0_25] : memref<6x6x64xf32, #tpu.memory_space<vmem>>, vector<4x4x64xf32>
    %35 = vector.extract_strided_slice %28 {offsets = [1, 0], sizes = [1, 64], strides = [1, 1]} : vector<9x64xf32> to vector<1x64xf32>
    %36 = vector.shape_cast %35 : vector<1x64xf32> to vector<1x1x64xf32>
    %37 = vector.broadcast %36 : vector<1x1x64xf32> to vector<4x4x64xf32>
    %38 = arith.mulf %34, %37 : vector<4x4x64xf32>
    %39 = arith.addf %33, %38 : vector<4x4x64xf32>
    %c0_26 = arith.constant 0 : index
    %c2 = arith.constant 2 : index
    %c0_27 = arith.constant 0 : index
    %40 = vector.load %arg12[%c0_26, %c2, %c0_27] : memref<6x6x64xf32, #tpu.memory_space<vmem>>, vector<4x4x64xf32>
    %41 = vector.extract_strided_slice %28 {offsets = [2, 0], sizes = [1, 64], strides = [1, 1]} : vector<9x64xf32> to vector<1x64xf32>
    %42 = vector.shape_cast %41 : vector<1x64xf32> to vector<1x1x64xf32>
    %43 = vector.broadcast %42 : vector<1x1x64xf32> to vector<4x4x64xf32>
    %44 = arith.mulf %40, %43 : vector<4x4x64xf32>
    %45 = arith.addf %39, %44 : vector<4x4x64xf32>
    %c1_28 = arith.constant 1 : index
    %c0_29 = arith.constant 0 : index
    %c0_30 = arith.constant 0 : index
    %46 = vector.load %arg12[%c1_28, %c0_29, %c0_30] : memref<6x6x64xf32, #tpu.memory_space<vmem>>, vector<4x4x64xf32>
    %47 = vector.extract_strided_slice %28 {offsets = [3, 0], sizes = [1, 64], strides = [1, 1]} : vector<9x64xf32> to vector<1x64xf32>
    %48 = vector.shape_cast %47 : vector<1x64xf32> to vector<1x1x64xf32>
    %49 = vector.broadcast %48 : vector<1x1x64xf32> to vector<4x4x64xf32>
    %50 = arith.mulf %46, %49 : vector<4x4x64xf32>
    %51 = arith.addf %45, %50 : vector<4x4x64xf32>
    %c1_31 = arith.constant 1 : index
    %c1_32 = arith.constant 1 : index
    %c0_33 = arith.constant 0 : index
    %52 = vector.load %arg12[%c1_31, %c1_32, %c0_33] : memref<6x6x64xf32, #tpu.memory_space<vmem>>, vector<4x4x64xf32>
    %53 = vector.extract_strided_slice %28 {offsets = [4, 0], sizes = [1, 64], strides = [1, 1]} : vector<9x64xf32> to vector<1x64xf32>
    %54 = vector.shape_cast %53 : vector<1x64xf32> to vector<1x1x64xf32>
    %55 = vector.broadcast %54 : vector<1x1x64xf32> to vector<4x4x64xf32>
    %56 = arith.mulf %52, %55 : vector<4x4x64xf32>
    %57 = arith.addf %51, %56 : vector<4x4x64xf32>
    %c1_34 = arith.constant 1 : index
    %c2_35 = arith.constant 2 : index
    %c0_36 = arith.constant 0 : index
    %58 = vector.load %arg12[%c1_34, %c2_35, %c0_36] : memref<6x6x64xf32, #tpu.memory_space<vmem>>, vector<4x4x64xf32>
    %59 = vector.extract_strided_slice %28 {offsets = [5, 0], sizes = [1, 64], strides = [1, 1]} : vector<9x64xf32> to vector<1x64xf32>
    %60 = vector.shape_cast %59 : vector<1x64xf32> to vector<1x1x64xf32>
    %61 = vector.broadcast %60 : vector<1x1x64xf32> to vector<4x4x64xf32>
    %62 = arith.mulf %58, %61 : vector<4x4x64xf32>
    %63 = arith.addf %57, %62 : vector<4x4x64xf32>
    %c2_37 = arith.constant 2 : index
    %c0_38 = arith.constant 0 : index
    %c0_39 = arith.constant 0 : index
    %64 = vector.load %arg12[%c2_37, %c0_38, %c0_39] : memref<6x6x64xf32, #tpu.memory_space<vmem>>, vector<4x4x64xf32>
    %65 = vector.extract_strided_slice %28 {offsets = [6, 0], sizes = [1, 64], strides = [1, 1]} : vector<9x64xf32> to vector<1x64xf32>
    %66 = vector.shape_cast %65 : vector<1x64xf32> to vector<1x1x64xf32>
    %67 = vector.broadcast %66 : vector<1x1x64xf32> to vector<4x4x64xf32>
    %68 = arith.mulf %64, %67 : vector<4x4x64xf32>
    %69 = arith.addf %63, %68 : vector<4x4x64xf32>
    %c2_40 = arith.constant 2 : index
    %c1_41 = arith.constant 1 : index
    %c0_42 = arith.constant 0 : index
    %70 = vector.load %arg12[%c2_40, %c1_41, %c0_42] : memref<6x6x64xf32, #tpu.memory_space<vmem>>, vector<4x4x64xf32>
    %71 = vector.extract_strided_slice %28 {offsets = [7, 0], sizes = [1, 64], strides = [1, 1]} : vector<9x64xf32> to vector<1x64xf32>
    %72 = vector.shape_cast %71 : vector<1x64xf32> to vector<1x1x64xf32>
    %73 = vector.broadcast %72 : vector<1x1x64xf32> to vector<4x4x64xf32>
    %74 = arith.mulf %70, %73 : vector<4x4x64xf32>
    %75 = arith.addf %69, %74 : vector<4x4x64xf32>
    %c2_43 = arith.constant 2 : index
    %c2_44 = arith.constant 2 : index
    %c0_45 = arith.constant 0 : index
    %76 = vector.load %arg12[%c2_43, %c2_44, %c0_45] : memref<6x6x64xf32, #tpu.memory_space<vmem>>, vector<4x4x64xf32>
    %77 = vector.extract_strided_slice %28 {offsets = [8, 0], sizes = [1, 64], strides = [1, 1]} : vector<9x64xf32> to vector<1x64xf32>
    %78 = vector.shape_cast %77 : vector<1x64xf32> to vector<1x1x64xf32>
    %79 = vector.broadcast %78 : vector<1x1x64xf32> to vector<4x4x64xf32>
    %80 = arith.mulf %76, %79 : vector<4x4x64xf32>
    %81 = arith.addf %75, %80 : vector<4x4x64xf32>
    %c0_46 = arith.constant 0 : index
    %c0_47 = arith.constant 0 : index
    %82 = vector.load %arg6[%c0_46, %c0_47] : memref<1x64xf32, #tpu.memory_space<vmem>>, vector<1x64xf32>
    %83 = vector.shape_cast %82 : vector<1x64xf32> to vector<1x1x64xf32>
    %84 = vector.broadcast %83 : vector<1x1x64xf32> to vector<4x4x64xf32>
    %85 = arith.mulf %81, %84 : vector<4x4x64xf32>
    %c0_48 = arith.constant 0 : index
    %c0_49 = arith.constant 0 : index
    %86 = vector.load %arg7[%c0_48, %c0_49] : memref<1x64xf32, #tpu.memory_space<vmem>>, vector<1x64xf32>
    %87 = vector.shape_cast %86 : vector<1x64xf32> to vector<1x1x64xf32>
    %88 = vector.broadcast %87 : vector<1x1x64xf32> to vector<4x4x64xf32>
    %89 = arith.addf %85, %88 : vector<4x4x64xf32>
    %cst_50 = arith.constant 5.000000e-01 : f32
    %90 = vector.broadcast %cst_50 : f32 to vector<4x4x64xf32>
    %91 = arith.mulf %90, %89 : vector<4x4x64xf32>
    %cst_51 = arith.constant 4.471500e-02 : f32
    %92 = vector.broadcast %cst_51 : f32 to vector<4x4x64xf32>
    %93 = arith.mulf %92, %89 : vector<4x4x64xf32>
    %94 = arith.mulf %93, %89 : vector<4x4x64xf32>
    %95 = arith.mulf %94, %89 : vector<4x4x64xf32>
    %96 = arith.addf %89, %95 : vector<4x4x64xf32>
    %cst_52 = arith.constant 0.797884583 : f32
    %97 = vector.broadcast %cst_52 : f32 to vector<4x4x64xf32>
    %98 = arith.mulf %97, %96 : vector<4x4x64xf32>
    %99 = math.tanh %98 : vector<4x4x64xf32>
    %cst_53 = arith.constant 1.000000e+00 : f32
    %100 = vector.broadcast %cst_53 : f32 to vector<4x4x64xf32>
    %101 = arith.addf %100, %99 : vector<4x4x64xf32>
    %102 = arith.mulf %91, %101 : vector<4x4x64xf32>
    %103 = vector.shape_cast %102 : vector<4x4x64xf32> to vector<16x64xf32>
    %104 = arith.truncf %103 : vector<16x64xf32> to vector<16x64xbf16>
    %c0_54 = arith.constant 0 : index
    %c0_55 = arith.constant 0 : index
    %105 = vector.load %arg8[%c0_54, %c0_55] : memref<64x32xbf16, #tpu.memory_space<vmem>>, vector<64x32xbf16>
    %cst_56 = arith.constant dense<0.000000e+00> : vector<16x32xf32>
    %106 = tpu.matmul %104, %105, %cst_56 {dimension_numbers = #tpu.dot_dimension_numbers<[1], [0], [0], [1], [0, 0, 1, 1], [], []>} : vector<16x64xbf16>, vector<64x32xbf16>, vector<16x32xf32> -> vector<16x32xf32>
    %c0_57 = arith.constant 0 : index
    %c0_58 = arith.constant 0 : index
    %107 = vector.load %arg9[%c0_57, %c0_58] : memref<1x32xf32, #tpu.memory_space<vmem>>, vector<1x32xf32>
    %108 = vector.broadcast %107 : vector<1x32xf32> to vector<16x32xf32>
    %109 = arith.mulf %106, %108 : vector<16x32xf32>
    %c0_59 = arith.constant 0 : index
    %c0_60 = arith.constant 0 : index
    %110 = vector.load %arg10[%c0_59, %c0_60] : memref<1x32xf32, #tpu.memory_space<vmem>>, vector<1x32xf32>
    %111 = vector.broadcast %110 : vector<1x32xf32> to vector<16x32xf32>
    %112 = arith.addf %109, %111 : vector<16x32xf32>
    %113 = arith.addf %112, %1 : vector<16x32xf32>
    %c0_61 = arith.constant 0 : index
    %c0_62 = arith.constant 0 : index
    %c0_63 = arith.constant 0 : index
    %114 = vector.load %arg11[%c0_61, %c0_62, %c0_63] : memref<1x16x32xf32, #tpu.memory_space<vmem>>, vector<1x16x32xf32>
    %115 = vector.shape_cast %114 : vector<1x16x32xf32> to vector<16x32xf32>
    %116 = vector.shape_cast %113 : vector<16x32xf32> to vector<1x16x32xf32>
    tpu.vector_store %arg11[%c0_61, %c0_62, %c0_63], %116 {strides = array<i32>} : memref<1x16x32xf32, #tpu.memory_space<vmem>>, vector<1x16x32xf32>,
    return
  }
  func.func @transform_0(%arg0: i32) -> (i32, i32, i32) {
    %c0_i32 = arith.constant 0 : i32
    %c0_i32_0 = arith.constant 0 : i32
    %c0_i32_1 = arith.constant 0 : i32
    return %arg0, %c0_i32, %c0_i32_0 : i32, i32, i32
  }
  func.func @transform_1(%arg0: i32) -> (i32, i32) {
    %c0_i32 = arith.constant 0 : i32
    %c0_i32_0 = arith.constant 0 : i32
    %c0_i32_1 = arith.constant 0 : i32
    return %c0_i32, %c0_i32_0 : i32, i32
  }
  func.func @transform_2(%arg0: i32) -> (i32, i32) {
    %c0_i32 = arith.constant 0 : i32
    %c0_i32_0 = arith.constant 0 : i32
    %c0_i32_1 = arith.constant 0 : i32
    return %c0_i32, %c0_i32_0 : i32, i32
  }
  func.func @transform_3(%arg0: i32) -> (i32, i32) {
    %c0_i32 = arith.constant 0 : i32
    %c0_i32_0 = arith.constant 0 : i32
    %c0_i32_1 = arith.constant 0 : i32
    return %c0_i32, %c0_i32_0 : i32, i32
  }
  func.func @transform_4(%arg0: i32) -> (i32, i32) {
    %c0_i32 = arith.constant 0 : i32
    %c0_i32_0 = arith.constant 0 : i32
    %c0_i32_1 = arith.constant 0 : i32
    return %c0_i32, %c0_i32_0 : i32, i32
  }
  func.func @transform_5(%arg0: i32) -> (i32, i32) {
    %c0_i32 = arith.constant 0 : i32
    %c0_i32_0 = arith.constant 0 : i32
    %c0_i32_1 = arith.constant 0 : i32
    return %c0_i32, %c0_i32_0 : i32, i32
  }
  func.func @transform_6(%arg0: i32) -> (i32, i32) {
    %c0_i32 = arith.constant 0 : i32
    %c0_i32_0 = arith.constant 0 : i32
    %c0_i32_1 = arith.constant 0 : i32
    return %c0_i32, %c0_i32_0 : i32, i32
  }
  func.func @transform_7(%arg0: i32) -> (i32, i32) {
    %c0_i32 = arith.constant 0 : i32
    %c0_i32_0 = arith.constant 0 : i32
    %c0_i32_1 = arith.constant 0 : i32
    return %c0_i32, %c0_i32_0 : i32, i32
  }
  func.func @transform_8(%arg0: i32) -> (i32, i32) {
    %c0_i32 = arith.constant 0 : i32
    %c0_i32_0 = arith.constant 0 : i32
    %c0_i32_1 = arith.constant 0 : i32
    return %c0_i32, %c0_i32_0 : i32, i32
  }
  func.func @transform_9(%arg0: i32) -> (i32, i32) {
    %c0_i32 = arith.constant 0 : i32
    %c0_i32_0 = arith.constant 0 : i32
    %c0_i32_1 = arith.constant 0 : i32
    return %c0_i32, %c0_i32_0 : i32, i32
  }
  func.func @transform_10(%arg0: i32) -> (i32, i32, i32) {
    %c0_i32 = arith.constant 0 : i32
    %c0_i32_0 = arith.constant 0 : i32
    %c0_i32_1 = arith.constant 0 : i32
    return %arg0, %c0_i32, %c0_i32_0 : i32, i32, i32
  }
}

module attributes {stable_mosaic.version = 11 : i64} {
  func.func @_head_kernel(%arg0: memref<2x4x64xf32, #tpu.memory_space<vmem>>, %arg1: memref<1x64xf32, #tpu.memory_space<vmem>>, %arg2: memref<1x64xf32, #tpu.memory_space<vmem>>, %arg3: memref<64x10xbf16, #tpu.memory_space<vmem>>, %arg4: memref<1x10xf32, #tpu.memory_space<vmem>>, %arg5: memref<2x10xf32, #tpu.memory_space<vmem>>) attributes {dimension_semantics = [], scalar_prefetch = 0 : i64, scratch_operands = 0 : i64, tpu.core_type = #tpu.core_type<tc>} {
    %c0 = arith.constant 0 : index
    %c0_0 = arith.constant 0 : index
    %c0_1 = arith.constant 0 : index
    %0 = vector.load %arg0[%c0, %c0_0, %c0_1] : memref<2x4x64xf32, #tpu.memory_space<vmem>>, vector<2x4x64xf32>
    %cst = arith.constant dense<0.000000e+00> : vector<2x64xf32>
    %1 = vector.multi_reduction <add>, %0, %cst [1] : vector<2x4x64xf32> to vector<2x64xf32>
    %cst_2 = arith.constant 2.500000e-01 : f32
    %2 = vector.broadcast %cst_2 : f32 to vector<2x64xf32>
    %3 = arith.mulf %1, %2 : vector<2x64xf32>
    %cst_3 = arith.constant dense<0.000000e+00> : vector<2xf32>
    %4 = vector.multi_reduction <add>, %3, %cst_3 [1] : vector<2x64xf32> to vector<2xf32>
    %5 = vector.shape_cast %4 : vector<2xf32> to vector<2x1xf32>
    %cst_4 = arith.constant 6.400000e+01 : f32
    %6 = vector.broadcast %cst_4 : f32 to vector<2x1xf32>
    %7 = arith.divf %5, %6 : vector<2x1xf32>
    %8 = vector.broadcast %7 : vector<2x1xf32> to vector<2x64xf32>
    %9 = arith.subf %3, %8 : vector<2x64xf32>
    %10 = arith.mulf %9, %9 : vector<2x64xf32>
    %cst_5 = arith.constant dense<0.000000e+00> : vector<2xf32>
    %11 = vector.multi_reduction <add>, %10, %cst_5 [1] : vector<2x64xf32> to vector<2xf32>
    %12 = vector.shape_cast %11 : vector<2xf32> to vector<2x1xf32>
    %cst_6 = arith.constant 6.400000e+01 : f32
    %13 = vector.broadcast %cst_6 : f32 to vector<2x1xf32>
    %14 = arith.divf %12, %13 : vector<2x1xf32>
    %15 = vector.broadcast %7 : vector<2x1xf32> to vector<2x64xf32>
    %16 = arith.subf %3, %15 : vector<2x64xf32>
    %cst_7 = arith.constant 9.99999974E-6 : f32
    %17 = vector.broadcast %cst_7 : f32 to vector<2x1xf32>
    %18 = arith.addf %14, %17 : vector<2x1xf32>
    %19 = math.rsqrt %18 : vector<2x1xf32>
    %20 = vector.broadcast %19 : vector<2x1xf32> to vector<2x64xf32>
    %21 = arith.mulf %16, %20 : vector<2x64xf32>
    %c0_8 = arith.constant 0 : index
    %c0_9 = arith.constant 0 : index
    %22 = vector.load %arg1[%c0_8, %c0_9] : memref<1x64xf32, #tpu.memory_space<vmem>>, vector<1x64xf32>
    %23 = vector.broadcast %22 : vector<1x64xf32> to vector<2x64xf32>
    %24 = arith.mulf %21, %23 : vector<2x64xf32>
    %c0_10 = arith.constant 0 : index
    %c0_11 = arith.constant 0 : index
    %25 = vector.load %arg2[%c0_10, %c0_11] : memref<1x64xf32, #tpu.memory_space<vmem>>, vector<1x64xf32>
    %26 = vector.broadcast %25 : vector<1x64xf32> to vector<2x64xf32>
    %27 = arith.addf %24, %26 : vector<2x64xf32>
    %28 = arith.truncf %27 : vector<2x64xf32> to vector<2x64xbf16>
    %c0_12 = arith.constant 0 : index
    %c0_13 = arith.constant 0 : index
    %29 = vector.load %arg3[%c0_12, %c0_13] : memref<64x10xbf16, #tpu.memory_space<vmem>>, vector<64x10xbf16>
    %cst_14 = arith.constant dense<0.000000e+00> : vector<2x10xf32>
    %30 = tpu.matmul %28, %29, %cst_14 {dimension_numbers = #tpu.dot_dimension_numbers<[1], [0], [0], [1], [0, 0, 1, 1], [], []>} : vector<2x64xbf16>, vector<64x10xbf16>, vector<2x10xf32> -> vector<2x10xf32>
    %c0_15 = arith.constant 0 : index
    %c0_16 = arith.constant 0 : index
    %31 = vector.load %arg4[%c0_15, %c0_16] : memref<1x10xf32, #tpu.memory_space<vmem>>, vector<1x10xf32>
    %32 = vector.broadcast %31 : vector<1x10xf32> to vector<2x10xf32>
    %33 = arith.addf %30, %32 : vector<2x10xf32>
    %c0_17 = arith.constant 0 : index
    %c0_18 = arith.constant 0 : index
    %34 = vector.load %arg5[%c0_17, %c0_18] : memref<2x10xf32, #tpu.memory_space<vmem>>, vector<2x10xf32>
    tpu.vector_store %arg5[%c0_17, %c0_18], %33 {strides = array<i32>} : memref<2x10xf32, #tpu.memory_space<vmem>>, vector<2x10xf32>,
    return
  }
}

</mosaic_0001>

<bundles_post_ra>
// kernel: convnet_forward.12
= control target key start
LH: loop header
LB: loop body
LE: loop exit
PB: predicated region body
PF: predicated region fallthrough
CT: control target
= control target key end

     0   :  { %s845_s15 = smov 0   ;;  %s944_s0 = inlined_call_operand.vmem [shape: f32[2,8,2,8,16], index: 0, kind: input, shape index: {}]   ;;  %s945_s1 = inlined_call_operand.vmem [shape: bf16[4,8,16], index: 1, kind: input, shape index: {}]   ;;  %s946_s2 = inlined_call_operand.vmem [shape: f32[1,16], index: 2, kind: input, shape index: {}]   ;;  %s947_s3 = inlined_call_operand.vmem [shape: f32[1,16], index: 3, kind: input, shape index: {}]   ;;  %s948_s4 = inlined_call_operand.vmem [shape: f32[2,64,16], index: 4, kind: output, shape index: {}]  }
   0x1 LB: > { %s683_s16 = sadd.s32 4294967295, %s817_s15   ;;  %p687_p0 = scmp.ge.s32.totalorder %s817_s15, 1  ;;  %s817_s15 = sphi %s845_s15, %s14_s15  }
   0x2   : > { %p162_p1 = scmp.lt.s32.totalorder %s817_s15, 3 }
   0x4   : > { %p163_p2 = pnand %p687_p0, %p162_p1 }
   0x5   : > { %p188_p3 = scmp.lt.s32.totalorder (!%p163_p2), %s683_s16, 1  ;;  %v217_v0 = vld [vmem:[%s945_s1 + $0x8] sm:$0xf] (!%p163_p2)  ;;  %vm248_vm0 = vcmask (!%p163_p2), 1043456   ;;  %v216_v2 = vld [vmem:[%s945_s1 + $0x4] sm:$0xf] (!%p163_p2) }
   0x6   : > { %166 = sbr.rel (%p163_p2) target bundleno = 384 (0x180), region = 36  ;;  %800 = vmatprep.subr.msk.bf16.mxu0 (!%p163_p2), %vm248_vm0, %v217_v0  ;;  %v414_v1 = vsel (!%p163_p2), %vm248_vm0, %v217_v0, 0  ;;  %v215_v3 = vld [vmem:[%s945_s1] sm:$0xf] (!%p163_p2)  ;;  %798 = vmatprep.subr.msk.bf16.mxu1 (!%p163_p2), %vm248_vm0, %v216_v2  ;;  %v250_v4 = vsel (!%p163_p2), %vm248_vm0, %v216_v2, 0  ;;  %s819_s29 = smov (!%p163_p2), 120  }
   0x7   : > { %755 = vmatpush3.bf16.msra.mxu0 (!%p163_p2), %v414_v1  ;;  %v218_v5 = vld [vmem:[%s945_s1 + $0xc] sm:$0xf] (!%p163_p2)  ;;  %v330_v6 = vsel (!%p163_p2), %vm248_vm0, %v215_v3, 0  ;;  %735 = vmatpush3.bf16.msra.mxu1 (!%p163_p2), %v250_v4  ;;  %vm235_vm1 = vcmask (!%p163_p2), 64512   ;;  %v708_v48 = vld [vmem:[%s946_s2] ss:$0 sm:$0xff] (!%p163_p2) }
   0x8   : > { %801 = vmatprep.subr.msk.bf16.mxu0 (!%p163_p2), %vm248_vm0, %v218_v5  ;;  %799 = vmatprep.subr.msk.bf16.mxu1 (!%p163_p2), %vm248_vm0, %v215_v3  ;;  %v514_v28 = vsel (!%p163_p2), %vm248_vm0, %v218_v5, 0  ;;  %v709_v52 = vld [vmem:[%s947_s3] ss:$0 sm:$0xff] (!%p163_p2)  ;;  %vm619_vm2 = vcmask (!%p163_p2), 130048  }
   0xd   : > { %s950_s16 = smov (!%p188_p3, %s683_s16), 1 }
   0xe   : > { %s712_s25 = sshll.u32 %s950_s16, 7  ;;  %s713_s6 = sshll.u32 %s950_s16, 6 }
   0xf   : > { %s878_s28 = scalar_lea.vmem %s944_s0, %s712_s25  ;;  %s923_s11 = scalar_lea.vmem %s948_s4, %s713_s6 }
  0x10   : > { %v199_v7 = vld [vmem:[%s878_s28] sm:$0xff]  ;;  %v201_v8 = vld [vmem:[%s878_s28 + $0x10] sm:$0xff]  ;;  %v200_v17 = vld [vmem:[%s878_s28 + $0x8] sm:$0xff] }
  0x11   : > { %v207_v9 = vld [vmem:[%s878_s28 + $0x40] sm:$0xff]  ;;  %v219_v10 = vpack.c.bf16 %v201_v8, %v199_v7  ;;  %v209_v11 = vld [vmem:[%s878_s28 + $0x50] sm:$0xff]  ;;  %v202_v19 = vld [vmem:[%s878_s28 + $0x18] sm:$0xff] }
  0x12   : > { %v203_v12 = vld [vmem:[%s878_s28 + $0x20] sm:$0xff]  ;;  %v205_v13 = vld [vmem:[%s878_s28 + $0x30] sm:$0xff]  ;;  %v221_v14 = vpack.c.bf16 %v209_v11, %v207_v9  ;;  %v204_v20 = vld [vmem:[%s878_s28 + $0x28] sm:$0xff]  ;;  %v397_v23 = vpack.c.bf16 %v202_v19, %v200_v17 }
  0x13   : > { %v211_v15 = vld [vmem:[%s878_s28 + $0x60] sm:$0xff]  ;;  %v213_v16 = vld [vmem:[%s878_s28 + $0x70] sm:$0xff]  ;;  %227 = vrot.lane.b32.xlu0 %v219_v10, %s819_s29  ;;  %v220_v18 = vpack.c.bf16 %v205_v13, %v203_v12  ;;  %v206_v21 = vld [vmem:[%s878_s28 + $0x38] sm:$0xff] }
  0x14   : > { %231 = vrot.lane.b32.xlu1 %v221_v14, %s819_s29  ;;  %v222_v22 = vpack.c.bf16 %v213_v16, %v211_v15  ;;  %v208_v24 = vld [vmem:[%s878_s28 + $0x48] sm:$0xff]  ;;  %v210_v25 = vld [vmem:[%s878_s28 + $0x58] sm:$0xff]  ;;  %v398_v26 = vpack.c.bf16 %v206_v21, %v204_v20  ;;  %756 = vmatprep.mubr.msk.bf16.mxu0 %vm235_vm1, %v397_v23 }
  0x15   : > { %v399_v27 = vpack.c.bf16 %v210_v25, %v208_v24  ;;  %v212_v29 = vld [vmem:[%s878_s28 + $0x68] sm:$0xff]  ;;  %v214_v30 = vld [vmem:[%s878_s28 + $0x78] sm:$0xff] }
  0x16   : > { %757 = vmatmul.mubr.msk.bf16.vlgmr.msra.gmra.mrb[0].mxu0 %vm235_vm1, %v398_v26  ;;  %v400_v31 = vpack.c.bf16 %v214_v30, %v212_v29 }
  0x17   : > { %229 = vrot.lane.b32.xlu0 %v220_v18, %s819_s29  ;;  %760 = vmatprep.mubr.msk.bf16.mxu0 %vm235_vm1, %v399_v27 }
  0x18   : > { %233 = vrot.lane.b32.xlu1 %v222_v22, %s819_s29  ;;  %765 = vmatpush3.bf16.msra.mxu0 %v514_v28 }
  0x1b   : > { %493 = vrot.lane.b32.xlu0 %v397_v23, %s819_s29 }
  0x1c   : > { %495 = vrot.lane.b32.xlu1 %v398_v26, %s819_s29 }
  0x1e   : > { %761 = vmatmul.mubr.msk.bf16.gmra.mrb[4].mxu0 %vm235_vm1, %v400_v31 }
  0x1f   : > { %497 = vrot.lane.b32.xlu0 %v399_v27, %s819_s29 }
  0x20   : > { %499 = vrot.lane.b32.xlu1 %v400_v31, %s819_s29 }
  0x85   : > { %v228_v32 = vpop.permute.xlu0 %227 }
  0x86   : > { %v232_v33 = vpop.permute.xlu1 %231  ;;  %736 = vmatprep.mubr.msk.bf16.mxu1 %vm235_vm1, %v228_v32 }
  0x89   : > { %v230_v34 = vpop.permute.xlu0 %229 }
  0x8a   : > { %v234_v35 = vpop.permute.xlu1 %233  ;;  %737 = vmatmul.mubr.msk.bf16.vlgmr.msra.gmra.mrb[0].mxu1 %vm235_vm1, %v230_v34 }
  0x8b   : > { %745 = vmatpush3.bf16.msra.mxu1 %v330_v6  ;;  %740 = vmatprep.mubr.msk.bf16.mxu1 %vm235_vm1, %v232_v33 }
  0x8d   : > { %v494_v36 = vpop.permute.xlu0 %493 }
  0x8e   : > { %v496_v37 = vpop.permute.xlu1 %495  ;;  %766 = vmatprep.mubr.msk.bf16.mxu0 %vm235_vm1, %v494_v36 }
  0x8f   : > { %767 = vmatmul.mubr.msk.bf16.vlgmr.msra.gmra.mrb[0].mxu0 %vm235_vm1, %v496_v37 }
  0x91   : > { %v498_v38 = vpop.permute.xlu0 %497 }
  0x92   : > { %741 = vmatmul.mubr.msk.bf16.gmra.mrb[4].mxu1 %vm235_vm1, %v234_v35  ;;  %770 = vmatprep.mubr.msk.bf16.mxu0 %vm235_vm1, %v498_v38  ;;  %v500_v39 = vpop.permute.xlu1 %499 }
  0x93   : > { %746 = vmatprep.mubr.msk.bf16.mxu1 %vm235_vm1, %v219_v10 }
  0x97   : > { %771 = vmatmul.mubr.msk.bf16.gmra.mrb[4].mxu0 %vm235_vm1, %v500_v39 }
  0x9a   : > { %747 = vmatmul.mubr.msk.bf16.vlgmr.msra.gmra.mrb[0].mxu1 %vm235_vm1, %v220_v18 }
  0x9b   : > { %750 = vmatprep.mubr.msk.bf16.mxu1 %vm235_vm1, %v221_v14 }
  0xa2   : > { %751 = vmatmul.mubr.msk.bf16.gmra.mrb[4].mxu1 %vm235_vm1, %v222_v22 }
 0x162   : > { %v768_v40 = vpop.f32.mrb[0].mxu0 }
 0x163   : > { %v550_v41 = vpop.f32.mrb[1].mxu0 }
 0x164   : > { %v769_v42 = vpop.f32.mrb[2].mxu0 }
 0x165   : > { %v553_v43 = vpop.f32.mrb[3].mxu0 }
 0x16a   : > { %v772_v44 = vpop.f32.mrb[4].mxu0 }
 0x16b   : > { %v566_v45 = vpop.f32.mrb[5].mxu0 }
 0x16c   : > { %v773_v46 = vpop.f32.mrb[6].mxu0 }
 0x16d   : > { %v748_v47 = vpop.f32.mrb[0].mxu1  ;;  %v569_v49 = vpop.f32.mrb[7].mxu0 }
 0x16e   : > { %v774_v50 = vadd.f32 %v768_v40, %v748_v47  ;;  %v366_v51 = vpop.f32.mrb[1].mxu1 }
 0x16f   : > { %v775_v53 = vadd.f32 %v550_v41, %v366_v51  ;;  %v749_v54 = vpop.f32.mrb[2].mxu1 }
 0x170   : > { %v598_v55 = vmul.f32 %v774_v50, %v708_v48  ;;  %v776_v56 = vadd.f32 %v769_v42, %v749_v54  ;;  %v369_v57 = vpop.f32.mrb[3].mxu1 }
 0x171   : > { %v596_v58 = vmul.f32 %v775_v53, %v708_v48  ;;  %v777_v59 = vadd.f32 %v553_v43, %v369_v57 }
 0x172   : > { %v613_v60 = vadd.f32 %v709_v52, %v598_v55  ;;  %v599_v61 = vmul.f32 %v776_v56, %v708_v48 }
 0x173   : > { %v611_v62 = vadd.f32 %v709_v52, %v596_v58  ;;  %v597_v63 = vmul.f32 %v777_v59, %v708_v48 }
 0x174   : > { %622 = vst.msk [vmem:[%s923_s11 + $0x10] sm:$0xff] %vm619_vm2, %v613_v60  ;;  %v614_v0 = vadd.f32 %v709_v52, %v599_v61 }
 0x175   : > { %620 = vst.msk [vmem:[%s923_s11] sm:$0xff] %vm619_vm2, %v611_v62  ;;  %v612_v1 = vadd.f32 %v709_v52, %v597_v63  ;;  %v752_v2 = vpop.f32.mrb[4].mxu1 }
 0x176   : > { %623 = vst.msk [vmem:[%s923_s11 + $0x18] sm:$0xff] %vm619_vm2, %v614_v0  ;;  %v778_v3 = vadd.f32 %v772_v44, %v752_v2  ;;  %v382_v4 = vpop.f32.mrb[5].mxu1 }
 0x177   : > { %621 = vst.msk [vmem:[%s923_s11 + $0x8] sm:$0xff] %vm619_vm2, %v612_v1  ;;  %v779_v5 = vadd.f32 %v566_v45, %v382_v4  ;;  %v753_v6 = vpop.f32.mrb[6].mxu1 }
 0x178   : > { %v602_v7 = vmul.f32 %v778_v3, %v708_v48  ;;  %v780_v8 = vadd.f32 %v773_v46, %v753_v6  ;;  %v385_v9 = vpop.f32.mrb[7].mxu1 }
 0x179   : > { %v600_v10 = vmul.f32 %v779_v5, %v708_v48  ;;  %v781_v11 = vadd.f32 %v569_v49, %v385_v9 }
 0x17a   : > { %v617_v12 = vadd.f32 %v709_v52, %v602_v7  ;;  %v603_v13 = vmul.f32 %v780_v8, %v708_v48 }
 0x17b   : > { %v615_v14 = vadd.f32 %v709_v52, %v600_v10  ;;  %v601_v15 = vmul.f32 %v781_v11, %v708_v48 }
 0x17c   : > { %626 = vst.msk [vmem:[%s923_s11 + $0x30] sm:$0xff] %vm619_vm2, %v617_v12  ;;  %v618_v16 = vadd.f32 %v709_v52, %v603_v13 }
 0x17d   : > { %624 = vst.msk [vmem:[%s923_s11 + $0x20] sm:$0xff] %vm619_vm2, %v615_v14  ;;  %v616_v17 = vadd.f32 %v709_v52, %v601_v15 }
 0x17e   : > { %627 = vst.msk [vmem:[%s923_s11 + $0x38] sm:$0xff] %vm619_vm2, %v618_v16 }
 0x17f   : > { %625 = vst.msk [vmem:[%s923_s11 + $0x28] sm:$0xff] %vm619_vm2, %v616_v17 }
 0x180 PF: > { %s14_s15 = sadd.s32 1, %s817_s15  }
 0x181   : > { %p11_p4 = scmp.ge.s32.totalorder %s14_s15, 4  }
 0x183   :  { %13 = sbr.rel (!%p11_p4) target bundleno = 1 (0x1), region = 66 }

// kernel: convnet_forward.10
= control target key start
LH: loop header
LB: loop body
LE: loop exit
PB: predicated region body
PF: predicated region fallthrough
CT: control target
= control target key end

     0   :  { %s3575_s15 = smov 0   ;;  %s4556_s0 = inlined_call_operand.vmem [shape: f32[2,18,18,3], index: 0, kind: input, shape index: {}]   ;;  %s4557_s1 = inlined_call_operand.vmem [shape: bf16[9,3,8], index: 1, kind: input, shape index: {}]   ;;  %s4558_s2 = inlined_call_operand.vmem [shape: f32[1,8], index: 2, kind: input, shape index: {}]   ;;  %s4559_s3 = inlined_call_operand.vmem [shape: f32[1,8], index: 3, kind: input, shape index: {}]   ;;  %s4560_s4 = inlined_call_operand.vmem [shape: f32[2,256,8], index: 4, kind: output, shape index: {}]  }
   0x1 LB: > { %s2657_s16 = sadd.s32 4294967295, %s3547_s15   ;;  %p2661_p0 = scmp.ge.s32.totalorder %s3547_s15, 1  ;;  %s3547_s15 = sphi %s3575_s15, %s14_s15  }
   0x2   : > { %p162_p1 = scmp.lt.s32.totalorder %s3547_s15, 3 }
   0x4   : > { %p163_p2 = pnand %p2661_p0, %p162_p1 }
   0x6   : > { %166 = sbr.rel (%p163_p2) target bundleno = 531 (0x213), region = 36 }
   0xd   : > { %v254_v0 = vld [vmem:[%s4557_s1 + $0x2] sm:$0x3]  ;;  %vm504_vm0 = vcmask 1040384   ;;  %vm505_vm1 = vcmask 1041408   ;;  %p188_p3 = scmp.lt.s32.totalorder %s2657_s16, 1  ;;  %v3549_v1 = vmov 65535  }
   0xe   : > { %v506_v2 = vsel %vm504_vm0, 4294967295, %v3549_v1  ;;  %v257_v3 = vld [vmem:[%s4557_s1 + $0x8] sm:$0x3]  ;;  %v253_v5 = vld [vmem:[%s4557_s1] sm:$0x3]  ;;  %vm326_vm2 = vcmask 1046528  }
   0xf   : > { %v3589_v4 = vsel %vm505_vm1, %v506_v2, 0  ;;  %s4622_s16 = smov (!%p188_p3, %s2657_s16), 1  ;;  %v258_v6 = vld [vmem:[%s4557_s1 + $0xa] sm:$0x3]  ;;  %vm455_vm3 = vcmask 23552   ;;  %vm884_vm4 = vcmask 1045504  }
  0x10   : > { %v509_v7 = vand.u32 %v3589_v4, %v254_v0  ;;  %v3601_v8 = vand.u32 %v3589_v4, %v257_v3  ;;  %v721_v9 = vand.u32 %v3589_v4, %v253_v5  ;;  %v3605_v10 = vand.u32 %v3589_v4, %v258_v6  ;;  %s3531_s25 = smul.u32 432, %s4622_s16  ;;  %v255_v23 = vld [vmem:[%s4557_s1 + $0x4] sm:$0x3]  ;;  %v259_v33 = vld [vmem:[%s4557_s1 + $0xc] sm:$0x3]  ;;  %s2813_s17 = sshll.u32 %s4622_s16, 8 }
  0x11   : > { %v3689_v45 = vand.u32 %v3589_v4, %v255_v23  ;;  %v3701_v51 = vand.u32 %v3589_v4, %v259_v33  ;;  %s4420_s22 = scalar_lea.vmem %s4560_s4, %s2813_s17  ;;  %vm2569_vm5 = vcmask 64512  }
  0x12   : > { %4587 = vst [vmem:[#allocation2_spill] sm:$0xff] %v3601_v8  ;;  %2967 = vmatprep.subr.bf16.mxu1 %v509_v7  ;;  %3103 = vmatprep.subr.bf16.mxu0 %v3601_v8  ;;  %s3613_s28 = scalar_lea.vmem %s4556_s0, %s3531_s25 }
  0x13   : > { %2968 = vmatpush3.bf16.msra.mxu1 %v509_v7  ;;  %3104 = vmatpush3.bf16.msra.mxu0 %v3601_v8  ;;  %v3616_v11 = vld [vmem:[%s3613_s28] sm:$0xff]  ;;  %v3619_v12 = vld [vmem:[%s3613_s28 + $0x8] sm:$0xff]  ;;  %v3622_v13 = vld [vmem:[%s3613_s28 + $0x10] sm:$0x3] }
  0x14   : > { %3001 = vmatprep.subr.bf16.mxu1 %v721_v9  ;;  %3137 = vmatprep.subr.bf16.mxu0 %v3605_v10  ;;  %v327_v14 = vrot.slane %v3616_v11, 1  ;;  %v328_v15 = vrot.slane %v3619_v12, 1  ;;  %v330_v16 = vrot.slane %v3622_v13, 1  ;;  %v3629_v17 = vld [vmem:[%s3613_s28 + $0x18] sm:$0xff]  ;;  %v3632_v18 = vld [vmem:[%s3613_s28 + $0x20] sm:$0xff]  ;;  %v3643_v22 = vld [vmem:[%s3613_s28 + $0x30] sm:$0xff] }
  0x15   : > { %v3635_v19 = vld [vmem:[%s3613_s28 + $0x28] sm:$0x3]  ;;  %v3639_v20 = vpack.c.bf16 %v3632_v18, %v3629_v17  ;;  %v332_v21 = vrot.slane %v3629_v17, 1  ;;  %v333_v26 = vrot.slane %v3632_v18, 1  ;;  %v3653_v28 = vld [vmem:[%s3613_s28 + $0x38] sm:$0xff]  ;;  %v3662_v32 = vld [vmem:[%s3613_s28 + $0x50] sm:$0xff] }
  0x16   : > { %v329_v24 = vsel %vm326_vm2, %v327_v14, %v328_v15  ;;  %v331_v25 = vsel %vm326_vm2, %v328_v15, %v330_v16  ;;  %v335_v27 = vrot.slane %v3635_v19, 1  ;;  %v3656_v29 = vld [vmem:[%s3613_s28 + $0x40] sm:$0x3]  ;;  %v3659_v31 = vld [vmem:[%s3613_s28 + $0x48] sm:$0xff]  ;;  %v337_v36 = vrot.slane %v3643_v22, 1  ;;  %v3686_v44 = vld [vmem:[%s3613_s28 + $0x78] sm:$0xff] }
  0x17   : > { %v439_v30 = vpack.c.bf16 %v331_v25, %v329_v24  ;;  %v334_v34 = vsel %vm326_vm2, %v332_v21, %v333_v26  ;;  %v338_v37 = vrot.slane %v3653_v28, 1  ;;  %v3672_v38 = vld [vmem:[%s3613_s28 + $0x58] sm:$0x3]  ;;  %v3675_v39 = vld [vmem:[%s3613_s28 + $0x60] sm:$0xff]  ;;  %v3678_v40 = vld [vmem:[%s3613_s28 + $0x68] sm:$0xff]  ;;  %v340_v42 = vrot.slane %v3656_v29, 1 }
  0x18   : > { %v336_v35 = vsel %vm326_vm2, %v333_v26, %v335_v27  ;;  %v3683_v43 = vld [vmem:[%s3613_s28 + $0x70] sm:$0x3]  ;;  %v342_v47 = vrot.slane %v3659_v31, 1  ;;  %v343_v48 = vrot.slane %v3662_v32, 1  ;;  %v3695_v49 = vld [vmem:[%s3613_s28 + $0x80] sm:$0xff]  ;;  %v345_v53 = vrot.slane %v3672_v38, 1 }
  0x19   : > { %2969 = vmatprep.mubr.msk.bf16.mxu1 %vm455_vm3, %v439_v30  ;;  %v440_v41 = vpack.c.bf16 %v336_v35, %v334_v34  ;;  %v339_v46 = vsel %vm326_vm2, %v337_v36, %v338_v37  ;;  %v3698_v50 = vld [vmem:[%s3613_s28 + $0x88] sm:$0x3]  ;;  %v341_v52 = vsel %vm326_vm2, %v338_v37, %v340_v42  ;;  %v347_v54 = vrot.slane %v3675_v39, 1  ;;  %v3732_v5 = vld [vmem:[%s3613_s28 + $0x90] sm:$0xff]  ;;  %v3735_v6 = vld [vmem:[%s3613_s28 + $0x98] sm:$0xff] }
  0x1a   : > { %v348_v55 = vrot.slane %v3678_v40, 1  ;;  %v3709_v56 = vpack.c.bf16 %v341_v52, %v339_v46  ;;  %v344_v57 = vsel %vm326_vm2, %v342_v47, %v343_v48  ;;  %v350_v58 = vrot.slane %v3683_v43, 1  ;;  %v3738_v7 = vld [vmem:[%s3613_s28 + $0xa0] sm:$0x3]  ;;  %v3748_v14 = vld [vmem:[%s3613_s28 + $0xb8] sm:$0x3] }
  0x1b   : > { %3105 = vmatprep.mubr.msk.bf16.mxu0 %vm455_vm3, %v440_v41  ;;  %2970 = vmatmul.mubr.msk.bf16.vlgmr.msra.gmra.mrb[0].mxu1 %vm455_vm3, %v440_v41  ;;  %v352_v59 = vrot.slane %v3686_v44, 1  ;;  %v346_v60 = vsel %vm326_vm2, %v343_v48, %v345_v53  ;;  %v353_v61 = vrot.slane %v3695_v49, 1  ;;  %v355_v62 = vrot.slane %v3698_v50, 1  ;;  %v3771_v34 = vld [vmem:[%s3613_s28 + $0xc0] sm:$0xff]  ;;  %v3774_v35 = vld [vmem:[%s3613_s28 + $0xc8] sm:$0xff] }
  0x1c   : > { %3002 = vmatpush3.bf16.msra.mxu1 %v721_v9  ;;  %4588 = vst [vmem:[#allocation3_spill] sm:$0xff] %v3709_v56  ;;  %3106 = vmatmul.mubr.msk.bf16.vlgmr.msra.gmra.mrb[0].mxu0 %vm455_vm3, %v3709_v56  ;;  %v3722_v63 = vpack.c.bf16 %v346_v60, %v344_v57  ;;  %v349_v0 = vsel %vm326_vm2, %v347_v54, %v348_v55  ;;  %v3742_v9 = vld [vmem:[%s3613_s28 + $0xa8] sm:$0xff]  ;;  %v357_v21 = vrot.slane %v3732_v5, 1  ;;  %v358_v23 = vrot.slane %v3735_v6, 1  ;;  %v3779_v41 = vld [vmem:[%s3613_s28 + $0xd0] sm:$0x3] }
  0x1d   : > { %3035 = vmatprep.subr.bf16.mxu1 %v3689_v45  ;;  %2973 = vmatprep.mubr.msk.bf16.mxu1 %vm455_vm3, %v3709_v56  ;;  %v351_v1 = vsel %vm326_vm2, %v348_v55, %v350_v58  ;;  %v354_v2 = vsel %vm326_vm2, %v352_v59, %v353_v61  ;;  %v356_v3 = vsel %vm326_vm2, %v353_v61, %v355_v62  ;;  %v360_v24 = vrot.slane %v3738_v7, 1  ;;  %v3802_v55 = vld [vmem:[%s3613_s28 + $0xe8] sm:$0x3]  ;;  %v3807_v59 = vld [vmem:[%s3613_s28 + $0xf0] sm:$0xff]  ;;  %v3810_v60 = vld [vmem:[%s3613_s28 + $0xf8] sm:$0xff] }
  0x1e   : > { %4589 = vst [vmem:[#allocation4_spill] sm:$0xff] %v3722_v63  ;;  %3138 = vmatpush3.bf16.msra.mxu0 %v3605_v10  ;;  %3109 = vmatprep.mubr.msk.bf16.mxu0 %vm455_vm3, %v3722_v63  ;;  %v3745_v10 = vld [vmem:[%s3613_s28 + $0xb0] sm:$0xff]  ;;  %v3750_v15 = vpack.c.bf16 %v351_v1, %v349_v0  ;;  %v3754_v16 = vpack.c.bf16 %v356_v3, %v354_v2  ;;  %v362_v25 = vrot.slane %v3742_v9, 1  ;;  %v365_v27 = vrot.slane %v3748_v14, 1  ;;  %v3819_v2 = vld [vmem:[%s3613_s28 + $0x100] sm:$0x3] }
  0x1f   : > { %3171 = vmatprep.subr.bf16.mxu0 %v3701_v51  ;;  %v363_v26 = vrot.slane %v3745_v10, 1  ;;  %v359_v30 = vsel %vm326_vm2, %v357_v21, %v358_v23  ;;  %v361_v33 = vsel %vm326_vm2, %v358_v23, %v360_v24  ;;  %v890_v42 = vrot.slane %v3629_v17, 2  ;;  %v3891_v56 = vld [vmem:[%s3613_s28 + $0x140] sm:$0xff] }
  0x20   : > { %4590 = vst [vmem:[#allocation5_spill] sm:$0xff] %v3750_v15  ;;  %4591 = vst [vmem:[#allocation6_spill] sm:$0xff] %v3754_v16  ;;  %v891_v46 = vrot.slane %v3632_v18, 2  ;;  %v893_v47 = vrot.slane %v3635_v19, 2  ;;  %v3784_v48 = vpack.c.bf16 %v361_v33, %v359_v30  ;;  %v367_v52 = vrot.slane %v3771_v34, 1  ;;  %v3796_v18 = vld [vmem:[%s3613_s28 + $0xd8] sm:$0xff] }
  0x21   : > { %v364_v36 = vsel %vm326_vm2, %v362_v25, %v363_v26  ;;  %v366_v37 = vsel %vm326_vm2, %v363_v26, %v365_v27  ;;  %v368_v53 = vrot.slane %v3774_v35, 1  ;;  %v370_v17 = vrot.slane %v3779_v41, 1  ;;  %v3799_v19 = vld [vmem:[%s3613_s28 + $0xe0] sm:$0xff]  ;;  %v3835_v33 = vld [vmem:[%s3613_s28 + $0x108] sm:$0xff] }
  0x22   : > { %4592 = vst [vmem:[#allocation7_spill] sm:$0xff] %v3784_v48  ;;  %v3790_v54 = vpack.c.bf16 %v366_v37, %v364_v36  ;;  %v895_v57 = vrot.slane %v3643_v22, 2  ;;  %v896_v58 = vrot.slane %v3653_v28, 2  ;;  %v898_v61 = vrot.slane %v3656_v29, 2  ;;  %v3838_v36 = vld [vmem:[%s3613_s28 + $0x110] sm:$0xff] }
  0x23   : > { %2974 = vmatmul.mubr.msk.bf16.gmra.mrb[4].mxu1 %vm455_vm3, %v3722_v63  ;;  %v369_v62 = vsel %vm326_vm2, %v367_v52, %v368_v53  ;;  %v892_v0 = vsel %vm884_vm4, %v890_v42, %v891_v46  ;;  %v894_v1 = vsel %vm884_vm4, %v891_v46, %v893_v47  ;;  %v371_v3 = vsel %vm326_vm2, %v368_v53, %v370_v17  ;;  %v3841_v37 = vld [vmem:[%s3613_s28 + $0x118] sm:$0x3]  ;;  %v3850_v53 = vld [vmem:[%s3613_s28 + $0x120] sm:$0xff] }
  0x24   : > { %2977 = vmatprep.mubr.msk.bf16.mxu1 %vm455_vm3, %v3750_v15  ;;  %3110 = vmatmul.mubr.msk.bf16.gmra.mrb[4].mxu0 %vm455_vm3, %v3750_v15  ;;  %4593 = vst [vmem:[#allocation8_spill] sm:$0xff] %v3790_v54  ;;  %v372_v29 = vrot.slane %v3796_v18, 1  ;;  %v373_v21 = vrot.slane %v3799_v19, 1  ;;  %v375_v23 = vrot.slane %v3802_v55, 1  ;;  %v377_v24 = vrot.slane %v3807_v59, 1  ;;  %v3888_v63 = vld [vmem:[%s3613_s28 + $0x138] sm:$0xff] }
  0x25   : > { %3113 = vmatprep.mubr.msk.bf16.mxu0 %vm455_vm3, %v3754_v16  ;;  %v378_v25 = vrot.slane %v3810_v60, 1  ;;  %v380_v26 = vrot.slane %v3819_v2, 1  ;;  %v3830_v27 = vpack.c.bf16 %v371_v3, %v369_v62  ;;  %v3832_v30 = vpack.c.bf16 %v894_v1, %v892_v0  ;;  %v3859_v3 = vld [vmem:[%s3613_s28 + $0x128] sm:$0xff] }
  0x26   : > { %v374_v42 = vsel %vm326_vm2, %v372_v29, %v373_v21  ;;  %v376_v46 = vsel %vm326_vm2, %v373_v21, %v375_v23  ;;  %v897_v47 = vsel %vm884_vm4, %v895_v57, %v896_v58  ;;  %v899_v52 = vsel %vm884_vm4, %v896_v58, %v898_v61  ;;  %v3862_v29 = vld [vmem:[%s3613_s28 + $0x130] sm:$0x3] }
  0x27   : > { %4594 = vst [vmem:[#allocation9_spill] sm:$0xff] %v3830_v27  ;;  %4595 = vst [vmem:[#allocation10_spill] sm:$0xff] %v3832_v30  ;;  %v379_v17 = vsel %vm326_vm2, %v377_v24, %v378_v25  ;;  %v900_v62 = vrot.slane %v3659_v31, 2  ;;  %v901_v0 = vrot.slane %v3662_v32, 2  ;;  %v903_v1 = vrot.slane %v3672_v38, 2 }
  0x28   : > { %v381_v57 = vsel %vm326_vm2, %v378_v25, %v380_v26  ;;  %v382_v58 = vrot.slane %v3835_v33, 1  ;;  %v383_v61 = vrot.slane %v3838_v36, 1  ;;  %v385_v21 = vrot.slane %v3841_v37, 1 }
  0x29   : > { %v3872_v38 = vpack.c.bf16 %v376_v46, %v374_v42  ;;  %v387_v23 = vrot.slane %v3850_v53, 1  ;;  %v388_v24 = vrot.slane %v3859_v3, 1  ;;  %v390_v25 = vrot.slane %v3862_v29, 1 }
  0x2a   : > { %v3877_v26 = vpack.c.bf16 %v899_v52, %v897_v47  ;;  %v386_v42 = vsel %vm326_vm2, %v383_v61, %v385_v21  ;;  %v905_v46 = vrot.slane %v3675_v39, 2  ;;  %v906_v15 = vrot.slane %v3678_v40, 2  ;;  %v260_v47 = vld [vmem:[%s4557_s1 + $0xe] sm:$0x3] }
  0x2b   : > { %2978 = vmatmul.mubr.msk.bf16.gmra.mrb[8].mxu1 %vm455_vm3, %v3754_v16  ;;  %4596 = vst [vmem:[#allocation11_spill] sm:$0xff] %v3872_v38  ;;  %v384_v16 = vsel %vm326_vm2, %v382_v58, %v383_v61  ;;  %v908_v52 = vrot.slane %v3683_v43, 2  ;;  %v389_v58 = vsel %vm326_vm2, %v387_v23, %v388_v24  ;;  %v391_v61 = vsel %vm326_vm2, %v388_v24, %v390_v25 }
  0x2c   : > { %2981 = vmatprep.mubr.msk.bf16.mxu1 %vm455_vm3, %v3784_v48  ;;  %3114 = vmatmul.mubr.msk.bf16.gmra.mrb[8].mxu0 %vm455_vm3, %v3784_v48  ;;  %4597 = vst [vmem:[#allocation12_spill] sm:$0xff] %v3877_v26  ;;  %v902_v48 = vsel %vm884_vm4, %v900_v62, %v901_v0  ;;  %v911_v62 = vrot.slane %v3695_v49, 2  ;;  %v913_v43 = vrot.slane %v3698_v50, 2  ;;  %v392_v21 = vrot.slane %v3888_v63, 1 }
  0x2d   : > { %3117 = vmatprep.mubr.msk.bf16.mxu0 %vm455_vm3, %v3790_v54  ;;  %v393_v8 = vrot.slane %v3891_v56, 1  ;;  %v907_v50 = vsel %vm884_vm4, %v905_v46, %v906_v15  ;;  %v3935_v24 = vpack.c.bf16 %v3662_v32, %v3659_v31  ;;  %v909_v25 = vsel %vm884_vm4, %v906_v15, %v908_v52 }
  0x2e   : > { %v914_v31 = vsel %vm884_vm4, %v911_v62, %v913_v43  ;;  %v915_v52 = vrot.slane %v3732_v5, 2  ;;  %v3967_v43 = vpack.c.bf16 %v909_v25, %v907_v50  ;;  %v3987_v50 = vld [vmem:[%s3613_s28 + $0x178] sm:$0x3]  ;;  %v3991_v25 = vpack.c.bf16 %v3745_v10, %v3742_v9 }
  0x2f   : > { %v394_v46 = vsel %vm326_vm2, %v392_v21, %v393_v8 }
  0x30   : > { %4602 = vst [vmem:[#allocation17_spill] sm:$0xff] %v3967_v43 }
  0x33   : > { %2982 = vmatmul.mubr.msk.bf16.gmra.mrb[12].mxu1 %vm455_vm3, %v3790_v54  ;;  %v3879_v54 = vpack.c.bf16 %v381_v57, %v379_v17  ;;  %v910_v17 = vrot.slane %v3686_v44, 2 }
  0x34   : > { %2985 = vmatprep.mubr.msk.bf16.mxu1 %vm455_vm3, %v3830_v27  ;;  %3118 = vmatmul.mubr.msk.bf16.gmra.mrb[12].mxu0 %vm455_vm3, %v3830_v27  ;;  %v904_v27 = vsel %vm884_vm4, %v901_v0, %v903_v1  ;;  %v3900_v0 = vld [vmem:[%s3613_s28 + $0x148] sm:$0x3]  ;;  %v3904_v1 = vpack.c.bf16 %v3653_v28, %v3643_v22  ;;  %v3918_v22 = vld [vmem:[%s3613_s28 + $0x150] sm:$0xff]  ;;  %v3921_v28 = vld [vmem:[%s3613_s28 + $0x158] sm:$0xff] }
  0x35   : > { %3139 = vmatprep.mubr.msk.bf16.mxu0 %vm455_vm3, %v3832_v30  ;;  %4598 = vst [vmem:[#allocation13_spill] sm:$0xff] %v3879_v54  ;;  %v3908_v57 = vpack.c.bf16 %v904_v27, %v902_v48  ;;  %v3927_v48 = vand.u32 %v3589_v4, %v260_v47  ;;  %v3929_v27 = vpack.c.bf16 %v386_v42, %v384_v16  ;;  %v395_v23 = vrot.slane %v3900_v0, 1 }
  0x36   : > { %v912_v47 = vsel %vm884_vm4, %v910_v17, %v911_v62  ;;  %v3945_v16 = vpack.c.bf16 %v3678_v40, %v3675_v39  ;;  %v397_v32 = vrot.slane %v3918_v22, 1  ;;  %v398_v15 = vrot.slane %v3921_v28, 1 }
  0x37   : > { %4599 = vst [vmem:[#allocation14_spill] sm:$0xff] %v3908_v57  ;;  %4600 = vst [vmem:[#allocation15_spill] sm:$0xff] %v3929_v27  ;;  %v916_v39 = vrot.slane %v3735_v6, 2  ;;  %v3959_v40 = vpack.c.bf16 %v3695_v49, %v3686_v44  ;;  %v918_v17 = vrot.slane %v3738_v7, 2  ;;  %v920_v62 = vrot.slane %v3742_v9, 2 }
  0x38   : > { %v3969_v21 = vpack.c.bf16 %v914_v31, %v912_v47  ;;  %v3976_v44 = vpack.c.bf16 %v3735_v6, %v3732_v5  ;;  %v923_v7 = vrot.slane %v3748_v14, 2  ;;  %v886_v5 = vrot.slane %v3619_v12, 2 }
  0x39   : > { %v888_v6 = vrot.slane %v3622_v13, 2  ;;  %v917_v31 = vsel %vm884_vm4, %v915_v52, %v916_v39  ;;  %v919_v14 = vsel %vm884_vm4, %v916_v39, %v918_v17  ;;  %v4005_v9 = vpack.c.bf16 %v3774_v35, %v3771_v34 }
  0x3a   : > { %4603 = vst [vmem:[#allocation18_spill] sm:$0xff] %v3969_v21  ;;  %v4022_v39 = vpack.c.bf16 %v3810_v60, %v3807_v59  ;;  %v4030_v17 = vpack.c.bf16 %v3859_v3, %v3850_v53  ;;  %v928_v30 = vrot.slane %v3779_v41, 2 }
  0x3b   : > { %2986 = vmatmul.mubr.msk.bf16.gmra.mrb[16].mxu1 %vm455_vm3, %v3872_v38  ;;  %v3924_v38 = vld [vmem:[%s3613_s28 + $0x160] sm:$0x3] }
  0x3c   : > { %2989 = vmatprep.mubr.msk.bf16.mxu1 %vm455_vm3, %v3879_v54  ;;  %3140 = vmatmul.mubr.msk.bf16.vlgmr.msra.gmra.mrb[0].mxu0 %vm455_vm3, %v3877_v26  ;;  %v3940_v54 = vpack.c.bf16 %v391_v61, %v389_v58  ;;  %v400_v42 = vrot.slane %v3924_v38, 1  ;;  %v921_v58 = vrot.slane %v3745_v10, 2  ;;  %v885_v61 = vrot.slane %v3616_v11, 2 }
  0x3d   : > { %3172 = vmatpush3.bf16.msra.mxu0 %v3701_v51  ;;  %3143 = vmatprep.mubr.msk.bf16.mxu0 %vm455_vm3, %v3908_v57  ;;  %v396_v51 = vsel %vm326_vm2, %v393_v8, %v395_v23  ;;  %v3972_v57 = vld [vmem:[%s3613_s28 + $0x168] sm:$0xff]  ;;  %v399_v8 = vsel %vm326_vm2, %v397_v32, %v398_v15  ;;  %v3984_v23 = vld [vmem:[%s3613_s28 + $0x170] sm:$0xff] }
  0x3e   : > { %4601 = vst [vmem:[#allocation16_spill] sm:$0xff] %v3940_v54  ;;  %3205 = vmatprep.subr.bf16.mxu0 %v3927_v48  ;;  %v401_v49 = vsel %vm326_vm2, %v398_v15, %v400_v42  ;;  %v3997_v47 = vpack.c.bf16 %v396_v51, %v394_v46  ;;  %v922_v32 = vsel %vm884_vm4, %v920_v62, %v921_v58  ;;  %v402_v15 = vrot.slane %v3972_v57, 1 }
  0x3f   : > { %v4009_v13 = vpack.c.bf16 %v401_v49, %v399_v8  ;;  %v403_v10 = vrot.slane %v3984_v23, 1  ;;  %v405_v42 = vrot.slane %v3987_v50, 1  ;;  %v4015_v46 = vpack.c.bf16 %v3799_v19, %v3796_v18 }
  0x40   : > { %v924_v52 = vsel %vm884_vm4, %v921_v58, %v923_v7  ;;  %v4026_v51 = vpack.c.bf16 %v3838_v36, %v3835_v33  ;;  %v4034_v62 = vpack.c.bf16 %v3891_v56, %v3888_v63  ;;  %v4038_v8 = vpack.c.bf16 %v3921_v28, %v3918_v22 }
  0x41   : > { %v4042_v58 = vpack.c.bf16 %v3984_v23, %v3972_v57  ;;  %v4045_v49 = vsel %vm884_vm4, %v885_v61, %v886_v5  ;;  %v4048_v7 = vsel %vm884_vm4, %v886_v5, %v888_v6  ;;  %v404_v26 = vsel %vm326_vm2, %v402_v15, %v403_v10 }
  0x42   : > { %v926_v61 = vrot.slane %v3774_v35, 2  ;;  %v406_v5 = vsel %vm326_vm2, %v403_v10, %v405_v42  ;;  %v931_v6 = vrot.slane %v3799_v19, 2  ;;  %v943_v10 = vrot.slane %v3841_v37, 2  ;;  %v256_v42 = vld [vmem:[%s4557_s1 + $0x6] sm:$0x3] }
  0x43   : > { %2990 = vmatmul.mubr.msk.bf16.gmra.mrb[20].mxu1 %vm455_vm3, %v3929_v27  ;;  %v925_v27 = vrot.slane %v3771_v34, 2  ;;  %v930_v34 = vrot.slane %v3796_v18, 2  ;;  %v4072_v35 = vpack.c.bf16 %v406_v5, %v404_v26  ;;  %v935_v26 = vrot.slane %v3807_v59, 2 }
  0x44   : > { %2993 = vmatprep.mubr.msk.bf16.mxu1 %vm455_vm3, %v3940_v54  ;;  %3144 = vmatmul.mubr.msk.bf16.gmra.mrb[4].mxu0 %vm455_vm3, %v3967_v43  ;;  %v4050_v54 = vpack.c.bf16 %v919_v14, %v917_v31  ;;  %v4057_v43 = vpack.c.bf16 %v924_v52, %v922_v32  ;;  %v933_v31 = vrot.slane %v3802_v55, 2  ;;  %v929_v14 = vsel %vm884_vm4, %v926_v61, %v928_v30 }
  0x45   : > { %3147 = vmatprep.mubr.msk.bf16.mxu0 %vm455_vm3, %v3969_v21  ;;  %v997_v21 = vpack.c.bf16 %v4048_v7, %v4045_v49  ;;  %v927_v41 = vsel %vm884_vm4, %v925_v27, %v926_v61  ;;  %v262_v32 = vpack.c.bf16 %v3619_v12, %v3616_v11  ;;  %v932_v18 = vsel %vm884_vm4, %v930_v34, %v931_v6  ;;  %v4608_v49 = vld [vmem:[#allocation17_spill] sm:$0xff]  ;;  %v4609_v7 = vld [vmem:[#allocation18_spill] sm:$0xff] }
  0x46   : > { %v934_v19 = vsel %vm884_vm4, %v931_v6, %v933_v31  ;;  %v4080_v55 = vpack.c.bf16 %v929_v14, %v927_v41  ;;  %v936_v27 = vrot.slane %v3810_v60, 2  ;;  %v938_v30 = vrot.slane %v3819_v2, 2 }
  0x47   : > { %v4084_v15 = vpack.c.bf16 %v934_v19, %v932_v18  ;;  %v940_v11 = vrot.slane %v3835_v33, 2  ;;  %v941_v12 = vrot.slane %v3838_v36, 2  ;;  %v4105_v36 = vand.u32 %v3589_v4, %v256_v42 }
  0x48   : > { %v937_v59 = vsel %vm884_vm4, %v935_v26, %v936_v27  ;;  %v939_v60 = vsel %vm884_vm4, %v936_v27, %v938_v30  ;;  %v945_v61 = vrot.slane %v3850_v53, 2  ;;  %v946_v5 = vrot.slane %v3859_v3, 2  ;;  %v247_v30 = vld [vmem:[%s3613_s28 + $0x180] sm:$0xff] }
  0x49   : > { %v942_v2 = vsel %vm884_vm4, %v940_v11, %v941_v12  ;;  %v944_v33 = vsel %vm884_vm4, %v941_v12, %v943_v10  ;;  %v4107_v37 = vpack.c.bf16 %v939_v60, %v937_v59  ;;  %v948_v34 = vrot.slane %v3862_v29, 2  ;;  %v249_v11 = vld [vmem:[%s3613_s28 + $0x190] sm:$0x3] }
  0x4a   : > { %v4111_v52 = vpack.c.bf16 %v944_v33, %v942_v2  ;;  %v950_v6 = vrot.slane %v3888_v63, 2  ;;  %v951_v31 = vrot.slane %v3891_v56, 2  ;;  %v953_v41 = vrot.slane %v3900_v0, 2 }
  0x4b   : > { %2994 = vmatmul.mubr.msk.bf16.gmra.mrb[24].mxu1 %vm455_vm3, %v3997_v47  ;;  %v947_v53 = vsel %vm884_vm4, %v945_v61, %v946_v5  ;;  %v955_v0 = vrot.slane %v3918_v22, 2  ;;  %v956_v14 = vrot.slane %v3921_v28, 2  ;;  %v960_v18 = vrot.slane %v3972_v57, 2  ;;  %v248_v57 = vld [vmem:[%s3613_s28 + $0x188] sm:$0xff] }
  0x4c   : > { %2997 = vmatprep.mubr.msk.bf16.mxu1 %vm455_vm3, %v4009_v13  ;;  %3148 = vmatmul.mubr.msk.bf16.gmra.mrb[8].mxu0 %vm455_vm3, %v4050_v54  ;;  %v952_v3 = vsel %vm884_vm4, %v950_v6, %v951_v31  ;;  %v954_v63 = vsel %vm884_vm4, %v951_v31, %v953_v41  ;;  %v961_v19 = vrot.slane %v3984_v23, 2  ;;  %v963_v26 = vrot.slane %v3987_v50, 2  ;;  %v261_v41 = vld [vmem:[%s4557_s1 + $0x10] sm:$0x3] }
  0x4d   : > { %3151 = vmatprep.mubr.msk.bf16.mxu0 %vm455_vm3, %v4057_v43  ;;  %v4135_v56 = vpack.c.bf16 %v954_v63, %v952_v3  ;;  %v957_v22 = vsel %vm884_vm4, %v955_v0, %v956_v14  ;;  %v1667_v12 = vrot.slane %v247_v30, 2  ;;  %v1668_v10 = vrot.slane %v248_v57, 2  ;;  %v250_v3 = vld [vmem:[%s3613_s28 + $0x198] sm:$0xff]  ;;  %v251_v63 = vld [vmem:[%s3613_s28 + $0x1a0] sm:$0xff] }
  0x4e   : > { %v964_v27 = vsel %vm884_vm4, %v961_v19, %v963_v26  ;;  %v1670_v42 = vrot.slane %v249_v11, 2  ;;  %v1460_v59 = vrot.slane %v247_v30, 1  ;;  %v1461_v60 = vrot.slane %v248_v57, 1 }
  0x4f   : > { %v1463_v2 = vrot.slane %v249_v11, 1  ;;  %v1669_v33 = vsel %vm884_vm4, %v1667_v12, %v1668_v10  ;;  %v2284_v0 = vrot.slane %v250_v3, 2  ;;  %v4614_v11 = vld [vmem:[#allocation7_spill] sm:$0xff]  ;;  %v4615_v12 = vld [vmem:[#allocation8_spill] sm:$0xff] }
  0x50   : > { %v1671_v61 = vsel %vm884_vm4, %v1668_v10, %v1670_v42  ;;  %v4616_v10 = vld [vmem:[#allocation9_spill] sm:$0xff]  ;;  %v4617_v42 = vld [vmem:[#allocation11_spill] sm:$0xff] }
  0x51   : > { %v4174_v31 = vpack.c.bf16 %v1671_v61, %v1669_v33 }
  0x53   : > { %2998 = vmatmul.mubr.msk.bf16.gmra.mrb[28].mxu1 %vm455_vm3, %v4072_v35 }
  0x54   : > { %3003 = vmatprep.mubr.msk.bf16.mxu1 %vm455_vm3, %v262_v32  ;;  %3152 = vmatmul.mubr.msk.bf16.gmra.mrb[12].mxu0 %vm455_vm3, %v4080_v55  ;;  %v958_v32 = vrot.slane %v3924_v38, 2  ;;  %v962_v38 = vsel %vm884_vm4, %v960_v18, %v961_v19  ;;  %v1874_v19 = vpack.c.bf16 %v251_v63, %v250_v3 }
  0x55   : > { %3155 = vmatprep.mubr.msk.bf16.mxu0 %vm455_vm3, %v4084_v15  ;;  %v4160_v50 = vpack.c.bf16 %v964_v27, %v962_v38  ;;  %v4610_v38 = vld [vmem:[#allocation3_spill] sm:$0xff]  ;;  %v4611_v27 = vld [vmem:[#allocation4_spill] sm:$0xff] }
  0x56   : > { %v959_v28 = vsel %vm884_vm4, %v956_v14, %v958_v32  ;;  %v2285_v14 = vrot.slane %v251_v63, 2  ;;  %v252_v32 = vld [vmem:[%s3613_s28 + $0x1a8] sm:$0x3] }
  0x57   : > { %v4156_v23 = vpack.c.bf16 %v959_v28, %v957_v22  ;;  %v2287_v18 = vrot.slane %v252_v32, 2 }
  0x58   : > { %v4257_v26 = vsel %vm884_vm4, %v2284_v0, %v2285_v14 }
  0x59   : > { %v4260_v22 = vsel %vm884_vm4, %v2285_v14, %v2287_v18 }
  0x5a   : > { %v2291_v28 = vpack.c.bf16 %v4260_v22, %v4257_v26 }
  0x5b   : > { %3004 = vmatmul.mubr.msk.bf16.vlgmr.msra.gmra.mrb[0].mxu1 %vm455_vm3, %v3639_v20 }
  0x5c   : > { %3036 = vmatpush3.bf16.msra.mxu1 %v3689_v45  ;;  %3007 = vmatprep.mubr.msk.bf16.mxu1 %vm455_vm3, %v3904_v1  ;;  %v949_v45 = vsel %vm884_vm4, %v946_v5, %v948_v34  ;;  %v1462_v5 = vsel %vm326_vm2, %v1460_v59, %v1461_v60  ;;  %v1464_v34 = vsel %vm326_vm2, %v1461_v60, %v1463_v2  ;;  %v4618_v59 = vld [vmem:[#allocation13_spill] sm:$0xff]  ;;  %v4619_v60 = vld [vmem:[#allocation15_spill] sm:$0xff]  ;;  %v4620_v2 = vld [vmem:[#allocation16_spill] sm:$0xff] }
  0x5d   : > { %3069 = vmatprep.subr.bf16.mxu1 %v4105_v36  ;;  %3156 = vmatmul.mubr.msk.bf16.gmra.mrb[16].mxu0 %vm455_vm3, %v4107_v37  ;;  %v4131_v29 = vpack.c.bf16 %v949_v45, %v947_v53  ;;  %v4172_v6 = vpack.c.bf16 %v1464_v34, %v1462_v5  ;;  %v2296_v53 = vand.u32 %v3589_v4, %v261_v41  ;;  %v4604_v4 = vld [vmem:[#allocation10_spill] sm:$0xff] }
  0x5e   : > { %3159 = vmatprep.mubr.msk.bf16.mxu0 %vm455_vm3, %v4111_v52  ;;  %v4606_v45 = vld [vmem:[#allocation2_spill] sm:$0xff] }
  0x63   : > { %3008 = vmatmul.mubr.msk.bf16.gmra.mrb[4].mxu1 %vm455_vm3, %v3935_v24 }
  0x64   : > { %3011 = vmatprep.mubr.msk.bf16.mxu1 %vm455_vm3, %v3945_v16 }
  0x65   : > { %3160 = vmatmul.mubr.msk.bf16.gmra.mrb[20].mxu0 %vm455_vm3, %v4131_v29 }
  0x66   : > { %3163 = vmatprep.mubr.msk.bf16.mxu0 %vm455_vm3, %v4135_v56 }
  0x6b   : > { %3012 = vmatmul.mubr.msk.bf16.gmra.mrb[8].mxu1 %vm455_vm3, %v3959_v40 }
  0x6c   : > { %3015 = vmatprep.mubr.msk.bf16.mxu1 %vm455_vm3, %v3976_v44 }
  0x6d   : > { %3164 = vmatmul.mubr.msk.bf16.gmra.mrb[24].mxu0 %vm455_vm3, %v4156_v23 }
  0x6e   : > { %3167 = vmatprep.mubr.msk.bf16.mxu0 %vm455_vm3, %v4160_v50 }
  0x73   : > { %3016 = vmatmul.mubr.msk.bf16.gmra.mrb[12].mxu1 %vm455_vm3, %v3991_v25 }
  0x74   : > { %3019 = vmatprep.mubr.msk.bf16.mxu1 %vm455_vm3, %v4005_v9 }
  0x75   : > { %3168 = vmatmul.mubr.msk.bf16.gmra.mrb[28].mxu0 %vm455_vm3, %v4174_v31 }
  0x76   : > { %3173 = vmatprep.mubr.msk.bf16.mxu0 %vm455_vm3, %v3904_v1 }
  0x7b   : > { %3020 = vmatmul.mubr.msk.bf16.gmra.mrb[16].mxu1 %vm455_vm3, %v4015_v46 }
  0x7c   : > { %3023 = vmatprep.mubr.msk.bf16.mxu1 %vm455_vm3, %v4022_v39 }
  0x7d   : > { %3174 = vmatmul.mubr.msk.bf16.vlgmr.msra.gmra.mrb[0].mxu0 %vm455_vm3, %v3935_v24 }
  0x7e   : > { %3206 = vmatpush3.bf16.msra.mxu0 %v3927_v48  ;;  %3177 = vmatprep.mubr.msk.bf16.mxu0 %vm455_vm3, %v3945_v16  ;;  %v4605_v48 = vld [vmem:[#allocation12_spill] sm:$0xff] }
  0x7f   : > { %3239 = vmatprep.subr.bf16.mxu0 %v2296_v53 }
  0x83   : > { %3024 = vmatmul.mubr.msk.bf16.gmra.mrb[20].mxu1 %vm455_vm3, %v4026_v51 }
  0x84   : > { %3027 = vmatprep.mubr.msk.bf16.mxu1 %vm455_vm3, %v4030_v17 }
  0x85   : > { %3178 = vmatmul.mubr.msk.bf16.gmra.mrb[4].mxu0 %vm455_vm3, %v3959_v40 }
  0x86   : > { %3181 = vmatprep.mubr.msk.bf16.mxu0 %vm455_vm3, %v3976_v44 }
  0x8b   : > { %3028 = vmatmul.mubr.msk.bf16.gmra.mrb[24].mxu1 %vm455_vm3, %v4034_v62 }
  0x8c   : > { %3031 = vmatprep.mubr.msk.bf16.mxu1 %vm455_vm3, %v4038_v8 }
  0x8d   : > { %3182 = vmatmul.mubr.msk.bf16.gmra.mrb[8].mxu0 %vm455_vm3, %v3991_v25 }
  0x8e   : > { %3185 = vmatprep.mubr.msk.bf16.mxu0 %vm455_vm3, %v4005_v9 }
  0x93   : > { %3032 = vmatmul.mubr.msk.bf16.gmra.mrb[28].mxu1 %vm455_vm3, %v4042_v58 }
  0x94   : > { %3037 = vmatprep.mubr.msk.bf16.mxu1 %vm455_vm3, %v997_v21  ;;  %v4607_v21 = vld [vmem:[#allocation14_spill] sm:$0xff] }
  0x95   : > { %3186 = vmatmul.mubr.msk.bf16.gmra.mrb[12].mxu0 %vm455_vm3, %v4015_v46 }
  0x96   : > { %3189 = vmatprep.mubr.msk.bf16.mxu0 %vm455_vm3, %v4022_v39 }
  0x9b   : > { %3038 = vmatmul.mubr.msk.bf16.vlgmr.msra.gmra.mrb[0].mxu1 %vm455_vm3, %v4604_v4 }
  0x9c   : > { %3070 = vmatpush3.bf16.msra.mxu1 %v4105_v36  ;;  %3041 = vmatprep.mubr.msk.bf16.mxu1 %vm455_vm3, %v4605_v48  ;;  %v4243_v36 = vpack.c.bf16 %v248_v57, %v247_v30  ;;  %v4612_v30 = vld [vmem:[#allocation5_spill] sm:$0xff]  ;;  %v4613_v57 = vld [vmem:[#allocation6_spill] sm:$0xff] }
  0x9d   : > { %3273 = vmatprep.subr.bf16.mxu1 %v4606_v45  ;;  %3190 = vmatmul.mubr.msk.bf16.gmra.mrb[16].mxu0 %vm455_vm3, %v4026_v51 }
  0x9e   : > { %3193 = vmatprep.mubr.msk.bf16.mxu0 %vm455_vm3, %v4030_v17 }
  0xa3   : > { %3042 = vmatmul.mubr.msk.bf16.gmra.mrb[4].mxu1 %vm455_vm3, %v4607_v21 }
  0xa4   : > { %3045 = vmatprep.mubr.msk.bf16.mxu1 %vm455_vm3, %v4608_v49 }
  0xa5   : > { %3194 = vmatmul.mubr.msk.bf16.gmra.mrb[20].mxu0 %vm455_vm3, %v4034_v62 }
  0xa6   : > { %3197 = vmatprep.mubr.msk.bf16.mxu0 %vm455_vm3, %v4038_v8 }
  0xab   : > { %3046 = vmatmul.mubr.msk.bf16.gmra.mrb[8].mxu1 %vm455_vm3, %v4609_v7 }
  0xac   : > { %3049 = vmatprep.mubr.msk.bf16.mxu1 %vm455_vm3, %v4050_v54 }
  0xad   : > { %3198 = vmatmul.mubr.msk.bf16.gmra.mrb[24].mxu0 %vm455_vm3, %v4042_v58 }
  0xae   : > { %3201 = vmatprep.mubr.msk.bf16.mxu0 %vm455_vm3, %v4243_v36 }
  0xb3   : > { %3050 = vmatmul.mubr.msk.bf16.gmra.mrb[12].mxu1 %vm455_vm3, %v4057_v43 }
  0xb4   : > { %3053 = vmatprep.mubr.msk.bf16.mxu1 %vm455_vm3, %v4080_v55 }
  0xb5   : > { %3202 = vmatmul.mubr.msk.bf16.gmra.mrb[28].mxu0 %vm455_vm3, %v1874_v19 }
  0xb6   : > { %3207 = vmatprep.mubr.msk.bf16.mxu0 %vm455_vm3, %v4610_v38 }
  0xbb   : > { %3054 = vmatmul.mubr.msk.bf16.gmra.mrb[16].mxu1 %vm455_vm3, %v4084_v15 }
  0xbc   : > { %3057 = vmatprep.mubr.msk.bf16.mxu1 %vm455_vm3, %v4107_v37 }
  0xbd   : > { %3208 = vmatmul.mubr.msk.bf16.vlgmr.msra.gmra.mrb[0].mxu0 %vm455_vm3, %v4611_v27 }
  0xbe   : > { %3240 = vmatpush3.bf16.msra.mxu0 %v2296_v53  ;;  %3211 = vmatprep.mubr.msk.bf16.mxu0 %vm455_vm3, %v4612_v30 }
  0xc3   : > { %3058 = vmatmul.mubr.msk.bf16.gmra.mrb[20].mxu1 %vm455_vm3, %v4111_v52 }
  0xc4   : > { %3061 = vmatprep.mubr.msk.bf16.mxu1 %vm455_vm3, %v4131_v29 }
  0xc5   : > { %3212 = vmatmul.mubr.msk.bf16.gmra.mrb[4].mxu0 %vm455_vm3, %v4613_v57 }
  0xc6   : > { %3215 = vmatprep.mubr.msk.bf16.mxu0 %vm455_vm3, %v4614_v11 }
  0xcb   : > { %3062 = vmatmul.mubr.msk.bf16.gmra.mrb[24].mxu1 %vm455_vm3, %v4135_v56 }
  0xcc   : > { %3065 = vmatprep.mubr.msk.bf16.mxu1 %vm455_vm3, %v4156_v23 }
  0xcd   : > { %3216 = vmatmul.mubr.msk.bf16.gmra.mrb[8].mxu0 %vm455_vm3, %v4615_v12 }
  0xce   : > { %3219 = vmatprep.mubr.msk.bf16.mxu0 %vm455_vm3, %v4616_v10 }
  0xd3   : > { %3066 = vmatmul.mubr.msk.bf16.gmra.mrb[28].mxu1 %vm455_vm3, %v4160_v50 }
  0xd4   : > { %3071 = vmatprep.mubr.msk.bf16.mxu1 %vm455_vm3, %v3639_v20  ;;  %v2077_v20 = vrot.slane %v250_v3, 1 }
  0xd5   : > { %3220 = vmatmul.mubr.msk.bf16.gmra.mrb[12].mxu0 %vm455_vm3, %v4617_v42 }
  0xd6   : > { %3223 = vmatprep.mubr.msk.bf16.mxu0 %vm455_vm3, %v4618_v59 }
  0xdb   : > { %3072 = vmatmul.mubr.msk.bf16.vlgmr.msra.gmra.mrb[0].mxu1 %vm455_vm3, %v3904_v1  ;;  %v2078_v1 = vrot.slane %v251_v63, 1 }
  0xdc   : > { %3274 = vmatpush3.bf16.msra.mxu1 %v4606_v45  ;;  %3075 = vmatprep.mubr.msk.bf16.mxu1 %vm455_vm3, %v3935_v24  ;;  %v2080_v24 = vrot.slane %v252_v32, 1 }
  0xdd   : > { %3224 = vmatmul.mubr.msk.bf16.gmra.mrb[16].mxu0 %vm455_vm3, %v4619_v60 }
  0xde   : > { %3227 = vmatprep.mubr.msk.bf16.mxu0 %vm455_vm3, %v4620_v2 }
  0xe3   : > { %3076 = vmatmul.mubr.msk.bf16.gmra.mrb[4].mxu1 %vm455_vm3, %v3945_v16  ;;  %v2079_v16 = vsel %vm326_vm2, %v2077_v20, %v2078_v1 }
  0xe4   : > { %3079 = vmatprep.mubr.msk.bf16.mxu1 %vm455_vm3, %v3959_v40  ;;  %v2081_v40 = vsel %vm326_vm2, %v2078_v1, %v2080_v24 }
  0xe5   : > { %3228 = vmatmul.mubr.msk.bf16.gmra.mrb[20].mxu0 %vm455_vm3, %v3997_v47  ;;  %v2084_v33 = vpack.c.bf16 %v2081_v40, %v2079_v16 }
  0xe6   : > { %3231 = vmatprep.mubr.msk.bf16.mxu0 %vm455_vm3, %v4009_v13 }
  0xeb   : > { %3080 = vmatmul.mubr.msk.bf16.gmra.mrb[8].mxu1 %vm455_vm3, %v3976_v44 }
  0xec   : > { %3083 = vmatprep.mubr.msk.bf16.mxu1 %vm455_vm3, %v3991_v25 }
  0xed   : > { %3232 = vmatmul.mubr.msk.bf16.gmra.mrb[24].mxu0 %vm455_vm3, %v4072_v35 }
  0xee   : > { %3235 = vmatprep.mubr.msk.bf16.mxu0 %vm455_vm3, %v4172_v6 }
  0xf3   : > { %3084 = vmatmul.mubr.msk.bf16.gmra.mrb[12].mxu1 %vm455_vm3, %v4005_v9 }
  0xf4   : > { %3087 = vmatprep.mubr.msk.bf16.mxu1 %vm455_vm3, %v4015_v46 }
  0xf5   : > { %3236 = vmatmul.mubr.msk.bf16.gmra.mrb[28].mxu0 %vm455_vm3, %v2084_v33 }
  0xf6   : > { %3241 = vmatprep.mubr.msk.bf16.mxu0 %vm455_vm3, %v4605_v48 }
  0xfb   : > { %3088 = vmatmul.mubr.msk.bf16.gmra.mrb[16].mxu1 %vm455_vm3, %v4022_v39 }
  0xfc   : > { %3091 = vmatprep.mubr.msk.bf16.mxu1 %vm455_vm3, %v4026_v51 }
  0xfd   : > { %3242 = vmatmul.mubr.msk.bf16.vlgmr.msra.gmra.mrb[0].mxu0 %vm455_vm3, %v4607_v21 }
  0xfe   : > { %3245 = vmatprep.mubr.msk.bf16.mxu0 %vm455_vm3, %v4608_v49 }
 0x103   : > { %3092 = vmatmul.mubr.msk.bf16.gmra.mrb[20].mxu1 %vm455_vm3, %v4030_v17 }
 0x104   : > { %3095 = vmatprep.mubr.msk.bf16.mxu1 %vm455_vm3, %v4034_v62 }
 0x105   : > { %3246 = vmatmul.mubr.msk.bf16.gmra.mrb[4].mxu0 %vm455_vm3, %v4609_v7 }
 0x106   : > { %3249 = vmatprep.mubr.msk.bf16.mxu0 %vm455_vm3, %v4050_v54 }
 0x10b   : > { %3096 = vmatmul.mubr.msk.bf16.gmra.mrb[24].mxu1 %vm455_vm3, %v4038_v8 }
 0x10c   : > { %3099 = vmatprep.mubr.msk.bf16.mxu1 %vm455_vm3, %v4042_v58 }
 0x10d   : > { %3250 = vmatmul.mubr.msk.bf16.gmra.mrb[8].mxu0 %vm455_vm3, %v4057_v43 }
 0x10e   : > { %3253 = vmatprep.mubr.msk.bf16.mxu0 %vm455_vm3, %v4080_v55 }
 0x113   : > { %3100 = vmatmul.mubr.msk.bf16.gmra.mrb[28].mxu1 %vm455_vm3, %v4243_v36 }
 0x114   : > { %3121 = vmatprep.mubr.msk.bf16.mxu1 %vm455_vm3, %v4617_v42 }
 0x115   : > { %3254 = vmatmul.mubr.msk.bf16.gmra.mrb[12].mxu0 %vm455_vm3, %v4084_v15 }
 0x116   : > { %3257 = vmatprep.mubr.msk.bf16.mxu0 %vm455_vm3, %v4107_v37  ;;  %v4408_v37 = vld [vmem:[%s4558_s2] ss:$0 sm:$0xff] }
 0x11b   : > { %3122 = vmatmul.mubr.msk.bf16.vlgmr.msra.gmra.mrb[16].mxu1 %vm455_vm3, %v4618_v59 }
 0x11c   : > { %3125 = vmatprep.mubr.msk.bf16.mxu1 %vm455_vm3, %v4619_v60 }
 0x11d   : > { %3258 = vmatmul.mubr.msk.bf16.gmra.mrb[16].mxu0 %vm455_vm3, %v4111_v52 }
 0x11e   : > { %3261 = vmatprep.mubr.msk.bf16.mxu0 %vm455_vm3, %v4131_v29 }
 0x123   : > { %3126 = vmatmul.mubr.msk.bf16.gmra.mrb[20].mxu1 %vm455_vm3, %v4620_v2 }
 0x124   : > { %3129 = vmatprep.mubr.msk.bf16.mxu1 %vm455_vm3, %v3997_v47 }
 0x125   : > { %3262 = vmatmul.mubr.msk.bf16.gmra.mrb[20].mxu0 %vm455_vm3, %v4135_v56  ;;  %v4414_v56 = vld [vmem:[%s4559_s3] ss:$0 sm:$0xff] }
 0x126   : > { %3265 = vmatprep.mubr.msk.bf16.mxu0 %vm455_vm3, %v4156_v23 }
 0x12b   : > { %3130 = vmatmul.mubr.msk.bf16.gmra.mrb[24].mxu1 %vm455_vm3, %v4009_v13 }
 0x12c   : > { %3133 = vmatprep.mubr.msk.bf16.mxu1 %vm455_vm3, %v4072_v35 }
 0x12d   : > { %3266 = vmatmul.mubr.msk.bf16.gmra.mrb[24].mxu0 %vm455_vm3, %v4160_v50 }
 0x12e   : > { %3269 = vmatprep.mubr.msk.bf16.mxu0 %vm455_vm3, %v4174_v31 }
 0x133   : > { %3134 = vmatmul.mubr.msk.bf16.gmra.mrb[28].mxu1 %vm455_vm3, %v4172_v6 }
 0x135   : > { %3270 = vmatmul.mubr.msk.bf16.gmra.mrb[28].mxu0 %vm455_vm3, %v2291_v28 }
 0x1ae   : > { %v3073_v54 = vpop.f32.mrb[0].mxu1 }
 0x1af   : > { %v1298_v43 = vpop.f32.mrb[1].mxu1 }
 0x1b0   : > { %v3074_v44 = vpop.f32.mrb[2].mxu1 }
 0x1b1   : > { %v1301_v25 = vpop.f32.mrb[3].mxu1 }
 0x1b6   : > { %v3077_v47 = vpop.f32.mrb[4].mxu1 }
 0x1b7   : > { %v1314_v9 = vpop.f32.mrb[5].mxu1 }
 0x1b8   : > { %v3078_v13 = vpop.f32.mrb[6].mxu1 }
 0x1b9   : > { %v1317_v46 = vpop.f32.mrb[7].mxu1 }
 0x1be   : > { %v3081_v39 = vpop.f32.mrb[8].mxu1 }
 0x1bf   : > { %v1330_v51 = vpop.f32.mrb[9].mxu1 }
 0x1c0   : > { %v3082_v17 = vpop.f32.mrb[10].mxu1 }
 0x1c1   : > { %v1333_v62 = vpop.f32.mrb[11].mxu1 }
 0x1c6   : > { %v4397_v8 = vpop.f32.mrb[12].mxu1 }
 0x1c7   : > { %v4399_v58 = vpop.f32.mrb[13].mxu1 }
 0x1c8   : > { %v4401_v35 = vpop.f32.mrb[14].mxu1 }
 0x1c9   : > { %v4403_v55 = vpop.f32.mrb[15].mxu1 }
 0x1d0   : > { %v3243_v15 = vpop.f32.mrb[0].mxu0 }
 0x1d1   : > { %v3275_v52 = vadd.f32 %v3243_v15, %v3073_v54  ;;  %v2332_v29 = vpop.f32.mrb[1].mxu0 }
 0x1d2   : > { %v3276_v23 = vadd.f32 %v2332_v29, %v1298_v43  ;;  %v3244_v50 = vpop.f32.mrb[2].mxu0 }
 0x1d3   : > { %v2500_v61 = vmul.f32 %v3275_v52, %v4408_v37  ;;  %v3277_v5 = vadd.f32 %v3244_v50, %v3074_v44  ;;  %v2335_v34 = vpop.f32.mrb[3].mxu0 }
 0x1d4   : > { %v2498_v6 = vmul.f32 %v3276_v23, %v4408_v37  ;;  %v3278_v31 = vadd.f32 %v2335_v34, %v1301_v25 }
 0x1d5   : > { %v2539_v41 = vadd.f32 %v4414_v56, %v2500_v61  ;;  %v2501_v53 = vmul.f32 %v3277_v5, %v4408_v37 }
 0x1d6   : > { %v2537_v4 = vadd.f32 %v4414_v56, %v2498_v6  ;;  %v2499_v48 = vmul.f32 %v3278_v31, %v4408_v37 }
 0x1d7   : > { %2572 = vst.msk [vmem:[%s4420_s22 + $0x10] sm:$0xff] %vm2569_vm5, %v2539_v41  ;;  %v2540_v45 = vadd.f32 %v4414_v56, %v2501_v53 }
 0x1d8   : > { %2570 = vst.msk [vmem:[%s4420_s22] sm:$0xff] %vm2569_vm5, %v2537_v4  ;;  %v2538_v21 = vadd.f32 %v4414_v56, %v2499_v48  ;;  %v3247_v49 = vpop.f32.mrb[4].mxu0 }
 0x1d9   : > { %2573 = vst.msk [vmem:[%s4420_s22 + $0x18] sm:$0xff] %vm2569_vm5, %v2540_v45  ;;  %v3279_v7 = vadd.f32 %v3247_v49, %v3077_v47  ;;  %v2348_v36 = vpop.f32.mrb[5].mxu0 }
 0x1da   : > { %2571 = vst.msk [vmem:[%s4420_s22 + $0x8] sm:$0xff] %vm2569_vm5, %v2538_v21  ;;  %v3280_v3 = vadd.f32 %v2348_v36, %v1314_v9  ;;  %v3248_v63 = vpop.f32.mrb[6].mxu0 }
 0x1db   : > { %v2504_v0 = vmul.f32 %v3279_v7, %v4408_v37  ;;  %v3281_v14 = vadd.f32 %v3248_v63, %v3078_v13  ;;  %v2351_v32 = vpop.f32.mrb[7].mxu0 }
 0x1dc   : > { %v2502_v18 = vmul.f32 %v3280_v3, %v4408_v37  ;;  %v3282_v19 = vadd.f32 %v2351_v32, %v1317_v46 }
 0x1dd   : > { %v2543_v26 = vadd.f32 %v4414_v56, %v2504_v0  ;;  %v2505_v22 = vmul.f32 %v3281_v14, %v4408_v37 }
 0x1de   : > { %v2541_v28 = vadd.f32 %v4414_v56, %v2502_v18  ;;  %v2503_v38 = vmul.f32 %v3282_v19, %v4408_v37 }
 0x1df   : > { %2576 = vst.msk [vmem:[%s4420_s22 + $0x30] sm:$0xff] %vm2569_vm5, %v2543_v26  ;;  %v2544_v27 = vadd.f32 %v4414_v56, %v2505_v22 }
 0x1e0   : > { %2574 = vst.msk [vmem:[%s4420_s22 + $0x20] sm:$0xff] %vm2569_vm5, %v2541_v28  ;;  %v2542_v30 = vadd.f32 %v4414_v56, %v2503_v38  ;;  %v3251_v57 = vpop.f32.mrb[8].mxu0 }
 0x1e1   : > { %2577 = vst.msk [vmem:[%s4420_s22 + $0x38] sm:$0xff] %vm2569_vm5, %v2544_v27  ;;  %v3283_v11 = vadd.f32 %v3251_v57, %v3081_v39  ;;  %v2364_v12 = vpop.f32.mrb[9].mxu0 }
 0x1e2   : > { %2575 = vst.msk [vmem:[%s4420_s22 + $0x28] sm:$0xff] %vm2569_vm5, %v2542_v30  ;;  %v3284_v10 = vadd.f32 %v2364_v12, %v1330_v51  ;;  %v3252_v42 = vpop.f32.mrb[10].mxu0 }
 0x1e3   : > { %v2508_v59 = vmul.f32 %v3283_v11, %v4408_v37  ;;  %v3285_v60 = vadd.f32 %v3252_v42, %v3082_v17  ;;  %v2367_v2 = vpop.f32.mrb[11].mxu0 }
 0x1e4   : > { %v2506_v20 = vmul.f32 %v3284_v10, %v4408_v37  ;;  %v3286_v1 = vadd.f32 %v2367_v2, %v1333_v62 }
 0x1e5   : > { %v2547_v24 = vadd.f32 %v4414_v56, %v2508_v59  ;;  %v2509_v16 = vmul.f32 %v3285_v60, %v4408_v37 }
 0x1e6   : > { %v2545_v40 = vadd.f32 %v4414_v56, %v2506_v20  ;;  %v2507_v33 = vmul.f32 %v3286_v1, %v4408_v37 }
 0x1e7   : > { %2580 = vst.msk [vmem:[%s4420_s22 + $0x50] sm:$0xff] %vm2569_vm5, %v2547_v24  ;;  %v2548_v54 = vadd.f32 %v4414_v56, %v2509_v16 }
 0x1e8   : > { %2578 = vst.msk [vmem:[%s4420_s22 + $0x40] sm:$0xff] %vm2569_vm5, %v2545_v40  ;;  %v2546_v43 = vadd.f32 %v4414_v56, %v2507_v33  ;;  %v3255_v44 = vpop.f32.mrb[12].mxu0 }
 0x1e9   : > { %2581 = vst.msk [vmem:[%s4420_s22 + $0x58] sm:$0xff] %vm2569_vm5, %v2548_v54  ;;  %v3287_v25 = vadd.f32 %v3255_v44, %v4397_v8  ;;  %v2380_v47 = vpop.f32.mrb[13].mxu0 }
 0x1ea   : > { %2579 = vst.msk [vmem:[%s4420_s22 + $0x48] sm:$0xff] %vm2569_vm5, %v2546_v43  ;;  %v3288_v9 = vadd.f32 %v2380_v47, %v4399_v58  ;;  %v3256_v13 = vpop.f32.mrb[14].mxu0 }
 0x1eb   : > { %v2512_v46 = vmul.f32 %v3287_v25, %v4408_v37  ;;  %v3289_v39 = vadd.f32 %v3256_v13, %v4401_v35  ;;  %v2383_v51 = vpop.f32.mrb[15].mxu0 }
 0x1ec   : > { %v2510_v17 = vmul.f32 %v3288_v9, %v4408_v37  ;;  %v3290_v62 = vadd.f32 %v2383_v51, %v4403_v55 }
 0x1ed   : > { %v2551_v8 = vadd.f32 %v4414_v56, %v2512_v46  ;;  %v2513_v15 = vmul.f32 %v3289_v39, %v4408_v37 }
 0x1ee   : > { %v3123_v52 = vpop.f32.mrb[16].mxu1  ;;  %v2549_v58 = vadd.f32 %v4414_v56, %v2510_v17  ;;  %v2511_v29 = vmul.f32 %v3290_v62, %v4408_v37 }
 0x1ef   : > { %v1572_v23 = vpop.f32.mrb[17].mxu1  ;;  %2584 = vst.msk [vmem:[%s4420_s22 + $0x70] sm:$0xff] %vm2569_vm5, %v2551_v8  ;;  %v2552_v35 = vadd.f32 %v4414_v56, %v2513_v15 }
 0x1f0   : > { %v3124_v50 = vpop.f32.mrb[18].mxu1  ;;  %2582 = vst.msk [vmem:[%s4420_s22 + $0x60] sm:$0xff] %vm2569_vm5, %v2549_v58  ;;  %v2550_v55 = vadd.f32 %v4414_v56, %v2511_v29  ;;  %v3259_v61 = vpop.f32.mrb[16].mxu0 }
 0x1f1   : > { %v1575_v5 = vpop.f32.mrb[19].mxu1  ;;  %2585 = vst.msk [vmem:[%s4420_s22 + $0x78] sm:$0xff] %vm2569_vm5, %v2552_v35  ;;  %v3291_v34 = vadd.f32 %v3259_v61, %v3123_v52  ;;  %v2396_v6 = vpop.f32.mrb[17].mxu0 }
 0x1f2   : > { %2583 = vst.msk [vmem:[%s4420_s22 + $0x68] sm:$0xff] %vm2569_vm5, %v2550_v55  ;;  %v3292_v31 = vadd.f32 %v2396_v6, %v1572_v23  ;;  %v3260_v41 = vpop.f32.mrb[18].mxu0 }
 0x1f3   : > { %v2516_v53 = vmul.f32 %v3291_v34, %v4408_v37  ;;  %v3293_v4 = vadd.f32 %v3260_v41, %v3124_v50  ;;  %v2399_v48 = vpop.f32.mrb[19].mxu0 }
 0x1f4   : > { %v2514_v45 = vmul.f32 %v3292_v31, %v4408_v37  ;;  %v3294_v21 = vadd.f32 %v2399_v48, %v1575_v5 }
 0x1f5   : > { %v2555_v49 = vadd.f32 %v4414_v56, %v2516_v53  ;;  %v2517_v7 = vmul.f32 %v3293_v4, %v4408_v37 }
 0x1f6   : > { %v3127_v36 = vpop.f32.mrb[20].mxu1  ;;  %v2553_v3 = vadd.f32 %v4414_v56, %v2514_v45  ;;  %v2515_v63 = vmul.f32 %v3294_v21, %v4408_v37 }
 0x1f7   : > { %v1588_v0 = vpop.f32.mrb[21].mxu1  ;;  %2588 = vst.msk [vmem:[%s4420_s22 + $0x90] sm:$0xff] %vm2569_vm5, %v2555_v49  ;;  %v2556_v14 = vadd.f32 %v4414_v56, %v2517_v7 }
 0x1f8   : > { %v3128_v32 = vpop.f32.mrb[22].mxu1  ;;  %2586 = vst.msk [vmem:[%s4420_s22 + $0x80] sm:$0xff] %vm2569_vm5, %v2553_v3  ;;  %v2554_v18 = vadd.f32 %v4414_v56, %v2515_v63  ;;  %v3263_v19 = vpop.f32.mrb[20].mxu0 }
 0x1f9   : > { %v1591_v26 = vpop.f32.mrb[23].mxu1  ;;  %2589 = vst.msk [vmem:[%s4420_s22 + $0x98] sm:$0xff] %vm2569_vm5, %v2556_v14  ;;  %v3295_v22 = vadd.f32 %v3263_v19, %v3127_v36  ;;  %v2412_v28 = vpop.f32.mrb[21].mxu0 }
 0x1fa   : > { %2587 = vst.msk [vmem:[%s4420_s22 + $0x88] sm:$0xff] %vm2569_vm5, %v2554_v18  ;;  %v3296_v38 = vadd.f32 %v2412_v28, %v1588_v0  ;;  %v3264_v27 = vpop.f32.mrb[22].mxu0 }
 0x1fb   : > { %v2520_v30 = vmul.f32 %v3295_v22, %v4408_v37  ;;  %v3297_v57 = vadd.f32 %v3264_v27, %v3128_v32  ;;  %v2415_v11 = vpop.f32.mrb[23].mxu0 }
 0x1fc   : > { %v2518_v12 = vmul.f32 %v3296_v38, %v4408_v37  ;;  %v3298_v10 = vadd.f32 %v2415_v11, %v1591_v26 }
 0x1fd   : > { %v2559_v42 = vadd.f32 %v4414_v56, %v2520_v30  ;;  %v2521_v59 = vmul.f32 %v3297_v57, %v4408_v37 }
 0x1fe   : > { %v3131_v60 = vpop.f32.mrb[24].mxu1  ;;  %v2557_v2 = vadd.f32 %v4414_v56, %v2518_v12  ;;  %v2519_v20 = vmul.f32 %v3298_v10, %v4408_v37 }
 0x1ff   : > { %v1604_v1 = vpop.f32.mrb[25].mxu1  ;;  %2592 = vst.msk [vmem:[%s4420_s22 + $0xb0] sm:$0xff] %vm2569_vm5, %v2559_v42  ;;  %v2560_v24 = vadd.f32 %v4414_v56, %v2521_v59 }
 0x200   : > { %v3132_v16 = vpop.f32.mrb[26].mxu1  ;;  %2590 = vst.msk [vmem:[%s4420_s22 + $0xa0] sm:$0xff] %vm2569_vm5, %v2557_v2  ;;  %v2558_v40 = vadd.f32 %v4414_v56, %v2519_v20  ;;  %v3267_v33 = vpop.f32.mrb[24].mxu0 }
 0x201   : > { %v1607_v54 = vpop.f32.mrb[27].mxu1  ;;  %2593 = vst.msk [vmem:[%s4420_s22 + $0xb8] sm:$0xff] %vm2569_vm5, %v2560_v24  ;;  %v3299_v43 = vadd.f32 %v3267_v33, %v3131_v60  ;;  %v2428_v44 = vpop.f32.mrb[25].mxu0 }
 0x202   : > { %2591 = vst.msk [vmem:[%s4420_s22 + $0xa8] sm:$0xff] %vm2569_vm5, %v2558_v40  ;;  %v3300_v25 = vadd.f32 %v2428_v44, %v1604_v1  ;;  %v3268_v47 = vpop.f32.mrb[26].mxu0 }
 0x203   : > { %v2524_v9 = vmul.f32 %v3299_v43, %v4408_v37  ;;  %v3301_v13 = vadd.f32 %v3268_v47, %v3132_v16  ;;  %v2431_v46 = vpop.f32.mrb[27].mxu0 }
 0x204   : > { %v2522_v39 = vmul.f32 %v3300_v25, %v4408_v37  ;;  %v3302_v51 = vadd.f32 %v2431_v46, %v1607_v54 }
 0x205   : > { %v2563_v17 = vadd.f32 %v4414_v56, %v2524_v9  ;;  %v2525_v62 = vmul.f32 %v3301_v13, %v4408_v37 }
 0x206   : > { %v3135_v8 = vpop.f32.mrb[28].mxu1  ;;  %v2561_v15 = vadd.f32 %v4414_v56, %v2522_v39  ;;  %v2523_v52 = vmul.f32 %v3302_v51, %v4408_v37 }
 0x207   : > { %v1620_v58 = vpop.f32.mrb[29].mxu1  ;;  %2596 = vst.msk [vmem:[%s4420_s22 + $0xd0] sm:$0xff] %vm2569_vm5, %v2563_v17  ;;  %v2564_v29 = vadd.f32 %v4414_v56, %v2525_v62 }
 0x208   : > { %v3136_v23 = vpop.f32.mrb[30].mxu1  ;;  %2594 = vst.msk [vmem:[%s4420_s22 + $0xc0] sm:$0xff] %vm2569_vm5, %v2561_v15  ;;  %v2562_v35 = vadd.f32 %v4414_v56, %v2523_v52  ;;  %v3271_v50 = vpop.f32.mrb[28].mxu0 }
 0x209   : > { %v1623_v55 = vpop.f32.mrb[31].mxu1  ;;  %2597 = vst.msk [vmem:[%s4420_s22 + $0xd8] sm:$0xff] %vm2569_vm5, %v2564_v29  ;;  %v3303_v61 = vadd.f32 %v3271_v50, %v3135_v8  ;;  %v2444_v5 = vpop.f32.mrb[29].mxu0 }
 0x20a   : > { %2595 = vst.msk [vmem:[%s4420_s22 + $0xc8] sm:$0xff] %vm2569_vm5, %v2562_v35  ;;  %v3304_v34 = vadd.f32 %v2444_v5, %v1620_v58  ;;  %v3272_v6 = vpop.f32.mrb[30].mxu0 }
 0x20b   : > { %v2528_v31 = vmul.f32 %v3303_v61, %v4408_v37  ;;  %v3305_v41 = vadd.f32 %v3272_v6, %v3136_v23  ;;  %v2447_v53 = vpop.f32.mrb[31].mxu0 }
 0x20c   : > { %v2526_v4 = vmul.f32 %v3304_v34, %v4408_v37  ;;  %v3306_v48 = vadd.f32 %v2447_v53, %v1623_v55 }
 0x20d   : > { %v2567_v45 = vadd.f32 %v4414_v56, %v2528_v31  ;;  %v2529_v21 = vmul.f32 %v3305_v41, %v4408_v37 }
 0x20e   : > { %v2565_v49 = vadd.f32 %v4414_v56, %v2526_v4  ;;  %v2527_v7 = vmul.f32 %v3306_v48, %v4408_v37 }
 0x20f   : > { %2600 = vst.msk [vmem:[%s4420_s22 + $0xf0] sm:$0xff] %vm2569_vm5, %v2567_v45  ;;  %v2568_v36 = vadd.f32 %v4414_v56, %v2529_v21 }
 0x210   : > { %2598 = vst.msk [vmem:[%s4420_s22 + $0xe0] sm:$0xff] %vm2569_vm5, %v2565_v49  ;;  %v2566_v3 = vadd.f32 %v4414_v56, %v2527_v7 }
 0x211   : > { %2601 = vst.msk [vmem:[%s4420_s22 + $0xf8] sm:$0xff] %vm2569_vm5, %v2568_v36 }
 0x212   : > { %2599 = vst.msk [vmem:[%s4420_s22 + $0xe8] sm:$0xff] %vm2569_vm5, %v2566_v3 }
 0x213 PF: > { %s14_s15 = sadd.s32 1, %s3547_s15  }
 0x214   : > { %p11_p4 = scmp.ge.s32.totalorder %s14_s15, 4  }
 0x216   :  { %13 = sbr.rel (!%p11_p4) target bundleno = 1 (0x1), region = 66 }

// kernel: convnet_forward.13
= control target key start
LH: loop header
LB: loop body
LE: loop exit
PB: predicated region body
PF: predicated region fallthrough
CT: control target
= control target key end

     0   :  { %s1311_s13 = smov 0   ;;  %s1688_s0 = inlined_call_operand.vmem [shape: f32[2,64,16], index: 0, kind: input, shape index: {}]   ;;  %s1689_s1 = inlined_call_operand.vmem [shape: bf16[16,32], index: 1, kind: input, shape index: {}]   ;;  %s1690_s2 = inlined_call_operand.vmem [shape: f32[1,32], index: 2, kind: input, shape index: {}]   ;;  %s1691_s3 = inlined_call_operand.vmem [shape: f32[1,32], index: 3, kind: input, shape index: {}]   ;;  %s1692_s4 = inlined_call_operand.vmem [shape: f32[9,32], index: 4, kind: input, shape index: {}]   ;;  %s1693_s5 = inlined_call_operand.vmem [shape: f32[1,32], index: 5, kind: input, shape index: {}]   ;;  %s1694_s6 = inlined_call_operand.vmem [shape: f32[1,32], index: 6, kind: input, shape index: {}]   ;;  %s1695_s7 = inlined_call_operand.vmem [shape: bf16[32,16], index: 7, kind: input, shape index: {}]   ;;  %s1696_s8 = inlined_call_operand.vmem [shape: f32[1,16], index: 8, kind: input, shape index: {}]   ;;  %s1697_s9 = inlined_call_operand.vmem [shape: f32[1,16], index: 9, kind: input, shape index: {}]   ;;  %s1698_s10 = inlined_call_operand.vmem [shape: f32[2,64,16], index: 10, kind: output, shape index: {}]  }
   0x1 LB: > { %s1139_s14 = sadd.s32 4294967295, %s1253_s13   ;;  %p1143_p0 = scmp.ge.s32.totalorder %s1253_s13, 1  ;;  %s1253_s13 = sphi %s1311_s13, %s20_s13  }
   0x2   : > { %p312_p1 = scmp.lt.s32.totalorder %s1253_s13, 3 }
   0x4   : > { %p313_p2 = pnand %p1143_p0, %p312_p1 }
   0x5   : > { %v1212_v0 = vld [vmem:[%s1689_s1] sm:$0xff] (!%p313_p2)   ;;  %p350_p3 = scmp.lt.s32.totalorder (!%p313_p2), %s1139_s14, 1  ;;  %vm381_vm0 = vcmask (!%p313_p2), 130048   ;;  %vm561_vm1 = vcmask (!%p313_p2), 261120   ;;  %vm563_vm2 = vcmask (!%p313_p2), 254976   ;;  %v1255_v13 = vmov (!%p313_p2), 0.0  }
   0x6   : > { %316 = sbr.rel (%p313_p2) target bundleno = 572 (0x23c), region = 60  ;;  %1181 = vmatprep.subr.bf16.mxu0 (!%p313_p2), %v1212_v0  ;;  %569 = vst.msk [vmem:[#allocation2 + $0x30] sm:$0xff] (!%p313_p2), %vm561_vm1, %v1255_v13  ;;  %562 = vst.msk [vmem:[#allocation2] sm:$0xff] (!%p313_p2), %vm561_vm1, %v1255_v13  ;;  %v1213_v14 = vld [vmem:[%s1695_s7] sm:$0xff] (!%p313_p2)   ;;  %v1214_v15 = vld [vmem:[%s1695_s7 + $0x8] sm:$0xff] (!%p313_p2)   ;;  %v602_v45 = vlaneseq (!%p313_p2) }
   0x7   : > { %1182 = vmatpush3.bf16.msra.mxu0 (!%p313_p2), %v1212_v0  ;;  %570 = vst.msk [vmem:[#allocation2 + $0x38] sm:$0x3] (!%p313_p2), %vm563_vm2, %v1255_v13  ;;  %564 = vst.msk [vmem:[#allocation2 + $0x8] sm:$0x3] (!%p313_p2), %vm563_vm2, %v1255_v13  ;;  %1191 = vmatprep.subr.bf16.mxu1 (!%p313_p2), %v1213_v14  ;;  %v1153_v16 = vld [vmem:[%s1690_s2] ss:$0 sm:$0xff] (!%p313_p2) }
   0x8   : > { %565 = vst.msk [vmem:[#allocation2 + $0x10] sm:$0xff] (!%p313_p2), %vm561_vm1, %v1255_v13  ;;  %567 = vst.msk [vmem:[#allocation2 + $0x20] sm:$0xff] (!%p313_p2), %vm561_vm1, %v1255_v13  ;;  %1192 = vmatpush3.bf16.msra.mxu1 (!%p313_p2), %v1213_v14  ;;  %v1154_v18 = vld [vmem:[%s1691_s3] ss:$0 sm:$0xff] (!%p313_p2)  ;;  %v1420_v61 = vshrl.u32 (!%p313_p2), %v602_v45, 7 }
   0x9   : > { %566 = vst.msk [vmem:[#allocation2 + $0x18] sm:$0x3] (!%p313_p2), %vm563_vm2, %v1255_v13  ;;  %568 = vst.msk [vmem:[#allocation2 + $0x28] sm:$0x3] (!%p313_p2), %vm563_vm2, %v1255_v13  ;;  %1193 = vmatprep.subr.bf16.mxu1 (!%p313_p2), %v1214_v15 }
   0xa   : > { %571 = vst.msk [vmem:[#allocation2 + $0x40] sm:$0xff] (!%p313_p2), %vm561_vm1, %v1255_v13  ;;  %573 = vst.msk [vmem:[#allocation2 + $0x50] sm:$0xff] (!%p313_p2), %vm561_vm1, %v1255_v13 }
   0xb   : > { %572 = vst.msk [vmem:[#allocation2 + $0x48] sm:$0x3] (!%p313_p2), %vm563_vm2, %v1255_v13  ;;  %574 = vst.msk [vmem:[#allocation2 + $0x58] sm:$0x3] (!%p313_p2), %vm563_vm2, %v1255_v13 }
   0xc   : > { %575 = vst.msk [vmem:[#allocation2 + $0x60] sm:$0xff] (!%p313_p2), %vm561_vm1, %v1255_v13  ;;  %577 = vst.msk [vmem:[#allocation2 + $0x70] sm:$0xff] (!%p313_p2), %vm561_vm1, %v1255_v13  ;;  %1194 = vmatpush3.bf16.msra.mxu1 (!%p313_p2), %v1214_v15 }
   0xd   : > { %s1700_s14 = smov (!%p350_p3, %s1139_s14), 1  ;;  %576 = vst.msk [vmem:[#allocation2 + $0x68] sm:$0x3] %vm563_vm2, %v1255_v13  ;;  %578 = vst.msk [vmem:[#allocation2 + $0x78] sm:$0x3] %vm563_vm2, %v1255_v13 }
   0xe   : > { %s1168_s17 = sshll.u32 %s1700_s14, 6  ;;  %579 = vst.msk [vmem:[#allocation2 + $0x80] sm:$0xff] %vm561_vm1, %v1255_v13  ;;  %581 = vst.msk [vmem:[#allocation2 + $0x90] sm:$0xff] %vm561_vm1, %v1255_v13 }
   0xf   : > { %s354_s20 = scalar_lea.vmem %s1688_s0, %s1168_s17  ;;  %580 = vst.msk [vmem:[#allocation2 + $0x88] sm:$0x3] %vm563_vm2, %v1255_v13  ;;  %582 = vst.msk [vmem:[#allocation2 + $0x98] sm:$0x3] %vm563_vm2, %v1255_v13  ;;  %s1659_s26 = scalar_lea.vmem %s1698_s10, %s1168_s17 }
  0x10   : > { %v1330_v1 = vld [vmem:[%s354_s20] sm:$0xff]  ;;  %v1332_v2 = vld [vmem:[%s354_s20 + $0x8] sm:$0xff]  ;;  %v1334_v3 = vld [vmem:[%s354_s20 + $0x10] sm:$0xff] }
  0x11   : > { %v369_v4 = vpack.c.bf16 %v1332_v2, %v1330_v1  ;;  %v1338_v5 = vld [vmem:[%s354_s20 + $0x18] sm:$0xff]  ;;  %v1340_v6 = vld [vmem:[%s354_s20 + $0x20] sm:$0xff]  ;;  %v1342_v7 = vld [vmem:[%s354_s20 + $0x28] sm:$0xff] }
  0x12   : > { %v370_v8 = vpack.c.bf16 %v1338_v5, %v1334_v3  ;;  %v371_v9 = vpack.c.bf16 %v1342_v7, %v1340_v6  ;;  %v1351_v10 = vld [vmem:[%s354_s20 + $0x30] sm:$0xff]  ;;  %v1353_v11 = vld [vmem:[%s354_s20 + $0x38] sm:$0xff] }
  0x13   : > { %1183 = vmatprep.mubr.msk.bf16.mxu0 %vm381_vm0, %v369_v4  ;;  %v372_v12 = vpack.c.bf16 %v1353_v11, %v1351_v10 }
  0x14   : > { %1184 = vmatmul.mubr.msk.bf16.vlgmr.msra.gmra.mrb[0].mxu0 %vm381_vm0, %v370_v8 }
  0x15   : > { %1187 = vmatprep.mubr.msk.bf16.mxu0 %vm381_vm0, %v371_v9 }
  0x1c   : > { %1188 = vmatmul.mubr.msk.bf16.gmra.mrb[4].mxu0 %vm381_vm0, %v372_v12 }
  0xe7   : > { %v1185_v17 = vpop.f32.mrb[0].mxu0 }
  0xe8   : > { %v468_v19 = vmul.f32 %v1185_v17, %v1153_v16  ;;  %v428_v20 = vpop.f32.mrb[1].mxu0 }
  0xe9   : > { %v466_v21 = vmul.f32 %v1153_v16, %v428_v20  ;;  %v1186_v22 = vpop.f32.mrb[2].mxu0  ;;  %v624_v20 = vsub.s32 1, %v1420_v61 }
  0xea   : > { %v1390_v23 = vadd.f32 %v1154_v18, %v468_v19  ;;  %v469_v24 = vmul.f32 %v1186_v22, %v1153_v16  ;;  %v431_v25 = vpop.f32.mrb[3].mxu0 }
  0xeb   : > { %v1392_v26 = vadd.f32 %v1154_v18, %v466_v21  ;;  %v467_v27 = vmul.f32 %v1153_v16, %v431_v25 }
  0xec   : > { %v499_v28 = vmul.f32 0.044715, %v1390_v23  ;;  %v1395_v29 = vadd.f32 %v1154_v18, %v469_v24 }
  0xed   : > { %v497_v30 = vmul.f32 0.044715, %v1392_v26  ;;  %v1398_v31 = vadd.f32 %v1154_v18, %v467_v27 }
  0xee   : > { %v507_v32 = vmul.f32 %v499_v28, %v1390_v23  ;;  %v500_v33 = vmul.f32 0.044715, %v1395_v29 }
  0xef   : > { %v505_v34 = vmul.f32 %v497_v30, %v1392_v26  ;;  %v498_v35 = vmul.f32 0.044715, %v1398_v31  ;;  %v1189_v36 = vpop.f32.mrb[4].mxu0 }
  0xf0   : > { %v515_v37 = vmul.f32 %v507_v32, %v1390_v23  ;;  %v508_v38 = vmul.f32 %v500_v33, %v1395_v29  ;;  %v472_v39 = vmul.f32 %v1189_v36, %v1153_v16  ;;  %v444_v40 = vpop.f32.mrb[5].mxu0  ;;  %v594_v33 = vld [vmem:[#allocation2] sm:$0xff] }
  0xf1   : > { %v513_v41 = vmul.f32 %v505_v34, %v1392_v26  ;;  %v506_v42 = vmul.f32 %v498_v35, %v1398_v31  ;;  %v470_v43 = vmul.f32 %v1153_v16, %v444_v40  ;;  %v1190_v44 = vpop.f32.mrb[6].mxu0  ;;  %v614_v36 = vld [vmem:[#allocation2 + $0x1] sm:$0xff] }
  0xf2   : > { %v523_v46 = vadd.f32 %v515_v37, %v1390_v23  ;;  %v516_v47 = vmul.f32 %v508_v38, %v1395_v29  ;;  %v1410_v48 = vadd.f32 %v1154_v18, %v472_v39  ;;  %v473_v49 = vmul.f32 %v1190_v44, %v1153_v16  ;;  %v447_v50 = vpop.f32.mrb[7].mxu0 }
  0xf3   : > { %v521_v51 = vadd.f32 %v513_v41, %v1392_v26  ;;  %v514_v52 = vmul.f32 %v506_v42, %v1398_v31  ;;  %v1414_v53 = vadd.f32 %v1154_v18, %v470_v43  ;;  %v471_v54 = vmul.f32 %v1153_v16, %v447_v50 }
  0xf4   : > { %v531_v55 = vmul.f32 0.7978846, %v523_v46  ;;  %v524_v56 = vadd.f32 %v516_v47, %v1395_v29  ;;  %v503_v57 = vmul.f32 0.044715, %v1410_v48  ;;  %v1423_v0 = vadd.f32 %v1154_v18, %v473_v49 }
  0xf5   : > { %v529_v58 = vmul.f32 0.7978846, %v521_v51  ;;  %v522_v59 = vadd.f32 %v514_v52, %v1398_v31  ;;  %v501_v60 = vmul.f32 0.044715, %v1414_v53  ;;  %v1426_v9 = vadd.f32 %v1154_v18, %v471_v54  ;;  %v1438_v18 = vld [vmem:[%s1692_s4] sm:$0xff] }
  0xf6   : > { %1215 = vtanh.f32 %v531_v55  ;;  %v532_v62 = vmul.f32 0.7978846, %v524_v56  ;;  %v511_v63 = vmul.f32 %v503_v57, %v1410_v48  ;;  %v504_v13 = vmul.f32 0.044715, %v1423_v0 }
  0xf7   : > { %1217 = vtanh.f32 %v529_v58  ;;  %v530_v4 = vmul.f32 0.7978846, %v522_v59  ;;  %v509_v8 = vmul.f32 %v501_v60, %v1414_v53  ;;  %v502_v15 = vmul.f32 0.044715, %v1426_v9  ;;  %v642_v58 = vld [vmem:[#allocation2 + $0x2] sm:$0xff] }
  0xf8   : > { %1219 = vtanh.f32 %v532_v62  ;;  %v519_v12 = vmul.f32 %v511_v63, %v1410_v48  ;;  %v604_v16 = vsub.s32 0, %v1420_v61  ;;  %v512_v19 = vmul.f32 %v504_v13, %v1423_v0 }
  0xf9   : > { %1221 = vtanh.f32 %v530_v4  ;;  %v517_v14 = vmul.f32 %v509_v8, %v1414_v53  ;;  %v510_v22 = vmul.f32 %v502_v15, %v1426_v9  ;;  %v1450_v34 = vrot.slane %v1438_v18, %v624_v20 }
  0xfa   : > { %v527_v17 = vadd.f32 %v519_v12, %v1410_v48  ;;  %v520_v25 = vmul.f32 %v512_v19, %v1423_v0  ;;  %v1446_v30 = vrot.slane %v1438_v18, %v604_v16  ;;  %v652_v39 = vsub.s32 2, %v1420_v61 }
  0xfb   : > { %v525_v21 = vadd.f32 %v517_v14, %v1414_v53  ;;  %v518_v28 = vmul.f32 %v510_v22, %v1426_v9  ;;  %v491_v41 = vmul.f32 0.5, %v1390_v23  ;;  %v489_v46 = vmul.f32 0.5, %v1392_v26  ;;  %v1484_v22 = vld [vmem:[%s1692_s4 + $0x8] ss:$0 sm:$0xff] }
  0xfc   : > { %v535_v24 = vmul.f32 0.7978846, %v527_v17  ;;  %v528_v32 = vadd.f32 %v520_v25, %v1423_v0  ;;  %v606_v44 = vmul.f32 %v1446_v30, %v594_v33  ;;  %v626_v49 = vmul.f32 %v1450_v34, %v614_v36 }
  0xfd   : > { %v533_v27 = vmul.f32 0.7978846, %v525_v21  ;;  %v526_v35 = vadd.f32 %v518_v28, %v1426_v9  ;;  %v492_v52 = vmul.f32 0.5, %v1395_v29  ;;  %v490_v23 = vmul.f32 0.5, %v1398_v31 }
  0xfe   : > { %1223 = vtanh.f32 %v535_v24  ;;  %v536_v38 = vmul.f32 0.7978846, %v528_v32  ;;  %v1461_v57 = vrot.slane %v1438_v18, %v652_v39  ;;  %v765_v59 = vsub.s32 6, %v1420_v61 }
  0xff   : > { %1225 = vtanh.f32 %v533_v27  ;;  %v534_v43 = vmul.f32 0.7978846, %v526_v35  ;;  %v793_v29 = vsub.s32 7, %v1420_v61  ;;  %v680_v62 = vsub.s32 3, %v1420_v61 }
 0x100   : > { %v1216_v37 = vpop.eup %1215  ;;  %1227 = vtanh.f32 %v536_v38  ;;  %v634_v63 = vadd.f32 %v626_v49, %v606_v44  ;;  %v654_v4 = vmul.f32 %v1461_v57, %v642_v58  ;;  %v708_v8 = vsub.s32 4, %v1420_v61 }
 0x101   : > { %v1218_v40 = vpop.eup %1217  ;;  %v547_v42 = vadd.f32 1.0, %v1216_v37  ;;  %1229 = vtanh.f32 %v534_v43  ;;  %v736_v12 = vsub.s32 5, %v1420_v61  ;;  %v495_v14 = vmul.f32 0.5, %v1410_v48 }
 0x102   : > { %v1220_v45 = vpop.eup %1219  ;;  %v545_v47 = vadd.f32 1.0, %v1218_v40  ;;  %v1475_v16 = vrot.slane %v1438_v18, %v765_v59  ;;  %v493_v17 = vmul.f32 0.5, %v1414_v53  ;;  %v1479_v20 = vrot.slane %v1438_v18, %v793_v29 }
 0x103   : > { %v1222_v50 = vpop.eup %1221  ;;  %v555_v51 = vmul.f32 %v547_v42, %v491_v41  ;;  %v548_v54 = vadd.f32 1.0, %v1220_v45  ;;  %v1487_v61 = vrot.slane %v1438_v18, %v680_v62  ;;  %v662_v25 = vadd.f32 %v654_v4, %v634_v63 }
 0x104   : > { %v553_v55 = vmul.f32 %v545_v47, %v489_v46  ;;  %v546_v56 = vadd.f32 1.0, %v1222_v50  ;;  %v1490_v27 = vrot.slane %v1438_v18, %v708_v8  ;;  %v1493_v53 = vrot.slane %v1438_v18, %v736_v12 }
 0x105   : > { %586 = vst.msk [vmem:[#allocation2 + $0x31] sm:$0xff] %vm561_vm1, %v555_v51  ;;  %v556_v26 = vmul.f32 %v548_v54, %v492_v52  ;;  %v496_v36 = vmul.f32 0.5, %v1423_v0  ;;  %v494_v38 = vmul.f32 0.5, %v1426_v9 }
 0x106   : > { %584 = vst.msk [vmem:[#allocation2 + $0x11] sm:$0xff] %vm561_vm1, %v553_v55  ;;  %v554_v60 = vmul.f32 %v546_v56, %v490_v23 }
 0x107   : > { %587 = vst.msk [vmem:[#allocation2 + $0x41] sm:$0xff] %vm561_vm1, %v556_v26 }
 0x108   : > { %v1224_v31 = vpop.eup %1223  ;;  %585 = vst.msk [vmem:[#allocation2 + $0x21] sm:$0xff] %vm561_vm1, %v554_v60 }
 0x109   : > { %v1226_v13 = vpop.eup %1225  ;;  %v551_v15 = vadd.f32 1.0, %v1224_v31 }
 0x10a   : > { %v549_v19 = vadd.f32 1.0, %v1226_v13  ;;  %v1228_v48 = vpop.eup %1227 }
 0x10b   : > { %v559_v21 = vmul.f32 %v551_v15, %v495_v14  ;;  %v1230_v35 = vpop.eup %1229  ;;  %v552_v37 = vadd.f32 1.0, %v1228_v48 }
 0x10c   : > { %v557_v24 = vmul.f32 %v549_v19, %v493_v17  ;;  %v756_v28 = vld [vmem:[#allocation2 + $0x30] sm:$0xff]  ;;  %v550_v18 = vadd.f32 1.0, %v1230_v35 }
 0x10d   : > { %v784_v32 = vld [vmem:[#allocation2 + $0x31] sm:$0xff]  ;;  %590 = vst.msk [vmem:[#allocation2 + $0x71] sm:$0xff] %vm561_vm1, %v559_v21  ;;  %v768_v42 = vmul.f32 %v1475_v16, %v756_v28  ;;  %v560_v46 = vmul.f32 %v552_v37, %v496_v36  ;;  %v609_v31 = vmul.f32 %v756_v28, %v1446_v30  ;;  %v684_v35 = vmul.f32 %v756_v28, %v1487_v61 }
 0x10e   : > { %v812_v33 = vld [vmem:[#allocation2 + $0x32] sm:$0xff]  ;;  %588 = vst.msk [vmem:[#allocation2 + $0x51] sm:$0xff] %vm561_vm1, %v557_v24  ;;  %v1503_v45 = vmul.f32 %v1479_v20, %v784_v32  ;;  %v558_v52 = vmul.f32 %v550_v18, %v494_v38  ;;  %v629_v12 = vmul.f32 %v784_v32, %v1450_v34  ;;  %v673_v13 = vld [vmem:[#allocation2 + $0x40] sm:$0xff] }
 0x10f   : > { %v595_v39 = vld [vmem:[#allocation2 + $0x10] sm:$0xff]  ;;  %v671_v47 = vld [vmem:[#allocation2 + $0x20] sm:$0xff]  ;;  %v1508_v51 = vmul.f32 %v1484_v22, %v812_v33  ;;  %591 = vst.msk [vmem:[#allocation2 + $0x81] sm:$0xff] %vm561_vm1, %v560_v46  ;;  %v657_v21 = vmul.f32 %v812_v33, %v1461_v57  ;;  %v740_v46 = vmul.f32 %v812_v33, %v1493_v53  ;;  %v769_v28 = vmul.f32 %v1475_v16, %v673_v13 }
 0x110   : > { %v615_v40 = vld [vmem:[#allocation2 + $0x11] sm:$0xff]  ;;  %v607_v43 = vmul.f32 %v1446_v30, %v595_v39  ;;  %v682_v9 = vmul.f32 %v1487_v61, %v595_v39  ;;  %v699_v49 = vld [vmem:[#allocation2 + $0x21] sm:$0xff]  ;;  %v683_v56 = vmul.f32 %v1487_v61, %v671_v47  ;;  %589 = vst.msk [vmem:[#allocation2 + $0x61] sm:$0xff] %vm561_vm1, %v558_v52  ;;  %v767_v29 = vmul.f32 %v1475_v16, %v671_v47 }
 0x111   : > { %v643_v41 = vld [vmem:[#allocation2 + $0x12] sm:$0xff]  ;;  %v627_v44 = vmul.f32 %v1450_v34, %v615_v40  ;;  %v727_v50 = vld [vmem:[#allocation2 + $0x22] sm:$0xff]  ;;  %v710_v55 = vmul.f32 %v1490_v27, %v615_v40  ;;  %v711_v58 = vmul.f32 %v1490_v27, %v699_v49  ;;  %v608_v62 = vmul.f32 %v671_v47, %v1446_v30 }
 0x112   : > { %v655_v0 = vmul.f32 %v1461_v57, %v643_v41  ;;  %v738_v23 = vmul.f32 %v1493_v53, %v643_v41  ;;  %v690_v26 = vadd.f32 %v682_v9, %v662_v25  ;;  %v739_v59 = vmul.f32 %v1493_v53, %v727_v50  ;;  %v701_v14 = vld [vmem:[#allocation2 + $0x41] sm:$0xff] }
 0x113   : > { %v635_v54 = vadd.f32 %v627_v44, %v607_v43  ;;  %v795_v4 = vmul.f32 %v1479_v20, %v699_v49  ;;  %v628_v8 = vmul.f32 %v699_v49, %v1450_v34  ;;  %v823_v17 = vmul.f32 %v1484_v22, %v727_v50  ;;  %v729_v36 = vld [vmem:[#allocation2 + $0x42] sm:$0xff] }
 0x114   : > { %v718_v63 = vadd.f32 %v710_v55, %v690_v26  ;;  %v656_v19 = vmul.f32 %v727_v50, %v1461_v57  ;;  %v637_v25 = vadd.f32 %v629_v12, %v609_v31  ;;  %v685_v39 = vmul.f32 %v1487_v61, %v673_v13 }
 0x115   : > { %v663_v60 = vadd.f32 %v655_v0, %v635_v54  ;;  %v636_v24 = vadd.f32 %v628_v8, %v608_v62  ;;  %v758_v37 = vld [vmem:[#allocation2 + $0x50] sm:$0xff]  ;;  %v712_v40 = vmul.f32 %v784_v32, %v1490_v27  ;;  %v713_v41 = vmul.f32 %v1490_v27, %v701_v14 }
 0x116   : > { %v746_v48 = vadd.f32 %v738_v23, %v718_v63  ;;  %v665_v44 = vadd.f32 %v657_v21, %v637_v25  ;;  %v786_v0 = vld [vmem:[#allocation2 + $0x51] sm:$0xff]  ;;  %v741_v9 = vmul.f32 %v1493_v53, %v729_v36  ;;  %v770_v49 = vmul.f32 %v1475_v16, %v758_v37  ;;  %v1538_v23 = vld [vmem:[%s1693_s5] ss:$0 sm:$0xff] }
 0x117   : > { %v691_v15 = vadd.f32 %v683_v56, %v663_v60  ;;  %v664_v43 = vadd.f32 %v656_v19, %v636_v24  ;;  %v797_v32 = vmul.f32 %v1479_v20, %v701_v14  ;;  %v798_v33 = vmul.f32 %v1479_v20, %v786_v0  ;;  %v675_v19 = vld [vmem:[#allocation2 + $0x60] sm:$0xff] }
 0x118   : > { %v775_v18 = vadd.f32 %v767_v29, %v746_v48  ;;  %v693_v54 = vadd.f32 %v685_v39, %v665_v44  ;;  %v610_v56 = vmul.f32 %v673_v13, %v1446_v30  ;;  %v611_v26 = vmul.f32 %v758_v37, %v1446_v30  ;;  %v814_v29 = vld [vmem:[#allocation2 + $0x52] sm:$0xff] }
 0x119   : > { %v719_v38 = vadd.f32 %v711_v58, %v691_v15  ;;  %v692_v52 = vadd.f32 %v684_v35, %v664_v43  ;;  %v630_v62 = vmul.f32 %v701_v14, %v1450_v34  ;;  %v825_v63 = vmul.f32 %v1484_v22, %v729_v36 }
 0x11a   : > { %v803_v50 = vadd.f32 %v795_v4, %v775_v18  ;;  %v721_v60 = vadd.f32 %v713_v41, %v693_v54  ;;  %v631_v4 = vmul.f32 %v786_v0, %v1450_v34  ;;  %v658_v8 = vmul.f32 %v729_v36, %v1461_v57 }
 0x11b   : > { %v747_v47 = vadd.f32 %v739_v59, %v719_v38  ;;  %v720_v59 = vadd.f32 %v712_v40, %v692_v52  ;;  %v659_v21 = vmul.f32 %v814_v29, %v1461_v57  ;;  %v686_v48 = vmul.f32 %v758_v37, %v1487_v61  ;;  %v703_v38 = vld [vmem:[#allocation2 + $0x61] sm:$0xff] }
 0x11c   : > { %v831_v58 = vadd.f32 %v823_v17, %v803_v50  ;;  %v749_v15 = vadd.f32 %v741_v9, %v721_v60  ;;  %v638_v17 = vadd.f32 %v630_v62, %v610_v56  ;;  %v826_v36 = vmul.f32 %v1484_v22, %v814_v29  ;;  %v760_v56 = vld [vmem:[#allocation2 + $0x70] sm:$0xff] }
 0x11d   : > { %v776_v55 = vadd.f32 %v768_v42, %v747_v47  ;;  %v1548_v42 = vld [vmem:[%s1694_s6] ss:$0 sm:$0xff]  ;;  %v748_v13 = vadd.f32 %v740_v46, %v720_v59  ;;  %v687_v18 = vmul.f32 %v1487_v61, %v675_v19  ;;  %v714_v37 = vmul.f32 %v786_v0, %v1490_v27  ;;  %v731_v46 = vld [vmem:[#allocation2 + $0x62] sm:$0xff] }
 0x11e   : > { %v846_v12 = vmul.f32 %v1538_v23, %v831_v58  ;;  %v778_v35 = vadd.f32 %v770_v49, %v749_v15  ;;  %v666_v40 = vadd.f32 %v658_v8, %v638_v17  ;;  %v715_v49 = vmul.f32 %v1490_v27, %v703_v38 }
 0x11f   : > { %v804_v31 = vadd.f32 %v1503_v45, %v776_v55  ;;  %v639_v45 = vadd.f32 %v631_v4, %v611_v26  ;;  %v777_v25 = vadd.f32 %v769_v28, %v748_v13  ;;  %v742_v55 = vmul.f32 %v814_v29, %v1493_v53 }
 0x120   : > { %v1558_v24 = vadd.f32 %v1548_v42, %v846_v12  ;;  %v806_v44 = vadd.f32 %v798_v33, %v778_v35  ;;  %v694_v9 = vadd.f32 %v686_v48, %v666_v40  ;;  %v743_v0 = vmul.f32 %v1493_v53, %v731_v46 }
 0x121   : > { %v832_v14 = vadd.f32 %v1508_v51, %v804_v31  ;;  %v667_v41 = vadd.f32 %v659_v21, %v639_v45  ;;  %v805_v43 = vadd.f32 %v797_v32, %v777_v25  ;;  %v771_v62 = vmul.f32 %v1475_v16, %v675_v19  ;;  %v788_v31 = vld [vmem:[#allocation2 + $0x71] sm:$0xff] }
 0x122   : > { %v877_v51 = vmul.f32 0.044715, %v1558_v24  ;;  %v834_v54 = vadd.f32 %v826_v36, %v806_v44  ;;  %v722_v33 = vadd.f32 %v714_v37, %v694_v9  ;;  %v772_v8 = vmul.f32 %v1475_v16, %v760_v56  ;;  %v816_v25 = vld [vmem:[#allocation2 + $0x72] sm:$0xff] }
 0x123   : > { %v847_v39 = vmul.f32 %v1538_v23, %v832_v14  ;;  %v695_v28 = vadd.f32 %v687_v18, %v667_v41  ;;  %v833_v52 = vadd.f32 %v825_v63, %v805_v43  ;;  %v799_v17 = vmul.f32 %v1479_v20, %v703_v38 }
 0x124   : > { %v885_v50 = vmul.f32 %v877_v51, %v1558_v24  ;;  %v849_v60 = vmul.f32 %v1538_v23, %v834_v54  ;;  %v750_v4 = vadd.f32 %v742_v55, %v722_v33  ;;  %v800_v48 = vmul.f32 %v1479_v20, %v788_v31 }
 0x125   : > { %v1566_v47 = vadd.f32 %v1548_v42, %v847_v39  ;;  %v723_v26 = vadd.f32 %v715_v49, %v695_v28  ;;  %v848_v59 = vmul.f32 %v1538_v23, %v833_v52  ;;  %v827_v43 = vmul.f32 %v1484_v22, %v731_v46 }
 0x126   : > { %v893_v58 = vmul.f32 %v885_v50, %v1558_v24  ;;  %v1584_v15 = vadd.f32 %v1548_v42, %v849_v60  ;;  %v779_v45 = vadd.f32 %v771_v62, %v750_v4  ;;  %v828_v44 = vmul.f32 %v1484_v22, %v816_v25 }
 0x127   : > { %v878_v32 = vmul.f32 0.044715, %v1566_v47  ;;  %v751_v29 = vadd.f32 %v743_v0, %v723_v26  ;;  %v1581_v13 = vadd.f32 %v1548_v42, %v848_v59  ;;  %v612_v28 = vmul.f32 %v675_v19, %v1446_v30  ;;  %v677_v59 = vld [vmem:[#allocation2 + $0x80] sm:$0xff] }
 0x128   : > { %v901_v12 = vadd.f32 %v893_v58, %v1558_v24  ;;  %v880_v40 = vmul.f32 0.044715, %v1584_v15  ;;  %v807_v41 = vadd.f32 %v799_v17, %v779_v45  ;;  %v613_v49 = vmul.f32 %v760_v56, %v1446_v30  ;;  %v762_v45 = vld [vmem:[#allocation2 + $0x90] sm:$0xff] }
 0x129   : > { %v886_v63 = vmul.f32 %v878_v32, %v1566_v47  ;;  %v780_v21 = vadd.f32 %v772_v8, %v751_v29  ;;  %v879_v36 = vmul.f32 0.044715, %v1581_v13  ;;  %v632_v55 = vmul.f32 %v703_v38, %v1450_v34 }
 0x12a   : > { %v909_v35 = vmul.f32 0.7978846, %v901_v12  ;;  %v888_v9 = vmul.f32 %v880_v40, %v1584_v15  ;;  %v835_v52 = vadd.f32 %v827_v43, %v807_v41  ;;  %v633_v33 = vmul.f32 %v788_v31, %v1450_v34  ;;  %v733_v40 = vld [vmem:[#allocation2 + $0x82] sm:$0xff] }
 0x12b   : > { %v894_v14 = vmul.f32 %v886_v63, %v1566_v47  ;;  %v808_v18 = vadd.f32 %v800_v48, %v780_v21  ;;  %v887_v51 = vmul.f32 %v879_v36, %v1581_v13  ;;  %v660_v26 = vmul.f32 %v731_v46, %v1461_v57  ;;  %v790_v48 = vld [vmem:[#allocation2 + $0x91] sm:$0xff] }
 0x12c   : > { %1231 = vtanh.f32 %v909_v35  ;;  %v896_v32 = vmul.f32 %v888_v9, %v1584_v15  ;;  %v850_v58 = vmul.f32 %v1538_v23, %v835_v52  ;;  %v640_v30 = vadd.f32 %v632_v55, %v612_v28 }
 0x12d   : > { %v902_v39 = vadd.f32 %v894_v14, %v1566_v47  ;;  %v895_v50 = vmul.f32 %v887_v51, %v1581_v13  ;;  %v836_v54 = vadd.f32 %v828_v44, %v808_v18  ;;  %v641_v62 = vadd.f32 %v633_v33, %v613_v49  ;;  %v705_v14 = vld [vmem:[#allocation2 + $0x81] sm:$0xff] }
 0x12e   : > { %v904_v60 = vadd.f32 %v896_v32, %v1584_v15  ;;  %v661_v38 = vmul.f32 %v816_v25, %v1461_v57  ;;  %v1609_v4 = vadd.f32 %v1548_v42, %v850_v58  ;;  %v668_v46 = vadd.f32 %v660_v26, %v640_v30 }
 0x12f   : > { %v910_v37 = vmul.f32 0.7978846, %v902_v39  ;;  %v903_v0 = vadd.f32 %v895_v50, %v1581_v13  ;;  %v851_v19 = vmul.f32 %v1538_v23, %v836_v54  ;;  %v688_v12 = vmul.f32 %v760_v56, %v1487_v61  ;;  %v818_v50 = vld [vmem:[#allocation2 + $0x92] sm:$0xff] }
 0x130   : > { %v912_v29 = vmul.f32 0.7978846, %v904_v60  ;;  %v669_v8 = vadd.f32 %v661_v38, %v641_v62  ;;  %v689_v17 = vmul.f32 %v1487_v61, %v677_v59  ;;  %v881_v21 = vmul.f32 0.044715, %v1609_v4 }
 0x131   : > { %1233 = vtanh.f32 %v910_v37  ;;  %v911_v63 = vmul.f32 0.7978846, %v903_v0  ;;  %v1612_v34 = vadd.f32 %v1548_v42, %v851_v19  ;;  %v716_v57 = vmul.f32 %v788_v31, %v1490_v27 }
 0x132   : > { %v696_v36 = vadd.f32 %v688_v12, %v668_v46  ;;  %v697_v39 = vadd.f32 %v689_v17, %v669_v8  ;;  %v889_v18 = vmul.f32 %v881_v21, %v1609_v4  ;;  %v717_v56 = vmul.f32 %v1490_v27, %v705_v14 }
 0x133   : > { %1235 = vtanh.f32 %v911_v63  ;;  %v882_v35 = vmul.f32 0.044715, %v1612_v34  ;;  %v774_v61 = vmul.f32 %v1475_v16, %v762_v45  ;;  %v744_v44 = vmul.f32 %v816_v25, %v1493_v53 }
 0x134   : > { %1237 = vtanh.f32 %v912_v29  ;;  %v724_v43 = vadd.f32 %v716_v57, %v696_v36  ;;  %v802_v31 = vmul.f32 %v1479_v20, %v790_v48  ;;  %v897_v9 = vmul.f32 %v889_v18, %v1609_v4 }
 0x135   : > { %v890_v51 = vmul.f32 %v882_v35, %v1612_v34  ;;  %v725_v28 = vadd.f32 %v717_v56, %v697_v39  ;;  %v745_v49 = vmul.f32 %v1493_v53, %v733_v40  ;;  %v869_v54 = vmul.f32 0.5, %v1558_v24 }
 0x136   : > { %v1232_v41 = vpop.eup %1231  ;;  %v752_v55 = vadd.f32 %v744_v44, %v724_v43  ;;  %v773_v32 = vmul.f32 %v1475_v16, %v677_v59  ;;  %v870_v33 = vmul.f32 0.5, %v1566_v47  ;;  %v905_v26 = vadd.f32 %v897_v9, %v1609_v4 }
 0x137   : > { %v925_v37 = vadd.f32 1.0, %v1232_v41  ;;  %v898_v27 = vmul.f32 %v890_v51, %v1612_v34  ;;  %v753_v0 = vadd.f32 %v745_v49, %v725_v28  ;;  %v801_v53 = vmul.f32 %v1479_v20, %v705_v14 }
 0x138   : > { %v781_v19 = vadd.f32 %v773_v32, %v752_v55  ;;  %v830_v30 = vmul.f32 %v1484_v22, %v818_v50  ;;  %v913_v62 = vmul.f32 0.7978846, %v905_v26  ;;  %v829_v16 = vmul.f32 %v1484_v22, %v733_v40 }
 0x139   : > { %v906_v58 = vadd.f32 %v898_v27, %v1612_v34  ;;  %v933_v60 = vmul.f32 %v925_v37, %v869_v54  ;;  %v782_v38 = vadd.f32 %v774_v61, %v753_v0  ;;  %v871_v12 = vmul.f32 0.5, %v1581_v13 }
 0x13a   : > { %v809_v46 = vadd.f32 %v801_v53, %v781_v19  ;;  %1239 = vtanh.f32 %v913_v62  ;;  %v872_v14 = vmul.f32 0.5, %v1584_v15  ;;  %v873_v44 = vmul.f32 0.5, %v1609_v4  ;;  %v1165_v53 = vld [vmem:[%s1697_s9] ss:$0 sm:$0xff] }
 0x13b   : > { %v1234_v52 = vpop.eup %1233  ;;  %v914_v63 = vmul.f32 0.7978846, %v906_v58  ;;  %v810_v29 = vadd.f32 %v802_v31, %v782_v38  ;;  %v874_v31 = vmul.f32 0.5, %v1612_v34  ;;  %v1164_v58 = vld [vmem:[%s1696_s8] ss:$0 sm:$0xff] }
 0x13c   : > { %v926_v25 = vadd.f32 1.0, %v1234_v52  ;;  %v837_v20 = vadd.f32 %v829_v16, %v809_v46 }
 0x13d   : > { %v1236_v47 = vpop.eup %1235  ;;  %1241 = vtanh.f32 %v914_v63  ;;  %v838_v21 = vadd.f32 %v830_v30, %v810_v29 }
 0x13e   : > { %v934_v24 = vmul.f32 %v926_v25, %v870_v33  ;;  %v1238_v8 = vpop.eup %1237  ;;  %v927_v17 = vadd.f32 1.0, %v1236_v47  ;;  %v852_v48 = vmul.f32 %v1538_v23, %v837_v20 }
 0x13f   : > { %v928_v45 = vadd.f32 1.0, %v1238_v8  ;;  %v853_v35 = vmul.f32 %v1538_v23, %v838_v21 }
 0x140   : > { %v941_v59 = vpack.c.bf16 %v934_v24, %v933_v60  ;;  %v935_v57 = vmul.f32 %v927_v17, %v871_v12  ;;  %v867_v36 = vadd.f32 %v1548_v42, %v852_v48 }
 0x141   : > { %v936_v22 = vmul.f32 %v928_v45, %v872_v14  ;;  %v868_v13 = vadd.f32 %v1548_v42, %v853_v35 }
 0x142   : > { %1195 = vmatprep.mubr.msk.bf16.mxu1 %vm561_vm1, %v941_v59  ;;  %v883_v40 = vmul.f32 0.044715, %v867_v36  ;;  %v875_v32 = vmul.f32 0.5, %v867_v36 }
 0x143   : > { %v942_v39 = vpack.c.bf16 %v936_v22, %v935_v57  ;;  %v884_v41 = vmul.f32 0.044715, %v868_v13  ;;  %v876_v4 = vmul.f32 0.5, %v868_v13 }
 0x144   : > { %v891_v18 = vmul.f32 %v883_v40, %v867_v36  ;;  %v1240_v56 = vpop.eup %1239 }
 0x145   : > { %1196 = vmatmul.mubr.msk.bf16.vlgmr.msra.gmra.mrb[0].mxu1 %vm561_vm1, %v942_v39  ;;  %v892_v15 = vmul.f32 %v884_v41, %v868_v13  ;;  %v929_v51 = vadd.f32 1.0, %v1240_v56 }
 0x146   : > { %v899_v43 = vmul.f32 %v891_v18, %v867_v36 }
 0x147   : > { %v1242_v61 = vpop.eup %1241  ;;  %v900_v37 = vmul.f32 %v892_v15, %v868_v13  ;;  %v937_v28 = vmul.f32 %v929_v51, %v873_v44 }
 0x148   : > { %v930_v23 = vadd.f32 1.0, %v1242_v61  ;;  %v907_v9 = vadd.f32 %v899_v43, %v867_v36 }
 0x149   : > { %v908_v42 = vadd.f32 %v900_v37, %v868_v13 }
 0x14a   : > { %v938_v49 = vmul.f32 %v930_v23, %v874_v31  ;;  %v915_v50 = vmul.f32 0.7978846, %v907_v9 }
 0x14b   : > { %v916_v54 = vmul.f32 0.7978846, %v908_v42 }
 0x14c   : > { %v943_v52 = vpack.c.bf16 %v938_v49, %v937_v28  ;;  %1243 = vtanh.f32 %v915_v50 }
 0x14d   : > { %1245 = vtanh.f32 %v916_v54 }
 0x14e   : > { %1199 = vmatprep.mubr.msk.bf16.mxu1 %vm561_vm1, %v943_v52 }
 0x156   : > { %v1244_v27 = vpop.eup %1243 }
 0x157   : > { %v1246_v55 = vpop.eup %1245  ;;  %v931_v33 = vadd.f32 1.0, %v1244_v27 }
 0x158   : > { %v932_v34 = vadd.f32 1.0, %v1246_v55 }
 0x159   : > { %v939_v25 = vmul.f32 %v931_v33, %v875_v32 }
 0x15a   : > { %v940_v26 = vmul.f32 %v932_v34, %v876_v4 }
 0x15c   : > { %v944_v0 = vpack.c.bf16 %v940_v26, %v939_v25 }
 0x15e   : > { %1200 = vmatmul.mubr.msk.bf16.gmra.mrb[4].mxu1 %vm561_vm1, %v944_v0 }
 0x218   : > { %v1197_v19 = vpop.f32.mrb[0].mxu1 }
 0x219   : > { %v1047_v30 = vmul.f32 %v1197_v19, %v1164_v58  ;;  %v1007_v60 = vpop.f32.mrb[1].mxu1 }
 0x21a   : > { %v1045_v24 = vmul.f32 %v1164_v58, %v1007_v60  ;;  %v1198_v62 = vpop.f32.mrb[2].mxu1 }
 0x21b   : > { %v1062_v38 = vadd.f32 %v1165_v53, %v1047_v30  ;;  %v1048_v63 = vmul.f32 %v1198_v62, %v1164_v58  ;;  %v1010_v46 = vpop.f32.mrb[3].mxu1 }
 0x21c   : > { %v1060_v16 = vadd.f32 %v1165_v53, %v1045_v24  ;;  %v1046_v47 = vmul.f32 %v1164_v58, %v1010_v46 }
 0x21d   : > { %v1070_v59 = vadd.f32 %v1062_v38, %v1334_v3  ;;  %v1063_v29 = vadd.f32 %v1165_v53, %v1048_v63 }
 0x21e   : > { %v1068_v8 = vadd.f32 %v1060_v16, %v1330_v1  ;;  %v1061_v12 = vadd.f32 %v1165_v53, %v1046_v47 }
 0x21f   : > { %1078 = vst.msk [vmem:[%s1659_s26 + $0x10] sm:$0xff] %vm381_vm0, %v1070_v59  ;;  %v1071_v17 = vadd.f32 %v1063_v29, %v1338_v5 }
 0x220   : > { %1076 = vst.msk [vmem:[%s1659_s26] sm:$0xff] %vm381_vm0, %v1068_v8  ;;  %v1069_v20 = vadd.f32 %v1061_v12, %v1332_v2 }
 0x221   : > { %1079 = vst.msk [vmem:[%s1659_s26 + $0x18] sm:$0xff] %vm381_vm0, %v1071_v17 }
 0x222   : > { %1077 = vst.msk [vmem:[%s1659_s26 + $0x8] sm:$0xff] %vm381_vm0, %v1069_v20 }
 0x231   : > { %v1201_v14 = vpop.f32.mrb[4].mxu1 }
 0x232   : > { %v1051_v3 = vmul.f32 %v1201_v14, %v1164_v58  ;;  %v1023_v45 = vpop.f32.mrb[5].mxu1 }
 0x233   : > { %v1049_v1 = vmul.f32 %v1164_v58, %v1023_v45  ;;  %v1202_v21 = vpop.f32.mrb[6].mxu1 }
 0x234   : > { %v1066_v57 = vadd.f32 %v1165_v53, %v1051_v3  ;;  %v1052_v48 = vmul.f32 %v1202_v21, %v1164_v58  ;;  %v1026_v5 = vpop.f32.mrb[7].mxu1 }
 0x235   : > { %v1064_v22 = vadd.f32 %v1165_v53, %v1049_v1  ;;  %v1050_v35 = vmul.f32 %v1164_v58, %v1026_v5 }
 0x236   : > { %v1074_v2 = vadd.f32 %v1066_v57, %v1351_v10  ;;  %v1067_v36 = vadd.f32 %v1165_v53, %v1052_v48 }
 0x237   : > { %v1072_v39 = vadd.f32 %v1064_v22, %v1340_v6  ;;  %v1065_v13 = vadd.f32 %v1165_v53, %v1050_v35 }
 0x238   : > { %1082 = vst.msk [vmem:[%s1659_s26 + $0x30] sm:$0xff] %vm381_vm0, %v1074_v2  ;;  %v1075_v40 = vadd.f32 %v1067_v36, %v1353_v11 }
 0x239   : > { %1080 = vst.msk [vmem:[%s1659_s26 + $0x20] sm:$0xff] %vm381_vm0, %v1072_v39  ;;  %v1073_v41 = vadd.f32 %v1065_v13, %v1342_v7 }
 0x23a   : > { %1083 = vst.msk [vmem:[%s1659_s26 + $0x38] sm:$0xff] %vm381_vm0, %v1075_v40 }
 0x23b   : > { %1081 = vst.msk [vmem:[%s1659_s26 + $0x28] sm:$0xff] %vm381_vm0, %v1073_v41 }
 0x23c PF: > { %s20_s13 = sadd.s32 1, %s1253_s13  }
 0x23d   : > { %p17_p4 = scmp.ge.s32.totalorder %s20_s13, 4  }
 0x23f   :  { %19 = sbr.rel (!%p17_p4) target bundleno = 1 (0x1), region = 92 }

// kernel: convnet_forward.11
= control target key start
LH: loop header
LB: loop body
LE: loop exit
PB: predicated region body
PF: predicated region fallthrough
CT: control target
= control target key end

     0   :  { %s3139_s13 = smov 0   ;;  %s4714_s0 = inlined_call_operand.vmem [shape: f32[2,256,8], index: 0, kind: input, shape index: {}]   ;;  %s4715_s1 = inlined_call_operand.vmem [shape: bf16[8,16], index: 1, kind: input, shape index: {}]   ;;  %s4716_s2 = inlined_call_operand.vmem [shape: f32[1,16], index: 2, kind: input, shape index: {}]   ;;  %s4717_s3 = inlined_call_operand.vmem [shape: f32[1,16], index: 3, kind: input, shape index: {}]   ;;  %s4718_s4 = inlined_call_operand.vmem [shape: f32[9,16], index: 4, kind: input, shape index: {}]   ;;  %s4719_s5 = inlined_call_operand.vmem [shape: f32[1,16], index: 5, kind: input, shape index: {}]   ;;  %s4720_s6 = inlined_call_operand.vmem [shape: f32[1,16], index: 6, kind: input, shape index: {}]   ;;  %s4721_s7 = inlined_call_operand.vmem [shape: bf16[16,8], index: 7, kind: input, shape index: {}]   ;;  %s4722_s8 = inlined_call_operand.vmem [shape: f32[1,8], index: 8, kind: input, shape index: {}]   ;;  %s4723_s9 = inlined_call_operand.vmem [shape: f32[1,8], index: 9, kind: input, shape index: {}]   ;;  %s4724_s10 = inlined_call_operand.vmem [shape: f32[2,256,8], index: 10, kind: output, shape index: {}]  }
   0x1 LB: > { %s2746_s14 = sadd.s32 4294967295, %s3081_s13   ;;  %p2750_p0 = scmp.ge.s32.totalorder %s3081_s13, 1  ;;  %s3081_s13 = sphi %s3139_s13, %s20_s13  }
   0x2   : > { %p312_p1 = scmp.lt.s32.totalorder %s3081_s13, 3 }
   0x4   : > { %p313_p2 = pnand %p2750_p0, %p312_p1 }
   0x5   : > { %v409_v0 = vld [vmem:[%s4715_s1] sm:$0xf] (!%p313_p2)  ;;  %vm459_vm0 = vcmask (!%p313_p2), 1043456   ;;  %p350_p3 = scmp.lt.s32.totalorder (!%p313_p2), %s2746_s14, 1  ;;  %vm410_vm1 = vcmask (!%p313_p2), 64512   ;;  %vm990_vm2 = vcmask (!%p313_p2), 130048   ;;  %v1113_v52 = vlaneseq (!%p313_p2) }
   0x6   : > { %316 = sbr.rel (%p313_p2) target bundleno = 797 (0x31d), region = 60  ;;  %2901 = vmatprep.subr.msk.bf16.mxu0 (!%p313_p2), %vm459_vm0, %v409_v0  ;;  %v461_v1 = vsel (!%p313_p2), %vm459_vm0, %v409_v0, 0  ;;  %v3083_v50 = vmov (!%p313_p2), 0.0   ;;  %vm993_vm3 = vcmask (!%p313_p2), 123904   ;;  %v2911_v51 = vld [vmem:[%s4721_s7] sm:$0xff] (!%p313_p2)  }
   0x7   : > { %2834 = vmatpush3.bf16.msra.mxu0 (!%p313_p2), %v461_v1  ;;  %998 = vst.msk [vmem:[#allocation2 + $0x30] sm:$0xff] (!%p313_p2), %vm990_vm2, %v3083_v50  ;;  %999 = vst.msk [vmem:[#allocation2 + $0x38] sm:$0xff] (!%p313_p2), %vm990_vm2, %v3083_v50  ;;  %2867 = vmatprep.subr.bf16.mxu1 (!%p313_p2), %v2911_v51  ;;  %v1114_v53 = vshrl.u32 (!%p313_p2), %v1113_v52, 7  ;;  %v1079_v56 = vld [vmem:[%s4718_s4] sm:$0xff] (!%p313_p2) }
   0x8   : > { %991 = vst.msk [vmem:[#allocation2] sm:$0xff] (!%p313_p2), %vm990_vm2, %v3083_v50  ;;  %992 = vst.msk [vmem:[#allocation2 + $0x8] sm:$0xff] (!%p313_p2), %vm990_vm2, %v3083_v50  ;;  %2868 = vmatpush3.bf16.msra.mxu1 (!%p313_p2), %v2911_v51 }
   0x9   : > { %995 = vst.msk [vmem:[#allocation2 + $0x18] sm:$0xff] (!%p313_p2), %vm990_vm2, %v3083_v50  ;;  %996 = vst.msk [vmem:[#allocation2 + $0x20] sm:$0xff] (!%p313_p2), %vm990_vm2, %v3083_v50  ;;  %v1115_v54 = vsub.s32 (!%p313_p2), 0, %v1114_v53  ;;  %v1183_v55 = vsub.s32 (!%p313_p2), 1, %v1114_v53  ;;  %v1283_v61 = vsub.s32 (!%p313_p2), 2, %v1114_v53 }
   0xa   : > { %1001 = vst.msk [vmem:[#allocation2 + $0x48] sm:$0xff] (!%p313_p2), %vm990_vm2, %v3083_v50  ;;  %1002 = vst.msk [vmem:[#allocation2 + $0x50] sm:$0xff] (!%p313_p2), %vm990_vm2, %v3083_v50 }
   0xb   : > { %1004 = vst.msk [vmem:[#allocation2 + $0x60] sm:$0xff] (!%p313_p2), %vm990_vm2, %v3083_v50  ;;  %1005 = vst.msk [vmem:[#allocation2 + $0x68] sm:$0xff] (!%p313_p2), %vm990_vm2, %v3083_v50  ;;  %v3268_v57 = vrot.slane (!%p313_p2), %v1079_v56, %v1115_v54  ;;  %v3270_v58 = vrot.slane (!%p313_p2), %v1079_v56, %v1183_v55 }
   0xc   : > { %1007 = vst.msk [vmem:[#allocation2 + $0x78] sm:$0xff] (!%p313_p2), %vm990_vm2, %v3083_v50  ;;  %1008 = vst.msk [vmem:[#allocation2 + $0x80] sm:$0xff] (!%p313_p2), %vm990_vm2, %v3083_v50 }
   0xd   : > { %s4726_s14 = smov (!%p350_p3, %s2746_s14), 1  ;;  %1010 = vst.msk [vmem:[#allocation2 + $0x90] sm:$0xff] %vm990_vm2, %v3083_v50  ;;  %1011 = vst.msk [vmem:[#allocation2 + $0x98] sm:$0xff] %vm990_vm2, %v3083_v50 }
   0xe   : > { %s2797_s17 = sshll.u32 %s4726_s14, 8  ;;  %1013 = vst.msk [vmem:[#allocation2 + $0xa8] sm:$0xff] %vm990_vm2, %v3083_v50  ;;  %1014 = vst.msk [vmem:[#allocation2 + $0xb0] sm:$0xff] %vm990_vm2, %v3083_v50 }
   0xf   : > { %s3158_s20 = scalar_lea.vmem %s4714_s0, %s2797_s17  ;;  %1016 = vst.msk [vmem:[#allocation2 + $0xc0] sm:$0xff] %vm990_vm2, %v3083_v50  ;;  %1017 = vst.msk [vmem:[#allocation2 + $0xc8] sm:$0xff] %vm990_vm2, %v3083_v50  ;;  %v1081_v59 = vld [vmem:[#allocation2] sm:$0xff]  ;;  %v1082_v62 = vld [vmem:[#allocation2 + $0x8] sm:$0xff]  ;;  %s4553_s11 = scalar_lea.vmem %s4724_s10, %s2797_s17 }
  0x10   : > { %v361_v2 = vld [vmem:[%s3158_s20] sm:$0xff]  ;;  %v362_v3 = vld [vmem:[%s3158_s20 + $0x8] sm:$0xff]  ;;  %v363_v4 = vld [vmem:[%s3158_s20 + $0x10] sm:$0xff]  ;;  %1019 = vst.msk [vmem:[#allocation2 + $0xd8] sm:$0xff] %vm990_vm2, %v3083_v50  ;;  %v1117_v0 = vmul.f32 %v3268_v57, %v1081_v59 }
  0x11   : > { %v393_v5 = vpack.c.bf16 %v362_v3, %v361_v2  ;;  %v364_v6 = vld [vmem:[%s3158_s20 + $0x18] sm:$0xff]  ;;  %v365_v7 = vld [vmem:[%s3158_s20 + $0x20] sm:$0xff]  ;;  %v366_v8 = vld [vmem:[%s3158_s20 + $0x28] sm:$0xff]  ;;  %1020 = vst.msk [vmem:[#allocation2 + $0xe0] sm:$0xff] %vm990_vm2, %v3083_v50  ;;  %v1118_v3 = vmul.f32 %v3268_v57, %v1082_v62 }
  0x12   : > { %v394_v9 = vpack.c.bf16 %v364_v6, %v363_v4  ;;  %v395_v10 = vpack.c.bf16 %v366_v8, %v365_v7  ;;  %v367_v11 = vld [vmem:[%s3158_s20 + $0x30] sm:$0xff]  ;;  %v368_v12 = vld [vmem:[%s3158_s20 + $0x38] sm:$0xff]  ;;  %v369_v13 = vld [vmem:[%s3158_s20 + $0x40] sm:$0xff]  ;;  %1022 = vst.msk [vmem:[#allocation2 + $0xf0] sm:$0xff] %vm990_vm2, %v3083_v50 }
  0x13   : > { %2835 = vmatprep.mubr.msk.bf16.mxu0 %vm410_vm1, %v393_v5  ;;  %v370_v14 = vld [vmem:[%s3158_s20 + $0x48] sm:$0xff]  ;;  %v396_v15 = vpack.c.bf16 %v368_v12, %v367_v11  ;;  %v371_v17 = vld [vmem:[%s3158_s20 + $0x50] sm:$0xff]  ;;  %v372_v18 = vld [vmem:[%s3158_s20 + $0x58] sm:$0xff]  ;;  %1023 = vst.msk [vmem:[#allocation2 + $0xf8] sm:$0xff] %vm990_vm2, %v3083_v50  ;;  %v3281_v5 = vrot.slane %v1079_v56, %v1283_v61 }
  0x14   : > { %2836 = vmatmul.mubr.msk.bf16.vlgmr.msra.gmra.mrb[0].mxu0 %vm410_vm1, %v394_v9  ;;  %v397_v16 = vpack.c.bf16 %v370_v14, %v369_v13  ;;  %v373_v19 = vld [vmem:[%s3158_s20 + $0x60] sm:$0xff]  ;;  %v374_v20 = vld [vmem:[%s3158_s20 + $0x68] sm:$0xff]  ;;  %v398_v21 = vpack.c.bf16 %v372_v18, %v371_v17  ;;  %v375_v23 = vld [vmem:[%s3158_s20 + $0x70] sm:$0xff]  ;;  %1025 = vst.msk [vmem:[#allocation2 + $0x108] sm:$0xff] %vm990_vm2, %v3083_v50  ;;  %v1383_v13 = vsub.s32 3, %v1114_v53 }
  0x15   : > { %2839 = vmatprep.mubr.msk.bf16.mxu0 %vm410_vm1, %v395_v10  ;;  %v399_v22 = vpack.c.bf16 %v374_v20, %v373_v19  ;;  %v376_v24 = vld [vmem:[%s3158_s20 + $0x78] sm:$0xff]  ;;  %v377_v25 = vld [vmem:[%s3158_s20 + $0x80] sm:$0xff]  ;;  %v378_v26 = vld [vmem:[%s3158_s20 + $0x88] sm:$0xff]  ;;  %1026 = vst.msk [vmem:[#allocation2 + $0x110] sm:$0xff] %vm990_vm2, %v3083_v50 }
  0x16   : > { %v400_v27 = vpack.c.bf16 %v376_v24, %v375_v23  ;;  %v401_v28 = vpack.c.bf16 %v378_v26, %v377_v25  ;;  %v379_v29 = vld [vmem:[%s3158_s20 + $0x90] sm:$0xff]  ;;  %v380_v30 = vld [vmem:[%s3158_s20 + $0x98] sm:$0xff]  ;;  %v381_v31 = vld [vmem:[%s3158_s20 + $0xa0] sm:$0xff]  ;;  %1028 = vst.msk [vmem:[#allocation2 + $0x120] sm:$0xff] %vm990_vm2, %v3083_v50  ;;  %v1583_v23 = vsub.s32 5, %v1114_v53  ;;  %v1684_v26 = vsub.s32 6, %v1114_v53 }
  0x17   : > { %v382_v32 = vld [vmem:[%s3158_s20 + $0xa8] sm:$0xff]  ;;  %v402_v33 = vpack.c.bf16 %v380_v30, %v379_v29  ;;  %v383_v35 = vld [vmem:[%s3158_s20 + $0xb0] sm:$0xff]  ;;  %v384_v36 = vld [vmem:[%s3158_s20 + $0xb8] sm:$0xff]  ;;  %1029 = vst.msk [vmem:[#allocation2 + $0x128] sm:$0xff] %vm990_vm2, %v3083_v50  ;;  %v3297_v30 = vrot.slane %v1079_v56, %v1383_v13 }
  0x18   : > { %v403_v34 = vpack.c.bf16 %v382_v32, %v381_v31  ;;  %v385_v37 = vld [vmem:[%s3158_s20 + $0xc0] sm:$0xff]  ;;  %v386_v38 = vld [vmem:[%s3158_s20 + $0xc8] sm:$0xff]  ;;  %v404_v39 = vpack.c.bf16 %v384_v36, %v383_v35  ;;  %v387_v41 = vld [vmem:[%s3158_s20 + $0xd0] sm:$0xff]  ;;  %1031 = vst.msk [vmem:[#allocation2 + $0x138] sm:$0xff] %vm990_vm2, %v3083_v50 }
  0x19   : > { %v405_v40 = vpack.c.bf16 %v386_v38, %v385_v37  ;;  %v388_v42 = vld [vmem:[%s3158_s20 + $0xd8] sm:$0xff]  ;;  %v389_v43 = vld [vmem:[%s3158_s20 + $0xe0] sm:$0xff]  ;;  %v390_v44 = vld [vmem:[%s3158_s20 + $0xe8] sm:$0xff]  ;;  %1032 = vst.msk [vmem:[#allocation2 + $0x140] sm:$0xff] %vm990_vm2, %v3083_v50  ;;  %v3306_v38 = vrot.slane %v1079_v56, %v1583_v23 }
  0x1a   : > { %v406_v45 = vpack.c.bf16 %v388_v42, %v387_v41  ;;  %v407_v46 = vpack.c.bf16 %v390_v44, %v389_v43  ;;  %v391_v47 = vld [vmem:[%s3158_s20 + $0xf0] sm:$0xff]  ;;  %v392_v48 = vld [vmem:[%s3158_s20 + $0xf8] sm:$0xff]  ;;  %1034 = vst.msk [vmem:[#allocation2 + $0x150] sm:$0xff] %vm990_vm2, %v3083_v50  ;;  %1035 = vst.msk [vmem:[#allocation2 + $0x158] sm:$0xff] %vm990_vm2, %v3083_v50  ;;  %v3308_v42 = vrot.slane %v1079_v56, %v1684_v26 }
  0x1b   : > { %v408_v49 = vpack.c.bf16 %v392_v48, %v391_v47  ;;  %1037 = vst.msk [vmem:[#allocation2 + $0x168] sm:$0xff] %vm990_vm2, %v3083_v50  ;;  %1038 = vst.msk [vmem:[#allocation2 + $0x170] sm:$0xff] %vm990_vm2, %v3083_v50  ;;  %v1149_v60 = vld [vmem:[#allocation2 + $0x1] sm:$0xff]  ;;  %v3277_v2 = vld [vmem:[%s4716_s2] ss:$0 sm:$0xff] }
  0x1c   : > { %2840 = vmatmul.mubr.msk.bf16.gmra.mrb[4].mxu0 %vm410_vm1, %v396_v15  ;;  %1040 = vst.msk [vmem:[#allocation2 + $0x180] sm:$0xff] %vm990_vm2, %v3083_v50  ;;  %1041 = vst.msk [vmem:[#allocation2 + $0x188] sm:$0xff] %vm990_vm2, %v3083_v50  ;;  %v1185_v1 = vmul.f32 %v3270_v58, %v1149_v60  ;;  %v1249_v6 = vld [vmem:[#allocation2 + $0x2] sm:$0xff]  ;;  %v3286_v9 = vld [vmem:[%s4717_s3] ss:$0 sm:$0xff] }
  0x1d   : > { %2843 = vmatprep.mubr.msk.bf16.mxu0 %vm410_vm1, %v397_v16  ;;  %1043 = vst.msk [vmem:[#allocation2 + $0x198] sm:$0xff] %vm990_vm2, %v3083_v50  ;;  %1044 = vst.msk [vmem:[#allocation2 + $0x1a0] sm:$0xff] %vm990_vm2, %v3083_v50  ;;  %v1285_v17 = vmul.f32 %v3281_v5, %v1249_v6 }
  0x1e   : > { %1000 = vst.msk [vmem:[#allocation2 + $0x40] sm:$0x3] %vm993_vm3, %v3083_v50  ;;  %994 = vst.msk [vmem:[#allocation2 + $0x10] sm:$0x3] %vm993_vm3, %v3083_v50  ;;  %v1217_v12 = vadd.f32 %v1185_v1, %v1117_v0 }
  0x1f   : > { %997 = vst.msk [vmem:[#allocation2 + $0x28] sm:$0x3] %vm993_vm3, %v3083_v50  ;;  %1003 = vst.msk [vmem:[#allocation2 + $0x58] sm:$0x3] %vm993_vm3, %v3083_v50 }
  0x20   : > { %1006 = vst.msk [vmem:[#allocation2 + $0x70] sm:$0x3] %vm993_vm3, %v3083_v50  ;;  %1009 = vst.msk [vmem:[#allocation2 + $0x88] sm:$0x3] %vm993_vm3, %v3083_v50 }
  0x21   : > { %1012 = vst.msk [vmem:[#allocation2 + $0xa0] sm:$0x3] %vm993_vm3, %v3083_v50  ;;  %1015 = vst.msk [vmem:[#allocation2 + $0xb8] sm:$0x3] %vm993_vm3, %v3083_v50 }
  0x22   : > { %1018 = vst.msk [vmem:[#allocation2 + $0xd0] sm:$0x3] %vm993_vm3, %v3083_v50  ;;  %1021 = vst.msk [vmem:[#allocation2 + $0xe8] sm:$0x3] %vm993_vm3, %v3083_v50 }
  0x23   : > { %1024 = vst.msk [vmem:[#allocation2 + $0x100] sm:$0x3] %vm993_vm3, %v3083_v50  ;;  %1027 = vst.msk [vmem:[#allocation2 + $0x118] sm:$0x3] %vm993_vm3, %v3083_v50 }
  0x24   : > { %2844 = vmatmul.mubr.msk.bf16.gmra.mrb[8].mxu0 %vm410_vm1, %v398_v21  ;;  %1030 = vst.msk [vmem:[#allocation2 + $0x130] sm:$0x3] %vm993_vm3, %v3083_v50  ;;  %1033 = vst.msk [vmem:[#allocation2 + $0x148] sm:$0x3] %vm993_vm3, %v3083_v50 }
  0x25   : > { %2847 = vmatprep.mubr.msk.bf16.mxu0 %vm410_vm1, %v399_v22  ;;  %1036 = vst.msk [vmem:[#allocation2 + $0x160] sm:$0x3] %vm993_vm3, %v3083_v50  ;;  %1039 = vst.msk [vmem:[#allocation2 + $0x178] sm:$0x3] %vm993_vm3, %v3083_v50  ;;  %v1150_v63 = vld [vmem:[#allocation2 + $0x9] sm:$0xff]  ;;  %v1483_v22 = vsub.s32 4, %v1114_v53 }
  0x26   : > { %1042 = vst.msk [vmem:[#allocation2 + $0x190] sm:$0x3] %vm993_vm3, %v3083_v50  ;;  %1045 = vst.msk [vmem:[#allocation2 + $0x1a8] sm:$0x3] %vm993_vm3, %v3083_v50  ;;  %v1186_v4 = vmul.f32 %v3270_v58, %v1150_v63  ;;  %v1250_v7 = vld [vmem:[#allocation2 + $0xa] sm:$0xff] }
  0x27   : > { %v1286_v18 = vmul.f32 %v3281_v5, %v1250_v7  ;;  %v3304_v37 = vrot.slane %v1079_v56, %v1483_v22 }
  0x28   : > { %v1218_v16 = vadd.f32 %v1186_v4, %v1118_v3 }
  0x2c   : > { %2848 = vmatmul.mubr.msk.bf16.gmra.mrb[12].mxu0 %vm410_vm1, %v400_v27  ;;  %v1784_v27 = vsub.s32 7, %v1114_v53 }
  0x2d   : > { %2851 = vmatprep.mubr.msk.bf16.mxu0 %vm410_vm1, %v401_v28 }
  0x2e   : > { %v3310_v43 = vrot.slane %v1079_v56, %v1784_v27 }
  0x34   : > { %2852 = vmatmul.mubr.msk.bf16.gmra.mrb[16].mxu0 %vm410_vm1, %v402_v33  ;;  %v3300_v33 = vadd.f32 %v1285_v17, %v1217_v12 }
  0x35   : > { %2855 = vmatprep.mubr.msk.bf16.mxu0 %vm410_vm1, %v403_v34  ;;  %v3302_v34 = vadd.f32 %v1286_v18, %v1218_v16 }
  0x3c   : > { %2856 = vmatmul.mubr.msk.bf16.gmra.mrb[20].mxu0 %vm410_vm1, %v404_v39 }
  0x3d   : > { %2859 = vmatprep.mubr.msk.bf16.mxu0 %vm410_vm1, %v405_v40 }
  0x44   : > { %2860 = vmatmul.mubr.msk.bf16.gmra.mrb[24].mxu0 %vm410_vm1, %v406_v45 }
  0x45   : > { %2863 = vmatprep.mubr.msk.bf16.mxu0 %vm410_vm1, %v407_v46 }
  0x4c   : > { %2864 = vmatmul.mubr.msk.bf16.gmra.mrb[28].mxu0 %vm410_vm1, %v408_v49 }
  0xe7   : > { %v2837_v8 = vpop.f32.mrb[0].mxu0 }
  0xe8   : > { %v633_v10 = vmul.f32 %v2837_v8, %v3277_v2  ;;  %v497_v11 = vpop.f32.mrb[1].mxu0 }
  0xe9   : > { %v631_v14 = vmul.f32 %v3277_v2, %v497_v11  ;;  %v2838_v15 = vpop.f32.mrb[2].mxu0 }
  0xea   : > { %v672_v19 = vadd.f32 %v3286_v9, %v633_v10  ;;  %v634_v20 = vmul.f32 %v2838_v15, %v3277_v2  ;;  %v500_v21 = vpop.f32.mrb[3].mxu0 }
  0xeb   : > { %v670_v24 = vadd.f32 %v3286_v9, %v631_v14  ;;  %v632_v25 = vmul.f32 %v3277_v2, %v500_v21 }
  0xec   : > { %v736_v28 = vmul.f32 0.044715, %v672_v19  ;;  %v673_v29 = vadd.f32 %v3286_v9, %v634_v20  ;;  %v3312_v44 = vmul.f32 0.5, %v672_v19 }
  0xed   : > { %v734_v31 = vmul.f32 0.044715, %v670_v24  ;;  %v671_v32 = vadd.f32 %v3286_v9, %v632_v25  ;;  %v3315_v49 = vmul.f32 0.5, %v670_v24 }
  0xee   : > { %v768_v35 = vmul.f32 %v736_v28, %v672_v19  ;;  %v737_v36 = vmul.f32 0.044715, %v673_v29  ;;  %v3322_v3 = vmul.f32 0.5, %v673_v29 }
  0xef   : > { %v766_v39 = vmul.f32 %v734_v31, %v670_v24  ;;  %v735_v40 = vmul.f32 0.044715, %v671_v32  ;;  %v2841_v41 = vpop.f32.mrb[4].mxu0  ;;  %v3324_v8 = vmul.f32 0.5, %v671_v32 }
  0xf0   : > { %v800_v45 = vmul.f32 %v768_v35, %v672_v19  ;;  %v769_v46 = vmul.f32 %v737_v36, %v673_v29  ;;  %v637_v47 = vmul.f32 %v2841_v41, %v3277_v2  ;;  %v513_v48 = vpop.f32.mrb[5].mxu0 }
  0xf1   : > { %v798_v50 = vmul.f32 %v766_v39, %v670_v24  ;;  %v767_v51 = vmul.f32 %v735_v40, %v671_v32  ;;  %v635_v52 = vmul.f32 %v3277_v2, %v513_v48  ;;  %v2842_v53 = vpop.f32.mrb[6].mxu0 }
  0xf2   : > { %v832_v54 = vadd.f32 %v800_v45, %v672_v19  ;;  %v801_v55 = vmul.f32 %v769_v46, %v673_v29  ;;  %v676_v59 = vadd.f32 %v3286_v9, %v637_v47  ;;  %v638_v56 = vmul.f32 %v2842_v53, %v3277_v2  ;;  %v516_v60 = vpop.f32.mrb[7].mxu0 }
  0xf3   : > { %v830_v61 = vadd.f32 %v798_v50, %v670_v24  ;;  %v799_v62 = vmul.f32 %v767_v51, %v671_v32  ;;  %v674_v63 = vadd.f32 %v3286_v9, %v635_v52  ;;  %v636_v0 = vmul.f32 %v3277_v2, %v516_v60 }
  0xf4   : > { %v864_v1 = vmul.f32 0.7978846, %v832_v54  ;;  %v833_v4 = vadd.f32 %v801_v55, %v673_v29  ;;  %v740_v6 = vmul.f32 0.044715, %v676_v59  ;;  %v677_v14 = vadd.f32 %v3286_v9, %v638_v56 }
  0xf5   : > { %v862_v7 = vmul.f32 0.7978846, %v830_v61  ;;  %v831_v10 = vadd.f32 %v799_v62, %v671_v32  ;;  %v738_v11 = vmul.f32 0.044715, %v674_v63  ;;  %v675_v17 = vadd.f32 %v3286_v9, %v636_v0 }
  0xf6   : > { %2912 = vtanh.f32 %v864_v1  ;;  %v865_v12 = vmul.f32 0.7978846, %v833_v4  ;;  %v772_v13 = vmul.f32 %v740_v6, %v676_v59  ;;  %v3328_v19 = vmul.f32 0.5, %v676_v59 }
  0xf7   : > { %2914 = vtanh.f32 %v862_v7  ;;  %v863_v15 = vmul.f32 0.7978846, %v831_v10  ;;  %v770_v16 = vmul.f32 %v738_v11, %v674_v63  ;;  %v2845_v18 = vpop.f32.mrb[8].mxu0  ;;  %v741_v21 = vmul.f32 0.044715, %v677_v14 }
  0xf8   : > { %2916 = vtanh.f32 %v865_v12  ;;  %v804_v20 = vmul.f32 %v772_v13, %v676_v59  ;;  %v529_v22 = vpop.f32.mrb[9].mxu0  ;;  %v3330_v23 = vmul.f32 0.5, %v674_v63  ;;  %v739_v25 = vmul.f32 0.044715, %v675_v17 }
  0xf9   : > { %2918 = vtanh.f32 %v863_v15  ;;  %v802_v24 = vmul.f32 %v770_v16, %v674_v63  ;;  %v2846_v26 = vpop.f32.mrb[10].mxu0  ;;  %v773_v28 = vmul.f32 %v741_v21, %v677_v14  ;;  %v641_v29 = vmul.f32 %v2845_v18, %v3277_v2 }
  0xfa   : > { %v836_v27 = vadd.f32 %v804_v20, %v676_v59  ;;  %v639_v31 = vmul.f32 %v3277_v2, %v529_v22  ;;  %v532_v32 = vpop.f32.mrb[11].mxu0  ;;  %v771_v36 = vmul.f32 %v739_v25, %v675_v17  ;;  %v642_v39 = vmul.f32 %v2846_v26, %v3277_v2 }
  0xfb   : > { %v834_v35 = vadd.f32 %v802_v24, %v674_v63  ;;  %v640_v40 = vmul.f32 %v3277_v2, %v532_v32  ;;  %v805_v45 = vmul.f32 %v773_v28, %v677_v14  ;;  %v680_v46 = vadd.f32 %v3286_v9, %v641_v29 }
  0xfc   : > { %v868_v41 = vmul.f32 0.7978846, %v836_v27  ;;  %v678_v47 = vadd.f32 %v3286_v9, %v639_v31  ;;  %v3338_v50 = vmul.f32 0.5, %v677_v14  ;;  %v803_v51 = vmul.f32 %v771_v36, %v675_v17 }
  0xfd   : > { %v866_v48 = vmul.f32 0.7978846, %v834_v35  ;;  %v681_v52 = vadd.f32 %v3286_v9, %v642_v39  ;;  %v837_v53 = vadd.f32 %v805_v45, %v677_v14  ;;  %v3341_v54 = vmul.f32 0.5, %v675_v17 }
  0xfe   : > { %2920 = vtanh.f32 %v868_v41  ;;  %v744_v55 = vmul.f32 0.044715, %v680_v46  ;;  %v835_v59 = vadd.f32 %v803_v51, %v675_v17  ;;  %v742_v56 = vmul.f32 0.044715, %v678_v47 }
  0xff   : > { %2922 = vtanh.f32 %v866_v48  ;;  %v3344_v60 = vadd.f32 %v3286_v9, %v640_v40  ;;  %v2849_v61 = vpop.f32.mrb[12].mxu0  ;;  %v869_v63 = vmul.f32 0.7978846, %v837_v53  ;;  %v3346_v0 = vmul.f32 0.5, %v680_v46 }
 0x100   : > { %v2913_v62 = vpop.eup %2912  ;;  %v776_v1 = vmul.f32 %v744_v55, %v680_v46  ;;  %v745_v4 = vmul.f32 0.044715, %v681_v52  ;;  %v545_v6 = vpop.f32.mrb[13].mxu0  ;;  %v867_v11 = vmul.f32 0.7978846, %v835_v59  ;;  %v3348_v12 = vmul.f32 0.5, %v678_v47 }
 0x101   : > { %v2915_v7 = vpop.eup %2914  ;;  %v928_v10 = vadd.f32 1.0, %v2913_v62  ;;  %v774_v13 = vmul.f32 %v742_v56, %v678_v47  ;;  %v2850_v14 = vpop.f32.mrb[14].mxu0  ;;  %2924 = vtanh.f32 %v869_v63  ;;  %v743_v35 = vmul.f32 0.044715, %v3344_v60 }
 0x102   : > { %v2917_v15 = vpop.eup %2916  ;;  %v926_v16 = vadd.f32 1.0, %v2915_v7  ;;  %v808_v17 = vmul.f32 %v776_v1, %v680_v46  ;;  %v777_v18 = vmul.f32 %v745_v4, %v681_v52  ;;  %v548_v20 = vpop.f32.mrb[15].mxu0  ;;  %2926 = vtanh.f32 %v867_v11 }
 0x103   : > { %v2919_v21 = vpop.eup %2918  ;;  %v960_v22 = vmul.f32 %v928_v10, %v3312_v44  ;;  %v929_v24 = vadd.f32 1.0, %v2917_v15  ;;  %v806_v25 = vmul.f32 %v774_v13, %v678_v47  ;;  %v645_v36 = vmul.f32 %v2849_v61, %v3277_v2 }
 0x104   : > { %v958_v26 = vmul.f32 %v926_v16, %v3315_v49  ;;  %v927_v27 = vadd.f32 1.0, %v2919_v21  ;;  %v840_v28 = vadd.f32 %v808_v17, %v680_v46  ;;  %v809_v29 = vmul.f32 %v777_v18, %v681_v52 }
 0x105   : > { %1049 = vst.msk [vmem:[#allocation2 + $0x31] sm:$0xff] %vm990_vm2, %v960_v22  ;;  %v961_v31 = vmul.f32 %v929_v24, %v3322_v3  ;;  %v838_v32 = vadd.f32 %v806_v25, %v678_v47  ;;  %v643_v49 = vmul.f32 %v3277_v2, %v545_v6  ;;  %v775_v45 = vmul.f32 %v743_v35, %v3344_v60 }
 0x106   : > { %1047 = vst.msk [vmem:[#allocation2 + $0x19] sm:$0xff] %vm990_vm2, %v958_v26  ;;  %v959_v44 = vmul.f32 %v927_v27, %v3324_v8  ;;  %v872_v39 = vmul.f32 0.7978846, %v840_v28  ;;  %v841_v40 = vadd.f32 %v809_v29, %v681_v52  ;;  %v684_v3 = vadd.f32 %v3286_v9, %v645_v36 }
 0x107   : > { %1050 = vst.msk [vmem:[#allocation2 + $0x39] sm:$0xff] %vm990_vm2, %v961_v31  ;;  %v870_v41 = vmul.f32 0.7978846, %v838_v32  ;;  %v646_v46 = vmul.f32 %v2850_v14, %v3277_v2  ;;  %v2853_v47 = vpop.f32.mrb[16].mxu0  ;;  %v682_v8 = vadd.f32 %v3286_v9, %v643_v49  ;;  %v644_v53 = vmul.f32 %v3277_v2, %v548_v20 }
 0x108   : > { %v2921_v48 = vpop.eup %2920  ;;  %1048 = vst.msk [vmem:[#allocation2 + $0x21] sm:$0xff] %vm990_vm2, %v959_v44  ;;  %2928 = vtanh.f32 %v872_v39  ;;  %v873_v51 = vmul.f32 0.7978846, %v841_v40  ;;  %v561_v55 = vpop.f32.mrb[17].mxu0  ;;  %v3366_v61 = vmul.f32 0.5, %v681_v52  ;;  %v807_v62 = vmul.f32 %v775_v45, %v3344_v60 }
 0x109   : > { %v2923_v59 = vpop.eup %2922  ;;  %v932_v56 = vadd.f32 1.0, %v2921_v48  ;;  %2930 = vtanh.f32 %v870_v41  ;;  %v2854_v63 = vpop.f32.mrb[18].mxu0  ;;  %v3370_v4 = vmul.f32 0.5, %v3344_v60  ;;  %v748_v6 = vmul.f32 0.044715, %v684_v3 }
 0x10a   : > { %v930_v1 = vadd.f32 1.0, %v2923_v59  ;;  %2932 = vtanh.f32 %v873_v51  ;;  %v3372_v7 = vpop.f32.mrb[19].mxu0  ;;  %v839_v11 = vadd.f32 %v807_v62, %v3344_v60  ;;  %v746_v13 = vmul.f32 0.044715, %v682_v8 }
 0x10b   : > { %v964_v10 = vmul.f32 %v932_v56, %v3328_v19  ;;  %v685_v14 = vadd.f32 %v3286_v9, %v646_v46  ;;  %v2925_v52 = vpop.eup %2924  ;;  %v780_v16 = vmul.f32 %v748_v6, %v684_v3  ;;  %v683_v17 = vadd.f32 %v3286_v9, %v644_v53 }
 0x10c   : > { %v962_v15 = vmul.f32 %v930_v1, %v3330_v23  ;;  %v649_v18 = vmul.f32 %v2853_v47, %v3277_v2  ;;  %v2927_v20 = vpop.eup %2926  ;;  %v933_v21 = vadd.f32 1.0, %v2925_v52  ;;  %v871_v22 = vmul.f32 0.7978846, %v839_v11 }
 0x10d   : > { %1053 = vst.msk [vmem:[#allocation2 + $0x61] sm:$0xff] %vm990_vm2, %v964_v10  ;;  %v3381_v24 = vmul.f32 0.5, %v684_v3  ;;  %v778_v19 = vmul.f32 %v746_v13, %v682_v8  ;;  %v931_v60 = vadd.f32 1.0, %v2927_v20  ;;  %v812_v25 = vmul.f32 %v780_v16, %v684_v3 }
 0x10e   : > { %1051 = vst.msk [vmem:[#allocation2 + $0x49] sm:$0xff] %vm990_vm2, %v962_v15  ;;  %v3384_v26 = vmul.f32 0.5, %v682_v8  ;;  %v749_v23 = vmul.f32 0.044715, %v685_v14  ;;  %v965_v27 = vmul.f32 %v933_v21, %v3338_v50  ;;  %2934 = vtanh.f32 %v871_v22 }
 0x10f   : > { %v810_v28 = vmul.f32 %v778_v19, %v682_v8  ;;  %v747_v29 = vmul.f32 0.044715, %v683_v17  ;;  %v2857_v31 = vpop.f32.mrb[20].mxu0  ;;  %v963_v32 = vmul.f32 %v931_v60, %v3341_v54  ;;  %v844_v35 = vadd.f32 %v812_v25, %v684_v3 }
 0x110   : > { %v781_v36 = vmul.f32 %v749_v23, %v685_v14  ;;  %v688_v44 = vadd.f32 %v3286_v9, %v649_v18  ;;  %v577_v39 = vpop.f32.mrb[21].mxu0  ;;  %1054 = vst.msk [vmem:[#allocation2 + $0x69] sm:$0xff] %vm990_vm2, %v965_v27  ;;  %v3390_v49 = vmul.f32 0.5, %v685_v14  ;;  %v647_v45 = vmul.f32 %v3277_v2, %v561_v55 }
 0x111   : > { %v842_v40 = vadd.f32 %v810_v28, %v682_v8  ;;  %v779_v41 = vmul.f32 %v747_v29, %v683_v17  ;;  %v2858_v50 = vpop.f32.mrb[22].mxu0  ;;  %1052 = vst.msk [vmem:[#allocation2 + $0x51] sm:$0xff] %vm990_vm2, %v963_v32  ;;  %v876_v47 = vmul.f32 0.7978846, %v844_v35  ;;  %v650_v3 = vmul.f32 %v2854_v63, %v3277_v2 }
 0x112   : > { %v2929_v46 = vpop.eup %2928  ;;  %v813_v48 = vmul.f32 %v781_v36, %v685_v14  ;;  %v752_v54 = vmul.f32 0.044715, %v688_v44  ;;  %v3395_v51 = vpop.f32.mrb[23].mxu0  ;;  %v686_v62 = vadd.f32 %v3286_v9, %v647_v45  ;;  %v3400_v16 = vmul.f32 0.5, %v683_v17 }
 0x113   : > { %v2931_v53 = vpop.eup %2930  ;;  %v936_v59 = vadd.f32 1.0, %v2929_v46  ;;  %v874_v56 = vmul.f32 0.7978846, %v842_v40  ;;  %v811_v8 = vmul.f32 %v779_v41, %v683_v17  ;;  %2936 = vtanh.f32 %v876_v47 }
 0x114   : > { %v2933_v1 = vpop.eup %2932  ;;  %v934_v6 = vadd.f32 1.0, %v2931_v53  ;;  %v845_v55 = vadd.f32 %v813_v48, %v685_v14  ;;  %v784_v10 = vmul.f32 %v752_v54, %v688_v44  ;;  %v750_v22 = vmul.f32 0.044715, %v686_v62 }
 0x115   : > { %v968_v11 = vmul.f32 %v936_v59, %v3346_v0  ;;  %v937_v13 = vadd.f32 1.0, %v2933_v1  ;;  %2938 = vtanh.f32 %v874_v56  ;;  %v843_v52 = vadd.f32 %v811_v8, %v683_v17 }
 0x116   : > { %v966_v63 = vmul.f32 %v934_v6, %v3348_v12  ;;  %v877_v15 = vmul.f32 0.7978846, %v845_v55  ;;  %v816_v18 = vmul.f32 %v784_v10, %v688_v44  ;;  %v689_v14 = vadd.f32 %v3286_v9, %v650_v3 }
 0x117   : > { %1057 = vst.msk [vmem:[#allocation2 + $0x91] sm:$0xff] %vm990_vm2, %v968_v11  ;;  %v969_v20 = vmul.f32 %v937_v13, %v3366_v61  ;;  %v875_v21 = vmul.f32 0.7978846, %v843_v52  ;;  %v3405_v19 = vpop.f32.mrb[24].mxu0  ;;  %v648_v12 = vmul.f32 %v3277_v2, %v3372_v7  ;;  %v653_v17 = vmul.f32 %v2857_v31, %v3277_v2 }
 0x118   : > { %1055 = vst.msk [vmem:[#allocation2 + $0x79] sm:$0xff] %vm990_vm2, %v966_v63  ;;  %2940 = vtanh.f32 %v877_v15  ;;  %v848_v0 = vadd.f32 %v816_v18, %v688_v44  ;;  %v3411_v60 = vpop.f32.mrb[25].mxu0  ;;  %v2935_v25 = vpop.eup %2934  ;;  %v3414_v61 = vmul.f32 0.5, %v688_v44  ;;  %v782_v23 = vmul.f32 %v750_v22, %v686_v62 }
 0x119   : > { %1058 = vst.msk [vmem:[#allocation2 + $0x99] sm:$0xff] %vm990_vm2, %v969_v20  ;;  %2942 = vtanh.f32 %v875_v21  ;;  %v753_v27 = vmul.f32 0.044715, %v689_v14  ;;  %v3416_v28 = vpop.f32.mrb[26].mxu0  ;;  %v935_v29 = vadd.f32 1.0, %v2935_v25  ;;  %v687_v35 = vadd.f32 %v3286_v9, %v648_v12 }
 0x11a   : > { %v880_v32 = vmul.f32 0.7978846, %v848_v0  ;;  %v692_v7 = vadd.f32 %v3286_v9, %v653_v17  ;;  %v3420_v36 = vpop.f32.mrb[27].mxu0  ;;  %v814_v31 = vmul.f32 %v782_v23, %v686_v62  ;;  %v651_v41 = vmul.f32 %v3277_v2, %v577_v39 }
 0x11b   : > { %v785_v40 = vmul.f32 %v753_v27, %v689_v14  ;;  %v654_v45 = vmul.f32 %v2858_v50, %v3277_v2  ;;  %v967_v44 = vmul.f32 %v935_v29, %v3370_v4  ;;  %v3425_v46 = vmul.f32 0.5, %v686_v62 }
 0x11c   : > { %2944 = vtanh.f32 %v880_v32  ;;  %v751_v47 = vmul.f32 0.044715, %v687_v35  ;;  %v846_v48 = vadd.f32 %v814_v31, %v686_v62  ;;  %v3427_v54 = vmul.f32 0.5, %v689_v14 }
 0x11d   : > { %v817_v3 = vmul.f32 %v785_v40, %v689_v14  ;;  %v756_v53 = vmul.f32 0.044715, %v692_v7  ;;  %v2937_v59 = vpop.eup %2936  ;;  %1056 = vst.msk [vmem:[#allocation2 + $0x81] sm:$0xff] %vm990_vm2, %v967_v44  ;;  %v3430_v56 = vmul.f32 0.5, %v687_v35  ;;  %v690_v39 = vadd.f32 %v3286_v9, %v651_v41 }
 0x11e   : > { %v783_v8 = vmul.f32 %v751_v47, %v687_v35  ;;  %v693_v50 = vadd.f32 %v3286_v9, %v654_v45  ;;  %v940_v1 = vadd.f32 1.0, %v2937_v59  ;;  %v878_v6 = vmul.f32 0.7978846, %v846_v48 }
 0x11f   : > { %v2939_v4 = vpop.eup %2938  ;;  %v849_v55 = vadd.f32 %v817_v3, %v689_v14  ;;  %v788_v10 = vmul.f32 %v756_v53, %v692_v7  ;;  %v3434_v62 = vpop.f32.mrb[28].mxu0  ;;  %v754_v52 = vmul.f32 0.044715, %v690_v39  ;;  %v652_v63 = vmul.f32 %v3277_v2, %v3395_v51 }
 0x120   : > { %v938_v11 = vadd.f32 1.0, %v2939_v4  ;;  %v815_v13 = vmul.f32 %v783_v8, %v687_v35  ;;  %v3438_v15 = vpop.f32.mrb[29].mxu0  ;;  %v972_v18 = vmul.f32 %v940_v1, %v3381_v24  ;;  %2946 = vtanh.f32 %v878_v6 }
 0x121   : > { %v881_v20 = vmul.f32 0.7978846, %v849_v55  ;;  %v820_v21 = vmul.f32 %v788_v10, %v692_v7  ;;  %v3441_v22 = vpop.f32.mrb[30].mxu0  ;;  %v3444_v17 = vmul.f32 0.5, %v692_v7  ;;  %v786_v25 = vmul.f32 %v754_v52, %v690_v39 }
 0x122   : > { %v2941_v0 = vpop.eup %2940  ;;  %v970_v14 = vmul.f32 %v938_v11, %v3384_v26  ;;  %v847_v12 = vadd.f32 %v815_v13, %v687_v35  ;;  %v3446_v23 = vpop.f32.mrb[31].mxu0  ;;  %1061 = vst.msk [vmem:[#allocation2 + $0xc1] sm:$0xff] %vm990_vm2, %v972_v18  ;;  %v757_v29 = vmul.f32 0.044715, %v693_v50  ;;  %v691_v26 = vadd.f32 %v3286_v9, %v652_v63 }
 0x123   : > { %v2943_v27 = vpop.eup %2942  ;;  %v941_v51 = vadd.f32 1.0, %v2941_v0  ;;  %2948 = vtanh.f32 %v881_v20  ;;  %v852_v24 = vadd.f32 %v820_v21, %v692_v7  ;;  %v818_v40 = vmul.f32 %v786_v25, %v690_v39 }
 0x124   : > { %1059 = vst.msk [vmem:[#allocation2 + $0xa9] sm:$0xff] %vm990_vm2, %v970_v14  ;;  %v939_v32 = vadd.f32 1.0, %v2943_v27  ;;  %v879_v31 = vmul.f32 0.7978846, %v847_v12  ;;  %v789_v45 = vmul.f32 %v757_v29, %v693_v50  ;;  %v657_v44 = vmul.f32 %v3405_v19, %v3277_v2 }
 0x125   : > { %v973_v35 = vmul.f32 %v941_v51, %v3390_v49  ;;  %v884_v41 = vmul.f32 0.7978846, %v852_v24  ;;  %v3455_v7 = vmul.f32 0.5, %v690_v39  ;;  %v850_v3 = vadd.f32 %v818_v40, %v690_v39 }
 0x126   : > { %v2945_v47 = vpop.eup %2944  ;;  %v971_v48 = vmul.f32 %v939_v32, %v3400_v16  ;;  %2950 = vtanh.f32 %v879_v31  ;;  %v821_v59 = vmul.f32 %v789_v45, %v693_v50  ;;  %v755_v8 = vmul.f32 0.044715, %v691_v26 }
 0x127   : > { %1062 = vst.msk [vmem:[#allocation2 + $0xc9] sm:$0xff] %vm990_vm2, %v973_v35  ;;  %v944_v53 = vadd.f32 1.0, %v2945_v47  ;;  %2952 = vtanh.f32 %v884_v41  ;;  %v882_v49 = vmul.f32 0.7978846, %v850_v3  ;;  %v696_v4 = vadd.f32 %v3286_v9, %v657_v44 }
 0x128   : > { %1060 = vst.msk [vmem:[#allocation2 + $0xb1] sm:$0xff] %vm990_vm2, %v971_v48  ;;  %v655_v19 = vmul.f32 %v3277_v2, %v3411_v60  ;;  %v658_v16 = vmul.f32 %v3416_v28, %v3277_v2  ;;  %v853_v39 = vadd.f32 %v821_v59, %v693_v50  ;;  %v787_v6 = vmul.f32 %v755_v8, %v691_v26 }
 0x129   : > { %v976_v1 = vmul.f32 %v944_v53, %v3414_v61  ;;  %v656_v55 = vmul.f32 %v3277_v2, %v3420_v36  ;;  %2954 = vtanh.f32 %v882_v49  ;;  %v3467_v10 = vmul.f32 0.5, %v693_v50 }
 0x12a   : > { %v760_v11 = vmul.f32 0.044715, %v696_v4  ;;  %v694_v13 = vadd.f32 %v3286_v9, %v655_v19  ;;  %v2947_v52 = vpop.eup %2946  ;;  %v885_v60 = vmul.f32 0.7978846, %v853_v39  ;;  %v819_v63 = vmul.f32 %v787_v6, %v691_v26 }
 0x12b   : > { %1065 = vst.msk [vmem:[#allocation2 + $0xf1] sm:$0xff] %vm990_vm2, %v976_v1  ;;  %v697_v28 = vadd.f32 %v3286_v9, %v658_v16  ;;  %v695_v61 = vadd.f32 %v3286_v9, %v656_v55  ;;  %v942_v18 = vadd.f32 1.0, %v2947_v52  ;;  %v3473_v20 = vmul.f32 0.5, %v691_v26 }
 0x12c   : > { %v792_v21 = vmul.f32 %v760_v11, %v696_v4  ;;  %v758_v36 = vmul.f32 0.044715, %v694_v13  ;;  %2956 = vtanh.f32 %v885_v60  ;;  %v851_v50 = vadd.f32 %v819_v63, %v691_v26  ;;  %v3499_v60 = vld [vmem:[#allocation2 + $0x18] sm:$0xff] }
 0x12d   : > { %v2949_v0 = vpop.eup %2948  ;;  %v3475_v14 = vmul.f32 0.5, %v696_v4  ;;  %v761_v12 = vmul.f32 0.044715, %v697_v28  ;;  %v974_v25 = vmul.f32 %v942_v18, %v3425_v46  ;;  %v3478_v32 = vmul.f32 0.5, %v694_v13 }
 0x12e   : > { %v945_v27 = vadd.f32 1.0, %v2949_v0  ;;  %v824_v51 = vmul.f32 %v792_v21, %v696_v4  ;;  %v790_v24 = vmul.f32 %v758_v36, %v694_v13  ;;  %v883_v29 = vmul.f32 0.7978846, %v851_v50 }
 0x12f   : > { %v793_v31 = vmul.f32 %v761_v12, %v697_v28  ;;  %v759_v40 = vmul.f32 0.044715, %v695_v61  ;;  %1063 = vst.msk [vmem:[#allocation2 + $0xd9] sm:$0xff] %vm990_vm2, %v974_v25  ;;  %v661_v44 = vmul.f32 %v3434_v62, %v3277_v2  ;;  %v659_v16 = vmul.f32 %v3277_v2, %v3438_v15  ;;  %v3507_v25 = vld [vmem:[#allocation2 + $0x20] sm:$0xff] }
 0x130   : > { %v2951_v35 = vpop.eup %2950  ;;  %v977_v41 = vmul.f32 %v945_v27, %v3427_v54  ;;  %v856_v45 = vadd.f32 %v824_v51, %v696_v4  ;;  %v822_v26 = vmul.f32 %v790_v24, %v694_v13  ;;  %2958 = vtanh.f32 %v883_v29  ;;  %v3519_v24 = vld [vmem:[#allocation2 + $0x19] sm:$0xff] }
 0x131   : > { %v2953_v47 = vpop.eup %2952  ;;  %v943_v46 = vadd.f32 1.0, %v2951_v35  ;;  %v825_v48 = vmul.f32 %v793_v31, %v697_v28  ;;  %v791_v3 = vmul.f32 %v759_v40, %v695_v61  ;;  %v700_v49 = vadd.f32 %v3286_v9, %v661_v44 }
 0x132   : > { %1066 = vst.msk [vmem:[#allocation2 + $0xf9] sm:$0xff] %vm990_vm2, %v977_v41  ;;  %v948_v53 = vadd.f32 1.0, %v2953_v47  ;;  %v888_v59 = vmul.f32 0.7978846, %v856_v45  ;;  %v854_v8 = vadd.f32 %v822_v26, %v694_v13  ;;  %v3490_v6 = vmul.f32 0.5, %v697_v28  ;;  %v3526_v41 = vld [vmem:[#allocation2 + $0x21] sm:$0xff] }
 0x133   : > { %v975_v19 = vmul.f32 %v943_v46, %v3430_v56  ;;  %v857_v54 = vadd.f32 %v825_v48, %v697_v28  ;;  %v823_v4 = vmul.f32 %v791_v3, %v695_v61  ;;  %v2955_v62 = vpop.eup %2954  ;;  %v764_v52 = vmul.f32 0.044715, %v700_v49 }
 0x134   : > { %v980_v1 = vmul.f32 %v948_v53, %v3444_v17  ;;  %2960 = vtanh.f32 %v888_v59  ;;  %v886_v39 = vmul.f32 0.7978846, %v854_v8  ;;  %v946_v55 = vadd.f32 1.0, %v2955_v62  ;;  %v1549_v53 = vld [vmem:[#allocation2 + $0x1a] sm:$0xff] }
 0x135   : > { %1064 = vst.msk [vmem:[#allocation2 + $0xe1] sm:$0xff] %vm990_vm2, %v975_v19  ;;  %v889_v11 = vmul.f32 0.7978846, %v857_v54  ;;  %v855_v13 = vadd.f32 %v823_v4, %v695_v61  ;;  %v698_v56 = vadd.f32 %v3286_v9, %v659_v16  ;;  %v662_v15 = vmul.f32 %v3441_v22, %v3277_v2  ;;  %v1550_v4 = vld [vmem:[#allocation2 + $0x22] sm:$0xff] }
 0x136   : > { %1069 = vst.msk [vmem:[#allocation2 + $0x121] sm:$0xff] %vm990_vm2, %v980_v1  ;;  %2962 = vtanh.f32 %v886_v39  ;;  %v660_v17 = vmul.f32 %v3277_v2, %v3446_v23  ;;  %v2957_v63 = vpop.eup %2956  ;;  %v978_v28 = vmul.f32 %v946_v55, %v3455_v7  ;;  %v796_v21 = vmul.f32 %v764_v52, %v700_v49 }
 0x137   : > { %2964 = vtanh.f32 %v889_v11  ;;  %v887_v18 = vmul.f32 0.7978846, %v855_v13  ;;  %v949_v36 = vadd.f32 1.0, %v2957_v63  ;;  %v3502_v0 = vmul.f32 0.5, %v695_v61  ;;  %v3543_v11 = vld [vmem:[#allocation2 + $0x30] sm:$0xff]  ;;  %v3548_v63 = vld [vmem:[#allocation2 + $0x38] sm:$0xff] }
 0x138   : > { %v762_v50 = vmul.f32 0.044715, %v698_v56  ;;  %v3505_v12 = vadd.f32 %v3286_v9, %v662_v15  ;;  %1067 = vst.msk [vmem:[#allocation2 + $0x109] sm:$0xff] %vm990_vm2, %v978_v28  ;;  %v828_v2 = vmul.f32 %v796_v21, %v700_v49  ;;  %v3511_v22 = vadd.f32 %v3286_v9, %v660_v17 }
 0x139   : > { %2966 = vtanh.f32 %v887_v18  ;;  %v1385_v23 = vmul.f32 %v3297_v30, %v3499_v60  ;;  %v981_v7 = vmul.f32 %v949_v36, %v3467_v10  ;;  %v3516_v61 = vmul.f32 0.5, %v700_v49  ;;  %v3550_v36 = vld [vmem:[#allocation2 + $0x31] sm:$0xff] }
 0x13a   : > { %v794_v27 = vmul.f32 %v762_v50, %v698_v56  ;;  %v765_v51 = vmul.f32 0.044715, %v3505_v12  ;;  %v2959_v29 = vpop.eup %2958  ;;  %v860_v31 = vadd.f32 %v828_v2, %v700_v49  ;;  %v3521_v40 = vmul.f32 0.5, %v698_v56 }
 0x13b   : > { %v763_v35 = vmul.f32 0.044715, %v3511_v22  ;;  %v1386_v9 = vmul.f32 %v3297_v30, %v3507_v25  ;;  %1070 = vst.msk [vmem:[#allocation2 + $0x129] sm:$0xff] %vm990_vm2, %v981_v7  ;;  %v947_v10 = vadd.f32 1.0, %v2959_v29  ;;  %v1417_v44 = vadd.f32 %v1385_v23, %v3300_v33  ;;  %v3563_v29 = vld [vmem:[#allocation2 + $0x32] sm:$0xff] }
 0x13c   : > { %v826_v45 = vmul.f32 %v794_v27, %v698_v56  ;;  %v797_v26 = vmul.f32 %v765_v51, %v3505_v12  ;;  %v892_v47 = vmul.f32 0.7978846, %v860_v31  ;;  %v1485_v3 = vmul.f32 %v3304_v37, %v3519_v24  ;;  %v3561_v51 = vld [vmem:[#allocation2 + $0x39] sm:$0xff] }
 0x13d   : > { %v795_v46 = vmul.f32 %v763_v35, %v3511_v22  ;;  %v1418_v48 = vadd.f32 %v1386_v9, %v3302_v34  ;;  %v979_v8 = vmul.f32 %v947_v10, %v3473_v20  ;;  %v1486_v54 = vmul.f32 %v3304_v37, %v3526_v41 }
 0x13e   : > { %v2961_v59 = vpop.eup %2960  ;;  %v858_v49 = vadd.f32 %v826_v45, %v698_v56  ;;  %v829_v19 = vmul.f32 %v797_v26, %v3505_v12  ;;  %2968 = vtanh.f32 %v892_v47  ;;  %v1517_v62 = vadd.f32 %v1485_v3, %v1417_v44  ;;  %v3574_v26 = vld [vmem:[#allocation2 + $0x3a] sm:$0xff] }
 0x13f   : > { %v952_v33 = vadd.f32 1.0, %v2961_v59  ;;  %v827_v16 = vmul.f32 %v795_v46, %v3511_v22  ;;  %1068 = vst.msk [vmem:[#allocation2 + $0x111] sm:$0xff] %vm990_vm2, %v979_v8  ;;  %v1518_v55 = vadd.f32 %v1486_v54, %v1418_v48  ;;  %v1585_v20 = vmul.f32 %v3306_v38, %v1549_v53 }
 0x140   : > { %v2963_v34 = vpop.eup %2962  ;;  %v890_v1 = vmul.f32 0.7978846, %v858_v49  ;;  %v861_v39 = vadd.f32 %v829_v19, %v3505_v12  ;;  %v1586_v17 = vmul.f32 %v3306_v38, %v1550_v4  ;;  %v1686_v27 = vmul.f32 %v3308_v42, %v3543_v11  ;;  %v3594_v49 = vld [vmem:[%s4719_s5] ss:$0 sm:$0xff] }
 0x141   : > { %v2965_v13 = vpop.eup %2964  ;;  %v984_v52 = vmul.f32 %v952_v33, %v3475_v14  ;;  %v950_v56 = vadd.f32 1.0, %v2963_v34  ;;  %v859_v15 = vadd.f32 %v827_v16, %v3511_v22  ;;  %v1617_v21 = vadd.f32 %v1585_v20, %v1517_v62  ;;  %v3557_v14 = vld [vmem:[%s4718_s4 + $0x8] ss:$0 sm:$0xff] }
 0x142   : > { %v953_v28 = vadd.f32 1.0, %v2965_v13  ;;  %2970 = vtanh.f32 %v890_v1  ;;  %v893_v18 = vmul.f32 0.7978846, %v861_v39  ;;  %v1618_v7 = vadd.f32 %v1586_v17, %v1518_v55  ;;  %v3604_v1 = vld [vmem:[%s4720_s6] ss:$0 sm:$0xff]  ;;  %v3613_v20 = vld [vmem:[#allocation2 + $0x48] sm:$0xff] }
 0x143   : > { %v2967_v50 = vpop.eup %2966  ;;  %1073 = vst.msk [vmem:[#allocation2 + $0x151] sm:$0xff] %vm990_vm2, %v984_v52  ;;  %v982_v2 = vmul.f32 %v950_v56, %v3478_v32  ;;  %v891_v23 = vmul.f32 0.7978846, %v859_v15  ;;  %v1687_v32 = vmul.f32 %v3308_v42, %v3548_v63  ;;  %v3570_v9 = vmul.f32 0.5, %v3505_v12 }
 0x144   : > { %v985_v31 = vmul.f32 %v953_v28, %v3490_v6  ;;  %v951_v35 = vadd.f32 1.0, %v2967_v50  ;;  %2972 = vtanh.f32 %v893_v18  ;;  %v1718_v10 = vadd.f32 %v1686_v27, %v1617_v21  ;;  %v3619_v28 = vld [vmem:[#allocation2 + $0x50] sm:$0xff] }
 0x145   : > { %1071 = vst.msk [vmem:[#allocation2 + $0x139] sm:$0xff] %vm990_vm2, %v982_v2  ;;  %2974 = vtanh.f32 %v891_v23  ;;  %v1786_v45 = vmul.f32 %v3310_v43, %v3550_v36  ;;  %v1719_v44 = vadd.f32 %v1687_v32, %v1618_v7  ;;  %v1787_v47 = vmul.f32 %v3310_v43, %v3561_v51  ;;  %v3624_v23 = vld [vmem:[#allocation2 + $0x49] sm:$0xff]  ;;  %v3632_v32 = vld [vmem:[#allocation2 + $0x51] sm:$0xff] }
 0x146   : > { %1074 = vst.msk [vmem:[#allocation2 + $0x159] sm:$0xff] %vm990_vm2, %v985_v31  ;;  %v983_v6 = vmul.f32 %v951_v35, %v3502_v0  ;;  %v1886_v46 = vmul.f32 %v3557_v14, %v3563_v29  ;;  %v1119_v48 = vmul.f32 %v3499_v60, %v3268_v57  ;;  %v1120_v3 = vmul.f32 %v3507_v25, %v3268_v57 }
 0x147   : > { %v1818_v12 = vadd.f32 %v1786_v45, %v1718_v10  ;;  %v1187_v59 = vmul.f32 %v3519_v24, %v3270_v58  ;;  %v1819_v0 = vadd.f32 %v1787_v47, %v1719_v44  ;;  %v1887_v8 = vmul.f32 %v3557_v14, %v3574_v26 }
 0x148   : > { %1072 = vst.msk [vmem:[#allocation2 + $0x141] sm:$0xff] %vm990_vm2, %v983_v6  ;;  %v1188_v60 = vmul.f32 %v3526_v41, %v3270_v58  ;;  %v1287_v19 = vmul.f32 %v1549_v53, %v3281_v5  ;;  %v2969_v25 = vpop.eup %2968  ;;  %v731_v54 = vmul.f32 0.5, %v3511_v22  ;;  %v1288_v16 = vmul.f32 %v1550_v4, %v3281_v5 }
 0x149   : > { %v1918_v24 = vadd.f32 %v1886_v46, %v1818_v12  ;;  %v1219_v33 = vadd.f32 %v1187_v59, %v1119_v48  ;;  %v956_v62 = vadd.f32 1.0, %v2969_v25  ;;  %v1919_v34 = vadd.f32 %v1887_v8, %v1819_v0  ;;  %v3637_v46 = vld [vmem:[#allocation2 + $0x4a] sm:$0xff]  ;;  %v3641_v0 = vld [vmem:[#allocation2 + $0x52] sm:$0xff] }
 0x14a   : > { %v1220_v39 = vadd.f32 %v1188_v60, %v1120_v3  ;;  %v1387_v41 = vmul.f32 %v3543_v11, %v3297_v30  ;;  %v1388_v22 = vmul.f32 %v3548_v63, %v3297_v30  ;;  %v1487_v4 = vmul.f32 %v3550_v36, %v3304_v37 }
 0x14b   : > { %v1957_v53 = vmul.f32 %v3594_v49, %v1918_v24  ;;  %v1319_v55 = vadd.f32 %v1287_v19, %v1219_v33  ;;  %v988_v52 = vmul.f32 %v956_v62, %v3516_v61  ;;  %v1958_v56 = vmul.f32 %v3594_v49, %v1919_v34 }
 0x14c   : > { %v2971_v13 = vpop.eup %2970  ;;  %v1320_v15 = vadd.f32 %v1288_v16, %v1220_v39  ;;  %v1488_v17 = vmul.f32 %v3561_v51, %v3304_v37  ;;  %v1587_v2 = vmul.f32 %v3563_v29, %v3306_v38  ;;  %v1588_v31 = vmul.f32 %v3574_v26, %v3306_v38 }
 0x14d   : > { %v954_v18 = vadd.f32 1.0, %v2971_v13  ;;  %v1996_v21 = vadd.f32 %v3604_v1, %v1957_v53  ;;  %v1419_v50 = vadd.f32 %v1387_v41, %v1319_v55  ;;  %1077 = vst.msk [vmem:[#allocation2 + $0x181] sm:$0xff] %vm990_vm2, %v988_v52  ;;  %v1997_v61 = vadd.f32 %v3604_v1, %v1958_v56 }
 0x14e   : > { %v2973_v7 = vpop.eup %2972  ;;  %v1420_v27 = vadd.f32 %v1388_v22, %v1320_v15  ;;  %v1688_v35 = vmul.f32 %v3308_v42, %v3613_v20  ;;  %v1689_v47 = vmul.f32 %v3308_v42, %v3619_v28  ;;  %v1788_v59 = vmul.f32 %v3310_v43, %v3624_v23 }
 0x14f   : > { %v2975_v10 = vpop.eup %2974  ;;  %v986_v45 = vmul.f32 %v954_v18, %v3521_v40  ;;  %v957_v6 = vadd.f32 1.0, %v2973_v7  ;;  %v2060_v44 = vmul.f32 0.044715, %v1996_v21  ;;  %v2061_v48 = vmul.f32 0.044715, %v1997_v61 }
 0x150   : > { %v955_v12 = vadd.f32 1.0, %v2975_v10  ;;  %v1519_v3 = vadd.f32 %v1487_v4, %v1419_v50  ;;  %v1520_v60 = vadd.f32 %v1488_v17, %v1420_v27  ;;  %v1789_v19 = vmul.f32 %v3310_v43, %v3632_v32 }
 0x151   : > { %1075 = vst.msk [vmem:[#allocation2 + $0x169] sm:$0xff] %vm990_vm2, %v986_v45  ;;  %v989_v8 = vmul.f32 %v957_v6, %v3570_v9  ;;  %v2092_v40 = vmul.f32 %v2060_v44, %v1996_v21  ;;  %v2093_v24 = vmul.f32 %v2061_v48, %v1997_v61  ;;  %v1888_v16 = vmul.f32 %v3557_v14, %v3637_v46  ;;  %v3672_v6 = vld [vmem:[#allocation2 + $0x60] sm:$0xff]  ;;  %v3674_v44 = vld [vmem:[#allocation2 + $0x68] sm:$0xff] }
 0x152   : > { %v987_v25 = vmul.f32 %v955_v12, %v731_v54  ;;  %v1619_v33 = vadd.f32 %v1587_v2, %v1519_v3  ;;  %v1620_v34 = vadd.f32 %v1588_v31, %v1520_v60  ;;  %v1889_v39 = vmul.f32 %v3557_v14, %v3641_v0  ;;  %v3679_v3 = vld [vmem:[#allocation2 + $0x61] sm:$0xff] }
 0x153   : > { %1078 = vst.msk [vmem:[#allocation2 + $0x189] sm:$0xff] %vm990_vm2, %v989_v8  ;;  %v2124_v62 = vmul.f32 %v2092_v40, %v1996_v21  ;;  %v1121_v9 = vmul.f32 %v3543_v11, %v3268_v57  ;;  %v2125_v41 = vmul.f32 %v2093_v24, %v1997_v61  ;;  %v1122_v54 = vmul.f32 %v3548_v63, %v3268_v57 }
 0x154   : > { %1076 = vst.msk [vmem:[#allocation2 + $0x171] sm:$0xff] %vm990_vm2, %v987_v25  ;;  %v1720_v53 = vadd.f32 %v1688_v35, %v1619_v33  ;;  %v1189_v55 = vmul.f32 %v3550_v36, %v3270_v58  ;;  %v1721_v4 = vadd.f32 %v1689_v47, %v1620_v34  ;;  %v1190_v13 = vmul.f32 %v3561_v51, %v3270_v58  ;;  %v3690_v25 = vld [vmem:[#allocation2 + $0x6a] sm:$0xff] }
 0x155   : > { %v2156_v22 = vadd.f32 %v2124_v62, %v1996_v21  ;;  %v1289_v52 = vmul.f32 %v3563_v29, %v3281_v5  ;;  %v2157_v56 = vadd.f32 %v2125_v41, %v1997_v61  ;;  %v1290_v17 = vmul.f32 %v3574_v26, %v3281_v5 }
 0x156   : > { %v1820_v11 = vadd.f32 %v1788_v59, %v1720_v53  ;;  %v1221_v15 = vadd.f32 %v1189_v55, %v1121_v9  ;;  %v1821_v50 = vadd.f32 %v1789_v19, %v1721_v4  ;;  %v1222_v63 = vadd.f32 %v1190_v13, %v1122_v54  ;;  %v3681_v59 = vld [vmem:[#allocation2 + $0x69] sm:$0xff] }
 0x157   : > { %v2188_v18 = vmul.f32 0.7978846, %v2156_v22  ;;  %v1389_v36 = vmul.f32 %v3613_v20, %v3297_v30  ;;  %v2189_v2 = vmul.f32 0.7978846, %v2157_v56  ;;  %v1390_v51 = vmul.f32 %v3619_v28, %v3297_v30 }
 0x158   : > { %v1920_v7 = vadd.f32 %v1888_v16, %v1820_v11  ;;  %v1321_v27 = vadd.f32 %v1289_v52, %v1221_v15  ;;  %v2028_v31 = vmul.f32 0.5, %v1996_v21  ;;  %v1921_v29 = vadd.f32 %v1889_v39, %v1821_v50 }
 0x159   : > { %2976 = vtanh.f32 %v2188_v18  ;;  %v1322_v35 = vadd.f32 %v1290_v17, %v1222_v63  ;;  %v1489_v45 = vmul.f32 %v3624_v23, %v3304_v37  ;;  %v2029_v47 = vmul.f32 0.5, %v1997_v61  ;;  %v3688_v61 = vld [vmem:[#allocation2 + $0x62] sm:$0xff] }
 0x15a   : > { %2978 = vtanh.f32 %v2189_v2  ;;  %v1959_v10 = vmul.f32 %v3594_v49, %v1920_v7  ;;  %v1421_v26 = vadd.f32 %v1389_v36, %v1321_v27  ;;  %v1960_v12 = vmul.f32 %v3594_v49, %v1921_v29 }
 0x15b   : > { %v1422_v48 = vadd.f32 %v1390_v51, %v1322_v35  ;;  %v1490_v21 = vmul.f32 %v3632_v32, %v3304_v37  ;;  %v1589_v60 = vmul.f32 %v3637_v46, %v3306_v38  ;;  %v1590_v19 = vmul.f32 %v3641_v0, %v3306_v38 }
 0x15c   : > { %v1998_v8 = vadd.f32 %v3604_v1, %v1959_v10  ;;  %v1521_v40 = vadd.f32 %v1489_v45, %v1421_v26  ;;  %v3693_v24 = vadd.f32 %v3604_v1, %v1960_v12  ;;  %v1690_v16 = vmul.f32 %v3308_v42, %v3672_v6 }
 0x15d   : > { %v1522_v33 = vadd.f32 %v1490_v21, %v1422_v48  ;;  %v1691_v62 = vmul.f32 %v3308_v42, %v3674_v44  ;;  %v1790_v9 = vmul.f32 %v3310_v43, %v3679_v3  ;;  %v1791_v41 = vmul.f32 %v3310_v43, %v3681_v59 }
 0x15e   : > { %v2062_v34 = vmul.f32 0.044715, %v1998_v8  ;;  %v1621_v39 = vadd.f32 %v1589_v60, %v1521_v40  ;;  %v2063_v53 = vmul.f32 0.044715, %v3693_v24  ;;  %v1890_v55 = vmul.f32 %v3557_v14, %v3688_v61 }
 0x15f   : > { %v1622_v54 = vadd.f32 %v1590_v19, %v1522_v33  ;;  %v1891_v22 = vmul.f32 %v3557_v14, %v3690_v25  ;;  %v1123_v52 = vmul.f32 %v3613_v20, %v3268_v57  ;;  %v1124_v56 = vmul.f32 %v3619_v28, %v3268_v57 }
 0x160   : > { %v2094_v4 = vmul.f32 %v2062_v34, %v1998_v8  ;;  %v1722_v13 = vadd.f32 %v1690_v16, %v1621_v39  ;;  %v2095_v11 = vmul.f32 %v2063_v53, %v3693_v24  ;;  %v1191_v17 = vmul.f32 %v3624_v23, %v3270_v58  ;;  %v3739_v53 = vld [vmem:[#allocation2 + $0x80] sm:$0xff] }
 0x161   : > { %v1723_v15 = vadd.f32 %v1691_v62, %v1622_v54  ;;  %v1192_v18 = vmul.f32 %v3632_v32, %v3270_v58  ;;  %v1291_v36 = vmul.f32 %v3637_v46, %v3281_v5  ;;  %v1292_v20 = vmul.f32 %v3641_v0, %v3281_v5 }
 0x162   : > { %v2126_v50 = vmul.f32 %v2094_v4, %v1998_v8  ;;  %v1822_v63 = vadd.f32 %v1790_v9, %v1722_v13  ;;  %v2127_v28 = vmul.f32 %v2095_v11, %v3693_v24  ;;  %v1223_v27 = vadd.f32 %v1191_v17, %v1123_v52  ;;  %v3744_v13 = vld [vmem:[#allocation2 + $0x79] sm:$0xff]  ;;  %v3746_v52 = vld [vmem:[#allocation2 + $0x81] sm:$0xff] }
 0x163   : > { %v2977_v2 = vpop.eup %2976  ;;  %v1823_v7 = vadd.f32 %v1791_v41, %v1723_v15  ;;  %v1224_v51 = vadd.f32 %v1192_v18, %v1124_v56  ;;  %v1391_v32 = vmul.f32 %v3672_v6, %v3297_v30  ;;  %v1392_v16 = vmul.f32 %v3674_v44, %v3297_v30  ;;  %v3737_v41 = vld [vmem:[#allocation2 + $0x78] sm:$0xff]  ;;  %v3757_v18 = vld [vmem:[#allocation2 + $0x82] sm:$0xff] }
 0x164   : > { %v2979_v29 = vpop.eup %2978  ;;  %v2252_v35 = vadd.f32 1.0, %v2977_v2  ;;  %v2158_v23 = vadd.f32 %v2126_v50, %v1998_v8  ;;  %v1922_v10 = vadd.f32 %v1890_v55, %v1822_v63  ;;  %v2159_v45 = vadd.f32 %v2127_v28, %v3693_v24  ;;  %v3755_v17 = vld [vmem:[#allocation2 + $0x7a] sm:$0xff] }
 0x165   : > { %v2253_v26 = vadd.f32 1.0, %v2979_v29  ;;  %v1923_v46 = vadd.f32 %v1891_v22, %v1823_v7  ;;  %v1323_v12 = vadd.f32 %v1291_v36, %v1223_v27  ;;  %v1324_v40 = vadd.f32 %v1292_v20, %v1224_v51 }
 0x166   : > { %v2284_v48 = vmul.f32 %v2252_v35, %v2028_v31  ;;  %v2190_v0 = vmul.f32 0.7978846, %v2158_v23  ;;  %v1961_v21 = vmul.f32 %v3594_v49, %v1922_v10  ;;  %v2191_v19 = vmul.f32 0.7978846, %v2159_v45 }
 0x167   : > { %v2285_v60 = vmul.f32 %v2253_v26, %v2029_v47  ;;  %v1962_v33 = vmul.f32 %v3594_v49, %v1923_v46  ;;  %v1423_v34 = vadd.f32 %v1391_v32, %v1323_v12  ;;  %v1491_v39 = vmul.f32 %v3679_v3, %v3304_v37 }
 0x168   : > { %2980 = vtanh.f32 %v2190_v0  ;;  %v3730_v62 = vadd.f32 %v3604_v1, %v1961_v21  ;;  %v1424_v47 = vadd.f32 %v1392_v16, %v1324_v40  ;;  %v2030_v54 = vmul.f32 0.5, %v1998_v8 }
 0x169   : > { %v2316_v31 = vpack.c.bf16 %v2285_v60, %v2284_v48  ;;  %2982 = vtanh.f32 %v2191_v19  ;;  %v3735_v9 = vadd.f32 %v3604_v1, %v1962_v33  ;;  %v1492_v22 = vmul.f32 %v3681_v59, %v3304_v37 }
 0x16a   : > { %v2064_v55 = vmul.f32 0.044715, %v3730_v62  ;;  %v1523_v4 = vadd.f32 %v1491_v39, %v1423_v34  ;;  %v2031_v56 = vmul.f32 0.5, %v3693_v24  ;;  %v1591_v15 = vmul.f32 %v3688_v61, %v3306_v38 }
 0x16b   : > { %2869 = vmatprep.mubr.msk.bf16.mxu1 %vm990_vm2, %v2316_v31  ;;  %v2065_v11 = vmul.f32 0.044715, %v3735_v9  ;;  %v1592_v8 = vmul.f32 %v3690_v25, %v3306_v38  ;;  %v1524_v63 = vadd.f32 %v1492_v22, %v1424_v47  ;;  %v1692_v36 = vmul.f32 %v3308_v42, %v3737_v41 }
 0x16c   : > { %v2096_v50 = vmul.f32 %v2064_v55, %v3730_v62  ;;  %v1693_v24 = vmul.f32 %v3308_v42, %v3739_v53  ;;  %v1623_v2 = vadd.f32 %v1591_v15, %v1523_v4  ;;  %v1792_v28 = vmul.f32 %v3310_v43, %v3744_v13 }
 0x16d   : > { %v2097_v20 = vmul.f32 %v2065_v11, %v3735_v9  ;;  %v1793_v7 = vmul.f32 %v3310_v43, %v3746_v52  ;;  %v1624_v51 = vadd.f32 %v1592_v8, %v1524_v63  ;;  %v1892_v29 = vmul.f32 %v3557_v14, %v3755_v17 }
 0x16e   : > { %v2128_v27 = vmul.f32 %v2096_v50, %v3730_v62  ;;  %v1893_v35 = vmul.f32 %v3557_v14, %v3757_v18  ;;  %v1724_v10 = vadd.f32 %v1692_v36, %v1623_v2  ;;  %v1125_v32 = vmul.f32 %v3672_v6, %v3268_v57  ;;  %v3804_v2 = vld [vmem:[#allocation2 + $0x98] sm:$0xff] }
 0x16f   : > { %v2129_v23 = vmul.f32 %v2097_v20, %v3735_v9  ;;  %v1126_v26 = vmul.f32 %v3674_v44, %v3268_v57  ;;  %v1725_v46 = vadd.f32 %v1693_v24, %v1624_v51  ;;  %v1193_v12 = vmul.f32 %v3679_v3, %v3270_v58  ;;  %v3802_v20 = vld [vmem:[#allocation2 + $0x90] sm:$0xff] }
 0x170   : > { %v2160_v45 = vadd.f32 %v2128_v27, %v3730_v62  ;;  %v1194_v48 = vmul.f32 %v3681_v59, %v3270_v58  ;;  %v1824_v21 = vadd.f32 %v1792_v28, %v1724_v10  ;;  %v1293_v40 = vmul.f32 %v3688_v61, %v3281_v5  ;;  %v3811_v27 = vld [vmem:[#allocation2 + $0x91] sm:$0xff] }
 0x171   : > { %v2161_v0 = vadd.f32 %v2129_v23, %v3735_v9  ;;  %v1294_v6 = vmul.f32 %v3690_v25, %v3281_v5  ;;  %v1825_v19 = vadd.f32 %v1793_v7, %v1725_v46  ;;  %v1225_v33 = vadd.f32 %v1193_v12, %v1125_v32  ;;  %v3820_v10 = vld [vmem:[#allocation2 + $0x92] sm:$0xff]  ;;  %v3822_v32 = vld [vmem:[#allocation2 + $0x9a] sm:$0xff] }
 0x172   : > { %v2981_v60 = vpop.eup %2980  ;;  %v2192_v44 = vmul.f32 0.7978846, %v2160_v45  ;;  %v1226_v16 = vadd.f32 %v1194_v48, %v1126_v26  ;;  %v1924_v31 = vadd.f32 %v1892_v29, %v1824_v21  ;;  %v1393_v59 = vmul.f32 %v3737_v41, %v3297_v30 }
 0x173   : > { %v2983_v34 = vpop.eup %2982  ;;  %v2254_v39 = vadd.f32 1.0, %v2981_v60  ;;  %v2193_v3 = vmul.f32 0.7978846, %v2161_v0  ;;  %v1925_v55 = vadd.f32 %v1893_v35, %v1825_v19  ;;  %v1325_v22 = vadd.f32 %v1293_v40, %v1225_v33 }
 0x174   : > { %v2255_v47 = vadd.f32 1.0, %v2983_v34  ;;  %2984 = vtanh.f32 %v2192_v44  ;;  %v1963_v25 = vmul.f32 %v3594_v49, %v1924_v31  ;;  %v1326_v4 = vadd.f32 %v1294_v6, %v1226_v16 }
 0x175   : > { %v2286_v61 = vmul.f32 %v2254_v39, %v2030_v54  ;;  %2986 = vtanh.f32 %v2193_v3  ;;  %v1964_v15 = vmul.f32 %v3594_v49, %v1925_v55  ;;  %v1394_v8 = vmul.f32 %v3739_v53, %v3297_v30 }
 0x176   : > { %v2287_v11 = vmul.f32 %v2255_v47, %v2031_v56  ;;  %v1425_v50 = vadd.f32 %v1393_v59, %v1325_v22  ;;  %v2032_v63 = vmul.f32 0.5, %v3730_v62  ;;  %v2033_v36 = vmul.f32 0.5, %v3735_v9  ;;  %v3813_v9 = vld [vmem:[#allocation2 + $0x99] sm:$0xff] }
 0x177   : > { %v3798_v24 = vadd.f32 %v3604_v1, %v1963_v25  ;;  %v1493_v54 = vmul.f32 %v3744_v13, %v3304_v37  ;;  %v3807_v28 = vadd.f32 %v3604_v1, %v1964_v15  ;;  %v1426_v7 = vadd.f32 %v1394_v8, %v1326_v4 }
 0x178   : > { %v2317_v56 = vpack.c.bf16 %v2287_v11, %v2286_v61  ;;  %v1494_v62 = vmul.f32 %v3746_v52, %v3304_v37  ;;  %v1593_v35 = vmul.f32 %v3755_v17, %v3306_v38  ;;  %v1594_v23 = vmul.f32 %v3757_v18, %v3306_v38 }
 0x179   : > { %v2066_v51 = vmul.f32 0.044715, %v3798_v24  ;;  %v1525_v29 = vadd.f32 %v1493_v54, %v1425_v50  ;;  %v2067_v26 = vmul.f32 0.044715, %v3807_v28  ;;  %v1694_v46 = vmul.f32 %v3308_v42, %v3802_v20 }
 0x17a   : > { %2870 = vmatmul.mubr.msk.bf16.vlgmr.msra.gmra.mrb[0].mxu1 %vm990_vm2, %v2317_v56  ;;  %v1526_v45 = vadd.f32 %v1494_v62, %v1426_v7  ;;  %v1695_v12 = vmul.f32 %v3308_v42, %v3804_v2  ;;  %v1794_v21 = vmul.f32 %v3310_v43, %v3811_v27  ;;  %v1795_v40 = vmul.f32 %v3310_v43, %v3813_v9 }
 0x17b   : > { %v2098_v48 = vmul.f32 %v2066_v51, %v3798_v24  ;;  %v1625_v0 = vadd.f32 %v1593_v35, %v1525_v29  ;;  %v2099_v6 = vmul.f32 %v2067_v26, %v3807_v28  ;;  %v1894_v44 = vmul.f32 %v3557_v14, %v3820_v10 }
 0x17c   : > { %v1626_v60 = vadd.f32 %v1594_v23, %v1526_v45  ;;  %v1895_v19 = vmul.f32 %v3557_v14, %v3822_v32  ;;  %v1127_v34 = vmul.f32 %v3737_v41, %v3268_v57  ;;  %v1128_v39 = vmul.f32 %v3739_v53, %v3268_v57 }
 0x17d   : > { %v2130_v33 = vmul.f32 %v2098_v48, %v3798_v24  ;;  %v1726_v16 = vadd.f32 %v1694_v46, %v1625_v0  ;;  %v2131_v31 = vmul.f32 %v2099_v6, %v3807_v28  ;;  %v1195_v47 = vmul.f32 %v3744_v13, %v3270_v58  ;;  %v3869_v48 = vld [vmem:[#allocation2 + $0xb0] sm:$0xff] }
 0x17e   : > { %v2985_v3 = vpop.eup %2984  ;;  %v1727_v59 = vadd.f32 %v1695_v12, %v1626_v60  ;;  %v1196_v55 = vmul.f32 %v3746_v52, %v3270_v58  ;;  %v1295_v41 = vmul.f32 %v3755_v17, %v3281_v5  ;;  %v1296_v51 = vmul.f32 %v3757_v18, %v3281_v5  ;;  %v3867_v12 = vld [vmem:[#allocation2 + $0xa8] sm:$0xff] }
 0x17f   : > { %v2987_v22 = vpop.eup %2986  ;;  %v2256_v61 = vadd.f32 1.0, %v2985_v3  ;;  %v2162_v25 = vadd.f32 %v2130_v33, %v3798_v24  ;;  %v1826_v4 = vadd.f32 %v1794_v21, %v1726_v16  ;;  %v2163_v53 = vadd.f32 %v2131_v31, %v3807_v28  ;;  %v3879_v60 = vld [vmem:[#allocation2 + $0xa9] sm:$0xff] }
 0x180   : > { %v2257_v11 = vadd.f32 1.0, %v2987_v22  ;;  %v1827_v15 = vadd.f32 %v1795_v40, %v1727_v59  ;;  %v1227_v8 = vadd.f32 %v1195_v47, %v1127_v34  ;;  %v1228_v13 = vadd.f32 %v1196_v55, %v1128_v39  ;;  %v3884_v34 = vld [vmem:[#allocation2 + $0xb1] sm:$0xff] }
 0x181   : > { %v2288_v50 = vmul.f32 %v2256_v61, %v2032_v63  ;;  %v2194_v54 = vmul.f32 0.7978846, %v2162_v25  ;;  %v1926_v56 = vadd.f32 %v1894_v44, %v1826_v4  ;;  %v2195_v62 = vmul.f32 0.7978846, %v2163_v53 }
 0x182   : > { %v2289_v7 = vmul.f32 %v2257_v11, %v2033_v36  ;;  %v1927_v52 = vadd.f32 %v1895_v19, %v1827_v15  ;;  %v1327_v35 = vadd.f32 %v1295_v41, %v1227_v8  ;;  %v1395_v17 = vmul.f32 %v3802_v20, %v3297_v30 }
 0x183   : > { %2988 = vtanh.f32 %v2194_v54  ;;  %v1965_v29 = vmul.f32 %v3594_v49, %v1926_v56  ;;  %v1328_v26 = vadd.f32 %v1296_v51, %v1228_v13  ;;  %v1396_v36 = vmul.f32 %v3804_v2, %v3297_v30 }
 0x184   : > { %v2318_v23 = vpack.c.bf16 %v2289_v7, %v2288_v50  ;;  %2990 = vtanh.f32 %v2195_v62  ;;  %v1966_v63 = vmul.f32 %v3594_v49, %v1927_v52  ;;  %v1427_v46 = vadd.f32 %v1395_v17, %v1327_v35 }
 0x185   : > { %v3861_v45 = vadd.f32 %v3604_v1, %v1965_v29  ;;  %v1495_v18 = vmul.f32 %v3811_v27, %v3304_v37  ;;  %v2034_v0 = vmul.f32 0.5, %v3798_v24  ;;  %v2035_v21 = vmul.f32 0.5, %v3807_v28  ;;  %v3886_v24 = vld [vmem:[#allocation2 + $0xaa] sm:$0xff]  ;;  %v3888_v28 = vld [vmem:[#allocation2 + $0xb2] sm:$0xff] }
 0x186   : > { %2873 = vmatprep.mubr.msk.bf16.mxu1 %vm990_vm2, %v2318_v23  ;;  %v3875_v40 = vadd.f32 %v3604_v1, %v1966_v63  ;;  %v1496_v6 = vmul.f32 %v3813_v9, %v3304_v37  ;;  %v1428_v19 = vadd.f32 %v1396_v36, %v1328_v26  ;;  %v1595_v16 = vmul.f32 %v3820_v10, %v3306_v38 }
 0x187   : > { %v2068_v44 = vmul.f32 0.044715, %v3861_v45  ;;  %v1527_v33 = vadd.f32 %v1495_v18, %v1427_v46  ;;  %v1596_v3 = vmul.f32 %v3822_v32, %v3306_v38  ;;  %v1696_v31 = vmul.f32 %v3308_v42, %v3867_v12 }
 0x188   : > { %v2069_v39 = vmul.f32 0.044715, %v3875_v40  ;;  %v1697_v59 = vmul.f32 %v3308_v42, %v3869_v48  ;;  %v1528_v55 = vadd.f32 %v1496_v6, %v1428_v19  ;;  %v1796_v61 = vmul.f32 %v3310_v43, %v3879_v60 }
 0x189   : > { %v2100_v47 = vmul.f32 %v2068_v44, %v3861_v45  ;;  %v1627_v22 = vadd.f32 %v1595_v16, %v1527_v33  ;;  %v1797_v4 = vmul.f32 %v3310_v43, %v3884_v34  ;;  %v1896_v41 = vmul.f32 %v3557_v14, %v3886_v24 }
 0x18a   : > { %v2101_v25 = vmul.f32 %v2069_v39, %v3875_v40  ;;  %v1897_v11 = vmul.f32 %v3557_v14, %v3888_v28  ;;  %v1628_v15 = vadd.f32 %v1596_v3, %v1528_v55  ;;  %v1129_v50 = vmul.f32 %v3802_v20, %v3268_v57 }
 0x18b   : > { %v2132_v53 = vmul.f32 %v2100_v47, %v3861_v45  ;;  %v1728_v8 = vadd.f32 %v1696_v31, %v1627_v22  ;;  %v1130_v56 = vmul.f32 %v3804_v2, %v3268_v57  ;;  %v1197_v13 = vmul.f32 %v3811_v27, %v3270_v58 }
 0x18c   : > { %v2133_v54 = vmul.f32 %v2101_v25, %v3875_v40  ;;  %v1198_v7 = vmul.f32 %v3813_v9, %v3270_v58  ;;  %v1729_v51 = vadd.f32 %v1697_v59, %v1628_v15  ;;  %v1297_v35 = vmul.f32 %v3820_v10, %v3281_v5  ;;  %v3939_v25 = vld [vmem:[#allocation2 + $0xc8] sm:$0xff] }
 0x18d   : > { %v2989_v62 = vpop.eup %2988  ;;  %v2164_v52 = vadd.f32 %v2132_v53, %v3861_v45  ;;  %v1828_v29 = vadd.f32 %v1796_v61, %v1728_v8  ;;  %v1229_v63 = vadd.f32 %v1197_v13, %v1129_v50  ;;  %v1298_v6 = vmul.f32 %v3822_v32, %v3281_v5  ;;  %v3949_v15 = vld [vmem:[#allocation2 + $0xc9] sm:$0xff] }
 0x18e   : > { %v2991_v20 = vpop.eup %2990  ;;  %v2258_v17 = vadd.f32 1.0, %v2989_v62  ;;  %v2165_v23 = vadd.f32 %v2133_v54, %v3875_v40  ;;  %v1230_v2 = vadd.f32 %v1198_v7, %v1130_v56  ;;  %v1829_v27 = vadd.f32 %v1797_v4, %v1729_v51  ;;  %v3941_v4 = vld [vmem:[#allocation2 + $0xc1] sm:$0xff] }
 0x18f   : > { %v2259_v26 = vadd.f32 1.0, %v2991_v20  ;;  %v2196_v36 = vmul.f32 0.7978846, %v2164_v52  ;;  %v1928_v46 = vadd.f32 %v1896_v41, %v1828_v29  ;;  %v1329_v44 = vadd.f32 %v1297_v35, %v1229_v63  ;;  %v3951_v8 = vld [vmem:[#allocation2 + $0xc2] sm:$0xff] }
 0x190   : > { %v2290_v18 = vmul.f32 %v2258_v17, %v2034_v0  ;;  %v2197_v9 = vmul.f32 0.7978846, %v2165_v23  ;;  %v1929_v33 = vadd.f32 %v1897_v11, %v1829_v27  ;;  %v1330_v16 = vadd.f32 %v1298_v6, %v1230_v2 }
 0x191   : > { %v2291_v19 = vmul.f32 %v2259_v26, %v2035_v21  ;;  %2992 = vtanh.f32 %v2196_v36  ;;  %v1967_v10 = vmul.f32 %v3594_v49, %v1928_v46  ;;  %v1397_v39 = vmul.f32 %v3867_v12, %v3297_v30  ;;  %v3933_v21 = vld [vmem:[#allocation2 + $0xc0] sm:$0xff] }
 0x192   : > { %2994 = vtanh.f32 %v2197_v9  ;;  %v1398_v3 = vmul.f32 %v3869_v48, %v3297_v30  ;;  %v2036_v0 = vmul.f32 0.5, %v3861_v45  ;;  %v1968_v59 = vmul.f32 %v3594_v49, %v1929_v33 }
 0x193   : > { %v2319_v31 = vpack.c.bf16 %v2291_v19, %v2290_v18  ;;  %v3931_v32 = vadd.f32 %v3604_v1, %v1967_v10  ;;  %v1429_v47 = vadd.f32 %v1397_v39, %v1329_v44  ;;  %v1497_v22 = vmul.f32 %v3879_v60, %v3304_v37 }
 0x194   : > { %v1430_v55 = vadd.f32 %v1398_v3, %v1330_v16  ;;  %v1498_v61 = vmul.f32 %v3884_v34, %v3304_v37  ;;  %v2037_v45 = vmul.f32 0.5, %v3875_v40  ;;  %v2007_v41 = vadd.f32 %v3604_v1, %v1968_v59  ;;  %v3957_v40 = vld [vmem:[#allocation2 + $0xca] sm:$0xff] }
 0x195   : > { %2874 = vmatmul.mubr.msk.bf16.gmra.mrb[4].mxu1 %vm990_vm2, %v2319_v31  ;;  %v2070_v11 = vmul.f32 0.044715, %v3931_v32  ;;  %v1597_v53 = vmul.f32 %v3886_v24, %v3306_v38  ;;  %v1529_v50 = vadd.f32 %v1497_v22, %v1429_v47  ;;  %v1598_v56 = vmul.f32 %v3888_v28, %v3306_v38 }
 0x196   : > { %v1530_v54 = vadd.f32 %v1498_v61, %v1430_v55  ;;  %v1698_v13 = vmul.f32 %v3308_v42, %v3933_v21  ;;  %v2071_v7 = vmul.f32 0.044715, %v2007_v41  ;;  %v1699_v52 = vmul.f32 %v3308_v42, %v3939_v25 }
 0x197   : > { %v2102_v62 = vmul.f32 %v2070_v11, %v3931_v32  ;;  %v1798_v51 = vmul.f32 %v3310_v43, %v3941_v4  ;;  %v1629_v29 = vadd.f32 %v1597_v53, %v1529_v50  ;;  %v1799_v20 = vmul.f32 %v3310_v43, %v3949_v15 }
 0x198   : > { %v1630_v35 = vadd.f32 %v1598_v56, %v1530_v54  ;;  %v1898_v17 = vmul.f32 %v3557_v14, %v3951_v8  ;;  %v2103_v23 = vmul.f32 %v2071_v7, %v2007_v41  ;;  %v1899_v2 = vmul.f32 %v3557_v14, %v3957_v40 }
 0x199   : > { %v2134_v63 = vmul.f32 %v2102_v62, %v3931_v32  ;;  %v1131_v26 = vmul.f32 %v3867_v12, %v3268_v57  ;;  %v1730_v36 = vadd.f32 %v1698_v13, %v1629_v29  ;;  %v1132_v46 = vmul.f32 %v3869_v48, %v3268_v57  ;;  %v3999_v29 = vld [vmem:[#allocation2 + $0xe0] sm:$0xff] }
 0x19a   : > { %v1731_v27 = vadd.f32 %v1699_v52, %v1630_v35  ;;  %v1199_v18 = vmul.f32 %v3879_v60, %v3270_v58  ;;  %v2135_v6 = vmul.f32 %v2103_v23, %v2007_v41  ;;  %v1200_v19 = vmul.f32 %v3884_v34, %v3270_v58  ;;  %v4001_v35 = vld [vmem:[#allocation2 + $0xd9] sm:$0xff]  ;;  %v4010_v23 = vld [vmem:[#allocation2 + $0xe1] sm:$0xff] }
 0x19b   : > { %v2993_v9 = vpop.eup %2992  ;;  %v2166_v44 = vadd.f32 %v2134_v63, %v3931_v32  ;;  %v1299_v33 = vmul.f32 %v3886_v24, %v3281_v5  ;;  %v1830_v16 = vadd.f32 %v1798_v51, %v1730_v36  ;;  %v1300_v61 = vmul.f32 %v3888_v28, %v3281_v5  ;;  %v3991_v28 = vld [vmem:[#allocation2 + $0xd8] sm:$0xff] }
 0x19c   : > { %v2995_v10 = vpop.eup %2994  ;;  %v2260_v12 = vadd.f32 1.0, %v2993_v9  ;;  %v1831_v39 = vadd.f32 %v1799_v20, %v1731_v27  ;;  %v1231_v3 = vadd.f32 %v1199_v18, %v1131_v26  ;;  %v2167_v48 = vadd.f32 %v2135_v6, %v2007_v41  ;;  %v4012_v63 = vld [vmem:[#allocation2 + $0xda] sm:$0xff] }
 0x19d   : > { %v2261_v31 = vadd.f32 1.0, %v2995_v10  ;;  %v2198_v59 = vmul.f32 0.7978846, %v2166_v44  ;;  %v1232_v47 = vadd.f32 %v1200_v19, %v1132_v46  ;;  %v1930_v55 = vadd.f32 %v1898_v17, %v1830_v16  ;;  %v4020_v46 = vld [vmem:[#allocation2 + $0xe2] sm:$0xff] }
 0x19e   : > { %v2292_v60 = vmul.f32 %v2260_v12, %v2036_v0  ;;  %v1931_v22 = vadd.f32 %v1899_v2, %v1831_v39  ;;  %v2199_v34 = vmul.f32 0.7978846, %v2167_v48  ;;  %v1331_v53 = vadd.f32 %v1299_v33, %v1231_v3 }
 0x19f   : > { %v2293_v11 = vmul.f32 %v2261_v31, %v2037_v45  ;;  %2996 = vtanh.f32 %v2198_v59  ;;  %v1969_v24 = vmul.f32 %v3594_v49, %v1930_v55  ;;  %v1332_v54 = vadd.f32 %v1300_v61, %v1232_v47 }
 0x1a0   : > { %v1970_v50 = vmul.f32 %v3594_v49, %v1931_v22  ;;  %v1399_v56 = vmul.f32 %v3933_v21, %v3297_v30  ;;  %v2038_v0 = vmul.f32 0.5, %v3931_v32  ;;  %2998 = vtanh.f32 %v2199_v34 }
 0x1a1   : > { %v2320_v13 = vpack.c.bf16 %v2293_v11, %v2292_v60  ;;  %v1400_v7 = vmul.f32 %v3939_v25, %v3297_v30  ;;  %v2039_v45 = vmul.f32 0.5, %v2007_v41  ;;  %v3994_v62 = vadd.f32 %v3604_v1, %v1969_v24 }
 0x1a2   : > { %v3997_v52 = vadd.f32 %v3604_v1, %v1970_v50  ;;  %v1431_v51 = vadd.f32 %v1399_v56, %v1331_v53  ;;  %v1499_v20 = vmul.f32 %v3941_v4, %v3304_v37  ;;  %v1500_v41 = vmul.f32 %v3949_v15, %v3304_v37 }
 0x1a3   : > { %2877 = vmatprep.mubr.msk.bf16.mxu1 %vm990_vm2, %v2320_v13  ;;  %v1432_v32 = vadd.f32 %v1400_v7, %v1332_v54  ;;  %v1599_v17 = vmul.f32 %v3951_v8, %v3306_v38  ;;  %v2072_v2 = vmul.f32 0.044715, %v3994_v62  ;;  %v1600_v36 = vmul.f32 %v3957_v40, %v3306_v38 }
 0x1a4   : > { %v2073_v26 = vmul.f32 0.044715, %v3997_v52  ;;  %v1700_v27 = vmul.f32 %v3308_v42, %v3991_v28  ;;  %v1531_v18 = vadd.f32 %v1499_v20, %v1431_v51  ;;  %v1701_v6 = vmul.f32 %v3308_v42, %v3999_v29 }
 0x1a5   : > { %v1532_v9 = vadd.f32 %v1500_v41, %v1432_v32  ;;  %v1800_v44 = vmul.f32 %v3310_v43, %v4001_v35  ;;  %v2104_v19 = vmul.f32 %v2072_v2, %v3994_v62  ;;  %v1801_v10 = vmul.f32 %v3310_v43, %v4010_v23 }
 0x1a6   : > { %v2105_v33 = vmul.f32 %v2073_v26, %v3997_v52  ;;  %v1900_v12 = vmul.f32 %v3557_v14, %v4012_v63  ;;  %v1631_v16 = vadd.f32 %v1599_v17, %v1531_v18  ;;  %v1901_v3 = vmul.f32 %v3557_v14, %v4020_v46 }
 0x1a7   : > { %v1632_v39 = vadd.f32 %v1600_v36, %v1532_v9  ;;  %v1133_v31 = vmul.f32 %v3933_v21, %v3268_v57  ;;  %v2136_v48 = vmul.f32 %v2104_v19, %v3994_v62  ;;  %v1134_v47 = vmul.f32 %v3939_v25, %v3268_v57 }
 0x1a8   : > { %v2137_v59 = vmul.f32 %v2105_v33, %v3997_v52  ;;  %v1201_v60 = vmul.f32 %v3941_v4, %v3270_v58  ;;  %v1732_v22 = vadd.f32 %v1700_v27, %v1631_v16  ;;  %v1202_v11 = vmul.f32 %v3949_v15, %v3270_v58  ;;  %v4072_v16 = vld [vmem:[#allocation2 + $0xf9] sm:$0xff] }
 0x1a9   : > { %v2997_v55 = vpop.eup %2996  ;;  %v1733_v61 = vadd.f32 %v1701_v6, %v1632_v39  ;;  %v1301_v14 = vmul.f32 %v3951_v8, %v3281_v5  ;;  %v2168_v34 = vadd.f32 %v2136_v48, %v3994_v62  ;;  %v1302_v4 = vmul.f32 %v3957_v40, %v3281_v5  ;;  %v4060_v6 = vld [vmem:[#allocation2 + $0xf0] sm:$0xff]  ;;  %v4081_v48 = vld [vmem:[#allocation2 + $0xfa] sm:$0xff] }
 0x1aa   : > { %v2262_v21 = vadd.f32 1.0, %v2997_v55  ;;  %v2169_v53 = vadd.f32 %v2137_v59, %v3997_v52  ;;  %v1233_v24 = vadd.f32 %v1201_v60, %v1133_v31  ;;  %v2999_v50 = vpop.eup %2998  ;;  %v1832_v25 = vadd.f32 %v1800_v44, %v1732_v22  ;;  %v4062_v44 = vld [vmem:[#allocation2 + $0xf8] sm:$0xff] }
 0x1ab   : > { %v1833_v54 = vadd.f32 %v1801_v10, %v1733_v61  ;;  %v1234_v56 = vadd.f32 %v1202_v11, %v1134_v47  ;;  %v2263_v13 = vadd.f32 1.0, %v2999_v50  ;;  %v2200_v51 = vmul.f32 0.7978846, %v2168_v34  ;;  %v4096_v34 = vld [vmem:[%s4718_s4 + $0x8] ss:$0 sm:$0xff] }
 0x1ac   : > { %v2294_v7 = vmul.f32 %v2262_v21, %v2038_v0  ;;  %v2201_v15 = vmul.f32 0.7978846, %v2169_v53  ;;  %v1932_v32 = vadd.f32 %v1900_v12, %v1832_v25  ;;  %v1333_v8 = vadd.f32 %v1301_v14, %v1233_v24  ;;  %v4070_v12 = vld [vmem:[#allocation2 + $0xf1] sm:$0xff] }
 0x1ad   : > { %v1933_v20 = vadd.f32 %v1901_v3, %v1833_v54  ;;  %v1334_v41 = vadd.f32 %v1302_v4, %v1234_v56  ;;  %v2295_v17 = vmul.f32 %v2263_v13, %v2039_v45  ;;  %3000 = vtanh.f32 %v2200_v51 }
 0x1ae   : > { %v1401_v2 = vmul.f32 %v3991_v28, %v3297_v30  ;;  %v1402_v26 = vmul.f32 %v3999_v29, %v3297_v30  ;;  %3002 = vtanh.f32 %v2201_v15  ;;  %v1971_v36 = vmul.f32 %v3594_v49, %v1932_v32 }
 0x1af   : > { %v1972_v40 = vmul.f32 %v3594_v49, %v1933_v20  ;;  %v1501_v0 = vmul.f32 %v4001_v35, %v3304_v37  ;;  %v2321_v27 = vpack.c.bf16 %v2295_v17, %v2294_v7  ;;  %v1502_v45 = vmul.f32 %v4010_v23, %v3304_v37 }
 0x1b0   : > { %v1433_v18 = vadd.f32 %v1401_v2, %v1333_v8  ;;  %v1434_v9 = vadd.f32 %v1402_v26, %v1334_v41  ;;  %v2040_v19 = vmul.f32 0.5, %v3994_v62  ;;  %v2041_v33 = vmul.f32 0.5, %v3997_v52  ;;  %v4079_v52 = vld [vmem:[#allocation2 + $0xf2] sm:$0xff] }
 0x1b1   : > { %v2010_v10 = vadd.f32 %v3604_v1, %v1971_v36  ;;  %v4068_v49 = vadd.f32 %v3604_v1, %v1972_v40  ;;  %2878 = vmatmul.mubr.msk.bf16.gmra.mrb[8].mxu1 %vm990_vm2, %v2321_v27  ;;  %v1601_v31 = vmul.f32 %v4012_v63, %v3306_v38  ;;  %v1602_v62 = vmul.f32 %v4020_v46, %v3306_v38 }
 0x1b2   : > { %v1533_v39 = vadd.f32 %v1501_v0, %v1433_v18  ;;  %v1534_v3 = vadd.f32 %v1502_v45, %v1434_v9  ;;  %v1702_v47 = vmul.f32 %v3308_v42, %v4060_v6  ;;  %v1703_v60 = vmul.f32 %v3308_v42, %v4062_v44 }
 0x1b3   : > { %v2074_v1 = vmul.f32 0.044715, %v2010_v10  ;;  %v2075_v59 = vmul.f32 0.044715, %v4068_v49  ;;  %v1802_v61 = vmul.f32 %v3310_v43, %v4070_v12  ;;  %v1803_v11 = vmul.f32 %v3310_v43, %v4072_v16 }
 0x1b4   : > { %v1633_v55 = vadd.f32 %v1601_v31, %v1533_v39  ;;  %v1634_v22 = vadd.f32 %v1602_v62, %v1534_v3  ;;  %v1902_v53 = vmul.f32 %v4096_v34, %v4079_v52  ;;  %v1903_v24 = vmul.f32 %v4096_v34, %v4081_v48 }
 0x1b5   : > { %v2106_v14 = vmul.f32 %v2074_v1, %v2010_v10  ;;  %v2107_v21 = vmul.f32 %v2075_v59, %v4068_v49  ;;  %v1135_v54 = vmul.f32 %v3991_v28, %v3268_v57  ;;  %v1136_v56 = vmul.f32 %v3999_v29, %v3268_v57 }
 0x1b6   : > { %v1734_v50 = vadd.f32 %v1702_v47, %v1633_v55  ;;  %v1735_v25 = vadd.f32 %v1703_v60, %v1634_v22  ;;  %v1203_v7 = vmul.f32 %v4001_v35, %v3270_v58  ;;  %v1204_v51 = vmul.f32 %v4010_v23, %v3270_v58 }
 0x1b7   : > { %v2138_v4 = vmul.f32 %v2106_v14, %v2010_v10  ;;  %v2139_v13 = vmul.f32 %v2107_v21, %v4068_v49  ;;  %v3001_v15 = vpop.eup %3000  ;;  %v1303_v8 = vmul.f32 %v4012_v63, %v3281_v5  ;;  %v1304_v28 = vmul.f32 %v4020_v46, %v3281_v5  ;;  %v4119_v63 = vld [vmem:[%s4719_s5] ss:$0 sm:$0xff]  ;;  %v4144_v14 = vld [vmem:[#allocation2 + $0x109] sm:$0xff] }
 0x1b8   : > { %v1834_v32 = vadd.f32 %v1802_v61, %v1734_v50  ;;  %v1835_v20 = vadd.f32 %v1803_v11, %v1735_v25  ;;  %v3003_v41 = vpop.eup %3002  ;;  %v2264_v29 = vadd.f32 1.0, %v3001_v15  ;;  %v1235_v26 = vadd.f32 %v1203_v7, %v1135_v54  ;;  %v4140_v61 = vld [vmem:[#allocation2 + $0x108] sm:$0xff]  ;;  %v4142_v11 = vld [vmem:[#allocation2 + $0x110] sm:$0xff] }
 0x1b9   : > { %v2170_v17 = vadd.f32 %v2138_v4, %v2010_v10  ;;  %v2171_v2 = vadd.f32 %v2139_v13, %v4068_v49  ;;  %v2265_v36 = vadd.f32 1.0, %v3003_v41  ;;  %v1236_v0 = vadd.f32 %v1204_v51, %v1136_v56  ;;  %v4151_v25 = vld [vmem:[#allocation2 + $0x111] sm:$0xff] }
 0x1ba   : > { %v1934_v35 = vadd.f32 %v1902_v53, %v1834_v32  ;;  %v1935_v40 = vadd.f32 %v1903_v24, %v1835_v20  ;;  %v2296_v23 = vmul.f32 %v2264_v29, %v2040_v19  ;;  %v1335_v9 = vadd.f32 %v1303_v8, %v1235_v26  ;;  %v4157_v7 = vld [vmem:[#allocation2 + $0x10a] sm:$0xff] }
 0x1bb   : > { %v2202_v27 = vmul.f32 0.7978846, %v2170_v17  ;;  %v2203_v18 = vmul.f32 0.7978846, %v2171_v2  ;;  %v2297_v45 = vmul.f32 %v2265_v36, %v2041_v33  ;;  %v1336_v3 = vadd.f32 %v1304_v28, %v1236_v0  ;;  %v4130_v33 = vld [vmem:[%s4720_s6] ss:$0 sm:$0xff] }
 0x1bc   : > { %v1973_v46 = vmul.f32 %v4119_v63, %v1934_v35  ;;  %v1974_v39 = vmul.f32 %v4119_v63, %v1935_v40  ;;  %v2042_v31 = vmul.f32 0.5, %v2010_v10  ;;  %v1403_v62 = vmul.f32 %v4060_v6, %v3297_v30  ;;  %v4169_v2 = vld [vmem:[#allocation2 + $0x112] sm:$0xff] }
 0x1bd   : > { %3004 = vtanh.f32 %v2202_v27  ;;  %v1404_v19 = vmul.f32 %v4062_v44, %v3297_v30  ;;  %v2322_v1 = vpack.c.bf16 %v2297_v45, %v2296_v23  ;;  %v1503_v55 = vmul.f32 %v4070_v12, %v3304_v37 }
 0x1be   : > { %3006 = vtanh.f32 %v2203_v18  ;;  %v2012_v59 = vadd.f32 %v4130_v33, %v1973_v46  ;;  %v4134_v47 = vadd.f32 %v4130_v33, %v1974_v39  ;;  %v1435_v10 = vadd.f32 %v1403_v62, %v1335_v9 }
 0x1bf   : > { %v1436_v60 = vadd.f32 %v1404_v19, %v1336_v3  ;;  %v1504_v22 = vmul.f32 %v4072_v16, %v3304_v37  ;;  %2881 = vmatprep.mubr.msk.bf16.mxu1 %vm990_vm2, %v2322_v1  ;;  %v2043_v21 = vmul.f32 0.5, %v4068_v49  ;;  %v1603_v50 = vmul.f32 %v4079_v52, %v3306_v38 }
 0x1c0   : > { %v2076_v53 = vmul.f32 0.044715, %v2012_v59  ;;  %v2077_v24 = vmul.f32 0.044715, %v4134_v47  ;;  %v4153_v54 = vmul.f32 0.5, %v2012_v59  ;;  %v1535_v56 = vadd.f32 %v1503_v55, %v1435_v10 }
 0x1c1   : > { %v1536_v4 = vadd.f32 %v1504_v22, %v1436_v60  ;;  %v1604_v13 = vmul.f32 %v4081_v48, %v3306_v38  ;;  %v1704_v15 = vmul.f32 %v3308_v42, %v4140_v61  ;;  %v1705_v32 = vmul.f32 %v3308_v42, %v4142_v11 }
 0x1c2   : > { %v2108_v51 = vmul.f32 %v2076_v53, %v2012_v59  ;;  %v2109_v49 = vmul.f32 %v2077_v24, %v4134_v47  ;;  %v1635_v20 = vadd.f32 %v1603_v50, %v1535_v56  ;;  %v1804_v28 = vmul.f32 %v3310_v43, %v4144_v14 }
 0x1c3   : > { %v1636_v8 = vadd.f32 %v1604_v13, %v1536_v4  ;;  %v1805_v41 = vmul.f32 %v3310_v43, %v4151_v25  ;;  %v1904_v26 = vmul.f32 %v4096_v34, %v4157_v7  ;;  %v1137_v36 = vmul.f32 %v4060_v6, %v3268_v57 }
 0x1c4   : > { %v2140_v29 = vmul.f32 %v2108_v51, %v2012_v59  ;;  %v2141_v17 = vmul.f32 %v2109_v49, %v4134_v47  ;;  %v1736_v35 = vadd.f32 %v1704_v15, %v1635_v20  ;;  %v1138_v0 = vmul.f32 %v4062_v44, %v3268_v57  ;;  %v4205_v20 = vld [vmem:[#allocation2 + $0x128] sm:$0xff] }
 0x1c5   : > { %v1737_v40 = vadd.f32 %v1705_v32, %v1636_v8  ;;  %v1205_v23 = vmul.f32 %v4070_v12, %v3270_v58  ;;  %v1206_v9 = vmul.f32 %v4072_v16, %v3270_v58  ;;  %v1305_v45 = vmul.f32 %v4079_v52, %v3281_v5  ;;  %v4207_v8 = vld [vmem:[#allocation2 + $0x121] sm:$0xff] }
 0x1c6   : > { %v2172_v27 = vadd.f32 %v2140_v29, %v2012_v59  ;;  %v2173_v18 = vadd.f32 %v2141_v17, %v4134_v47  ;;  %v1836_v39 = vadd.f32 %v1804_v28, %v1736_v35  ;;  %v1905_v3 = vmul.f32 %v4096_v34, %v4169_v2 }
 0x1c7   : > { %v3005_v46 = vpop.eup %3004  ;;  %v1837_v6 = vadd.f32 %v1805_v41, %v1737_v40  ;;  %v1237_v62 = vadd.f32 %v1205_v23, %v1137_v36  ;;  %v1238_v59 = vadd.f32 %v1206_v9, %v1138_v0  ;;  %v1306_v16 = vmul.f32 %v4081_v48, %v3281_v5  ;;  %v4224_v23 = vld [vmem:[#allocation2 + $0x12a] sm:$0xff] }
 0x1c8   : > { %v3007_v44 = vpop.eup %3006  ;;  %v2266_v19 = vadd.f32 1.0, %v3005_v46  ;;  %v2204_v1 = vmul.f32 0.7978846, %v2172_v27  ;;  %v2205_v12 = vmul.f32 0.7978846, %v2173_v18  ;;  %v1936_v60 = vadd.f32 %v1904_v26, %v1836_v39  ;;  %v4213_v26 = vld [vmem:[#allocation2 + $0x129] sm:$0xff] }
 0x1c9   : > { %v2267_v10 = vadd.f32 1.0, %v3007_v44  ;;  %v1937_v55 = vadd.f32 %v1905_v3, %v1837_v6  ;;  %v1337_v52 = vadd.f32 %v1305_v45, %v1237_v62  ;;  %v1405_v53 = vmul.f32 %v4140_v61, %v3297_v30 }
 0x1ca   : > { %v2298_v22 = vmul.f32 %v2266_v19, %v2042_v31  ;;  %3008 = vtanh.f32 %v2204_v1  ;;  %v1975_v50 = vmul.f32 %v4119_v63, %v1936_v60  ;;  %v1338_v4 = vadd.f32 %v1306_v16, %v1238_v59  ;;  %v4196_v31 = vld [vmem:[#allocation2 + $0x120] sm:$0xff] }
 0x1cb   : > { %v2299_v24 = vmul.f32 %v2267_v10, %v2043_v21  ;;  %3010 = vtanh.f32 %v2205_v12  ;;  %v1976_v56 = vmul.f32 %v4119_v63, %v1937_v55  ;;  %v1406_v13 = vmul.f32 %v4142_v11, %v3297_v30 }
 0x1cc   : > { %v1437_v51 = vadd.f32 %v1405_v53, %v1337_v52  ;;  %v1505_v48 = vmul.f32 %v4144_v14, %v3304_v37  ;;  %v2045_v15 = vmul.f32 0.5, %v4134_v47  ;;  %v4200_v21 = vadd.f32 %v4130_v33, %v1975_v50  ;;  %v4215_v47 = vld [vmem:[#allocation2 + $0x122] sm:$0xff] }
 0x1cd   : > { %v2323_v49 = vpack.c.bf16 %v2299_v24, %v2298_v22  ;;  %v4203_v32 = vadd.f32 %v4130_v33, %v1976_v56  ;;  %v1438_v28 = vadd.f32 %v1406_v13, %v1338_v4  ;;  %v1506_v41 = vmul.f32 %v4151_v25, %v3304_v37 }
 0x1ce   : > { %v1537_v29 = vadd.f32 %v1505_v48, %v1437_v51  ;;  %v1605_v17 = vmul.f32 %v4157_v7, %v3306_v38  ;;  %v2078_v36 = vmul.f32 0.044715, %v4200_v21  ;;  %v1606_v40 = vmul.f32 %v4169_v2, %v3306_v38 }
 0x1cf   : > { %2882 = vmatmul.mubr.msk.bf16.gmra.mrb[12].mxu1 %vm990_vm2, %v2323_v49  ;;  %v2079_v35 = vmul.f32 0.044715, %v4203_v32  ;;  %v1706_v0 = vmul.f32 %v3308_v42, %v4196_v31  ;;  %v1538_v27 = vadd.f32 %v1506_v41, %v1438_v28  ;;  %v1707_v9 = vmul.f32 %v3308_v42, %v4205_v20 }
 0x1d0   : > { %v1637_v18 = vadd.f32 %v1605_v17, %v1537_v29  ;;  %v1806_v45 = vmul.f32 %v3310_v43, %v4207_v8  ;;  %v2110_v46 = vmul.f32 %v2078_v36, %v4200_v21  ;;  %v1807_v6 = vmul.f32 %v3310_v43, %v4213_v26 }
 0x1d1   : > { %v2111_v39 = vmul.f32 %v2079_v35, %v4203_v32  ;;  %v1906_v3 = vmul.f32 %v4096_v34, %v4215_v47  ;;  %v1638_v62 = vadd.f32 %v1606_v40, %v1538_v27  ;;  %v1907_v19 = vmul.f32 %v4096_v34, %v4224_v23 }
 0x1d2   : > { %v1738_v44 = vadd.f32 %v1706_v0, %v1637_v18  ;;  %v1139_v1 = vmul.f32 %v4140_v61, %v3268_v57  ;;  %v2142_v12 = vmul.f32 %v2110_v46, %v4200_v21  ;;  %v1140_v10 = vmul.f32 %v4142_v11, %v3268_v57 }
 0x1d3   : > { %v2143_v59 = vmul.f32 %v2111_v39, %v4203_v32  ;;  %v1207_v60 = vmul.f32 %v4144_v14, %v3270_v58  ;;  %v1739_v16 = vadd.f32 %v1707_v9, %v1638_v62  ;;  %v1208_v52 = vmul.f32 %v4151_v25, %v3270_v58  ;;  %v4272_v62 = vld [vmem:[#allocation2 + $0x140] sm:$0xff] }
 0x1d4   : > { %v3009_v55 = vpop.eup %3008  ;;  %v1838_v22 = vadd.f32 %v1806_v45, %v1738_v44  ;;  %v1307_v53 = vmul.f32 %v4157_v7, %v3281_v5  ;;  %v2174_v50 = vadd.f32 %v2142_v12, %v4200_v21  ;;  %v1308_v25 = vmul.f32 %v4169_v2, %v3281_v5  ;;  %v4266_v45 = vld [vmem:[#allocation2 + $0x138] sm:$0xff] }
 0x1d5   : > { %v3011_v61 = vpop.eup %3010  ;;  %v2268_v24 = vadd.f32 1.0, %v3009_v55  ;;  %v2175_v56 = vadd.f32 %v2143_v59, %v4203_v32  ;;  %v1239_v4 = vadd.f32 %v1207_v60, %v1139_v1  ;;  %v1839_v13 = vadd.f32 %v1807_v6, %v1739_v16  ;;  %v4274_v44 = vld [vmem:[#allocation2 + $0x139] sm:$0xff] }
 0x1d6   : > { %v2269_v11 = vadd.f32 1.0, %v3011_v61  ;;  %v1938_v51 = vadd.f32 %v1906_v3, %v1838_v22  ;;  %v1240_v14 = vadd.f32 %v1208_v52, %v1140_v10  ;;  %v2206_v49 = vmul.f32 0.7978846, %v2174_v50  ;;  %v4280_v10 = vld [vmem:[#allocation2 + $0x141] sm:$0xff] }
 0x1d7   : > { %v2300_v48 = vmul.f32 %v2268_v24, %v4153_v54  ;;  %v2207_v28 = vmul.f32 0.7978846, %v2175_v56  ;;  %v1939_v7 = vadd.f32 %v1907_v19, %v1839_v13  ;;  %v1339_v17 = vadd.f32 %v1307_v53, %v1239_v4  ;;  %v4294_v4 = vld [vmem:[#allocation2 + $0x142] sm:$0xff] }
 0x1d8   : > { %v2301_v41 = vmul.f32 %v2269_v11, %v2045_v15  ;;  %v1977_v29 = vmul.f32 %v4119_v63, %v1938_v51  ;;  %3012 = vtanh.f32 %v2206_v49  ;;  %v1340_v36 = vadd.f32 %v1308_v25, %v1240_v14 }
 0x1d9   : > { %v1407_v35 = vmul.f32 %v4196_v31, %v3297_v30  ;;  %v1408_v40 = vmul.f32 %v4205_v20, %v3297_v30  ;;  %3014 = vtanh.f32 %v2207_v28  ;;  %v1978_v54 = vmul.f32 %v4119_v63, %v1939_v7 }
 0x1da   : > { %v2324_v0 = vpack.c.bf16 %v2301_v41, %v2300_v48  ;;  %v2016_v27 = vadd.f32 %v4130_v33, %v1977_v29  ;;  %v1507_v18 = vmul.f32 %v4207_v8, %v3304_v37  ;;  %v1508_v9 = vmul.f32 %v4213_v26, %v3304_v37 }
 0x1db   : > { %v1439_v2 = vadd.f32 %v1407_v35, %v1339_v17  ;;  %v1440_v15 = vadd.f32 %v1408_v40, %v1340_v36  ;;  %v2046_v46 = vmul.f32 0.5, %v4200_v21  ;;  %v2047_v39 = vmul.f32 0.5, %v4203_v32  ;;  %v4282_v21 = vld [vmem:[#allocation2 + $0x13a] sm:$0xff] }
 0x1dc   : > { %2885 = vmatprep.mubr.msk.bf16.mxu1 %vm990_vm2, %v2324_v0  ;;  %v2017_v6 = vadd.f32 %v4130_v33, %v1978_v54  ;;  %v2080_v3 = vmul.f32 0.044715, %v2016_v27  ;;  %v1607_v12 = vmul.f32 %v4215_v47, %v3306_v38  ;;  %v1608_v59 = vmul.f32 %v4224_v23, %v3306_v38 }
 0x1dd   : > { %v1539_v19 = vadd.f32 %v1507_v18, %v1439_v2  ;;  %v1540_v1 = vadd.f32 %v1508_v9, %v1440_v15  ;;  %v4284_v32 = vmul.f32 0.5, %v2016_v27  ;;  %v1708_v16 = vmul.f32 %v3308_v42, %v4266_v45 }
 0x1de   : > { %v2081_v60 = vmul.f32 0.044715, %v2017_v6  ;;  %v2112_v55 = vmul.f32 %v2080_v3, %v2016_v27  ;;  %v1709_v53 = vmul.f32 %v3308_v42, %v4272_v62  ;;  %v1808_v61 = vmul.f32 %v3310_v43, %v4274_v44 }
 0x1df   : > { %v1639_v22 = vadd.f32 %v1607_v12, %v1539_v19  ;;  %v1640_v52 = vadd.f32 %v1608_v59, %v1540_v1  ;;  %v1809_v56 = vmul.f32 %v3310_v43, %v4280_v10  ;;  %v1908_v11 = vmul.f32 %v4096_v34, %v4282_v21 }
 0x1e0   : > { %v2113_v24 = vmul.f32 %v2081_v60, %v2017_v6  ;;  %v2144_v50 = vmul.f32 %v2112_v55, %v2016_v27  ;;  %v1141_v14 = vmul.f32 %v4196_v31, %v3268_v57  ;;  %v1142_v48 = vmul.f32 %v4205_v20, %v3268_v57 }
 0x1e1   : > { %v1740_v13 = vadd.f32 %v1708_v16, %v1639_v22  ;;  %v1741_v51 = vadd.f32 %v1709_v53, %v1640_v52  ;;  %v1209_v25 = vmul.f32 %v4207_v8, %v3270_v58  ;;  %v1210_v41 = vmul.f32 %v4213_v26, %v3270_v58  ;;  %v4326_v22 = vld [vmem:[#allocation2 + $0x158] sm:$0xff] }
 0x1e2   : > { %v2145_v49 = vmul.f32 %v2113_v24, %v2017_v6  ;;  %v2176_v28 = vadd.f32 %v2144_v50, %v2016_v27  ;;  %v3013_v7 = vpop.eup %3012  ;;  %v1909_v36 = vmul.f32 %v4096_v34, %v4294_v4  ;;  %v1309_v31 = vmul.f32 %v4215_v47, %v3281_v5  ;;  %v4332_v50 = vld [vmem:[#allocation2 + $0x151] sm:$0xff] }
 0x1e3   : > { %v1840_v29 = vadd.f32 %v1808_v61, %v1740_v13  ;;  %v1841_v17 = vadd.f32 %v1809_v56, %v1741_v51  ;;  %v3015_v35 = vpop.eup %3014  ;;  %v2270_v40 = vadd.f32 1.0, %v3013_v7  ;;  %v1241_v54 = vadd.f32 %v1209_v25, %v1141_v14  ;;  %v4343_v14 = vld [vmem:[#allocation2 + $0x152] sm:$0xff] }
 0x1e4   : > { %v2177_v20 = vadd.f32 %v2145_v49, %v2017_v6  ;;  %v2208_v0 = vmul.f32 0.7978846, %v2176_v28  ;;  %v2271_v27 = vadd.f32 1.0, %v3015_v35  ;;  %v1242_v15 = vadd.f32 %v1210_v41, %v1142_v48  ;;  %v4345_v48 = vld [vmem:[#allocation2 + $0x15a] sm:$0xff] }
 0x1e5   : > { %v1940_v2 = vadd.f32 %v1908_v11, %v1840_v29  ;;  %v1941_v8 = vadd.f32 %v1909_v36, %v1841_v17  ;;  %v2302_v18 = vmul.f32 %v2270_v40, %v2046_v46  ;;  %v1310_v9 = vmul.f32 %v4224_v23, %v3281_v5 }
 0x1e6   : > { %v2209_v26 = vmul.f32 0.7978846, %v2177_v20  ;;  %3016 = vtanh.f32 %v2208_v0  ;;  %v2303_v3 = vmul.f32 %v2271_v27, %v2047_v39  ;;  %v1341_v1 = vadd.f32 %v1309_v31, %v1241_v54  ;;  %v4324_v39 = vld [vmem:[#allocation2 + $0x150] sm:$0xff] }
 0x1e7   : > { %v1979_v19 = vmul.f32 %v4119_v63, %v1940_v2  ;;  %v1980_v47 = vmul.f32 %v4119_v63, %v1941_v8  ;;  %v1342_v12 = vadd.f32 %v1310_v9, %v1242_v15  ;;  %v1409_v59 = vmul.f32 %v4266_v45, %v3297_v30 }
 0x1e8   : > { %3018 = vtanh.f32 %v2209_v26  ;;  %v1410_v60 = vmul.f32 %v4272_v62, %v3297_v30  ;;  %v2325_v46 = vpack.c.bf16 %v2303_v3, %v2302_v18  ;;  %v2049_v55 = vmul.f32 0.5, %v2017_v6  ;;  %v4334_v6 = vld [vmem:[#allocation2 + $0x159] sm:$0xff] }
 0x1e9   : > { %v4319_v16 = vadd.f32 %v4130_v33, %v1979_v19  ;;  %v4322_v23 = vadd.f32 %v4130_v33, %v1980_v47  ;;  %v1441_v52 = vadd.f32 %v1409_v59, %v1341_v1  ;;  %v1509_v61 = vmul.f32 %v4274_v44, %v3304_v37 }
 0x1ea   : > { %v1442_v53 = vadd.f32 %v1410_v60, %v1342_v12  ;;  %v1510_v24 = vmul.f32 %v4280_v10, %v3304_v37  ;;  %2886 = vmatmul.mubr.msk.bf16.gmra.mrb[16].mxu1 %vm990_vm2, %v2325_v46  ;;  %v1609_v13 = vmul.f32 %v4282_v21, %v3306_v38  ;;  %v1610_v51 = vmul.f32 %v4294_v4, %v3306_v38 }
 0x1eb   : > { %v2082_v56 = vmul.f32 0.044715, %v4319_v16  ;;  %v2083_v11 = vmul.f32 0.044715, %v4322_v23  ;;  %v1541_v49 = vadd.f32 %v1509_v61, %v1441_v52  ;;  %v1710_v25 = vmul.f32 %v3308_v42, %v4324_v39 }
 0x1ec   : > { %v1542_v28 = vadd.f32 %v1510_v24, %v1442_v53  ;;  %v1711_v41 = vmul.f32 %v3308_v42, %v4326_v22  ;;  %v1810_v17 = vmul.f32 %v3310_v43, %v4332_v50  ;;  %v1811_v36 = vmul.f32 %v3310_v43, %v4334_v6 }
 0x1ed   : > { %v2114_v7 = vmul.f32 %v2082_v56, %v4319_v16  ;;  %v2115_v29 = vmul.f32 %v2083_v11, %v4322_v23  ;;  %v1641_v31 = vadd.f32 %v1609_v13, %v1541_v49  ;;  %v1910_v40 = vmul.f32 %v4096_v34, %v4343_v14 }
 0x1ee   : > { %v1642_v35 = vadd.f32 %v1610_v51, %v1542_v28  ;;  %v1911_v20 = vmul.f32 %v4096_v34, %v4345_v48  ;;  %v1143_v27 = vmul.f32 %v4266_v45, %v3268_v57  ;;  %v1144_v2 = vmul.f32 %v4272_v62, %v3268_v57 }
 0x1ef   : > { %v2146_v0 = vmul.f32 %v2114_v7, %v4319_v16  ;;  %v2147_v54 = vmul.f32 %v2115_v29, %v4322_v23  ;;  %v1742_v15 = vadd.f32 %v1710_v25, %v1641_v31  ;;  %v1211_v26 = vmul.f32 %v4274_v44, %v3270_v58  ;;  %v4389_v7 = vld [vmem:[#allocation2 + $0x170] sm:$0xff] }
 0x1f0   : > { %v3017_v8 = vpop.eup %3016  ;;  %v1743_v18 = vadd.f32 %v1711_v41, %v1642_v35  ;;  %v1212_v9 = vmul.f32 %v4280_v10, %v3270_v58  ;;  %v1311_v45 = vmul.f32 %v4282_v21, %v3281_v5  ;;  %v1312_v24 = vmul.f32 %v4294_v4, %v3281_v5  ;;  %v4396_v35 = vld [vmem:[#allocation2 + $0x169] sm:$0xff] }
 0x1f1   : > { %v2272_v3 = vadd.f32 1.0, %v3017_v8  ;;  %v2178_v19 = vadd.f32 %v2146_v0, %v4319_v16  ;;  %v2179_v47 = vadd.f32 %v2147_v54, %v4322_v23  ;;  %v1842_v12 = vadd.f32 %v1810_v17, %v1742_v15  ;;  %v4405_v0 = vld [vmem:[#allocation2 + $0x171] sm:$0xff] }
 0x1f2   : > { %v3019_v1 = vpop.eup %3018  ;;  %v1843_v62 = vadd.f32 %v1811_v36, %v1743_v18  ;;  %v1243_v59 = vadd.f32 %v1211_v26, %v1143_v27  ;;  %v1244_v60 = vadd.f32 %v1212_v9, %v1144_v2  ;;  %v1411_v21 = vmul.f32 %v4324_v39, %v3297_v30  ;;  %v4407_v54 = vld [vmem:[#allocation2 + $0x16a] sm:$0xff] }
 0x1f3   : > { %v2273_v46 = vadd.f32 1.0, %v3019_v1  ;;  %v2304_v52 = vmul.f32 %v2272_v3, %v4284_v32  ;;  %v2210_v44 = vmul.f32 0.7978846, %v2178_v19  ;;  %v2211_v53 = vmul.f32 0.7978846, %v2179_v47  ;;  %v4421_v1 = vld [vmem:[#allocation2 + $0x172] sm:$0xff] }
 0x1f4   : > { %v1942_v61 = vadd.f32 %v1910_v40, %v1842_v12  ;;  %v1943_v10 = vadd.f32 %v1911_v20, %v1843_v62  ;;  %v1343_v56 = vadd.f32 %v1311_v45, %v1243_v59  ;;  %v1412_v13 = vmul.f32 %v4326_v22, %v3297_v30 }
 0x1f5   : > { %v2305_v11 = vmul.f32 %v2273_v46, %v2049_v55  ;;  %3020 = vtanh.f32 %v2210_v44  ;;  %v1344_v49 = vadd.f32 %v1312_v24, %v1244_v60  ;;  %v2050_v25 = vmul.f32 0.5, %v4319_v16  ;;  %v4387_v55 = vld [vmem:[#allocation2 + $0x168] sm:$0xff] }
 0x1f6   : > { %3022 = vtanh.f32 %v2211_v53  ;;  %v1981_v51 = vmul.f32 %v4119_v63, %v1942_v61  ;;  %v1982_v32 = vmul.f32 %v4119_v63, %v1943_v10  ;;  %v1443_v41 = vadd.f32 %v1411_v21, %v1343_v56 }
 0x1f7   : > { %v2326_v28 = vpack.c.bf16 %v2305_v11, %v2304_v52  ;;  %v1511_v4 = vmul.f32 %v4332_v50, %v3304_v37  ;;  %v2051_v29 = vmul.f32 0.5, %v4322_v23  ;;  %v1444_v31 = vadd.f32 %v1412_v13, %v1344_v49 }
 0x1f8   : > { %v2020_v17 = vadd.f32 %v4130_v33, %v1981_v51  ;;  %v4394_v36 = vadd.f32 %v4130_v33, %v1982_v32  ;;  %v1512_v16 = vmul.f32 %v4334_v6, %v3304_v37  ;;  %v1611_v20 = vmul.f32 %v4343_v14, %v3306_v38 }
 0x1f9   : > { %2889 = vmatprep.mubr.msk.bf16.mxu1 %vm990_vm2, %v2326_v28  ;;  %v1543_v40 = vadd.f32 %v1511_v4, %v1443_v41  ;;  %v1612_v23 = vmul.f32 %v4345_v48, %v3306_v38  ;;  %v1712_v8 = vmul.f32 %v3308_v42, %v4387_v55  ;;  %v1713_v15 = vmul.f32 %v3308_v42, %v4389_v7 }
 0x1fa   : > { %v2084_v27 = vmul.f32 0.044715, %v2020_v17  ;;  %v2085_v2 = vmul.f32 0.044715, %v4394_v36  ;;  %v4414_v18 = vmul.f32 0.5, %v2020_v17  ;;  %v1544_v26 = vadd.f32 %v1512_v16, %v1444_v31 }
 0x1fb   : > { %v1643_v9 = vadd.f32 %v1611_v20, %v1543_v40  ;;  %v1812_v3 = vmul.f32 %v3310_v43, %v4396_v35  ;;  %v1813_v45 = vmul.f32 %v3310_v43, %v4405_v0  ;;  %v1912_v12 = vmul.f32 %v4096_v34, %v4407_v54 }
 0x1fc   : > { %v2116_v19 = vmul.f32 %v2084_v27, %v2020_v17  ;;  %v2117_v47 = vmul.f32 %v2085_v2, %v4394_v36  ;;  %v1644_v62 = vadd.f32 %v1612_v23, %v1544_v26  ;;  %v1145_v60 = vmul.f32 %v4324_v39, %v3268_v57 }
 0x1fd   : > { %v1744_v59 = vadd.f32 %v1712_v8, %v1643_v9  ;;  %v1146_v46 = vmul.f32 %v4326_v22, %v3268_v57  ;;  %v1213_v53 = vmul.f32 %v4332_v50, %v3270_v58  ;;  %v1214_v61 = vmul.f32 %v4334_v6, %v3270_v58 }
 0x1fe   : > { %v2148_v52 = vmul.f32 %v2116_v19, %v2020_v17  ;;  %v2149_v44 = vmul.f32 %v2117_v47, %v4394_v36  ;;  %v1745_v24 = vadd.f32 %v1713_v15, %v1644_v62  ;;  %v1913_v11 = vmul.f32 %v4096_v34, %v4421_v1  ;;  %v1679_v19 = vld [vmem:[#allocation2 + $0x188] sm:$0xff] }
 0x1ff   : > { %v3021_v10 = vpop.eup %3020  ;;  %v1844_v56 = vadd.f32 %v1812_v3, %v1744_v59  ;;  %v1313_v39 = vmul.f32 %v4343_v14, %v3281_v5  ;;  %v1245_v32 = vadd.f32 %v1213_v53, %v1145_v60  ;;  %v1246_v41 = vadd.f32 %v1214_v61, %v1146_v46  ;;  %v4454_v47 = vld [vmem:[#allocation2 + $0x181] sm:$0xff]  ;;  %v1779_v60 = vld [vmem:[#allocation2 + $0x189] sm:$0xff] }
 0x200   : > { %v3023_v21 = vpop.eup %3022  ;;  %v2274_v22 = vadd.f32 1.0, %v3021_v10  ;;  %v2180_v13 = vadd.f32 %v2148_v52, %v2020_v17  ;;  %v2181_v51 = vadd.f32 %v2149_v44, %v4394_v36  ;;  %v1845_v50 = vadd.f32 %v1813_v45, %v1745_v24  ;;  %v1878_v46 = vld [vmem:[#allocation2 + $0x182] sm:$0xff]  ;;  %v1879_v10 = vld [vmem:[#allocation2 + $0x18a] sm:$0xff] }
 0x201   : > { %v2275_v49 = vadd.f32 1.0, %v3023_v21  ;;  %v1944_v28 = vadd.f32 %v1912_v12, %v1844_v56  ;;  %v1314_v16 = vmul.f32 %v4345_v48, %v3281_v5  ;;  %v1345_v23 = vadd.f32 %v1313_v39, %v1245_v32  ;;  %v1678_v48 = vld [vmem:[#allocation2 + $0x180] sm:$0xff] }
 0x202   : > { %v2306_v6 = vmul.f32 %v2274_v22, %v2050_v25  ;;  %v2212_v4 = vmul.f32 0.7978846, %v2180_v13  ;;  %v2213_v31 = vmul.f32 0.7978846, %v2181_v51  ;;  %v1945_v20 = vadd.f32 %v1913_v11, %v1845_v50 }
 0x203   : > { %v2307_v40 = vmul.f32 %v2275_v49, %v2051_v29  ;;  %v1983_v14 = vmul.f32 %v4119_v63, %v1944_v28  ;;  %v1346_v17 = vadd.f32 %v1314_v16, %v1246_v41  ;;  %v1413_v27 = vmul.f32 %v4387_v55, %v3297_v30 }
 0x204   : > { %3024 = vtanh.f32 %v2212_v4  ;;  %v1414_v2 = vmul.f32 %v4389_v7, %v3297_v30  ;;  %v1984_v25 = vmul.f32 %v4119_v63, %v1945_v20  ;;  %v1513_v9 = vmul.f32 %v4396_v35, %v3304_v37 }
 0x205   : > { %v2327_v8 = vpack.c.bf16 %v2307_v40, %v2306_v6  ;;  %3026 = vtanh.f32 %v2213_v31  ;;  %v4448_v15 = vadd.f32 %v4130_v33, %v1983_v14  ;;  %v1445_v29 = vadd.f32 %v1413_v27, %v1345_v23 }
 0x206   : > { %v1446_v26 = vadd.f32 %v1414_v2, %v1346_v17  ;;  %v1514_v3 = vmul.f32 %v4405_v0, %v3304_v37  ;;  %v2053_v45 = vmul.f32 0.5, %v4394_v36  ;;  %v4459_v12 = vadd.f32 %v4130_v33, %v1984_v25 }
 0x207   : > { %2890 = vmatmul.mubr.msk.bf16.gmra.mrb[20].mxu1 %vm990_vm2, %v2327_v8  ;;  %v2086_v62 = vmul.f32 0.044715, %v4448_v15  ;;  %v1613_v59 = vmul.f32 %v4407_v54, %v3306_v38  ;;  %v1545_v52 = vadd.f32 %v1513_v9, %v1445_v29  ;;  %v1614_v53 = vmul.f32 %v4421_v1, %v3306_v38 }
 0x208   : > { %v1546_v44 = vadd.f32 %v1514_v3, %v1446_v26  ;;  %v1714_v61 = vmul.f32 %v3308_v42, %v1678_v48  ;;  %v2087_v36 = vmul.f32 0.044715, %v4459_v12  ;;  %v1715_v56 = vmul.f32 %v3308_v42, %v1679_v19 }
 0x209   : > { %v2118_v24 = vmul.f32 %v2086_v62, %v4448_v15  ;;  %v1814_v11 = vmul.f32 %v3310_v43, %v4454_v47  ;;  %v1645_v39 = vadd.f32 %v1613_v59, %v1545_v52  ;;  %v1815_v22 = vmul.f32 %v3310_v43, %v1779_v60 }
 0x20a   : > { %v1646_v21 = vadd.f32 %v1614_v53, %v1546_v44  ;;  %v1914_v13 = vmul.f32 %v4096_v34, %v1878_v46  ;;  %v2119_v51 = vmul.f32 %v2087_v36, %v4459_v12  ;;  %v1915_v49 = vmul.f32 %v4096_v34, %v1879_v10  ;;  %v1681_v36 = vld [vmem:[#allocation2 + $0x1a0] sm:$0xff] }
 0x20b   : > { %v2150_v32 = vmul.f32 %v2118_v24, %v4448_v15  ;;  %v1147_v50 = vmul.f32 %v4387_v55, %v3268_v57  ;;  %v1746_v28 = vadd.f32 %v1714_v61, %v1645_v39  ;;  %v1148_v6 = vmul.f32 %v4389_v7, %v3268_v57  ;;  %v1680_v61 = vld [vmem:[#allocation2 + $0x198] sm:$0xff] }
 0x20c   : > { %v1747_v41 = vadd.f32 %v1715_v56, %v1646_v21  ;;  %v1215_v4 = vmul.f32 %v4396_v35, %v3270_v58  ;;  %v2151_v31 = vmul.f32 %v2119_v51, %v4459_v12  ;;  %v1216_v40 = vmul.f32 %v4405_v0, %v3270_v58  ;;  %v1780_v39 = vld [vmem:[#allocation2 + $0x199] sm:$0xff]  ;;  %v1781_v21 = vld [vmem:[#allocation2 + $0x1a1] sm:$0xff] }
 0x20d   : > { %v2182_v16 = vadd.f32 %v2150_v32, %v4448_v15  ;;  %v1315_v20 = vmul.f32 %v4407_v54, %v3281_v5  ;;  %v1846_v55 = vadd.f32 %v1814_v11, %v1746_v28  ;;  %v1316_v57 = vmul.f32 %v4421_v1, %v3281_v5  ;;  %v1880_v32 = vld [vmem:[#allocation2 + $0x19a] sm:$0xff] }
 0x20e   : > { %v3025_v14 = vpop.eup %3024  ;;  %v1847_v23 = vadd.f32 %v1815_v22, %v1747_v41  ;;  %v1247_v17 = vadd.f32 %v1215_v4, %v1147_v50  ;;  %v2183_v35 = vadd.f32 %v2151_v31, %v4459_v12  ;;  %v1248_v8 = vadd.f32 %v1216_v40, %v1148_v6 }
 0x20f   : > { %v3027_v7 = vpop.eup %3026  ;;  %v2276_v27 = vadd.f32 1.0, %v3025_v14  ;;  %v2214_v2 = vmul.f32 0.7978846, %v2182_v16  ;;  %v1946_v29 = vadd.f32 %v1914_v13, %v1846_v55  ;;  %v1415_v1 = vmul.f32 %v1678_v48, %v3297_v30 }
 0x210   : > { %v2277_v25 = vadd.f32 1.0, %v3027_v7  ;;  %v1947_v26 = vadd.f32 %v1915_v49, %v1847_v23  ;;  %v1347_v58 = vadd.f32 %v1315_v20, %v1247_v17  ;;  %v2215_v54 = vmul.f32 0.7978846, %v2183_v35  ;;  %v1881_v49 = vld [vmem:[#allocation2 + $0x1a2] sm:$0xff] }
 0x211   : > { %v2308_v0 = vmul.f32 %v2276_v27, %v4414_v18  ;;  %3028 = vtanh.f32 %v2214_v2  ;;  %v1348_v9 = vadd.f32 %v1316_v57, %v1248_v8  ;;  %v1985_v62 = vmul.f32 %v4119_v63, %v1946_v29 }
 0x212   : > { %v2309_v3 = vmul.f32 %v2277_v25, %v2053_v45  ;;  %v1986_v5 = vmul.f32 %v4119_v63, %v1947_v26  ;;  %3030 = vtanh.f32 %v2215_v54  ;;  %v1416_v59 = vmul.f32 %v1679_v19, %v3297_v30 }
 0x213   : > { %v4498_v44 = vadd.f32 %v4130_v33, %v1985_v62  ;;  %v1447_v18 = vadd.f32 %v1415_v1, %v1347_v58  ;;  %v1515_v24 = vmul.f32 %v4454_v47, %v3304_v37  ;;  %v1516_v56 = vmul.f32 %v1779_v60, %v3304_v37 }
 0x214   : > { %v2328_v52 = vpack.c.bf16 %v2309_v3, %v2308_v0  ;;  %v4501_v53 = vadd.f32 %v4130_v33, %v1986_v5  ;;  %v1448_v45 = vadd.f32 %v1416_v59, %v1348_v9  ;;  %v1615_v19 = vmul.f32 %v1878_v46, %v3306_v38 }
 0x215   : > { %v2088_v30 = vmul.f32 0.044715, %v4498_v44  ;;  %v1616_v11 = vmul.f32 %v1879_v10, %v3306_v38  ;;  %v1547_v22 = vadd.f32 %v1515_v24, %v1447_v18  ;;  %v1716_v51 = vmul.f32 %v3308_v42, %v1680_v61 }
 0x216   : > { %2893 = vmatprep.mubr.msk.bf16.mxu1 %vm990_vm2, %v2328_v52  ;;  %v2089_v48 = vmul.f32 0.044715, %v4501_v53  ;;  %v1548_v13 = vadd.f32 %v1516_v56, %v1448_v45  ;;  %v1717_v47 = vmul.f32 %v3308_v42, %v1681_v36  ;;  %v1816_v46 = vmul.f32 %v3310_v43, %v1780_v39 }
 0x217   : > { %v2120_v37 = vmul.f32 %v2088_v30, %v4498_v44  ;;  %v1647_v50 = vadd.f32 %v1615_v19, %v1547_v22  ;;  %v1817_v38 = vmul.f32 %v3310_v43, %v1781_v21  ;;  %v1916_v42 = vmul.f32 %v4096_v34, %v1880_v32 }
 0x218   : > { %v2121_v60 = vmul.f32 %v2089_v48, %v4501_v53  ;;  %v1648_v28 = vadd.f32 %v1616_v11, %v1548_v13  ;;  %v1917_v16 = vmul.f32 %v4096_v34, %v1881_v49  ;;  %v2054_v23 = vmul.f32 0.5, %v4448_v15 }
 0x219   : > { %v2152_v10 = vmul.f32 %v2120_v37, %v4498_v44  ;;  %v1748_v4 = vadd.f32 %v1716_v51, %v1647_v50  ;;  %v2055_v57 = vmul.f32 0.5, %v4459_v12  ;;  %v2057_v36 = vmul.f32 0.5, %v4501_v53 }
 0x21a   : > { %v2153_v41 = vmul.f32 %v2121_v60, %v4501_v53  ;;  %v1749_v31 = vadd.f32 %v1717_v47, %v1648_v28  ;;  %v4537_v47 = vld [vmem:[%s4722_s8] ss:$0 sm:$0xff] }
 0x21b   : > { %v3029_v6 = vpop.eup %3028  ;;  %v2184_v20 = vadd.f32 %v2152_v10, %v4498_v44  ;;  %v1848_v43 = vadd.f32 %v1816_v46, %v1748_v4  ;;  %v4542_v60 = vld [vmem:[%s4723_s9] ss:$0 sm:$0xff]  ;;  %v3043_v4 = vld [vmem:[%s3158_s20 + $0x10] sm:$0xff] }
 0x21c   : > { %v2278_v40 = vadd.f32 1.0, %v3029_v6  ;;  %v2185_v14 = vadd.f32 %v2153_v41, %v4501_v53  ;;  %v3031_v55 = vpop.eup %3030  ;;  %v1849_v17 = vadd.f32 %v1817_v38, %v1749_v31 }
 0x21d   : > { %v2279_v7 = vadd.f32 1.0, %v3031_v55  ;;  %v2216_v27 = vmul.f32 0.7978846, %v2184_v20  ;;  %v1948_v2 = vadd.f32 %v1916_v42, %v1848_v43 }
 0x21e   : > { %v2217_v35 = vmul.f32 0.7978846, %v2185_v14  ;;  %v1949_v8 = vadd.f32 %v1917_v16, %v1849_v17  ;;  %v2310_v25 = vmul.f32 %v2278_v40, %v2054_v23  ;;  %v3044_v16 = vld [vmem:[%s3158_s20] sm:$0xff]  ;;  %v3045_v14 = vld [vmem:[%s3158_s20 + $0x18] sm:$0xff]  ;;  %v3046_v23 = vld [vmem:[%s3158_s20 + $0x8] sm:$0xff] }
 0x21f   : > { %v2311_v29 = vmul.f32 %v2279_v7, %v2055_v57  ;;  %3032 = vtanh.f32 %v2216_v27  ;;  %v1987_v34 = vmul.f32 %v4119_v63, %v1948_v2 }
 0x220   : > { %3034 = vtanh.f32 %v2217_v35  ;;  %v1988_v26 = vmul.f32 %v4119_v63, %v1949_v8  ;;  %v2056_v63 = vmul.f32 0.5, %v4498_v44 }
 0x221   : > { %v2329_v58 = vpack.c.bf16 %v2311_v29, %v2310_v25  ;;  %v2026_v15 = vadd.f32 %v4130_v33, %v1987_v34 }
 0x222   : > { %v2027_v0 = vadd.f32 %v4130_v33, %v1988_v26  ;;  %v3047_v26 = vld [vmem:[%s3158_s20 + $0x30] sm:$0xff] }
 0x223   : > { %2894 = vmatmul.mubr.msk.bf16.gmra.mrb[24].mxu1 %vm990_vm2, %v2329_v58  ;;  %v2090_v12 = vmul.f32 0.044715, %v2026_v15  ;;  %v2058_v21 = vmul.f32 0.5, %v2026_v15 }
 0x224   : > { %v2091_v54 = vmul.f32 0.044715, %v2027_v0  ;;  %v2059_v22 = vmul.f32 0.5, %v2027_v0 }
 0x225   : > { %v2122_v9 = vmul.f32 %v2090_v12, %v2026_v15 }
 0x226   : > { %v2123_v3 = vmul.f32 %v2091_v54, %v2027_v0 }
 0x227   : > { %v2154_v62 = vmul.f32 %v2122_v9, %v2026_v15  ;;  %v3049_v9 = vld [vmem:[%s3158_s20 + $0x38] sm:$0xff] }
 0x228   : > { %v2155_v5 = vmul.f32 %v2123_v3, %v2027_v0 }
 0x229   : > { %v3033_v1 = vpop.eup %3032  ;;  %v2186_v18 = vadd.f32 %v2154_v62, %v2026_v15  ;;  %v3050_v62 = vld [vmem:[%s3158_s20 + $0x28] sm:$0xff] }
 0x22a   : > { %v3035_v59 = vpop.eup %3034  ;;  %v2280_v52 = vadd.f32 1.0, %v3033_v1  ;;  %v2187_v61 = vadd.f32 %v2155_v5, %v2027_v0  ;;  %v3048_v0 = vld [vmem:[%s3158_s20 + $0x20] sm:$0xff] }
 0x22b   : > { %v2281_v45 = vadd.f32 1.0, %v3035_v59  ;;  %v2218_v24 = vmul.f32 0.7978846, %v2186_v18 }
 0x22c   : > { %v2219_v33 = vmul.f32 0.7978846, %v2187_v61  ;;  %v2312_v56 = vmul.f32 %v2280_v52, %v2056_v63 }
 0x22d   : > { %v2313_v30 = vmul.f32 %v2281_v45, %v2057_v36  ;;  %3036 = vtanh.f32 %v2218_v24 }
 0x22e   : > { %3038 = vtanh.f32 %v2219_v33 }
 0x22f   : > { %v2330_v48 = vpack.c.bf16 %v2313_v30, %v2312_v56  ;;  %v3051_v56 = vld [vmem:[%s3158_s20 + $0x50] sm:$0xff] }
 0x231   : > { %2897 = vmatprep.mubr.msk.bf16.mxu1 %vm990_vm2, %v2330_v48 }
 0x237   : > { %v3037_v19 = vpop.eup %3036 }
 0x238   : > { %v3039_v11 = vpop.eup %3038  ;;  %v2282_v39 = vadd.f32 1.0, %v3037_v19  ;;  %v3052_v19 = vld [vmem:[%s3158_s20 + $0x40] sm:$0xff] }
 0x239   : > { %v2283_v13 = vadd.f32 1.0, %v3039_v11 }
 0x23a   : > { %v2314_v44 = vmul.f32 %v2282_v39, %v2058_v21  ;;  %v3053_v21 = vld [vmem:[%s3158_s20 + $0x58] sm:$0xff] }
 0x23b   : > { %v2315_v51 = vmul.f32 %v2283_v13, %v2059_v22  ;;  %v3054_v13 = vld [vmem:[%s3158_s20 + $0x48] sm:$0xff] }
 0x23d   : > { %v2331_v53 = vpack.c.bf16 %v2315_v51, %v2314_v44 }
 0x23f   : > { %2898 = vmatmul.mubr.msk.bf16.gmra.mrb[28].mxu1 %vm990_vm2, %v2331_v53 }
 0x24d   : > { %v2871_v37 = vpop.f32.mrb[0].mxu1 }
 0x24e   : > { %v2558_v32 = vmul.f32 %v2871_v37, %v4537_v47  ;;  %v2422_v49 = vpop.f32.mrb[1].mxu1 }
 0x24f   : > { %v2556_v50 = vmul.f32 %v4537_v47, %v2422_v49  ;;  %v2872_v28 = vpop.f32.mrb[2].mxu1 }
 0x250   : > { %v2597_v46 = vadd.f32 %v4542_v60, %v2558_v32  ;;  %v2559_v38 = vmul.f32 %v2872_v28, %v4537_v47  ;;  %v2425_v10 = vpop.f32.mrb[3].mxu1 }
 0x251   : > { %v2595_v41 = vadd.f32 %v4542_v60, %v2556_v50  ;;  %v2557_v6 = vmul.f32 %v4537_v47, %v2425_v10 }
 0x252   : > { %v2629_v31 = vadd.f32 %v3043_v4, %v2597_v46  ;;  %v2598_v42 = vadd.f32 %v4542_v60, %v2559_v38 }
 0x253   : > { %v2627_v40 = vadd.f32 %v3044_v16, %v2595_v41  ;;  %v2596_v20 = vadd.f32 %v4542_v60, %v2557_v6  ;;  %v3055_v41 = vld [vmem:[%s3158_s20 + $0x70] sm:$0xff] }
 0x254   : > { %2661 = vst.msk [vmem:[%s4553_s11 + $0x10] sm:$0xff] %vm410_vm1, %v2629_v31  ;;  %v2630_v55 = vadd.f32 %v3045_v14, %v2598_v42  ;;  %v3056_v31 = vld [vmem:[%s3158_s20 + $0x60] sm:$0xff]  ;;  %v3058_v14 = vld [vmem:[%s3158_s20 + $0x68] sm:$0xff] }
 0x255   : > { %2659 = vst.msk [vmem:[%s4553_s11] sm:$0xff] %vm410_vm1, %v2627_v40  ;;  %v2628_v43 = vadd.f32 %v3046_v23, %v2596_v20  ;;  %v3057_v40 = vld [vmem:[%s3158_s20 + $0x78] sm:$0xff] }
 0x256   : > { %2662 = vst.msk [vmem:[%s4553_s11 + $0x18] sm:$0xff] %vm410_vm1, %v2630_v55 }
 0x257   : > { %2660 = vst.msk [vmem:[%s4553_s11 + $0x8] sm:$0xff] %vm410_vm1, %v2628_v43 }
 0x268   : > { %v2875_v17 = vpop.f32.mrb[4].mxu1 }
 0x269   : > { %v2562_v57 = vmul.f32 %v2875_v17, %v4537_v47  ;;  %v2438_v7 = vpop.f32.mrb[5].mxu1 }
 0x26a   : > { %v2560_v27 = vmul.f32 %v4537_v47, %v2438_v7  ;;  %v2876_v35 = vpop.f32.mrb[6].mxu1 }
 0x26b   : > { %v2601_v2 = vadd.f32 %v4542_v60, %v2562_v57  ;;  %v2563_v8 = vmul.f32 %v2876_v35, %v4537_v47  ;;  %v2441_v25 = vpop.f32.mrb[7].mxu1 }
 0x26c   : > { %v2599_v29 = vadd.f32 %v4542_v60, %v2560_v27  ;;  %v2561_v34 = vmul.f32 %v4537_v47, %v2441_v25 }
 0x26d   : > { %v2633_v58 = vadd.f32 %v3047_v26, %v2601_v2  ;;  %v2602_v15 = vadd.f32 %v4542_v60, %v2563_v8 }
 0x26e   : > { %v2631_v12 = vadd.f32 %v3048_v0, %v2599_v29  ;;  %v2600_v54 = vadd.f32 %v4542_v60, %v2561_v34  ;;  %v3059_v29 = vld [vmem:[%s3158_s20 + $0x90] sm:$0xff] }
 0x26f   : > { %2665 = vst.msk [vmem:[%s4553_s11 + $0x30] sm:$0xff] %vm410_vm1, %v2633_v58  ;;  %v2634_v3 = vadd.f32 %v3049_v9, %v2602_v15  ;;  %v3060_v58 = vld [vmem:[%s3158_s20 + $0x80] sm:$0xff]  ;;  %v3062_v9 = vld [vmem:[%s3158_s20 + $0x88] sm:$0xff] }
 0x270   : > { %2663 = vst.msk [vmem:[%s4553_s11 + $0x20] sm:$0xff] %vm410_vm1, %v2631_v12  ;;  %v2632_v5 = vadd.f32 %v3050_v62, %v2600_v54  ;;  %v3061_v12 = vld [vmem:[%s3158_s20 + $0x98] sm:$0xff] }
 0x271   : > { %2666 = vst.msk [vmem:[%s4553_s11 + $0x38] sm:$0xff] %vm410_vm1, %v2634_v3 }
 0x272   : > { %2664 = vst.msk [vmem:[%s4553_s11 + $0x28] sm:$0xff] %vm410_vm1, %v2632_v5 }
 0x284   : > { %v2879_v1 = vpop.f32.mrb[8].mxu1 }
 0x285   : > { %v2566_v59 = vmul.f32 %v2879_v1, %v4537_v47  ;;  %v2454_v52 = vpop.f32.mrb[9].mxu1 }
 0x286   : > { %v2564_v18 = vmul.f32 %v4537_v47, %v2454_v52  ;;  %v2880_v61 = vpop.f32.mrb[10].mxu1 }
 0x287   : > { %v2605_v63 = vadd.f32 %v4542_v60, %v2566_v59  ;;  %v2567_v36 = vmul.f32 %v2880_v61, %v4537_v47  ;;  %v2457_v45 = vpop.f32.mrb[11].mxu1 }
 0x288   : > { %v2603_v24 = vadd.f32 %v4542_v60, %v2564_v18  ;;  %v2565_v33 = vmul.f32 %v4537_v47, %v2457_v45 }
 0x289   : > { %v2637_v30 = vadd.f32 %v3051_v56, %v2605_v63  ;;  %v2606_v48 = vadd.f32 %v4542_v60, %v2567_v36 }
 0x28a   : > { %v2635_v11 = vadd.f32 %v3052_v19, %v2603_v24  ;;  %v2604_v39 = vadd.f32 %v4542_v60, %v2565_v33  ;;  %v3063_v24 = vld [vmem:[%s3158_s20 + $0xb0] sm:$0xff] }
 0x28b   : > { %2669 = vst.msk [vmem:[%s4553_s11 + $0x50] sm:$0xff] %vm410_vm1, %v2637_v30  ;;  %v2638_v22 = vadd.f32 %v3053_v21, %v2606_v48  ;;  %v3064_v30 = vld [vmem:[%s3158_s20 + $0xa0] sm:$0xff]  ;;  %v3066_v21 = vld [vmem:[%s3158_s20 + $0xa8] sm:$0xff] }
 0x28c   : > { %2667 = vst.msk [vmem:[%s4553_s11 + $0x40] sm:$0xff] %vm410_vm1, %v2635_v11  ;;  %v2636_v44 = vadd.f32 %v3054_v13, %v2604_v39  ;;  %v3065_v11 = vld [vmem:[%s3158_s20 + $0xb8] sm:$0xff] }
 0x28d   : > { %2670 = vst.msk [vmem:[%s4553_s11 + $0x58] sm:$0xff] %vm410_vm1, %v2638_v22 }
 0x28e   : > { %2668 = vst.msk [vmem:[%s4553_s11 + $0x48] sm:$0xff] %vm410_vm1, %v2636_v44 }
 0x2a2   : > { %v2883_v51 = vpop.f32.mrb[12].mxu1 }
 0x2a3   : > { %v2570_v53 = vmul.f32 %v2883_v51, %v4537_v47  ;;  %v2470_v37 = vpop.f32.mrb[13].mxu1 }
 0x2a4   : > { %v2568_v32 = vmul.f32 %v4537_v47, %v2470_v37  ;;  %v2884_v49 = vpop.f32.mrb[14].mxu1 }
 0x2a5   : > { %v2609_v50 = vadd.f32 %v4542_v60, %v2570_v53  ;;  %v2571_v28 = vmul.f32 %v2884_v49, %v4537_v47  ;;  %v2473_v46 = vpop.f32.mrb[15].mxu1 }
 0x2a6   : > { %v2607_v38 = vadd.f32 %v4542_v60, %v2568_v32  ;;  %v2569_v10 = vmul.f32 %v4537_v47, %v2473_v46 }
 0x2a7   : > { %v2641_v6 = vadd.f32 %v3055_v41, %v2609_v50  ;;  %v2610_v4 = vadd.f32 %v4542_v60, %v2571_v28 }
 0x2a8   : > { %v2639_v42 = vadd.f32 %v3056_v31, %v2607_v38  ;;  %v2608_v16 = vadd.f32 %v4542_v60, %v2569_v10  ;;  %v3067_v38 = vld [vmem:[%s3158_s20 + $0xd0] sm:$0xff] }
 0x2a9   : > { %2673 = vst.msk [vmem:[%s4553_s11 + $0x70] sm:$0xff] %vm410_vm1, %v2641_v6  ;;  %v2642_v20 = vadd.f32 %v3057_v40, %v2610_v4  ;;  %v3068_v6 = vld [vmem:[%s3158_s20 + $0xc0] sm:$0xff]  ;;  %v3070_v40 = vld [vmem:[%s3158_s20 + $0xc8] sm:$0xff] }
 0x2aa   : > { %2671 = vst.msk [vmem:[%s4553_s11 + $0x60] sm:$0xff] %vm410_vm1, %v2639_v42  ;;  %v2640_v55 = vadd.f32 %v3058_v14, %v2608_v16  ;;  %v3069_v42 = vld [vmem:[%s3158_s20 + $0xd8] sm:$0xff] }
 0x2ab   : > { %2674 = vst.msk [vmem:[%s4553_s11 + $0x78] sm:$0xff] %vm410_vm1, %v2642_v20 }
 0x2ac   : > { %2672 = vst.msk [vmem:[%s4553_s11 + $0x68] sm:$0xff] %vm410_vm1, %v2640_v55 }
 0x2bd   : > { %v2887_v23 = vpop.f32.mrb[16].mxu1 }
 0x2be   : > { %v2574_v43 = vmul.f32 %v2887_v23, %v4537_v47  ;;  %v2486_v17 = vpop.f32.mrb[17].mxu1 }
 0x2bf   : > { %v2572_v57 = vmul.f32 %v4537_v47, %v2486_v17  ;;  %v2888_v7 = vpop.f32.mrb[18].mxu1 }
 0x2c0   : > { %v2613_v27 = vadd.f32 %v4542_v60, %v2574_v43  ;;  %v2575_v35 = vmul.f32 %v2888_v7, %v4537_v47  ;;  %v2489_v2 = vpop.f32.mrb[19].mxu1 }
 0x2c1   : > { %v2611_v8 = vadd.f32 %v4542_v60, %v2572_v57  ;;  %v2573_v25 = vmul.f32 %v4537_v47, %v2489_v2 }
 0x2c2   : > { %v2645_v34 = vadd.f32 %v3059_v29, %v2613_v27  ;;  %v2614_v26 = vadd.f32 %v4542_v60, %v2575_v35 }
 0x2c3   : > { %v2643_v15 = vadd.f32 %v3060_v58, %v2611_v8  ;;  %v2612_v0 = vadd.f32 %v4542_v60, %v2573_v25  ;;  %v3071_v8 = vld [vmem:[%s3158_s20 + $0xf0] sm:$0xff] }
 0x2c4   : > { %2677 = vst.msk [vmem:[%s4553_s11 + $0x90] sm:$0xff] %vm410_vm1, %v2645_v34  ;;  %v2646_v54 = vadd.f32 %v3061_v12, %v2614_v26  ;;  %v3072_v34 = vld [vmem:[%s3158_s20 + $0xe0] sm:$0xff]  ;;  %v3074_v12 = vld [vmem:[%s3158_s20 + $0xe8] sm:$0xff] }
 0x2c5   : > { %2675 = vst.msk [vmem:[%s4553_s11 + $0x80] sm:$0xff] %vm410_vm1, %v2643_v15  ;;  %v2644_v3 = vadd.f32 %v3062_v9, %v2612_v0  ;;  %v3073_v15 = vld [vmem:[%s3158_s20 + $0xf8] sm:$0xff] }
 0x2c6   : > { %2678 = vst.msk [vmem:[%s4553_s11 + $0x98] sm:$0xff] %vm410_vm1, %v2646_v54 }
 0x2c7   : > { %2676 = vst.msk [vmem:[%s4553_s11 + $0x88] sm:$0xff] %vm410_vm1, %v2644_v3 }
 0x2da   : > { %v2891_v62 = vpop.f32.mrb[20].mxu1 }
 0x2db   : > { %v2578_v5 = vmul.f32 %v2891_v62, %v4537_v47  ;;  %v2502_v1 = vpop.f32.mrb[21].mxu1 }
 0x2dc   : > { %v2576_v59 = vmul.f32 %v4537_v47, %v2502_v1  ;;  %v2892_v52 = vpop.f32.mrb[22].mxu1 }
 0x2dd   : > { %v2617_v18 = vadd.f32 %v4542_v60, %v2578_v5  ;;  %v2579_v61 = vmul.f32 %v2892_v52, %v4537_v47  ;;  %v2505_v63 = vpop.f32.mrb[23].mxu1 }
 0x2de   : > { %v2615_v36 = vadd.f32 %v4542_v60, %v2576_v59  ;;  %v2577_v45 = vmul.f32 %v4537_v47, %v2505_v63 }
 0x2df   : > { %v2649_v33 = vadd.f32 %v3063_v24, %v2617_v18  ;;  %v2618_v56 = vadd.f32 %v4542_v60, %v2579_v61 }
 0x2e0   : > { %v2647_v48 = vadd.f32 %v3064_v30, %v2615_v36  ;;  %v2616_v19 = vadd.f32 %v4542_v60, %v2577_v45 }
 0x2e1   : > { %2681 = vst.msk [vmem:[%s4553_s11 + $0xb0] sm:$0xff] %vm410_vm1, %v2649_v33  ;;  %v2650_v39 = vadd.f32 %v3065_v11, %v2618_v56 }
 0x2e2   : > { %2679 = vst.msk [vmem:[%s4553_s11 + $0xa0] sm:$0xff] %vm410_vm1, %v2647_v48  ;;  %v2648_v22 = vadd.f32 %v3066_v21, %v2616_v19 }
 0x2e3   : > { %2682 = vst.msk [vmem:[%s4553_s11 + $0xb8] sm:$0xff] %vm410_vm1, %v2650_v39 }
 0x2e4   : > { %2680 = vst.msk [vmem:[%s4553_s11 + $0xa8] sm:$0xff] %vm410_vm1, %v2648_v22 }
 0x2f6   : > { %v2895_v13 = vpop.f32.mrb[24].mxu1 }
 0x2f7   : > { %v2582_v44 = vmul.f32 %v2895_v13, %v4537_v47  ;;  %v2518_v51 = vpop.f32.mrb[25].mxu1 }
 0x2f8   : > { %v2580_v53 = vmul.f32 %v4537_v47, %v2518_v51  ;;  %v2896_v37 = vpop.f32.mrb[26].mxu1 }
 0x2f9   : > { %v2621_v32 = vadd.f32 %v4542_v60, %v2582_v44  ;;  %v2583_v49 = vmul.f32 %v2896_v37, %v4537_v47  ;;  %v2521_v50 = vpop.f32.mrb[27].mxu1 }
 0x2fa   : > { %v2619_v28 = vadd.f32 %v4542_v60, %v2580_v53  ;;  %v2581_v46 = vmul.f32 %v4537_v47, %v2521_v50 }
 0x2fb   : > { %v2653_v10 = vadd.f32 %v3067_v38, %v2621_v32  ;;  %v2622_v41 = vadd.f32 %v4542_v60, %v2583_v49 }
 0x2fc   : > { %v2651_v4 = vadd.f32 %v3068_v6, %v2619_v28  ;;  %v2620_v31 = vadd.f32 %v4542_v60, %v2581_v46 }
 0x2fd   : > { %2685 = vst.msk [vmem:[%s4553_s11 + $0xd0] sm:$0xff] %vm410_vm1, %v2653_v10  ;;  %v2654_v16 = vadd.f32 %v3069_v42, %v2622_v41 }
 0x2fe   : > { %2683 = vst.msk [vmem:[%s4553_s11 + $0xc0] sm:$0xff] %vm410_vm1, %v2651_v4  ;;  %v2652_v20 = vadd.f32 %v3070_v40, %v2620_v31 }
 0x2ff   : > { %2686 = vst.msk [vmem:[%s4553_s11 + $0xd8] sm:$0xff] %vm410_vm1, %v2654_v16 }
 0x300   : > { %2684 = vst.msk [vmem:[%s4553_s11 + $0xc8] sm:$0xff] %vm410_vm1, %v2652_v20 }
 0x312   : > { %v2899_v14 = vpop.f32.mrb[28].mxu1 }
 0x313   : > { %v2586_v55 = vmul.f32 %v2899_v14, %v4537_v47  ;;  %v2534_v23 = vpop.f32.mrb[29].mxu1 }
 0x314   : > { %v2584_v43 = vmul.f32 %v4537_v47, %v2534_v23  ;;  %v2900_v17 = vpop.f32.mrb[30].mxu1 }
 0x315   : > { %v2625_v57 = vadd.f32 %v4542_v60, %v2586_v55  ;;  %v2587_v7 = vmul.f32 %v2900_v17, %v4537_v47  ;;  %v2537_v27 = vpop.f32.mrb[31].mxu1 }
 0x316   : > { %v2623_v35 = vadd.f32 %v4542_v60, %v2584_v43  ;;  %v2585_v2 = vmul.f32 %v4537_v47, %v2537_v27 }
 0x317   : > { %v2657_v25 = vadd.f32 %v3071_v8, %v2625_v57  ;;  %v2626_v29 = vadd.f32 %v4542_v60, %v2587_v7 }
 0x318   : > { %v2655_v26 = vadd.f32 %v3072_v34, %v2623_v35  ;;  %v2624_v58 = vadd.f32 %v4542_v60, %v2585_v2 }
 0x319   : > { %2689 = vst.msk [vmem:[%s4553_s11 + $0xf0] sm:$0xff] %vm410_vm1, %v2657_v25  ;;  %v2658_v0 = vadd.f32 %v3073_v15, %v2626_v29 }
 0x31a   : > { %2687 = vst.msk [vmem:[%s4553_s11 + $0xe0] sm:$0xff] %vm410_vm1, %v2655_v26  ;;  %v2656_v54 = vadd.f32 %v3074_v12, %v2624_v58 }
 0x31b   : > { %2690 = vst.msk [vmem:[%s4553_s11 + $0xf8] sm:$0xff] %vm410_vm1, %v2658_v0 }
 0x31c   : > { %2688 = vst.msk [vmem:[%s4553_s11 + $0xe8] sm:$0xff] %vm410_vm1, %v2656_v54 }
 0x31d PF: > { %s20_s13 = sadd.s32 1, %s3081_s13  }
 0x31e   : > { %p17_p4 = scmp.ge.s32.totalorder %s20_s13, 4  }
 0x320   :  { %19 = sbr.rel (!%p17_p4) target bundleno = 1 (0x1), region = 92 }

// kernel: convnet_forward.14
= control target key start
LH: loop header
LB: loop body
LE: loop exit
PB: predicated region body
PF: predicated region fallthrough
CT: control target
= control target key end

     0   :  { %s640_s15 = smov 0   ;;  %s687_s0 = inlined_call_operand.vmem [shape: f32[2,4,2,4,32], index: 0, kind: input, shape index: {}]   ;;  %s688_s1 = inlined_call_operand.vmem [shape: bf16[4,16,32], index: 1, kind: input, shape index: {}]   ;;  %s689_s2 = inlined_call_operand.vmem [shape: f32[1,32], index: 2, kind: input, shape index: {}]   ;;  %s690_s3 = inlined_call_operand.vmem [shape: f32[1,32], index: 3, kind: input, shape index: {}]   ;;  %s691_s4 = inlined_call_operand.vmem [shape: f32[2,16,32], index: 4, kind: output, shape index: {}]  }
   0x1 LB: > { %s520_s16 = sadd.s32 4294967295, %s610_s15   ;;  %p524_p0 = scmp.ge.s32.totalorder %s610_s15, 1  ;;  %s610_s15 = sphi %s640_s15, %s14_s15  }
   0x2   : > { %p162_p1 = scmp.lt.s32.totalorder %s610_s15, 3 }
   0x4   : > { %p163_p2 = pnand %p524_p0, %p162_p1 }
   0x5   : > { %p188_p3 = scmp.lt.s32.totalorder (!%p163_p2), %s520_s16, 1  ;;  %v600_v0 = vld [vmem:[%s688_s1 + $0x10] sm:$0xff] (!%p163_p2)   ;;  %v612_v1 = vmov (!%p163_p2), 0.0   ;;  %vm613_vm0 = vmmov (!%p163_p2), 0   ;;  %v601_v2 = vld [vmem:[%s688_s1 + $0x8] sm:$0xff] (!%p163_p2)   ;;  %vm233_vm1 = vcmask (!%p163_p2), 130048  }
   0x6   : > { %166 = sbr.rel (%p163_p2) target bundleno = 367 (0x16f), region = 36  ;;  %563 = vmatprep.subr.bf16.mxu0 (!%p163_p2), %v612_v1  ;;  %551 = vmatprep.subr.bf16.mxu1 (!%p163_p2), %v612_v1  ;;  %v603_v8 = vld [vmem:[%s688_s1 + $0x18] sm:$0xff] (!%p163_p2)   ;;  %s614_s27 = smov (!%p163_p2), 112   ;;  %v602_v10 = vld [vmem:[%s688_s1] sm:$0xff] (!%p163_p2)   ;;  %vm462_vm2 = vcmask (!%p163_p2), 261120  }
   0x7   : > { %564 = vmatpush3.bf16.msra.mxu0 (!%p163_p2), %v600_v0  ;;  %565 = vmatprep.mubr.msk.bf16.mxu0 (!%p163_p2), %vm613_vm0, %v612_v1  ;;  %v537_v18 = vld [vmem:[%s689_s2] ss:$0 sm:$0xff] (!%p163_p2) }
   0x8   : > { %553 = vmatprep.mubr.msk.bf16.mxu1 (!%p163_p2), %vm613_vm0, %v612_v1  ;;  %569 = vmatprep.subr.bf16.mxu0 (!%p163_p2), %v612_v1  ;;  %v538_v21 = vld [vmem:[%s690_s3] ss:$0 sm:$0xff] (!%p163_p2) }
   0x9   : > { %552 = vmatpush3.bf16.msra.mxu1 (!%p163_p2), %v601_v2 }
   0xa   : > { %557 = vmatprep.subr.bf16.mxu1 (!%p163_p2), %v612_v1 }
   0xd   : > { %s693_s16 = smov (!%p188_p3, %s520_s16), 1 }
   0xe   : > { %s541_s21 = sshll.u32 %s693_s16, 5  ;;  %s542_s6 = sshll.u32 %s693_s16, 4 }
   0xf   : > { %s192_s24 = scalar_lea.vmem %s687_s0, %s541_s21  ;;  %s197_s11 = scalar_lea.vmem %s691_s4, %s542_s6 }
  0x10   : > { %v596_v3 = vld [vmem:[%s192_s24] ss:$8 sps:$4 sm:$0xff]   ;;  %v597_v4 = vld [vmem:[%s192_s24 + $0x10] ss:$8 sps:$4 sm:$0xff]   ;;  %v598_v6 = vld [vmem:[%s192_s24 + $0x4] ss:$8 sps:$4 sm:$0xff]  }
  0x11   : > { %v223_v5 = vpack.c.bf16 %v597_v4, %v596_v3  ;;  %v599_v7 = vld [vmem:[%s192_s24 + $0x14] ss:$8 sps:$4 sm:$0xff]  }
  0x12   : > { %v336_v9 = vpack.c.bf16 %v599_v7, %v598_v6 }
  0x13   : > { %225 = vrot.lane.b32.xlu0 %v223_v5, %s614_s27 }
  0x14   : > { %566 = vmatmul.mubr.msk.bf16.vlgmr.msra.gmra.mrb[0].mxu0 %vm233_vm1, %v336_v9 }
  0x15   : > { %570 = vmatpush3.bf16.msra.mxu0 %v603_v8  ;;  %571 = vmatprep.mubr.msk.bf16.mxu0 %vm613_vm0, %v612_v1 }
  0x17   : > { %390 = vrot.lane.b32.xlu0 %v336_v9, %s614_s27 }
  0x85   : > { %v226_v11 = vpop.permute.xlu0 %225 }
  0x86   : > { %554 = vmatmul.mubr.msk.bf16.vlgmr.msra.gmra.mrb[0].mxu1 %vm233_vm1, %v226_v11 }
  0x87   : > { %558 = vmatpush3.bf16.msra.mxu1 %v602_v10  ;;  %559 = vmatprep.mubr.msk.bf16.mxu1 %vm613_vm0, %v612_v1 }
  0x89   : > { %v391_v12 = vpop.permute.xlu0 %390 }
  0x8a   : > { %572 = vmatmul.mubr.msk.bf16.vlgmr.msra.gmra.mrb[0].mxu0 %vm233_vm1, %v391_v12 }
  0x92   : > { %560 = vmatmul.mubr.msk.bf16.vlgmr.msra.gmra.mrb[0].mxu1 %vm233_vm1, %v223_v5 }
 0x15d   : > { %v435_v13 = vpop.f32.mrb[0].mxu0 }
 0x15e   : > { %v573_v14 = vpop.f32.mrb[1].mxu0 }
 0x15f   : > { %v438_v15 = vpop.f32.mrb[2].mxu0 }
 0x160   : > { %v574_v16 = vpop.f32.mrb[3].mxu0 }
 0x165   : > { %v321_v17 = vpop.f32.mrb[0].mxu1 }
 0x166   : > { %v575_v19 = vadd.f32 %v435_v13, %v321_v17  ;;  %v561_v20 = vpop.f32.mrb[1].mxu1 }
 0x167   : > { %v324_v22 = vpop.f32.mrb[2].mxu1 }
 0x168   : > { %v451_v23 = vmul.f32 %v575_v19, %v537_v18  ;;  %v576_v24 = vadd.f32 %v438_v15, %v324_v22  ;;  %v562_v25 = vpop.f32.mrb[3].mxu1 }
 0x16a   : > { %v460_v26 = vadd.f32 %v538_v21, %v451_v23  ;;  %v452_v27 = vmul.f32 %v576_v24, %v537_v18 }
 0x16c   : > { %463 = vst.msk [vmem:[%s197_s11] sm:$0xff] %vm462_vm2, %v460_v26  ;;  %v461_v28 = vadd.f32 %v538_v21, %v452_v27 }
 0x16e   : > { %464 = vst.msk [vmem:[%s197_s11 + $0x8] sm:$0xff] %vm462_vm2, %v461_v28 }
 0x16f PF: > { %s14_s15 = sadd.s32 1, %s610_s15  }
 0x170   : > { %p11_p4 = scmp.ge.s32.totalorder %s14_s15, 4  }
 0x172   :  { %13 = sbr.rel (!%p11_p4) target bundleno = 1 (0x1), region = 66 }

// kernel: convnet_forward.17
= control target key start
LH: loop header
LB: loop body
LE: loop exit
PB: predicated region body
PF: predicated region fallthrough
CT: control target
= control target key end

     0   :  { %s679_s15 = smov 0   ;;  %s738_s0 = inlined_call_operand.vmem [shape: f32[2,2,2,2,64], index: 0, kind: input, shape index: {}]   ;;  %s739_s1 = inlined_call_operand.vmem [shape: bf16[4,32,64], index: 1, kind: input, shape index: {}]   ;;  %s740_s2 = inlined_call_operand.vmem [shape: f32[1,64], index: 2, kind: input, shape index: {}]   ;;  %s741_s3 = inlined_call_operand.vmem [shape: f32[1,64], index: 3, kind: input, shape index: {}]   ;;  %s742_s4 = inlined_call_operand.vmem [shape: f32[2,4,64], index: 4, kind: output, shape index: {}]  }
   0x1 LB: > { %s541_s16 = sadd.s32 4294967295, %s649_s15   ;;  %p545_p0 = scmp.ge.s32.totalorder %s649_s15, 1  ;;  %s649_s15 = sphi %s679_s15, %s14_s15  }
   0x2   : > { %p162_p1 = scmp.lt.s32.totalorder %s649_s15, 3 }
   0x4   : > { %p163_p2 = pnand %p545_p0, %p162_p1 }
   0x5   : > { %p187_p3 = scmp.lt.s32.totalorder (!%p163_p2), %s541_s16, 1  ;;  %v633_v0 = vld [vmem:[%s739_s1 + $0x20] sm:$0xff] (!%p163_p2)   ;;  %v651_v1 = vmov (!%p163_p2), 0.0   ;;  %v634_v2 = vld [vmem:[%s739_s1 + $0x28] sm:$0xff] (!%p163_p2)   ;;  %vm652_vm0 = vmmov (!%p163_p2), 0   ;;  %v635_v3 = vld [vmem:[%s739_s1 + $0x10] sm:$0xff] (!%p163_p2)  }
   0x6   : > { %166 = sbr.rel (%p163_p2) target bundleno = 365 (0x16d), region = 36  ;;  %594 = vmatprep.subr.bf16.mxu0 (!%p163_p2), %v651_v1  ;;  %578 = vmatprep.subr.bf16.mxu1 (!%p163_p2), %v651_v1  ;;  %v636_v4 = vld [vmem:[%s739_s1 + $0x18] sm:$0xff] (!%p163_p2)   ;;  %vm244_vm1 = vcmask (!%p163_p2), 261120   ;;  %v637_v8 = vld [vmem:[%s739_s1 + $0x30] sm:$0xff] (!%p163_p2)   ;;  %s653_s5 = smov (!%p163_p2), 96   ;;  %v638_v11 = vld [vmem:[%s739_s1] sm:$0xff] (!%p163_p2)  }
   0x7   : > { %595 = vmatpush3.bf16.msra.mxu0 (!%p163_p2), %v633_v0  ;;  %598 = vmatprep.mubr.msk.bf16.mxu0 (!%p163_p2), %vm652_vm0, %v651_v1  ;;  %v639_v10 = vld [vmem:[%s739_s1 + $0x38] sm:$0xff] (!%p163_p2)   ;;  %v640_v13 = vld [vmem:[%s739_s1 + $0x8] sm:$0xff] (!%p163_p2)   ;;  %v561_v20 = vld [vmem:[%s740_s2] ss:$0 sm:$0xff] (!%p163_p2)  ;;  %vm486_vm2 = vcmask (!%p163_p2), 519168  }
   0x8   : > { %596 = vmatprep.subr.bf16.mxu0 (!%p163_p2), %v651_v1  ;;  %582 = vmatprep.mubr.msk.bf16.mxu1 (!%p163_p2), %vm652_vm0, %v651_v1  ;;  %v562_v23 = vld [vmem:[%s741_s3] ss:$0 sm:$0xff] (!%p163_p2) }
   0x9   : > { %579 = vmatpush3.bf16.msra.mxu1 (!%p163_p2), %v635_v3 }
   0xa   : > { %580 = vmatprep.subr.bf16.mxu1 (!%p163_p2), %v651_v1 }
   0xb   : > { %597 = vmatpush3.bf16.msra.mxu0 (!%p163_p2), %v634_v2 }
   0xc   : > { %602 = vmatprep.subr.bf16.mxu0 (!%p163_p2), %v651_v1 }
   0xd   : > { %s744_s16 = smov (!%p187_p3, %s541_s16), 1  ;;  %581 = vmatpush3.bf16.msra.mxu1 %v636_v4 }
   0xe   : > { %s565_s23 = sshll.u32 %s744_s16, 3  ;;  %586 = vmatprep.subr.bf16.mxu1 %v651_v1  ;;  %s548_s14 = sshll.u32 %s744_s16, 2 }
   0xf   : > { %s191_s26 = scalar_lea.vmem %s738_s0, %s565_s23  ;;  %s195_s21 = scalar_lea.vmem %s742_s4, %s548_s14 }
  0x10   : > { %v641_v5 = vld.sshfl [vmem:[%s191_s26] sm:$0xf pattern:$0x76325410] }
  0x11   : > { %v642_v6 = vld.sshfl [vmem:[%s191_s26 + $0x2] sm:$0xf pattern:$0x76325410]  ;;  %v228_v7 = vpack.c.bf16 %v641_v5, %v641_v5 }
  0x12   : > { %v354_v9 = vpack.c.bf16 %v642_v6, %v642_v6 }
  0x13   : > { %230 = vrot.lane.b32.xlu0 %v228_v7, %s653_s5 }
  0x14   : > { %599 = vmatmul.mubr.msk.bf16.vlgmr.msra.gmra.mrb[0].mxu0 %vm244_vm1, %v354_v9 }
  0x15   : > { %603 = vmatpush3.bf16.msra.mxu0 %v637_v8  ;;  %606 = vmatprep.mubr.msk.bf16.mxu0 %vm652_vm0, %v651_v1 }
  0x16   : > { %604 = vmatprep.subr.bf16.mxu0 %v651_v1 }
  0x17   : > { %412 = vrot.lane.b32.xlu0 %v354_v9, %s653_s5 }
  0x19   : > { %605 = vmatpush3.bf16.msra.mxu0 %v639_v10 }
  0x85   : > { %v231_v12 = vpop.permute.xlu0 %230 }
  0x86   : > { %583 = vmatmul.mubr.msk.bf16.vlgmr.msra.gmra.mrb[0].mxu1 %vm244_vm1, %v231_v12 }
  0x87   : > { %587 = vmatpush3.bf16.msra.mxu1 %v638_v11  ;;  %590 = vmatprep.mubr.msk.bf16.mxu1 %vm652_vm0, %v651_v1 }
  0x88   : > { %588 = vmatprep.subr.bf16.mxu1 %v651_v1 }
  0x89   : > { %v413_v14 = vpop.permute.xlu0 %412 }
  0x8a   : > { %607 = vmatmul.mubr.msk.bf16.vlgmr.msra.gmra.mrb[0].mxu0 %vm244_vm1, %v413_v14 }
  0x8b   : > { %589 = vmatpush3.bf16.msra.mxu1 %v640_v13 }
  0x92   : > { %591 = vmatmul.mubr.msk.bf16.vlgmr.msra.gmra.mrb[0].mxu1 %vm244_vm1, %v228_v7 }
 0x15d   : > { %v463_v15 = vpop.f32.mrb[0].mxu0 }
 0x15e   : > { %v608_v16 = vpop.f32.mrb[1].mxu0 }
 0x15f   : > { %v466_v17 = vpop.f32.mrb[2].mxu0 }
 0x160   : > { %v609_v18 = vpop.f32.mrb[3].mxu0 }
 0x165   : > { %v337_v19 = vpop.f32.mrb[0].mxu1 }
 0x166   : > { %v610_v21 = vadd.f32 %v463_v15, %v337_v19  ;;  %v592_v22 = vpop.f32.mrb[1].mxu1 }
 0x167   : > { %v340_v24 = vpop.f32.mrb[2].mxu1 }
 0x168   : > { %v477_v25 = vmul.f32 %v610_v21, %v561_v20  ;;  %v593_v26 = vpop.f32.mrb[3].mxu1 }
 0x16a   : > { %v485_v27 = vadd.f32 %v562_v23, %v477_v25 }
 0x16c   : > { %487 = vst.msk [vmem:[%s195_s21] sm:$0xf] %vm486_vm2, %v485_v27 }
 0x16d PF: > { %s14_s15 = sadd.s32 1, %s649_s15  }
 0x16e   : > { %p11_p4 = scmp.ge.s32.totalorder %s14_s15, 4  }
 0x170   :  { %13 = sbr.rel (!%p11_p4) target bundleno = 1 (0x1), region = 66 }

// kernel: convnet_forward.18
= control target key start
LH: loop header
LB: loop body
LE: loop exit
PB: predicated region body
PF: predicated region fallthrough
CT: control target
= control target key end

     0   :  { %s963_s13 = smov 0   ;;  %s1056_s0 = inlined_call_operand.vmem [shape: f32[2,4,64], index: 0, kind: input, shape index: {}]   ;;  %s1057_s1 = inlined_call_operand.vmem [shape: bf16[64,128], index: 1, kind: input, shape index: {}]   ;;  %s1058_s2 = inlined_call_operand.vmem [shape: f32[1,128], index: 2, kind: input, shape index: {}]   ;;  %s1059_s3 = inlined_call_operand.vmem [shape: f32[1,128], index: 3, kind: input, shape index: {}]   ;;  %s1060_s4 = inlined_call_operand.vmem [shape: f32[9,128], index: 4, kind: input, shape index: {}]   ;;  %s1061_s5 = inlined_call_operand.vmem [shape: f32[1,128], index: 5, kind: input, shape index: {}]   ;;  %s1062_s6 = inlined_call_operand.vmem [shape: f32[1,128], index: 6, kind: input, shape index: {}]   ;;  %s1063_s7 = inlined_call_operand.vmem [shape: bf16[128,64], index: 7, kind: input, shape index: {}]   ;;  %s1064_s8 = inlined_call_operand.vmem [shape: f32[1,64], index: 8, kind: input, shape index: {}]   ;;  %s1065_s9 = inlined_call_operand.vmem [shape: f32[1,64], index: 9, kind: input, shape index: {}]   ;;  %s1066_s10 = inlined_call_operand.vmem [shape: f32[2,4,64], index: 10, kind: output, shape index: {}]  }
   0x1 LB: > { %s792_s14 = sadd.s32 4294967295, %s903_s13   ;;  %p796_p0 = scmp.ge.s32.totalorder %s903_s13, 1  ;;  %s903_s13 = sphi %s963_s13, %s20_s13  }
   0x2   : > { %p311_p1 = scmp.lt.s32.totalorder %s903_s13, 3 }
   0x4   : > { %p312_p2 = pnand %p796_p0, %p311_p1 }
   0x5   : > { %v879_v0 = vld [vmem:[%s1057_s1] sm:$0xff] (!%p312_p2)   ;;  %v905_v1 = vmov (!%p312_p2), 0.0   ;;  %v880_v2 = vld [vmem:[%s1057_s1 + $0x8] sm:$0xff] (!%p312_p2)   ;;  %vm906_vm0 = vmmov (!%p312_p2), 0   ;;  %p347_p3 = scmp.lt.s32.totalorder (!%p312_p2), %s792_s14, 1  ;;  %v881_v3 = vld [vmem:[%s1057_s1 + $0x10] sm:$0xff] (!%p312_p2)   ;;  %v467_v28 = vlaneseq (!%p312_p2) }
   0x6   : > { %315 = sbr.rel (%p312_p2) target bundleno = 544 (0x220), region = 60  ;;  %836 = vmatprep.subr.bf16.mxu0 (!%p312_p2), %v905_v1  ;;  %459 = vst [vmem:[#allocation2] sm:$0xf] (!%p312_p2), %v905_v1  ;;  %460 = vst [vmem:[#allocation2 + $0x4] sm:$0xf] (!%p312_p2), %v905_v1  ;;  %848 = vmatprep.subr.bf16.mxu1 (!%p312_p2), %v905_v1  ;;  %v882_v4 = vld [vmem:[%s1057_s1 + $0x18] sm:$0xff] (!%p312_p2)  }
   0x7   : > { %461 = vst [vmem:[#allocation2 + $0x8] sm:$0xf] (!%p312_p2), %v905_v1  ;;  %462 = vst [vmem:[#allocation2 + $0xc] sm:$0xf] (!%p312_p2), %v905_v1  ;;  %837 = vmatpush3.bf16.msra.mxu0 (!%p312_p2), %v879_v0  ;;  %844 = vmatprep.mubr.msk.bf16.mxu0 (!%p312_p2), %vm906_vm0, %v905_v1  ;;  %vm390_vm1 = vcmask (!%p312_p2), 523264   ;;  %v883_v7 = vld [vmem:[%s1063_s7] sm:$0xff] (!%p312_p2)  }
   0x8   : > { %838 = vmatprep.subr.bf16.mxu0 (!%p312_p2), %v905_v1  ;;  %864 = vmatprep.mubr.msk.bf16.mxu1 (!%p312_p2), %vm906_vm0, %v905_v1  ;;  %v884_v8 = vld [vmem:[%s1063_s7 + $0x8] sm:$0xff] (!%p312_p2)   ;;  %v885_v9 = vld [vmem:[%s1063_s7 + $0x10] sm:$0xff] (!%p312_p2)   ;;  %v886_v10 = vld [vmem:[%s1063_s7 + $0x18] sm:$0xff] (!%p312_p2)   ;;  %v907_v29 = vmov (!%p312_p2), 1983009808   ;;  %v468_v31 = vshrl.u32 (!%p312_p2), %v467_v28, 7 }
   0x9   : > { %849 = vmatpush3.bf16.msra.mxu1 (!%p312_p2), %v883_v7  ;;  %v887_v11 = vld [vmem:[%s1063_s7 + $0x20] sm:$0xff] (!%p312_p2)   ;;  %v888_v12 = vld [vmem:[%s1063_s7 + $0x28] sm:$0xff] (!%p312_p2)   ;;  %v889_v13 = vld [vmem:[%s1063_s7 + $0x30] sm:$0xff] (!%p312_p2)   ;;  %v465_v30 = vunpack.c.l.s4 (!%p312_p2), %v907_v29  ;;  %vm737_vm2 = vcmask (!%p312_p2), 519168  }
   0xa   : > { %850 = vmatprep.subr.bf16.mxu1 (!%p312_p2), %v905_v1  ;;  %v890_v14 = vld [vmem:[%s1063_s7 + $0x38] sm:$0xff] (!%p312_p2)   ;;  %v804_v15 = vld [vmem:[%s1058_s2] ss:$0 sm:$0xff] (!%p312_p2)  ;;  %v483_v32 = vsub.s32 (!%p312_p2), 0, %v468_v31  ;;  %v491_v33 = vsub.s32 (!%p312_p2), 1, %v468_v31  ;;  %v501_v39 = vsub.s32 (!%p312_p2), 2, %v468_v31 }
   0xb   : > { %839 = vmatpush3.bf16.msra.mxu0 (!%p312_p2), %v880_v2  ;;  %v805_v17 = vld [vmem:[%s1059_s3] ss:$0 sm:$0xff] (!%p312_p2)  ;;  %v466_v34 = vunpack.c.0.s8 (!%p312_p2), %v465_v30  ;;  %v511_v51 = vsub.s32 (!%p312_p2), 3, %v468_v31  ;;  %v521_v55 = vsub.s32 (!%p312_p2), 4, %v468_v31  ;;  %v531_v57 = vsub.s32 (!%p312_p2), 5, %v468_v31 }
   0xc   : > { %840 = vmatprep.subr.bf16.mxu0 (!%p312_p2), %v905_v1  ;;  %v477_v35 = vld [vmem:[%s1060_s4] sm:$0xff] (!%p312_p2)  ;;  %v542_v58 = vsub.s32 (!%p312_p2), 6, %v468_v31  ;;  %v552_v7 = vsub.s32 (!%p312_p2), 7, %v468_v31  ;;  %v807_v30 = vld [vmem:[%s1060_s4 + $0x8] ss:$0 sm:$0xff] (!%p312_p2) }
   0xd   : > { %s1068_s14 = smov (!%p347_p3, %s792_s14), 1  ;;  %851 = vmatpush3.bf16.msra.mxu1 %v884_v8  ;;  %v484_v37 = vrot.slane %v477_v35, %v483_v32  ;;  %v492_v38 = vrot.slane %v477_v35, %v491_v33  ;;  %v1028_v42 = vsub.s32 %v466_v34, %v468_v31  ;;  %v479_v43 = vld [vmem:[#allocation2] sm:$0x3]  ;;  %v502_v48 = vrot.slane %v477_v35, %v501_v39  ;;  %v497_v50 = vld [vmem:[#allocation2 + $0x2] sm:$0x3] }
   0xe   : > { %s797_s21 = sshll.u32 %s1068_s14, 2  ;;  %852 = vmatprep.subr.bf16.mxu1 %v905_v1  ;;  %v487_v44 = vld [vmem:[#allocation2 + $0x1] sm:$0x3]  ;;  %v512_v56 = vrot.slane %v477_v35, %v511_v51  ;;  %v522_v63 = vrot.slane %v477_v35, %v521_v55  ;;  %v549_v29 = vld [vmem:[#allocation2 + $0xd] sm:$0x3] }
   0xf   : > { %s350_s24 = scalar_lea.vmem %s1056_s0, %s797_s21  ;;  %841 = vmatpush3.bf16.msra.mxu0 %v881_v3  ;;  %v485_v46 = vmul.f32 %v484_v37, %v479_v43  ;;  %v493_v47 = vmul.f32 %v492_v38, %v487_v44  ;;  %v503_v54 = vmul.f32 %v502_v48, %v497_v50  ;;  %s354_s27 = scalar_lea.vmem %s1066_s10, %s797_s21 }
  0x10   : > { %v991_v5 = vld [vmem:[%s350_s24] sm:$0xf]  ;;  %842 = vmatprep.subr.bf16.mxu0 %v905_v1 }
  0x11   : > { %v357_v6 = vpack.c.bf16 %v991_v5, %v991_v5  ;;  %853 = vmatpush3.bf16.msra.mxu1 %v885_v9  ;;  %v495_v53 = vadd.f32 %v493_v47, %v485_v46 }
  0x12   : > { %854 = vmatprep.subr.bf16.mxu1 %v905_v1 }
  0x13   : > { %843 = vmatpush3.bf16.msra.mxu0 %v882_v4  ;;  %v505_v62 = vadd.f32 %v503_v54, %v495_v53 }
  0x15   : > { %855 = vmatpush3.bf16.msra.mxu1 %v886_v10 }
  0x16   : > { %845 = vmatmul.mubr.msk.bf16.vlgmr.msra.gmra.mrb[0].mxu0 %vm390_vm1, %v357_v6  ;;  %856 = vmatprep.subr.bf16.mxu1 %v905_v1  ;;  %v532_v6 = vrot.slane %v477_v35, %v531_v57 }
  0x19   : > { %857 = vmatpush3.bf16.msra.mxu1 %v887_v11 }
  0x1a   : > { %858 = vmatprep.subr.bf16.mxu1 %v905_v1 }
  0x1d   : > { %859 = vmatpush3.bf16.msra.mxu1 %v888_v12 }
  0x1e   : > { %860 = vmatprep.subr.bf16.mxu1 %v905_v1 }
  0x21   : > { %861 = vmatpush3.bf16.msra.mxu1 %v889_v13 }
  0x22   : > { %862 = vmatprep.subr.bf16.mxu1 %v905_v1 }
  0x25   : > { %863 = vmatpush3.bf16.msra.mxu1 %v890_v14 }
  0xe9   : > { %v428_v16 = vpop.f32.mrb[0].mxu0 }
  0xea   : > { %v441_v18 = vmul.f32 %v804_v15, %v428_v16  ;;  %v846_v19 = vpop.f32.mrb[1].mxu0  ;;  %v543_v15 = vrot.slane %v477_v35, %v542_v58 }
  0xeb   : > { %v431_v20 = vpop.f32.mrb[2].mxu0 }
  0xec   : > { %v449_v21 = vadd.f32 %v805_v17, %v441_v18  ;;  %v847_v22 = vpop.f32.mrb[3].mxu0 }
  0xed   : > { %v539_v22 = vld [vmem:[#allocation2 + $0xc] sm:$0x3] }
  0xee   : > { %v451_v23 = vmul.f32 0.044715, %v449_v21  ;;  %v450_v40 = vmul.f32 0.5, %v449_v21  ;;  %v545_v33 = vmul.f32 %v543_v15, %v539_v22 }
  0xf0   : > { %v452_v24 = vmul.f32 %v451_v23, %v449_v21  ;;  %v553_v23 = vrot.slane %v477_v35, %v552_v7 }
  0xf2   : > { %v453_v25 = vmul.f32 %v452_v24, %v449_v21 }
  0xf4   : > { %v454_v26 = vadd.f32 %v453_v25, %v449_v21 }
  0xf6   : > { %v455_v27 = vmul.f32 0.7978846, %v454_v26 }
  0xf8   : > { %891 = vtanh.f32 %v455_v27 }
 0x102   : > { %v892_v36 = vpop.eup %891 }
 0x103   : > { %v457_v41 = vadd.f32 1.0, %v892_v36 }
 0x105   : > { %v458_v45 = vmul.f32 %v457_v41, %v450_v40  ;;  %v555_v40 = vmul.f32 %v553_v23, %v549_v29 }
 0x107   : > { %v470_v49 = vrot.slane %v458_v45, %v1028_v42  ;;  %806 = vst.sshfl [vmem:[#allocation2 + $0x5] sm:$0x3 pattern:$0x76325410] %v458_v45  ;;  %v808_v45 = vld [vmem:[%s1061_s5] ss:$0 sm:$0xff] }
 0x109   : > { %v471_v52 = vcombine.high %v470_v49, %v470_v49 }
 0x10b   : > { %476 = vst [vmem:[#allocation2 + $0x9] sm:$0x3] %v471_v52 }
 0x10e   : > { %v480_v59 = vld [vmem:[#allocation2 + $0x4] sm:$0x3]  ;;  %v498_v61 = vld [vmem:[#allocation2 + $0x6] sm:$0x3] }
 0x10f   : > { %v488_v60 = vld [vmem:[#allocation2 + $0x5] sm:$0x3]  ;;  %v486_v0 = vmul.f32 %v484_v37, %v480_v59  ;;  %v504_v9 = vmul.f32 %v502_v48, %v498_v61  ;;  %v809_v48 = vld [vmem:[%s1062_s6] ss:$0 sm:$0xff] }
 0x110   : > { %v494_v1 = vmul.f32 %v492_v38, %v488_v60  ;;  %v507_v2 = vld [vmem:[#allocation2 + $0x4] sm:$0x3]  ;;  %v527_v10 = vld [vmem:[#allocation2 + $0x6] sm:$0x3]  ;;  %v559_v38 = vld [vmem:[#allocation2 + $0xe] sm:$0x3] }
 0x111   : > { %v517_v3 = vld [vmem:[#allocation2 + $0x5] sm:$0x3]  ;;  %v513_v4 = vmul.f32 %v512_v56, %v507_v2  ;;  %v533_v21 = vmul.f32 %v532_v6, %v527_v10  ;;  %v565_v44 = vmul.f32 %v807_v30, %v559_v38 }
 0x112   : > { %v496_v8 = vadd.f32 %v494_v1, %v486_v0  ;;  %v508_v11 = vld [vmem:[#allocation2 + $0x8] sm:$0x3]  ;;  %v523_v14 = vmul.f32 %v522_v63, %v517_v3  ;;  %v528_v20 = vld [vmem:[#allocation2 + $0xa] sm:$0x3] }
 0x113   : > { %v515_v12 = vadd.f32 %v513_v4, %v505_v62  ;;  %v518_v13 = vld [vmem:[#allocation2 + $0x9] sm:$0x3]  ;;  %v514_v17 = vmul.f32 %v512_v56, %v508_v11  ;;  %v534_v32 = vmul.f32 %v532_v6, %v528_v20 }
 0x114   : > { %v506_v16 = vadd.f32 %v504_v9, %v496_v8  ;;  %v538_v18 = vld [vmem:[#allocation2 + $0x8] sm:$0x3]  ;;  %v524_v25 = vmul.f32 %v522_v63, %v518_v13  ;;  %v558_v34 = vld [vmem:[#allocation2 + $0xa] sm:$0x3] }
 0x115   : > { %v525_v19 = vadd.f32 %v523_v14, %v515_v12  ;;  %v548_v26 = vld [vmem:[#allocation2 + $0x9] sm:$0x3]  ;;  %v544_v28 = vmul.f32 %v543_v15, %v538_v18  ;;  %v564_v41 = vmul.f32 %v807_v30, %v558_v34  ;;  %v818_v12 = vld [vmem:[%s1064_s8] ss:$0 sm:$0xff] }
 0x116   : > { %v516_v24 = vadd.f32 %v514_v17, %v506_v16  ;;  %v554_v37 = vmul.f32 %v553_v23, %v548_v26  ;;  %v819_v14 = vld [vmem:[%s1065_s9] ss:$0 sm:$0xff] }
 0x117   : > { %v535_v27 = vadd.f32 %v533_v21, %v525_v19 }
 0x118   : > { %v526_v31 = vadd.f32 %v524_v25, %v516_v24 }
 0x119   : > { %v546_v36 = vadd.f32 %v544_v28, %v535_v27 }
 0x11a   : > { %v536_v39 = vadd.f32 %v534_v32, %v526_v31 }
 0x11b   : > { %v556_v35 = vadd.f32 %v554_v37, %v546_v36 }
 0x11c   : > { %v547_v43 = vadd.f32 %v545_v33, %v536_v39 }
 0x11d   : > { %v566_v46 = vadd.f32 %v564_v41, %v556_v35 }
 0x11e   : > { %v557_v47 = vadd.f32 %v555_v40, %v547_v43 }
 0x11f   : > { %v575_v49 = vmul.f32 %v808_v45, %v566_v46 }
 0x120   : > { %v567_v50 = vadd.f32 %v565_v44, %v557_v47 }
 0x121   : > { %v584_v51 = vadd.f32 %v809_v48, %v575_v49 }
 0x122   : > { %v576_v52 = vmul.f32 %v808_v45, %v567_v50 }
 0x123   : > { %v588_v53 = vmul.f32 0.044715, %v584_v51  ;;  %v586_v3 = vmul.f32 0.5, %v584_v51 }
 0x124   : > { %v585_v54 = vadd.f32 %v809_v48, %v576_v52 }
 0x125   : > { %v590_v55 = vmul.f32 %v588_v53, %v584_v51 }
 0x126   : > { %v589_v56 = vmul.f32 0.044715, %v585_v54  ;;  %v587_v4 = vmul.f32 0.5, %v585_v54 }
 0x127   : > { %v592_v57 = vmul.f32 %v590_v55, %v584_v51 }
 0x128   : > { %v591_v58 = vmul.f32 %v589_v56, %v585_v54 }
 0x129   : > { %v594_v59 = vadd.f32 %v592_v57, %v584_v51 }
 0x12a   : > { %v593_v60 = vmul.f32 %v591_v58, %v585_v54 }
 0x12b   : > { %v596_v61 = vmul.f32 0.7978846, %v594_v59 }
 0x12c   : > { %v595_v62 = vadd.f32 %v593_v60, %v585_v54 }
 0x12d   : > { %893 = vtanh.f32 %v596_v61 }
 0x12e   : > { %v597_v63 = vmul.f32 0.7978846, %v595_v62 }
 0x130   : > { %895 = vtanh.f32 %v597_v63 }
 0x137   : > { %v894_v0 = vpop.eup %893 }
 0x138   : > { %v600_v1 = vadd.f32 1.0, %v894_v0 }
 0x13a   : > { %v896_v2 = vpop.eup %895  ;;  %v602_v7 = vmul.f32 %v600_v1, %v586_v3 }
 0x13b   : > { %v601_v6 = vadd.f32 1.0, %v896_v2 }
 0x13d   : > { %v603_v8 = vmul.f32 %v601_v6, %v587_v4 }
 0x13f   : > { %v606_v9 = vcombine.low %v602_v7, %v603_v8 }
 0x141   : > { %v613_v10 = vrot.slane %v606_v9, %v1028_v42 }
 0x143   : > { %v615_v11 = vpack.c.bf16 %v613_v10, %v613_v10 }
 0x145   : > { %865 = vmatmul.mubr.bf16.vlgmr.msra.gmra.mrb[0].mxu1 %v615_v11 }
 0x218   : > { %v714_v13 = vpop.f32.mrb[0].mxu1 }
 0x219   : > { %v727_v15 = vmul.f32 %v818_v12, %v714_v13  ;;  %v866_v16 = vpop.f32.mrb[1].mxu1 }
 0x21a   : > { %v717_v17 = vpop.f32.mrb[2].mxu1 }
 0x21b   : > { %v735_v18 = vadd.f32 %v819_v14, %v727_v15  ;;  %v867_v19 = vpop.f32.mrb[3].mxu1 }
 0x21d   : > { %v736_v42 = vadd.f32 %v735_v18, %v991_v5 }
 0x21f   : > { %738 = vst.msk [vmem:[%s354_s27] sm:$0xf] %vm737_vm2, %v736_v42 }
 0x220 PF: > { %s20_s13 = sadd.s32 1, %s903_s13  }
 0x221   : > { %p17_p4 = scmp.ge.s32.totalorder %s20_s13, 4  }
 0x223   :  { %19 = sbr.rel (!%p17_p4) target bundleno = 1 (0x1), region = 92 }

// kernel: convnet_forward.15
= control target key start
LH: loop header
LB: loop body
LE: loop exit
PB: predicated region body
PF: predicated region fallthrough
CT: control target
= control target key end

     0   :  { %s993_s13 = smov 0   ;;  %s1089_s0 = inlined_call_operand.vmem [shape: f32[2,16,32], index: 0, kind: input, shape index: {}]   ;;  %s1090_s1 = inlined_call_operand.vmem [shape: bf16[32,64], index: 1, kind: input, shape index: {}]   ;;  %s1091_s2 = inlined_call_operand.vmem [shape: f32[1,64], index: 2, kind: input, shape index: {}]   ;;  %s1092_s3 = inlined_call_operand.vmem [shape: f32[1,64], index: 3, kind: input, shape index: {}]   ;;  %s1093_s4 = inlined_call_operand.vmem [shape: f32[9,64], index: 4, kind: input, shape index: {}]   ;;  %s1094_s5 = inlined_call_operand.vmem [shape: f32[1,64], index: 5, kind: input, shape index: {}]   ;;  %s1095_s6 = inlined_call_operand.vmem [shape: f32[1,64], index: 6, kind: input, shape index: {}]   ;;  %s1096_s7 = inlined_call_operand.vmem [shape: bf16[64,32], index: 7, kind: input, shape index: {}]   ;;  %s1097_s8 = inlined_call_operand.vmem [shape: f32[1,32], index: 8, kind: input, shape index: {}]   ;;  %s1098_s9 = inlined_call_operand.vmem [shape: f32[1,32], index: 9, kind: input, shape index: {}]   ;;  %s1099_s10 = inlined_call_operand.vmem [shape: f32[2,16,32], index: 10, kind: output, shape index: {}]  }
   0x1 LB: > { %s844_s14 = sadd.s32 4294967295, %s934_s13   ;;  %p848_p0 = scmp.ge.s32.totalorder %s934_s13, 1  ;;  %s934_s13 = sphi %s993_s13, %s20_s13  }
   0x2   : > { %p312_p1 = scmp.lt.s32.totalorder %s934_s13, 3 }
   0x4   : > { %p313_p2 = pnand %p848_p0, %p312_p1 }
   0x5   : > { %v910_v0 = vld [vmem:[%s1090_s1] sm:$0xff] (!%p313_p2)   ;;  %v936_v1 = vmov (!%p313_p2), 0.0   ;;  %v911_v2 = vld [vmem:[%s1090_s1 + $0x8] sm:$0xff] (!%p313_p2)   ;;  %vm937_vm0 = vmmov (!%p313_p2), 0   ;;  %p350_p3 = scmp.lt.s32.totalorder (!%p313_p2), %s844_s14, 1  ;;  %vm380_vm1 = vcmask (!%p313_p2), 261120   ;;  %v486_v29 = vlaneseq (!%p313_p2) }
   0x6   : > { %316 = sbr.rel (%p313_p2) target bundleno = 544 (0x220), region = 60  ;;  %880 = vmatprep.subr.bf16.mxu0 (!%p313_p2), %v936_v1  ;;  %888 = vmatprep.subr.bf16.mxu1 (!%p313_p2), %v936_v1  ;;  %vm461_vm2 = vcmask (!%p313_p2), 521216   ;;  %v912_v6 = vld [vmem:[%s1096_s7] sm:$0xff] (!%p313_p2)   ;;  %v913_v7 = vld [vmem:[%s1096_s7 + $0x8] sm:$0xff] (!%p313_p2)   ;;  %v914_v8 = vld [vmem:[%s1096_s7 + $0x10] sm:$0xff] (!%p313_p2)   ;;  %vm475_vm3 = vcmask (!%p313_p2), 519168  }
   0x7   : > { %881 = vmatpush3.bf16.msra.mxu0 (!%p313_p2), %v910_v0  ;;  %884 = vmatprep.mubr.msk.bf16.mxu0 (!%p313_p2), %vm937_vm0, %v936_v1  ;;  %462 = vst.msk [vmem:[#allocation2] sm:$0x3f] (!%p313_p2), %vm461_vm2, %v936_v1  ;;  %463 = vst.msk [vmem:[#allocation2 + $0x8] sm:$0x3f] (!%p313_p2), %vm461_vm2, %v936_v1  ;;  %v915_v9 = vld [vmem:[%s1096_s7 + $0x18] sm:$0xff] (!%p313_p2)   ;;  %v487_v31 = vshrl.u32 (!%p313_p2), %v486_v29, 7 }
   0x8   : > { %882 = vmatprep.subr.bf16.mxu0 (!%p313_p2), %v936_v1  ;;  %896 = vmatprep.mubr.msk.bf16.mxu1 (!%p313_p2), %vm937_vm0, %v936_v1  ;;  %464 = vst.msk [vmem:[#allocation2 + $0x10] sm:$0x3f] (!%p313_p2), %vm461_vm2, %v936_v1  ;;  %467 = vst.msk [vmem:[#allocation2 + $0x28] sm:$0x3f] (!%p313_p2), %vm461_vm2, %v936_v1  ;;  %v856_v10 = vld [vmem:[%s1091_s2] ss:$0 sm:$0xff] (!%p313_p2) }
   0x9   : > { %465 = vst.msk [vmem:[#allocation2 + $0x18] sm:$0x3f] (!%p313_p2), %vm461_vm2, %v936_v1  ;;  %466 = vst.msk [vmem:[#allocation2 + $0x20] sm:$0x3f] (!%p313_p2), %vm461_vm2, %v936_v1  ;;  %889 = vmatpush3.bf16.msra.mxu1 (!%p313_p2), %v912_v6  ;;  %v857_v12 = vld [vmem:[%s1092_s3] ss:$0 sm:$0xff] (!%p313_p2) }
   0xa   : > { %890 = vmatprep.subr.bf16.mxu1 (!%p313_p2), %v936_v1  ;;  %v488_v32 = vsub.s32 (!%p313_p2), 0, %v487_v31  ;;  %v500_v33 = vsub.s32 (!%p313_p2), 1, %v487_v31  ;;  %v480_v34 = vld [vmem:[%s1093_s4] sm:$0xff] (!%p313_p2)  ;;  %v516_v38 = vsub.s32 (!%p313_p2), 2, %v487_v31  ;;  %v532_v53 = vsub.s32 (!%p313_p2), 3, %v487_v31 }
   0xb   : > { %883 = vmatpush3.bf16.msra.mxu0 (!%p313_p2), %v911_v2  ;;  %v548_v57 = vsub.s32 (!%p313_p2), 4, %v487_v31  ;;  %v564_v58 = vsub.s32 (!%p313_p2), 5, %v487_v31  ;;  %v581_v60 = vsub.s32 (!%p313_p2), 6, %v487_v31  ;;  %v597_v61 = vsub.s32 (!%p313_p2), 7, %v487_v31 }
   0xc   : > { %v489_v36 = vrot.slane (!%p313_p2), %v480_v34, %v488_v32  ;;  %v501_v37 = vrot.slane (!%p313_p2), %v480_v34, %v500_v33  ;;  %v517_v49 = vrot.slane (!%p313_p2), %v480_v34, %v516_v38  ;;  %v533_v59 = vrot.slane (!%p313_p2), %v480_v34, %v532_v53 }
   0xd   : > { %s1101_s14 = smov (!%p350_p3, %s844_s14), 1  ;;  %891 = vmatpush3.bf16.msra.mxu1 %v913_v7  ;;  %vm722_vm4 = vcmask 523264  }
   0xe   : > { %s870_s19 = sshll.u32 %s1101_s14, 4  ;;  %892 = vmatprep.subr.bf16.mxu1 %v936_v1  ;;  %v482_v41 = vld [vmem:[#allocation2] sm:$0xf] }
   0xf   : > { %s354_s22 = scalar_lea.vmem %s1089_s0, %s870_s19  ;;  %v494_v42 = vld [vmem:[#allocation2 + $0x1] sm:$0xf]  ;;  %v490_v47 = vmul.f32 %v489_v36, %v482_v41  ;;  %v578_v62 = vld [vmem:[#allocation2 + $0x28] sm:$0xf]  ;;  %s359_s12 = scalar_lea.vmem %s1099_s10, %s870_s19 }
  0x10   : > { %v1015_v3 = vld [vmem:[%s354_s22] sm:$0xff]  ;;  %v1017_v4 = vld [vmem:[%s354_s22 + $0x8] sm:$0xff]  ;;  %v502_v48 = vmul.f32 %v501_v37, %v494_v42 }
  0x11   : > { %v363_v5 = vpack.c.bf16 %v1017_v4, %v1015_v3  ;;  %893 = vmatpush3.bf16.msra.mxu1 %v914_v8  ;;  %v510_v52 = vld [vmem:[#allocation2 + $0x2] sm:$0xf] }
  0x12   : > { %894 = vmatprep.subr.bf16.mxu1 %v936_v1  ;;  %v506_v55 = vadd.f32 %v502_v48, %v490_v47  ;;  %v518_v56 = vmul.f32 %v517_v49, %v510_v52 }
  0x13   : > { %885 = vmatmul.mubr.msk.bf16.vlgmr.msra.gmra.mrb[0].mxu0 %vm380_vm1, %v363_v5  ;;  %v549_v5 = vrot.slane %v480_v34, %v548_v57 }
  0x14   : > { %v522_v2 = vadd.f32 %v518_v56, %v506_v55 }
  0x15   : > { %895 = vmatpush3.bf16.msra.mxu1 %v915_v9 }
  0xe6   : > { %v418_v11 = vpop.f32.mrb[0].mxu0 }
  0xe7   : > { %v432_v13 = vmul.f32 %v856_v10, %v418_v11  ;;  %v886_v14 = vpop.f32.mrb[1].mxu0  ;;  %v1047_v11 = vrot.slane %v480_v34, %v564_v58 }
  0xe8   : > { %v421_v15 = vpop.f32.mrb[2].mxu0 }
  0xe9   : > { %v441_v16 = vadd.f32 %v857_v12, %v432_v13  ;;  %v433_v17 = vmul.f32 %v856_v10, %v421_v15  ;;  %v887_v18 = vpop.f32.mrb[3].mxu0 }
  0xea   : > { %v1049_v18 = vrot.slane %v480_v34, %v597_v61 }
  0xeb   : > { %v445_v19 = vmul.f32 0.044715, %v441_v16  ;;  %v442_v20 = vadd.f32 %v857_v12, %v433_v17  ;;  %v443_v39 = vmul.f32 0.5, %v441_v16  ;;  %v582_v17 = vrot.slane %v480_v34, %v581_v60 }
  0xed   : > { %v447_v21 = vmul.f32 %v445_v19, %v441_v16  ;;  %v446_v22 = vmul.f32 0.044715, %v442_v20  ;;  %v444_v45 = vmul.f32 0.5, %v442_v20  ;;  %v1051_v31 = vmul.f32 %v582_v17, %v578_v62 }
  0xef   : > { %v449_v23 = vmul.f32 %v447_v21, %v441_v16  ;;  %v448_v24 = vmul.f32 %v446_v22, %v442_v20 }
  0xf1   : > { %v451_v25 = vadd.f32 %v449_v23, %v441_v16  ;;  %v450_v26 = vmul.f32 %v448_v24, %v442_v20 }
  0xf3   : > { %v453_v27 = vmul.f32 0.7978846, %v451_v25  ;;  %v452_v28 = vadd.f32 %v450_v26, %v442_v20 }
  0xf5   : > { %916 = vtanh.f32 %v453_v27  ;;  %v454_v30 = vmul.f32 0.7978846, %v452_v28 }
  0xf7   : > { %918 = vtanh.f32 %v454_v30 }
  0xff   : > { %v917_v35 = vpop.eup %916 }
 0x100   : > { %v457_v40 = vadd.f32 1.0, %v917_v35 }
 0x101   : > { %v919_v43 = vpop.eup %918 }
 0x102   : > { %v459_v44 = vmul.f32 %v457_v40, %v443_v39  ;;  %v458_v46 = vadd.f32 1.0, %v919_v43 }
 0x104   : > { %v470_v50 = vcombine.high %v459_v44, %v459_v44  ;;  %476 = vst.msk [vmem:[#allocation2 + $0x9] sm:$0xf] %vm475_vm3, %v459_v44  ;;  %v460_v51 = vmul.f32 %v458_v46, %v444_v45 }
 0x106   : > { %477 = vst.msk [vmem:[#allocation2 + $0x11] sm:$0xf] %vm475_vm3, %v470_v50  ;;  %v471_v54 = vcombine.high %v460_v51, %v460_v51  ;;  %478 = vst.msk [vmem:[#allocation2 + $0x19] sm:$0xf] %vm475_vm3, %v460_v51 }
 0x108   : > { %479 = vst.msk [vmem:[#allocation2 + $0x21] sm:$0xf] %vm475_vm3, %v471_v54 }
 0x10b   : > { %v483_v63 = vld [vmem:[#allocation2 + $0x8] sm:$0xf] }
 0x10c   : > { %v495_v0 = vld [vmem:[#allocation2 + $0x9] sm:$0xf]  ;;  %v491_v6 = vmul.f32 %v489_v36, %v483_v63 }
 0x10d   : > { %v511_v1 = vld [vmem:[#allocation2 + $0xa] sm:$0xf]  ;;  %v503_v7 = vmul.f32 %v501_v37, %v495_v0  ;;  %v484_v12 = vld [vmem:[#allocation2 + $0x10] sm:$0xf]  ;;  %v485_v13 = vld [vmem:[#allocation2 + $0x18] sm:$0xf] }
 0x10e   : > { %v526_v8 = vld [vmem:[#allocation2 + $0x8] sm:$0xf]  ;;  %v496_v14 = vld [vmem:[#allocation2 + $0x11] sm:$0xf]  ;;  %v519_v15 = vmul.f32 %v517_v49, %v511_v1  ;;  %v492_v19 = vmul.f32 %v489_v36, %v484_v12  ;;  %v493_v20 = vmul.f32 %v489_v36, %v485_v13  ;;  %v497_v21 = vld [vmem:[#allocation2 + $0x19] sm:$0xf] }
 0x10f   : > { %v542_v9 = vld [vmem:[#allocation2 + $0x9] sm:$0xf]  ;;  %v534_v16 = vmul.f32 %v533_v59, %v526_v8  ;;  %v504_v22 = vmul.f32 %v501_v37, %v496_v14  ;;  %v507_v23 = vadd.f32 %v503_v7, %v491_v6  ;;  %v512_v24 = vld [vmem:[#allocation2 + $0x12] sm:$0xf]  ;;  %v513_v25 = vld [vmem:[#allocation2 + $0x1a] sm:$0xf]  ;;  %v505_v26 = vmul.f32 %v501_v37, %v497_v21 }
 0x110   : > { %v558_v10 = vld [vmem:[#allocation2 + $0xa] sm:$0xf]  ;;  %v527_v27 = vld [vmem:[#allocation2 + $0x10] sm:$0xf]  ;;  %v528_v28 = vld [vmem:[#allocation2 + $0x18] sm:$0xf]  ;;  %v550_v30 = vmul.f32 %v549_v5, %v542_v9  ;;  %v520_v33 = vmul.f32 %v517_v49, %v512_v24  ;;  %v521_v41 = vmul.f32 %v517_v49, %v513_v25 }
 0x111   : > { %v538_v29 = vadd.f32 %v534_v16, %v522_v2  ;;  %v508_v32 = vadd.f32 %v504_v22, %v492_v19  ;;  %v523_v35 = vadd.f32 %v519_v15, %v507_v23  ;;  %v529_v38 = vld [vmem:[#allocation2 + $0x20] sm:$0xf]  ;;  %v535_v34 = vmul.f32 %v533_v59, %v527_v27  ;;  %v543_v39 = vld [vmem:[#allocation2 + $0x11] sm:$0xf]  ;;  %v544_v40 = vld [vmem:[#allocation2 + $0x19] sm:$0xf] }
 0x112   : > { %v509_v36 = vadd.f32 %v505_v26, %v493_v20  ;;  %v536_v42 = vmul.f32 %v533_v59, %v528_v28  ;;  %v545_v43 = vld [vmem:[#allocation2 + $0x21] sm:$0xf]  ;;  %v559_v44 = vld [vmem:[#allocation2 + $0x12] sm:$0xf]  ;;  %v566_v37 = vmul.f32 %v1047_v11, %v558_v10  ;;  %v551_v47 = vmul.f32 %v549_v5, %v543_v39  ;;  %v560_v50 = vld [vmem:[#allocation2 + $0x1a] sm:$0xf] }
 0x113   : > { %v524_v45 = vadd.f32 %v520_v33, %v508_v32  ;;  %v539_v46 = vadd.f32 %v535_v34, %v523_v35  ;;  %v554_v48 = vadd.f32 %v550_v30, %v538_v29  ;;  %v575_v51 = vld [vmem:[#allocation2 + $0x10] sm:$0xf]  ;;  %v576_v52 = vld [vmem:[#allocation2 + $0x18] sm:$0xf]  ;;  %v537_v54 = vmul.f32 %v533_v59, %v529_v38  ;;  %v561_v60 = vld [vmem:[#allocation2 + $0x22] sm:$0xf] }
 0x114   : > { %v525_v53 = vadd.f32 %v521_v41, %v509_v36  ;;  %v552_v55 = vmul.f32 %v549_v5, %v544_v40  ;;  %v567_v56 = vmul.f32 %v1047_v11, %v559_v44  ;;  %v591_v57 = vld [vmem:[#allocation2 + $0x11] sm:$0xf]  ;;  %v577_v62 = vld [vmem:[#allocation2 + $0x20] sm:$0xf]  ;;  %v583_v63 = vmul.f32 %v582_v17, %v575_v51  ;;  %v592_v0 = vld [vmem:[#allocation2 + $0x19] sm:$0xf] }
 0x115   : > { %v540_v58 = vadd.f32 %v536_v42, %v524_v45  ;;  %v555_v49 = vadd.f32 %v551_v47, %v539_v46  ;;  %v570_v61 = vadd.f32 %v566_v37, %v554_v48  ;;  %v858_v1 = vld [vmem:[%s1093_s4 + $0x8] ss:$0 sm:$0xff]  ;;  %v553_v6 = vmul.f32 %v549_v5, %v545_v43  ;;  %v607_v8 = vld [vmem:[#allocation2 + $0x12] sm:$0xf]  ;;  %v593_v13 = vld [vmem:[#allocation2 + $0x21] sm:$0xf] }
 0x116   : > { %v541_v2 = vadd.f32 %v537_v54, %v525_v53  ;;  %v568_v7 = vmul.f32 %v1047_v11, %v560_v50  ;;  %v584_v59 = vmul.f32 %v582_v17, %v576_v52  ;;  %v594_v14 = vld [vmem:[#allocation2 + $0x29] sm:$0xf]  ;;  %v599_v15 = vmul.f32 %v1049_v18, %v591_v57  ;;  %v608_v22 = vld [vmem:[#allocation2 + $0x1a] sm:$0xf]  ;;  %v609_v30 = vld [vmem:[#allocation2 + $0x22] sm:$0xf] }
 0x117   : > { %v556_v9 = vadd.f32 %v552_v55, %v540_v58  ;;  %v571_v10 = vadd.f32 %v567_v56, %v555_v49  ;;  %v587_v12 = vadd.f32 %v583_v63, %v570_v61  ;;  %v569_v19 = vmul.f32 %v1047_v11, %v561_v60  ;;  %v610_v25 = vld [vmem:[#allocation2 + $0x2a] sm:$0xf]  ;;  %v859_v32 = vld [vmem:[%s1094_s5] ss:$0 sm:$0xff] }
 0x118   : > { %v557_v16 = vadd.f32 %v553_v6, %v541_v2  ;;  %v585_v20 = vmul.f32 %v582_v17, %v577_v62  ;;  %v600_v21 = vmul.f32 %v1049_v18, %v592_v0  ;;  %v615_v26 = vmul.f32 %v858_v1, %v607_v8  ;;  %v860_v39 = vld [vmem:[%s1095_s6] ss:$0 sm:$0xff] }
 0x119   : > { %v572_v23 = vadd.f32 %v568_v7, %v556_v9  ;;  %v588_v5 = vadd.f32 %v584_v59, %v571_v10  ;;  %v603_v24 = vadd.f32 %v599_v15, %v587_v12  ;;  %v601_v28 = vmul.f32 %v1049_v18, %v593_v13 }
 0x11a   : > { %v573_v27 = vadd.f32 %v569_v19, %v557_v16  ;;  %v602_v29 = vmul.f32 %v1049_v18, %v594_v14  ;;  %v616_v33 = vmul.f32 %v858_v1, %v608_v22  ;;  %v618_v34 = vmul.f32 %v858_v1, %v610_v25 }
 0x11b   : > { %v589_v11 = vadd.f32 %v585_v20, %v572_v23  ;;  %v604_v17 = vadd.f32 %v600_v21, %v588_v5  ;;  %v619_v35 = vadd.f32 %v615_v26, %v603_v24  ;;  %v617_v36 = vmul.f32 %v858_v1, %v609_v30  ;;  %v866_v30 = vld [vmem:[%s1097_s8] ss:$0 sm:$0xff] }
 0x11c   : > { %v590_v38 = vadd.f32 %v1051_v31, %v573_v27 }
 0x11d   : > { %v605_v40 = vadd.f32 %v601_v28, %v589_v11  ;;  %v620_v41 = vadd.f32 %v616_v33, %v604_v17  ;;  %v630_v18 = vmul.f32 %v859_v32, %v619_v35  ;;  %v867_v11 = vld [vmem:[%s1098_s9] ss:$0 sm:$0xff] }
 0x11e   : > { %v606_v42 = vadd.f32 %v602_v29, %v590_v38 }
 0x11f   : > { %v621_v43 = vadd.f32 %v617_v36, %v605_v40  ;;  %v631_v44 = vmul.f32 %v859_v32, %v620_v41  ;;  %v641_v37 = vadd.f32 %v860_v39, %v630_v18 }
 0x120   : > { %v622_v45 = vadd.f32 %v618_v34, %v606_v42 }
 0x121   : > { %v632_v46 = vmul.f32 %v859_v32, %v621_v43  ;;  %v642_v47 = vadd.f32 %v860_v39, %v631_v44  ;;  %v649_v48 = vmul.f32 0.044715, %v641_v37  ;;  %v645_v21 = vmul.f32 0.5, %v641_v37 }
 0x122   : > { %v633_v50 = vmul.f32 %v859_v32, %v622_v45 }
 0x123   : > { %v643_v51 = vadd.f32 %v860_v39, %v632_v46  ;;  %v650_v31 = vmul.f32 0.044715, %v642_v47  ;;  %v653_v52 = vmul.f32 %v649_v48, %v641_v37  ;;  %v646_v14 = vmul.f32 0.5, %v642_v47 }
 0x124   : > { %v644_v53 = vadd.f32 %v860_v39, %v633_v50 }
 0x125   : > { %v651_v54 = vmul.f32 0.044715, %v643_v51  ;;  %v654_v55 = vmul.f32 %v650_v31, %v642_v47  ;;  %v657_v56 = vmul.f32 %v653_v52, %v641_v37  ;;  %v647_v19 = vmul.f32 0.5, %v643_v51 }
 0x126   : > { %v652_v57 = vmul.f32 0.044715, %v644_v53  ;;  %v648_v22 = vmul.f32 0.5, %v644_v53 }
 0x127   : > { %v655_v58 = vmul.f32 %v651_v54, %v643_v51  ;;  %v658_v49 = vmul.f32 %v654_v55, %v642_v47  ;;  %v661_v60 = vadd.f32 %v657_v56, %v641_v37 }
 0x128   : > { %v656_v61 = vmul.f32 %v652_v57, %v644_v53 }
 0x129   : > { %v659_v62 = vmul.f32 %v655_v58, %v643_v51  ;;  %v662_v63 = vadd.f32 %v658_v49, %v642_v47  ;;  %v665_v0 = vmul.f32 0.7978846, %v661_v60 }
 0x12a   : > { %v660_v1 = vmul.f32 %v656_v61, %v644_v53 }
 0x12b   : > { %v663_v2 = vadd.f32 %v659_v62, %v643_v51  ;;  %v666_v6 = vmul.f32 0.7978846, %v662_v63  ;;  %920 = vtanh.f32 %v665_v0 }
 0x12c   : > { %v664_v7 = vadd.f32 %v660_v1, %v644_v53 }
 0x12d   : > { %v667_v59 = vmul.f32 0.7978846, %v663_v2  ;;  %922 = vtanh.f32 %v666_v6 }
 0x12e   : > { %v668_v8 = vmul.f32 0.7978846, %v664_v7 }
 0x12f   : > { %924 = vtanh.f32 %v667_v59 }
 0x130   : > { %926 = vtanh.f32 %v668_v8 }
 0x135   : > { %v921_v9 = vpop.eup %920 }
 0x136   : > { %v673_v15 = vadd.f32 1.0, %v921_v9 }
 0x137   : > { %v923_v10 = vpop.eup %922 }
 0x138   : > { %v674_v12 = vadd.f32 1.0, %v923_v10  ;;  %v677_v25 = vmul.f32 %v673_v15, %v645_v21 }
 0x139   : > { %v925_v13 = vpop.eup %924 }
 0x13a   : > { %v927_v16 = vpop.eup %926  ;;  %v675_v20 = vadd.f32 1.0, %v925_v13  ;;  %v678_v5 = vmul.f32 %v674_v12, %v646_v14 }
 0x13b   : > { %v676_v23 = vadd.f32 1.0, %v927_v16 }
 0x13c   : > { %v679_v24 = vmul.f32 %v675_v20, %v647_v19  ;;  %v685_v27 = vcombine.low %v677_v25, %v678_v5 }
 0x13d   : > { %v680_v26 = vmul.f32 %v676_v23, %v648_v22 }
 0x13f   : > { %v686_v28 = vcombine.low %v679_v24, %v680_v26 }
 0x141   : > { %v689_v29 = vpack.c.bf16 %v686_v28, %v685_v27 }
 0x143   : > { %897 = vmatmul.mubr.msk.bf16.vlgmr.msra.gmra.mrb[0].mxu1 %vm722_vm4, %v689_v29 }
 0x216   : > { %v760_v32 = vpop.f32.mrb[0].mxu1 }
 0x217   : > { %v774_v17 = vmul.f32 %v866_v30, %v760_v32  ;;  %v898_v33 = vpop.f32.mrb[1].mxu1 }
 0x218   : > { %v763_v35 = vpop.f32.mrb[2].mxu1 }
 0x219   : > { %v783_v38 = vadd.f32 %v867_v11, %v774_v17  ;;  %v775_v34 = vmul.f32 %v866_v30, %v763_v35  ;;  %v899_v39 = vpop.f32.mrb[3].mxu1 }
 0x21b   : > { %v785_v40 = vadd.f32 %v783_v38, %v1015_v3  ;;  %v784_v36 = vadd.f32 %v867_v11, %v775_v34 }
 0x21d   : > { %787 = vst.msk [vmem:[%s359_s12] sm:$0xff] %vm380_vm1, %v785_v40  ;;  %v786_v41 = vadd.f32 %v784_v36, %v1017_v4 }
 0x21f   : > { %788 = vst.msk [vmem:[%s359_s12 + $0x8] sm:$0xff] %vm380_vm1, %v786_v41 }
 0x220 PF: > { %s20_s13 = sadd.s32 1, %s934_s13  }
 0x221   : > { %p17_p4 = scmp.ge.s32.totalorder %s20_s13, 4  }
 0x223   :  { %19 = sbr.rel (!%p17_p4) target bundleno = 1 (0x1), region = 92 }

// kernel: convnet_forward.19
= control target key start
LH: loop header
LB: loop body
LE: loop exit
PB: predicated region body
PF: predicated region fallthrough
CT: control target
= control target key end

     0   :  { %vm24_vm0 = vcmask 519168   ;;  %s336_s0 = inlined_call_operand.vmem [shape: f32[2,4,64], index: 0, kind: input, shape index: {}]   ;;  %s337_s1 = inlined_call_operand.vmem [shape: f32[1,64], index: 1, kind: input, shape index: {}]   ;;  %s338_s2 = inlined_call_operand.vmem [shape: f32[1,64], index: 2, kind: input, shape index: {}]   ;;  %s339_s3 = inlined_call_operand.vmem [shape: bf16[64,10], index: 3, kind: input, shape index: {}]   ;;  %s340_s4 = inlined_call_operand.vmem [shape: f32[1,10], index: 4, kind: input, shape index: {}]   ;;  %s341_s5 = inlined_call_operand.hbm [shape: f32[2,10], index: 5, kind: output, shape index: {}]  }
   0x1   :  { %v22_v0 = vld [vmem:[%s336_s0] sm:$0xf]  ;;  %v23_v1 = vld [vmem:[%s336_s0 + $0x4] sm:$0xf] }
   0x2   :  { %v25_v2 = vsel %vm24_vm0, %v22_v0, 0.0  ;;  %v32_v3 = vsel %vm24_vm0, %v23_v1, 0.0 }
   0x3   :  { %v26_v4 = vrot.slane %v25_v2, 4  ;;  %v33_v5 = vrot.slane %v32_v3, 4 }
   0x5   :  { %v27_v6 = vadd.f32 %v26_v4, %v25_v2  ;;  %v34_v7 = vadd.f32 %v33_v5, %v32_v3 }
   0x6   :  { %10 = vsyncpa [#allocation3], 0  ;;  %vm43_vm1 = vcmask 1041409   ;;  %vm46_vm2 = vcmask 517120   ;;  %v231_v30 = vld [vmem:[%s339_s3] sm:$0xff]   ;;  %v261_v31 = vmov 0.0  }
   0x7   :  { %v28_v8 = vrot.slane %v27_v6, 2  ;;  %v35_v9 = vrot.slane %v34_v7, 2  ;;  %216 = vmatprep.subr.bf16.mxu0 %v261_v31  ;;  %v232_v32 = vld [vmem:[%s339_s3 + $0x8] sm:$0xff]   ;;  %vm262_vm3 = vmmov 0   ;;  %v233_v33 = vld [vmem:[%s339_s3 + $0x10] sm:$0xff]   ;;  %v234_v34 = vld [vmem:[%s339_s3 + $0x18] sm:$0xff]  }
   0x8   :  { %217 = vmatpush3.bf16.msra.mxu0 %v231_v30  ;;  %224 = vmatprep.mubr.msk.bf16.mxu0 %vm262_vm3, %v261_v31  ;;  %v203_v39 = vld [vmem:[%s337_s1] ss:$0 sm:$0xff]  ;;  %vm143_vm4 = vcmask 523264   ;;  %vm187_vm5 = vcmask 74752  }
   0x9   :  { %v29_v10 = vadd.f32 %v28_v8, %v27_v6  ;;  %v36_v11 = vadd.f32 %v35_v9, %v34_v7  ;;  %218 = vmatprep.subr.bf16.mxu0 %v261_v31  ;;  %v204_v42 = vld [vmem:[%s338_s2] ss:$0 sm:$0xff]  ;;  %s263_s2 = smov [#allocation2]  }
   0xa   :  { %v205_v55 = vld [vmem:[%s340_s4] ss:$0 sm:$0xff]  ;;  %s195_s8 = sshll.u32 %s263_s2, 4  ;;  %s196_s8 = int_to_ptr.vmem [resolvable:$true] %s195_s8 }
   0xb   :  { %v30_v12 = vrot.slane %v29_v10, 1  ;;  %v37_v13 = vrot.slane %v36_v11, 1  ;;  %s237_s9 = scalar_lea.vmem %s196_s8, 32  ;;  %p242_p1 = scmp.lt.s32.totalorder %s196_s8, %s196_s8 }
   0xc   :  { %219 = vmatpush3.bf16.msra.mxu0 %v232_v32  ;;  %p238_p0 = scmp.ne.s32.totalorder %s196_s8, %s237_s9  ;;  %p243_p2 = scmp.lt.s32.totalorder %s237_s9, %s237_s9 }
   0xd   :  { %v31_v14 = vadd.f32 %v30_v12, %v29_v10  ;;  %v38_v15 = vadd.f32 %v37_v13, %v36_v11  ;;  %220 = vmatprep.subr.bf16.mxu0 %v261_v31 }
   0xe   :  { %p244_p3 = por %p243_p2, %p242_p1 }
   0xf   :  { %v39_v16 = vmul.f32 0.25, %v31_v14  ;;  %v40_v17 = vmul.f32 0.25, %v38_v15 }
  0x10   :  { %221 = vmatpush3.bf16.msra.mxu0 %v233_v33  ;;  %p245_p4 = pnand %p244_p3, %p238_p0 }
  0x11   :  { %v44_v18 = vsel %vm43_vm1, %v40_v17, %v39_v16  ;;  %222 = vmatprep.subr.bf16.mxu0 %v261_v31 }
  0x12   :  { %v47_v19 = vsel %vm46_vm2, %v44_v18, 0.0 }
  0x13   :  { %48 = vadd.xlane.f32.xlu0 %v47_v19 }
  0x14   :  { %223 = vmatpush3.bf16.msra.mxu0 %v234_v34 }
  0xa0   :  { %v49_v20 = vpop.xlane.xlu0 %48 }
  0xa1   :  { %v51_v21 = vmul.f32 0.015625, %v49_v20 }
  0xa3   :  { %v53_v22 = vrot.slane %v51_v21, 1  ;;  %v56_v23 = vsub.f32 %v39_v16, %v51_v21 }
  0xa5   :  { %v57_v24 = vsub.f32 %v40_v17, %v53_v22  ;;  %v58_v26 = vmul.f32 %v56_v23, %v56_v23 }
  0xa7   :  { %v59_v25 = vmul.f32 %v57_v24, %v57_v24 }
  0xa9   :  { %v62_v27 = vrot.slane %v59_v25, 7 }
  0xab   :  { %v63_v28 = vsel %vm43_vm1, %v62_v27, %v58_v26 }
  0xac   :  { %v65_v29 = vsel %vm46_vm2, %v63_v28, 0.0 }
  0xad   :  { %66 = vadd.xlane.f32.xlu0 %v65_v29 }
 0x13a   :  { %v67_v35 = vpop.xlane.xlu0 %66 }
 0x13b   :  { %v68_v36 = vmul.f32 0.015625, %v67_v35 }
 0x13d   :  { %v69_v37 = vadd.f32 1e-05, %v68_v36 }
 0x13f   :  { %235 = vrsqrt.f32 %v69_v37 }
 0x149   :  { %v236_v38 = vpop.eup %235 }
 0x14a   :  { %v72_v40 = vrot.slane %v236_v38, 1  ;;  %v75_v41 = vmul.f32 %v236_v38, %v56_v23 }
 0x14c   :  { %v76_v43 = vmul.f32 %v72_v40, %v57_v24  ;;  %v84_v44 = vmul.f32 %v203_v39, %v75_v41 }
 0x14e   :  { %v85_v45 = vmul.f32 %v203_v39, %v76_v43  ;;  %v93_v46 = vadd.f32 %v204_v42, %v84_v44 }
 0x150   :  { %v94_v47 = vadd.f32 %v204_v42, %v85_v45  ;;  %v95_v48 = vpack.c.bf16 %v93_v46, %v93_v46 }
 0x152   :  { %v96_v49 = vpack.c.bf16 %v94_v47, %v94_v47  ;;  %v114_v51 = vunpack.c.l.b16 %v95_v48 }
 0x154   :  { %v115_v50 = vunpack.c.l.b16 %v96_v49 }
 0x156   :  { %v116_v52 = vrot.slane %v115_v50, 7 }
 0x158   :  { %v117_v53 = vsel %vm43_vm1, %v116_v52, %v114_v51 }
 0x159   :  { %v118_v54 = vpack.c.b16 %v117_v53, %v117_v53 }
 0x15b   :  { %225 = vmatmul.mubr.msk.bf16.vlgmr.msra.gmra.mrb[0].mxu0 %vm143_vm4, %v118_v54 }
 0x22e   :  { %v181_v56 = vpop.f32.mrb[0].mxu0 }
 0x22f   :  { %v182_v57 = vadd.f32 %v205_v55, %v181_v56  ;;  %v226_v58 = vpop.f32.mrb[1].mxu0 }
 0x230   :  { %v184_v59 = vpop.f32.mrb[2].mxu0 }
 0x231   :  { %v227_v60 = vpop.f32.mrb[3].mxu0  ;;  %188 = vst.msk [vmem:[#allocation2] sm:$0x3] %vm187_vm5, %v182_v57 }
 0x232   :  { %248 = shalt.err (!%p245_p4)
}
 0x233   :  { %s249_s4 = scalar_lea.hbm %s341_s5, 32 }
 0x234   :  { %p250_p5 = scmp.ne.s32.totalorder %s341_s5, %s249_s4  ;;  %p253_p6 = scmp.lt.u32.totalorder %s249_s4, %s341_s5 }
 0x236   :  { %p255_p7 = pnand %p253_p6, %p250_p5 }
 0x238   :  { %258 = shalt.err (!%p255_p7)
}
 0x239   :  { %198 = dma.vmem_to_hbm [thread:$0]  %s196_s8, 32, %s341_s5, [#allocation3]  }
 0x23a   :  { %259 = dma.done.wait [#allocation3], 32  }
 0x23b   :  { %260 = vsyncadd [#allocation3], 4294967264 }
 0x23c   :  { %202 = vsyncpa [#allocation3], 1 }

</bundles_post_ra>
